<compile_context>
chip_gen: v7x
topology: tpu7x:2x2x1
jax: 0.10.0
libtpu: 0.0.40
codegen_flags: <defaults>
</compile_context>

<pallas_src>
import functools

import jax
import jax.numpy as jnp
from jax import lax
from jax.experimental import pallas as pl
from jax.experimental.pallas import tpu as pltpu


# ----------------------------- fused Pallas kernel ---------------------------

def _ctran_fused_kernel(x_ref, convw_ref, convb_ref, lemb_ref, ln0_ref, mask_ref,
                        wqkv_ref, bqkv_ref, wo_ref, w1_ref, w2_ref, vecs_ref,
                        outw_ref, outb_ref, eye_ref, o_ref,
                        *, num_heads, num_labels, num_layers, batch_per_step,
                        seq, eps):
    D = lemb_ref.shape[-1]
    dh = D // num_heads
    n = num_labels
    Bg = batch_per_step
    S = seq
    L = S + n
    BL = Bg * L
    scale = 1.0 / float(dh) ** 0.5

    # ---- backbone stand-in tail: 1x1 conv (BN folded) + ReLU on the VPU
    # (K = 3 contraction would waste >97% of an MXU push; 3 broadcast FMAs instead)
    x = x_ref[...]                                               # (Bg*S, C) f32
    feat = convb_ref[...]                                        # (1, D) -> broadcasts
    for c in range(x.shape[-1]):
        feat = feat + x[:, c:c + 1] * convw_ref[c:c + 1, :]
    feat = jnp.maximum(feat, 0.0)                                # (Bg*S, D)

    # ---- per-batch [image tokens ++ label embeddings], folded into one row slab
    pieces = []
    for b in range(Bg):
        pieces.append(feat[b * S:(b + 1) * S, :])                # (S, D)
        pieces.append(lemb_ref[...])                             # (n, D)
    tokens = jnp.concatenate(pieces, axis=0)                     # (BL, D)

    def ln(z, g, b):
        # one-pass stats: the two lane reductions are independent -> overlap in XLU
        m = jnp.mean(z, axis=-1, keepdims=True)
        m2 = jnp.mean(z * z, axis=-1, keepdims=True)
        return (z - m) * lax.rsqrt((m2 - m * m) + eps) * g + b

    emb = ln(tokens, ln0_ref[0:1, :], ln0_ref[1:2, :])
    amask = mask_ref[...]               # (BL, BL) block-diag additive mask (0 / -1e30)

    # ---- post-LN transformer encoder layers (statically unrolled, eval mode)
    for l in range(num_layers):
        vecs = vecs_ref[l]              # (8, D) rows: bo,b1,b2,g1,be1,g2,be2,pad
        xb = emb.astype(jnp.bfloat16)

        attn = jnp.zeros((BL, D), jnp.float32)
        for h in range(num_heads):
            # per-head fused [q|k|v] projection: (BL, D) @ (D, 3*dh)
            qkv = jnp.dot(xb, wqkv_ref[l, h],
                          preferred_element_type=jnp.float32) + bqkv_ref[l, h]
            q = qkv[:, :dh]
            k = qkv[:, dh:2 * dh]
            v = qkv[:, 2 * dh:]
            s = lax.dot_general(q, k, (((1,), (1,)), ((), ())),
                                preferred_element_type=jnp.float32) * scale + amask
            s = s - jnp.max(s, axis=-1, keepdims=True)
            p = jnp.exp(s)
            p = p * pl.reciprocal(jnp.sum(p, axis=-1, keepdims=True), approx=False)
            ctx = jnp.dot(p.astype(jnp.bfloat16), v.astype(jnp.bfloat16),
                          preferred_element_type=jnp.float32)    # (BL, dh)
            # accumulate per-head output projections (no lane concatenate)
            attn = attn + jnp.dot(ctx.astype(jnp.bfloat16), wo_ref[l, h],
                                  preferred_element_type=jnp.float32)

        src = ln(emb + attn + vecs[0:1, :], vecs[3:4, :], vecs[4:5, :])
        ff = jnp.maximum(
            jnp.dot(src.astype(jnp.bfloat16), w1_ref[l],
                    preferred_element_type=jnp.float32) + vecs[1:2, :], 0.0)
        ff = jnp.dot(ff.astype(jnp.bfloat16), w2_ref[l],
                     preferred_element_type=jnp.float32) + vecs[2:3, :]
        emb = ln(src + ff, vecs[5:6, :], vecs[6:7, :])

    # ---- label head: diag(label_emb @ W^T) + b  with a precomputed eye mask.
    # out_w stays lane-dense (n, D); diag extracted via eye-mask + sublane sum so
    # the per-batch logits land directly in lane layout.
    rows = []
    for b in range(Bg):
        le_b = emb[b * L + S:(b + 1) * L, :]                     # (n, D)
        fb = lax.dot_general(le_b, outw_ref[...], (((1,), (1,)), ((), ())),
                             preferred_element_type=jnp.float32)  # (n, n)
        rows.append(jnp.sum(fb * eye_ref[...], axis=0, keepdims=True))   # (1, n)
    logits = jnp.concatenate(rows, axis=0) + outb_ref[...]       # (Bg, n)
    # TODO(synk): output last dim is num_labels (=8); padding it to 128 lanes would
    # make the store unmasked but the payload is tiny, so it is left as-is.
    o_ref[0] = logits


def ctran_forward(params, images, *, num_labels, heads, layers, pool,
                  eps=1e-5, grid_splits=None):
    B, C, H, W = images.shape
    Hf, Wf = H // pool, W // pool
    S = Hf * Wf

    # Tiny average-pool stand-in for the unavailable spatial backbone, converted
    # to channels-last rows (B*S, C) for the fused kernel.
    pooled = images.reshape(B, C, Hf, pool, Wf, pool).mean(axis=(3, 5))
    x = pooled.transpose(0, 2, 3, 1).reshape(B * S, C)

    # Fold the whole batch into the matmul rows of a single grid step.  On v7x,
    # when B >= 4, split into 2 parallel steps so both TensorCores stay busy.
    if grid_splits is None:
        grid_splits = 2 if (B % 2 == 0 and B >= 4) else 1
    assert B % grid_splits == 0
    Bg = B // grid_splits
    L = S + num_labels
    BL = Bg * L

    # Block-diagonal additive attention mask (constant folded by XLA under jit):
    # tokens of different batches must not attend to each other after folding.
    bid = jnp.arange(BL, dtype=jnp.int32) // L
    amask = jnp.where(bid[:, None] == bid[None, :], 0.0, -1e30).astype(jnp.float32)

    kern = functools.partial(_ctran_fused_kernel, num_heads=heads,
                             num_labels=num_labels, num_layers=layers,
                             batch_per_step=Bg, seq=S, eps=eps)

    def full(shape):
        z = (0,) * len(shape)
        return pl.BlockSpec(shape, lambda g, _z=z: _z)

    out = pl.pallas_call(
        kern,
        out_shape=jax.ShapeDtypeStruct((grid_splits, Bg, num_labels), jnp.float32),
        grid=(grid_splits,),
        in_specs=[
            pl.BlockSpec((Bg * S, C), lambda g: (g, 0)),     # image tokens
            full(params["conv_w"].shape),
            full(params["conv_b"].shape),
            full(params["label_emb"].shape),
            full(params["ln0"].shape),
            full(amask.shape),
            full(params["wqkv"].shape),
            full(params["bqkv"].shape),
            full(params["wo"].shape),
            full(params["w1"].shape),
            full(params["w2"].shape),
            full(params["vecs"].shape),
            full(params["out_w"].shape),
            full(params["out_b"].shape),
            full(params["eye"].shape),
        ],
        out_specs=pl.BlockSpec((1, Bg, num_labels), lambda g: (g, 0, 0)),
        compiler_params=pltpu.CompilerParams(dimension_semantics=("parallel",)),
    )(x, params["conv_w"], params["conv_b"], params["label_emb"], params["ln0"],
      amask, params["wqkv"], params["bqkv"], params["wo"], params["w1"],
      params["w2"], params["vecs"], params["out_w"], params["out_b"],
      params["eye"])
    return out.reshape(B, num_labels)


# ------------------------------- model wrapper --------------------------------

class CTranModelPallas:
    """CTranModel forward pass as one fused Pallas kernel."""

    def __init__(self, num_labels, hidden=128, heads=4, layers=3,
                 img_channels=3, pool=8, key=None):
        assert hidden % heads == 0
        if key is None:
            key = jax.random.PRNGKey(0)
        self.num_labels = num_labels
        self.hidden = hidden
        self.heads = heads
        self.layers = layers
        self.pool = pool

        dh = hidden // heads
        dff = hidden          # TODO(synk): torch default dim_feedforward=2048
        counter = [0]

        def nrm(shape, std=0.02):
            counter[0] += 1
            k = jax.random.fold_in(key, counter[0])
            return (std * jax.random.normal(k, shape)).astype(jnp.float32)

        eps = 1e-5
        p = {}

        # Backbone stand-in: 1x1 conv (no bias) with identity-init BN folded in.
        bn_scale = 1.0 / (1.0 + eps) ** 0.5
        p["conv_w"] = nrm((img_channels, hidden), std=0.1) * bn_scale
        p["conv_b"] = jnp.zeros((1, hidden), jnp.float32)

        # label_lt embedding table and initial LayerNorm (row0=gamma, row1=beta).
        p["label_emb"] = nrm((num_labels, hidden))
        p["ln0"] = jnp.concatenate(
            [jnp.ones((1, hidden), jnp.float32),
             jnp.zeros((1, hidden), jnp.float32)], axis=0)

        # SelfAttnLayer stack: per-head [q|k|v] slabs and per-head out-proj slabs.
        wqkv, bqkv, wo, w1, w2, vecs = [], [], [], [], [], []
        for _ in range(layers):
            wq, wk, wv = nrm((hidden, hidden)), nrm((hidden, hidden)), nrm((hidden, hidden))
            per_head = []
            for h in range(heads):
                sl = slice(h * dh, (h + 1) * dh)
                per_head.append(jnp.concatenate([wq[:, sl], wk[:, sl], wv[:, sl]], axis=1))
            wqkv.append(jnp.stack(per_head))                     # (heads, D, 3*dh)
            bqkv.append(jnp.zeros((heads, 1, 3 * dh), jnp.float32))
            wo_full = nrm((hidden, hidden))
            wo.append(jnp.stack([wo_full[h * dh:(h + 1) * dh, :]
                                 for h in range(heads)]))        # (heads, dh, D)
            w1.append(nrm((hidden, dff)))
            w2.append(nrm((dff, hidden)))
            v = jnp.zeros((8, hidden), jnp.float32)
            v = v.at[3].set(1.0).at[5].set(1.0)  # rows: bo,b1,b2,g1,be1,g2,be2,pad
            vecs.append(v)
        p["wqkv"] = jnp.stack(wqkv).astype(jnp.bfloat16)         # (L, H, D, 3*dh)
        p["bqkv"] = jnp.stack(bqkv)                              # (L, H, 1, 3*dh)
        p["wo"] = jnp.stack(wo).astype(jnp.bfloat16)             # (L, H, dh, D)
        p["w1"] = jnp.stack(w1).astype(jnp.bfloat16)
        p["w2"] = jnp.stack(w2).astype(jnp.bfloat16)
        p["vecs"] = jnp.stack(vecs)

        # output_linear: torch layout (num_labels, hidden), kept lane-dense.
        p["out_w"] = nrm((num_labels, hidden))
        p["out_b"] = jnp.zeros((1, num_labels), jnp.float32)
        p["eye"] = jnp.eye(num_labels, dtype=jnp.float32)        # precomputed diag mask

        self.params = p
        self._forward = jax.jit(functools.partial(
            ctran_forward, num_labels=num_labels, heads=heads,
            layers=layers, pool=pool))

    def __call__(self, images, mask=None):
        # mask only matters when use_lmt=True (not exercised here).
        return self._forward(self.params, images)


# ------------------------------------ main ------------------------------------

if __name__ == "__main__":
    key = jax.random.PRNGKey(0)
    k_img, k_model = jax.random.split(key)

    num_labels = 8
    images = jax.random.normal(k_img, (2, 3, 32, 32), dtype=jnp.float32)  # NCHW

    model = CTranModelPallas(num_labels=num_labels, hidden=128, heads=4,
                             layers=3, img_channels=3, pool=8, key=k_model)

    out = model(images)
    out = jax.block_until_ready(out)
    assert out.shape == (2, num_labels), out.shape
    assert bool(jnp.all(jnp.isfinite(out)))
    print("KERNEL_OK")
</pallas_src>

<mosaic_0001>
module attributes {stable_mosaic.version = 11 : i64} {
  func.func @_ctran_fused_kernel(%arg0: i32, %arg1: memref<32x3xf32, #tpu.memory_space<vmem>>, %arg2: memref<3x128xf32, #tpu.memory_space<vmem>>, %arg3: memref<1x128xf32, #tpu.memory_space<vmem>>, %arg4: memref<8x128xf32, #tpu.memory_space<vmem>>, %arg5: memref<2x128xf32, #tpu.memory_space<vmem>>, %arg6: memref<48x48xf32, #tpu.memory_space<vmem>>, %arg7: memref<3x4x128x96xbf16, #tpu.memory_space<vmem>>, %arg8: memref<3x4x1x96xf32, #tpu.memory_space<vmem>>, %arg9: memref<3x4x32x128xbf16, #tpu.memory_space<vmem>>, %arg10: memref<3x128x128xbf16, #tpu.memory_space<vmem>>, %arg11: memref<3x128x128xbf16, #tpu.memory_space<vmem>>, %arg12: memref<3x8x128xf32, #tpu.memory_space<vmem>>, %arg13: memref<8x128xf32, #tpu.memory_space<vmem>>, %arg14: memref<1x8xf32, #tpu.memory_space<vmem>>, %arg15: memref<8x8xf32, #tpu.memory_space<vmem>>, %arg16: memref<1x2x8xf32, #tpu.memory_space<vmem>>) attributes {dimension_semantics = [#tpu.dimension_semantics<parallel>], iteration_bounds = array<i64: 1>, scalar_prefetch = 0 : i64, scratch_operands = 0 : i64, tpu.core_type = #tpu.core_type<tc>, window_params = [{transform_indices = @transform_0, window_bounds = array<i64: 32, 3>}, {pipeline_mode = #tpu.pipeline_mode<synchronous>, transform_indices = @transform_1, window_bounds = array<i64: 3, 128>}, {pipeline_mode = #tpu.pipeline_mode<synchronous>, transform_indices = @transform_2, window_bounds = array<i64: 1, 128>}, {pipeline_mode = #tpu.pipeline_mode<synchronous>, transform_indices = @transform_3, window_bounds = array<i64: 8, 128>}, {pipeline_mode = #tpu.pipeline_mode<synchronous>, transform_indices = @transform_4, window_bounds = array<i64: 2, 128>}, {pipeline_mode = #tpu.pipeline_mode<synchronous>, transform_indices = @transform_5, window_bounds = array<i64: 48, 48>}, {pipeline_mode = #tpu.pipeline_mode<synchronous>, transform_indices = @transform_6, window_bounds = array<i64: 3, 4, 128, 96>}, {pipeline_mode = #tpu.pipeline_mode<synchronous>, transform_indices = @transform_7, window_bounds = array<i64: 3, 4, 1, 96>}, {pipeline_mode = #tpu.pipeline_mode<synchronous>, transform_indices = @transform_8, window_bounds = array<i64: 3, 4, 32, 128>}, {pipeline_mode = #tpu.pipeline_mode<synchronous>, transform_indices = @transform_9, window_bounds = array<i64: 3, 128, 128>}, {pipeline_mode = #tpu.pipeline_mode<synchronous>, transform_indices = @transform_10, window_bounds = array<i64: 3, 128, 128>}, {pipeline_mode = #tpu.pipeline_mode<synchronous>, transform_indices = @transform_11, window_bounds = array<i64: 3, 8, 128>}, {pipeline_mode = #tpu.pipeline_mode<synchronous>, transform_indices = @transform_12, window_bounds = array<i64: 8, 128>}, {pipeline_mode = #tpu.pipeline_mode<synchronous>, transform_indices = @transform_13, window_bounds = array<i64: 1, 8>}, {pipeline_mode = #tpu.pipeline_mode<synchronous>, transform_indices = @transform_14, window_bounds = array<i64: 8, 8>}, {transform_indices = @transform_15, window_bounds = array<i64: 1, 2, 8>}]} {
    %c0 = arith.constant 0 : index
    %c0_0 = arith.constant 0 : index
    %0 = vector.load %arg1[%c0, %c0_0] : memref<32x3xf32, #tpu.memory_space<vmem>>, vector<32x3xf32>
    %c0_1 = arith.constant 0 : index
    %c0_2 = arith.constant 0 : index
    %1 = vector.load %arg3[%c0_1, %c0_2] : memref<1x128xf32, #tpu.memory_space<vmem>>, vector<1x128xf32>
    %2 = vector.extract_strided_slice %0 {offsets = [0, 0], sizes = [32, 1], strides = [1, 1]} : vector<32x3xf32> to vector<32x1xf32>
    %c0_3 = arith.constant 0 : index
    %c0_4 = arith.constant 0 : index
    %3 = vector.load %arg2[%c0_3, %c0_4] : memref<3x128xf32, #tpu.memory_space<vmem>>, vector<1x128xf32>
    %4 = vector.broadcast %2 : vector<32x1xf32> to vector<32x128xf32>
    %5 = vector.broadcast %3 : vector<1x128xf32> to vector<32x128xf32>
    %6 = arith.mulf %4, %5 : vector<32x128xf32>
    %7 = vector.broadcast %1 : vector<1x128xf32> to vector<32x128xf32>
    %8 = arith.addf %7, %6 : vector<32x128xf32>
    %9 = vector.extract_strided_slice %0 {offsets = [0, 1], sizes = [32, 1], strides = [1, 1]} : vector<32x3xf32> to vector<32x1xf32>
    %c1 = arith.constant 1 : index
    %c0_5 = arith.constant 0 : index
    %10 = vector.load %arg2[%c1, %c0_5] : memref<3x128xf32, #tpu.memory_space<vmem>>, vector<1x128xf32>
    %11 = vector.broadcast %9 : vector<32x1xf32> to vector<32x128xf32>
    %12 = vector.broadcast %10 : vector<1x128xf32> to vector<32x128xf32>
    %13 = arith.mulf %11, %12 : vector<32x128xf32>
    %14 = arith.addf %8, %13 : vector<32x128xf32>
    %15 = vector.extract_strided_slice %0 {offsets = [0, 2], sizes = [32, 1], strides = [1, 1]} : vector<32x3xf32> to vector<32x1xf32>
    %c2 = arith.constant 2 : index
    %c0_6 = arith.constant 0 : index
    %16 = vector.load %arg2[%c2, %c0_6] : memref<3x128xf32, #tpu.memory_space<vmem>>, vector<1x128xf32>
    %17 = vector.broadcast %15 : vector<32x1xf32> to vector<32x128xf32>
    %18 = vector.broadcast %16 : vector<1x128xf32> to vector<32x128xf32>
    %19 = arith.mulf %17, %18 : vector<32x128xf32>
    %20 = arith.addf %14, %19 : vector<32x128xf32>
    %cst = arith.constant 0.000000e+00 : f32
    %21 = vector.broadcast %cst : f32 to vector<32x128xf32>
    %22 = arith.maximumf %20, %21 : vector<32x128xf32>
    %23 = vector.extract_strided_slice %22 {offsets = [0, 0], sizes = [16, 128], strides = [1, 1]} : vector<32x128xf32> to vector<16x128xf32>
    %c0_7 = arith.constant 0 : index
    %c0_8 = arith.constant 0 : index
    %24 = vector.load %arg4[%c0_7, %c0_8] : memref<8x128xf32, #tpu.memory_space<vmem>>, vector<8x128xf32>
    %25 = vector.extract_strided_slice %22 {offsets = [16, 0], sizes = [16, 128], strides = [1, 1]} : vector<32x128xf32> to vector<16x128xf32>
    %c0_9 = arith.constant 0 : index
    %c0_10 = arith.constant 0 : index
    %26 = vector.load %arg4[%c0_9, %c0_10] : memref<8x128xf32, #tpu.memory_space<vmem>>, vector<8x128xf32>
    %27 = tpu.concatenate %23, %24, %25, %26 in 0 : vector<16x128xf32>, vector<8x128xf32>, vector<16x128xf32>, vector<8x128xf32> -> vector<48x128xf32>
    %c0_11 = arith.constant 0 : index
    %c0_12 = arith.constant 0 : index
    %28 = vector.load %arg5[%c0_11, %c0_12] : memref<2x128xf32, #tpu.memory_space<vmem>>, vector<1x128xf32>
    %c1_13 = arith.constant 1 : index
    %c0_14 = arith.constant 0 : index
    %29 = vector.load %arg5[%c1_13, %c0_14] : memref<2x128xf32, #tpu.memory_space<vmem>>, vector<1x128xf32>
    %cst_15 = arith.constant dense<0.000000e+00> : vector<48xf32>
    %30 = vector.multi_reduction <add>, %27, %cst_15 [1] : vector<48x128xf32> to vector<48xf32>
    %31 = vector.shape_cast %30 : vector<48xf32> to vector<48x1xf32>
    %cst_16 = arith.constant 1.280000e+02 : f32
    %32 = vector.broadcast %cst_16 : f32 to vector<48x1xf32>
    %33 = arith.divf %31, %32 : vector<48x1xf32>
    %34 = arith.mulf %27, %27 : vector<48x128xf32>
    %cst_17 = arith.constant dense<0.000000e+00> : vector<48xf32>
    %35 = vector.multi_reduction <add>, %34, %cst_17 [1] : vector<48x128xf32> to vector<48xf32>
    %36 = vector.shape_cast %35 : vector<48xf32> to vector<48x1xf32>
    %cst_18 = arith.constant 1.280000e+02 : f32
    %37 = vector.broadcast %cst_18 : f32 to vector<48x1xf32>
    %38 = arith.divf %36, %37 : vector<48x1xf32>
    %39 = vector.broadcast %33 : vector<48x1xf32> to vector<48x128xf32>
    %40 = arith.subf %27, %39 : vector<48x128xf32>
    %41 = arith.mulf %33, %33 : vector<48x1xf32>
    %42 = arith.subf %38, %41 : vector<48x1xf32>
    %cst_19 = arith.constant 9.99999974E-6 : f32
    %43 = vector.broadcast %cst_19 : f32 to vector<48x1xf32>
    %44 = arith.addf %42, %43 : vector<48x1xf32>
    %45 = math.rsqrt %44 : vector<48x1xf32>
    %46 = vector.broadcast %45 : vector<48x1xf32> to vector<48x128xf32>
    %47 = arith.mulf %40, %46 : vector<48x128xf32>
    %48 = vector.broadcast %28 : vector<1x128xf32> to vector<48x128xf32>
    %49 = arith.mulf %47, %48 : vector<48x128xf32>
    %50 = vector.broadcast %29 : vector<1x128xf32> to vector<48x128xf32>
    %51 = arith.addf %49, %50 : vector<48x128xf32>
    %c0_20 = arith.constant 0 : index
    %c0_21 = arith.constant 0 : index
    %52 = vector.load %arg6[%c0_20, %c0_21] : memref<48x48xf32, #tpu.memory_space<vmem>>, vector<48x48xf32>
    %c0_22 = arith.constant 0 : index
    %c0_23 = arith.constant 0 : index
    %c0_24 = arith.constant 0 : index
    %53 = vector.load %arg12[%c0_22, %c0_23, %c0_24] : memref<3x8x128xf32, #tpu.memory_space<vmem>>, vector<1x8x128xf32>
    %54 = vector.shape_cast %53 : vector<1x8x128xf32> to vector<8x128xf32>
    %55 = arith.truncf %51 : vector<48x128xf32> to vector<48x128xbf16>
    %cst_25 = arith.constant 0.000000e+00 : f32
    %56 = vector.broadcast %cst_25 : f32 to vector<48x128xf32>
    %c0_26 = arith.constant 0 : index
    %c0_27 = arith.constant 0 : index
    %c0_28 = arith.constant 0 : index
    %c0_29 = arith.constant 0 : index
    %57 = vector.load %arg7[%c0_26, %c0_27, %c0_28, %c0_29] : memref<3x4x128x96xbf16, #tpu.memory_space<vmem>>, vector<1x1x128x96xbf16>
    %58 = vector.shape_cast %57 : vector<1x1x128x96xbf16> to vector<128x96xbf16>
    %cst_30 = arith.constant dense<0.000000e+00> : vector<48x96xf32>
    %59 = tpu.matmul %55, %58, %cst_30 {dimension_numbers = #tpu.dot_dimension_numbers<[1], [0], [0], [1], [0, 0, 1, 1], [], []>} : vector<48x128xbf16>, vector<128x96xbf16>, vector<48x96xf32> -> vector<48x96xf32>
    %c0_31 = arith.constant 0 : index
    %c0_32 = arith.constant 0 : index
    %c0_33 = arith.constant 0 : index
    %c0_34 = arith.constant 0 : index
    %60 = vector.load %arg8[%c0_31, %c0_32, %c0_33, %c0_34] : memref<3x4x1x96xf32, #tpu.memory_space<vmem>>, vector<1x1x1x96xf32>
    %61 = vector.shape_cast %60 : vector<1x1x1x96xf32> to vector<1x96xf32>
    %62 = vector.broadcast %61 : vector<1x96xf32> to vector<48x96xf32>
    %63 = arith.addf %59, %62 : vector<48x96xf32>
    %64 = vector.extract_strided_slice %63 {offsets = [0, 0], sizes = [48, 32], strides = [1, 1]} : vector<48x96xf32> to vector<48x32xf32>
    %65 = vector.extract_strided_slice %63 {offsets = [0, 32], sizes = [48, 32], strides = [1, 1]} : vector<48x96xf32> to vector<48x32xf32>
    %66 = vector.extract_strided_slice %63 {offsets = [0, 64], sizes = [48, 32], strides = [1, 1]} : vector<48x96xf32> to vector<48x32xf32>
    %cst_35 = arith.constant dense<0.000000e+00> : vector<48x48xf32>
    %67 = tpu.matmul %64, %65, %cst_35 {dimension_numbers = #tpu.dot_dimension_numbers<[1], [1], [0], [0], [0, 0, 1, 0], [], []>} : vector<48x32xf32>, vector<48x32xf32>, vector<48x48xf32> -> vector<48x48xf32>
    %cst_36 = arith.constant 0.176776692 : f32
    %68 = vector.broadcast %cst_36 : f32 to vector<48x48xf32>
    %69 = arith.mulf %67, %68 : vector<48x48xf32>
    %70 = arith.addf %69, %52 : vector<48x48xf32>
    %cst_37 = arith.constant dense<0xFF800000> : vector<48xf32>
    %71 = vector.multi_reduction <maximumf>, %70, %cst_37 [1] : vector<48x48xf32> to vector<48xf32>
    %72 = vector.shape_cast %71 : vector<48xf32> to vector<48x1xf32>
    %73 = vector.broadcast %72 : vector<48x1xf32> to vector<48x48xf32>
    %74 = arith.subf %70, %73 : vector<48x48xf32>
    %75 = math.exp %74 : vector<48x48xf32>
    %cst_38 = arith.constant dense<0.000000e+00> : vector<48xf32>
    %76 = vector.multi_reduction <add>, %75, %cst_38 [1] : vector<48x48xf32> to vector<48xf32>
    %77 = vector.shape_cast %76 : vector<48xf32> to vector<48x1xf32>
    %78 = tpu.reciprocal %77 : vector<48x1xf32> -> vector<48x1xf32>
    %79 = vector.broadcast %78 : vector<48x1xf32> to vector<48x48xf32>
    %80 = arith.mulf %75, %79 : vector<48x48xf32>
    %81 = arith.truncf %80 : vector<48x48xf32> to vector<48x48xbf16>
    %82 = arith.truncf %66 : vector<48x32xf32> to vector<48x32xbf16>
    %cst_39 = arith.constant dense<0.000000e+00> : vector<48x32xf32>
    %83 = tpu.matmul %81, %82, %cst_39 {dimension_numbers = #tpu.dot_dimension_numbers<[1], [0], [0], [1], [0, 0, 1, 1], [], []>} : vector<48x48xbf16>, vector<48x32xbf16>, vector<48x32xf32> -> vector<48x32xf32>
    %84 = arith.truncf %83 : vector<48x32xf32> to vector<48x32xbf16>
    %c0_40 = arith.constant 0 : index
    %c0_41 = arith.constant 0 : index
    %c0_42 = arith.constant 0 : index
    %c0_43 = arith.constant 0 : index
    %85 = vector.load %arg9[%c0_40, %c0_41, %c0_42, %c0_43] : memref<3x4x32x128xbf16, #tpu.memory_space<vmem>>, vector<1x1x32x128xbf16>
    %86 = vector.shape_cast %85 : vector<1x1x32x128xbf16> to vector<32x128xbf16>
    %cst_44 = arith.constant dense<0.000000e+00> : vector<48x128xf32>
    %87 = tpu.matmul %84, %86, %cst_44 {dimension_numbers = #tpu.dot_dimension_numbers<[1], [0], [0], [1], [0, 0, 1, 1], [], []>} : vector<48x32xbf16>, vector<32x128xbf16>, vector<48x128xf32> -> vector<48x128xf32>
    %88 = arith.addf %56, %87 : vector<48x128xf32>
    %c0_45 = arith.constant 0 : index
    %c1_46 = arith.constant 1 : index
    %c0_47 = arith.constant 0 : index
    %c0_48 = arith.constant 0 : index
    %89 = vector.load %arg7[%c0_45, %c1_46, %c0_47, %c0_48] : memref<3x4x128x96xbf16, #tpu.memory_space<vmem>>, vector<1x1x128x96xbf16>
    %90 = vector.shape_cast %89 : vector<1x1x128x96xbf16> to vector<128x96xbf16>
    %cst_49 = arith.constant dense<0.000000e+00> : vector<48x96xf32>
    %91 = tpu.matmul %55, %90, %cst_49 {dimension_numbers = #tpu.dot_dimension_numbers<[1], [0], [0], [1], [0, 0, 1, 1], [], []>} : vector<48x128xbf16>, vector<128x96xbf16>, vector<48x96xf32> -> vector<48x96xf32>
    %c0_50 = arith.constant 0 : index
    %c1_51 = arith.constant 1 : index
    %c0_52 = arith.constant 0 : index
    %c0_53 = arith.constant 0 : index
    %92 = vector.load %arg8[%c0_50, %c1_51, %c0_52, %c0_53] : memref<3x4x1x96xf32, #tpu.memory_space<vmem>>, vector<1x1x1x96xf32>
    %93 = vector.shape_cast %92 : vector<1x1x1x96xf32> to vector<1x96xf32>
    %94 = vector.broadcast %93 : vector<1x96xf32> to vector<48x96xf32>
    %95 = arith.addf %91, %94 : vector<48x96xf32>
    %96 = vector.extract_strided_slice %95 {offsets = [0, 0], sizes = [48, 32], strides = [1, 1]} : vector<48x96xf32> to vector<48x32xf32>
    %97 = vector.extract_strided_slice %95 {offsets = [0, 32], sizes = [48, 32], strides = [1, 1]} : vector<48x96xf32> to vector<48x32xf32>
    %98 = vector.extract_strided_slice %95 {offsets = [0, 64], sizes = [48, 32], strides = [1, 1]} : vector<48x96xf32> to vector<48x32xf32>
    %cst_54 = arith.constant dense<0.000000e+00> : vector<48x48xf32>
    %99 = tpu.matmul %96, %97, %cst_54 {dimension_numbers = #tpu.dot_dimension_numbers<[1], [1], [0], [0], [0, 0, 1, 0], [], []>} : vector<48x32xf32>, vector<48x32xf32>, vector<48x48xf32> -> vector<48x48xf32>
    %cst_55 = arith.constant 0.176776692 : f32
    %100 = vector.broadcast %cst_55 : f32 to vector<48x48xf32>
    %101 = arith.mulf %99, %100 : vector<48x48xf32>
    %102 = arith.addf %101, %52 : vector<48x48xf32>
    %cst_56 = arith.constant dense<0xFF800000> : vector<48xf32>
    %103 = vector.multi_reduction <maximumf>, %102, %cst_56 [1] : vector<48x48xf32> to vector<48xf32>
    %104 = vector.shape_cast %103 : vector<48xf32> to vector<48x1xf32>
    %105 = vector.broadcast %104 : vector<48x1xf32> to vector<48x48xf32>
    %106 = arith.subf %102, %105 : vector<48x48xf32>
    %107 = math.exp %106 : vector<48x48xf32>
    %cst_57 = arith.constant dense<0.000000e+00> : vector<48xf32>
    %108 = vector.multi_reduction <add>, %107, %cst_57 [1] : vector<48x48xf32> to vector<48xf32>
    %109 = vector.shape_cast %108 : vector<48xf32> to vector<48x1xf32>
    %110 = tpu.reciprocal %109 : vector<48x1xf32> -> vector<48x1xf32>
    %111 = vector.broadcast %110 : vector<48x1xf32> to vector<48x48xf32>
    %112 = arith.mulf %107, %111 : vector<48x48xf32>
    %113 = arith.truncf %112 : vector<48x48xf32> to vector<48x48xbf16>
    %114 = arith.truncf %98 : vector<48x32xf32> to vector<48x32xbf16>
    %cst_58 = arith.constant dense<0.000000e+00> : vector<48x32xf32>
    %115 = tpu.matmul %113, %114, %cst_58 {dimension_numbers = #tpu.dot_dimension_numbers<[1], [0], [0], [1], [0, 0, 1, 1], [], []>} : vector<48x48xbf16>, vector<48x32xbf16>, vector<48x32xf32> -> vector<48x32xf32>
    %116 = arith.truncf %115 : vector<48x32xf32> to vector<48x32xbf16>
    %c0_59 = arith.constant 0 : index
    %c1_60 = arith.constant 1 : index
    %c0_61 = arith.constant 0 : index
    %c0_62 = arith.constant 0 : index
    %117 = vector.load %arg9[%c0_59, %c1_60, %c0_61, %c0_62] : memref<3x4x32x128xbf16, #tpu.memory_space<vmem>>, vector<1x1x32x128xbf16>
    %118 = vector.shape_cast %117 : vector<1x1x32x128xbf16> to vector<32x128xbf16>
    %cst_63 = arith.constant dense<0.000000e+00> : vector<48x128xf32>
    %119 = tpu.matmul %116, %118, %cst_63 {dimension_numbers = #tpu.dot_dimension_numbers<[1], [0], [0], [1], [0, 0, 1, 1], [], []>} : vector<48x32xbf16>, vector<32x128xbf16>, vector<48x128xf32> -> vector<48x128xf32>
    %120 = arith.addf %88, %119 : vector<48x128xf32>
    %c0_64 = arith.constant 0 : index
    %c2_65 = arith.constant 2 : index
    %c0_66 = arith.constant 0 : index
    %c0_67 = arith.constant 0 : index
    %121 = vector.load %arg7[%c0_64, %c2_65, %c0_66, %c0_67] : memref<3x4x128x96xbf16, #tpu.memory_space<vmem>>, vector<1x1x128x96xbf16>
    %122 = vector.shape_cast %121 : vector<1x1x128x96xbf16> to vector<128x96xbf16>
    %cst_68 = arith.constant dense<0.000000e+00> : vector<48x96xf32>
    %123 = tpu.matmul %55, %122, %cst_68 {dimension_numbers = #tpu.dot_dimension_numbers<[1], [0], [0], [1], [0, 0, 1, 1], [], []>} : vector<48x128xbf16>, vector<128x96xbf16>, vector<48x96xf32> -> vector<48x96xf32>
    %c0_69 = arith.constant 0 : index
    %c2_70 = arith.constant 2 : index
    %c0_71 = arith.constant 0 : index
    %c0_72 = arith.constant 0 : index
    %124 = vector.load %arg8[%c0_69, %c2_70, %c0_71, %c0_72] : memref<3x4x1x96xf32, #tpu.memory_space<vmem>>, vector<1x1x1x96xf32>
    %125 = vector.shape_cast %124 : vector<1x1x1x96xf32> to vector<1x96xf32>
    %126 = vector.broadcast %125 : vector<1x96xf32> to vector<48x96xf32>
    %127 = arith.addf %123, %126 : vector<48x96xf32>
    %128 = vector.extract_strided_slice %127 {offsets = [0, 0], sizes = [48, 32], strides = [1, 1]} : vector<48x96xf32> to vector<48x32xf32>
    %129 = vector.extract_strided_slice %127 {offsets = [0, 32], sizes = [48, 32], strides = [1, 1]} : vector<48x96xf32> to vector<48x32xf32>
    %130 = vector.extract_strided_slice %127 {offsets = [0, 64], sizes = [48, 32], strides = [1, 1]} : vector<48x96xf32> to vector<48x32xf32>
    %cst_73 = arith.constant dense<0.000000e+00> : vector<48x48xf32>
    %131 = tpu.matmul %128, %129, %cst_73 {dimension_numbers = #tpu.dot_dimension_numbers<[1], [1], [0], [0], [0, 0, 1, 0], [], []>} : vector<48x32xf32>, vector<48x32xf32>, vector<48x48xf32> -> vector<48x48xf32>
    %cst_74 = arith.constant 0.176776692 : f32
    %132 = vector.broadcast %cst_74 : f32 to vector<48x48xf32>
    %133 = arith.mulf %131, %132 : vector<48x48xf32>
    %134 = arith.addf %133, %52 : vector<48x48xf32>
    %cst_75 = arith.constant dense<0xFF800000> : vector<48xf32>
    %135 = vector.multi_reduction <maximumf>, %134, %cst_75 [1] : vector<48x48xf32> to vector<48xf32>
    %136 = vector.shape_cast %135 : vector<48xf32> to vector<48x1xf32>
    %137 = vector.broadcast %136 : vector<48x1xf32> to vector<48x48xf32>
    %138 = arith.subf %134, %137 : vector<48x48xf32>
    %139 = math.exp %138 : vector<48x48xf32>
    %cst_76 = arith.constant dense<0.000000e+00> : vector<48xf32>
    %140 = vector.multi_reduction <add>, %139, %cst_76 [1] : vector<48x48xf32> to vector<48xf32>
    %141 = vector.shape_cast %140 : vector<48xf32> to vector<48x1xf32>
    %142 = tpu.reciprocal %141 : vector<48x1xf32> -> vector<48x1xf32>
    %143 = vector.broadcast %142 : vector<48x1xf32> to vector<48x48xf32>
    %144 = arith.mulf %139, %143 : vector<48x48xf32>
    %145 = arith.truncf %144 : vector<48x48xf32> to vector<48x48xbf16>
    %146 = arith.truncf %130 : vector<48x32xf32> to vector<48x32xbf16>
    %cst_77 = arith.constant dense<0.000000e+00> : vector<48x32xf32>
    %147 = tpu.matmul %145, %146, %cst_77 {dimension_numbers = #tpu.dot_dimension_numbers<[1], [0], [0], [1], [0, 0, 1, 1], [], []>} : vector<48x48xbf16>, vector<48x32xbf16>, vector<48x32xf32> -> vector<48x32xf32>
    %148 = arith.truncf %147 : vector<48x32xf32> to vector<48x32xbf16>
    %c0_78 = arith.constant 0 : index
    %c2_79 = arith.constant 2 : index
    %c0_80 = arith.constant 0 : index
    %c0_81 = arith.constant 0 : index
    %149 = vector.load %arg9[%c0_78, %c2_79, %c0_80, %c0_81] : memref<3x4x32x128xbf16, #tpu.memory_space<vmem>>, vector<1x1x32x128xbf16>
    %150 = vector.shape_cast %149 : vector<1x1x32x128xbf16> to vector<32x128xbf16>
    %cst_82 = arith.constant dense<0.000000e+00> : vector<48x128xf32>
    %151 = tpu.matmul %148, %150, %cst_82 {dimension_numbers = #tpu.dot_dimension_numbers<[1], [0], [0], [1], [0, 0, 1, 1], [], []>} : vector<48x32xbf16>, vector<32x128xbf16>, vector<48x128xf32> -> vector<48x128xf32>
    %152 = arith.addf %120, %151 : vector<48x128xf32>
    %c0_83 = arith.constant 0 : index
    %c3 = arith.constant 3 : index
    %c0_84 = arith.constant 0 : index
    %c0_85 = arith.constant 0 : index
    %153 = vector.load %arg7[%c0_83, %c3, %c0_84, %c0_85] : memref<3x4x128x96xbf16, #tpu.memory_space<vmem>>, vector<1x1x128x96xbf16>
    %154 = vector.shape_cast %153 : vector<1x1x128x96xbf16> to vector<128x96xbf16>
    %cst_86 = arith.constant dense<0.000000e+00> : vector<48x96xf32>
    %155 = tpu.matmul %55, %154, %cst_86 {dimension_numbers = #tpu.dot_dimension_numbers<[1], [0], [0], [1], [0, 0, 1, 1], [], []>} : vector<48x128xbf16>, vector<128x96xbf16>, vector<48x96xf32> -> vector<48x96xf32>
    %c0_87 = arith.constant 0 : index
    %c3_88 = arith.constant 3 : index
    %c0_89 = arith.constant 0 : index
    %c0_90 = arith.constant 0 : index
    %156 = vector.load %arg8[%c0_87, %c3_88, %c0_89, %c0_90] : memref<3x4x1x96xf32, #tpu.memory_space<vmem>>, vector<1x1x1x96xf32>
    %157 = vector.shape_cast %156 : vector<1x1x1x96xf32> to vector<1x96xf32>
    %158 = vector.broadcast %157 : vector<1x96xf32> to vector<48x96xf32>
    %159 = arith.addf %155, %158 : vector<48x96xf32>
    %160 = vector.extract_strided_slice %159 {offsets = [0, 0], sizes = [48, 32], strides = [1, 1]} : vector<48x96xf32> to vector<48x32xf32>
    %161 = vector.extract_strided_slice %159 {offsets = [0, 32], sizes = [48, 32], strides = [1, 1]} : vector<48x96xf32> to vector<48x32xf32>
    %162 = vector.extract_strided_slice %159 {offsets = [0, 64], sizes = [48, 32], strides = [1, 1]} : vector<48x96xf32> to vector<48x32xf32>
    %cst_91 = arith.constant dense<0.000000e+00> : vector<48x48xf32>
    %163 = tpu.matmul %160, %161, %cst_91 {dimension_numbers = #tpu.dot_dimension_numbers<[1], [1], [0], [0], [0, 0, 1, 0], [], []>} : vector<48x32xf32>, vector<48x32xf32>, vector<48x48xf32> -> vector<48x48xf32>
    %cst_92 = arith.constant 0.176776692 : f32
    %164 = vector.broadcast %cst_92 : f32 to vector<48x48xf32>
    %165 = arith.mulf %163, %164 : vector<48x48xf32>
    %166 = arith.addf %165, %52 : vector<48x48xf32>
    %cst_93 = arith.constant dense<0xFF800000> : vector<48xf32>
    %167 = vector.multi_reduction <maximumf>, %166, %cst_93 [1] : vector<48x48xf32> to vector<48xf32>
    %168 = vector.shape_cast %167 : vector<48xf32> to vector<48x1xf32>
    %169 = vector.broadcast %168 : vector<48x1xf32> to vector<48x48xf32>
    %170 = arith.subf %166, %169 : vector<48x48xf32>
    %171 = math.exp %170 : vector<48x48xf32>
    %cst_94 = arith.constant dense<0.000000e+00> : vector<48xf32>
    %172 = vector.multi_reduction <add>, %171, %cst_94 [1] : vector<48x48xf32> to vector<48xf32>
    %173 = vector.shape_cast %172 : vector<48xf32> to vector<48x1xf32>
    %174 = tpu.reciprocal %173 : vector<48x1xf32> -> vector<48x1xf32>
    %175 = vector.broadcast %174 : vector<48x1xf32> to vector<48x48xf32>
    %176 = arith.mulf %171, %175 : vector<48x48xf32>
    %177 = arith.truncf %176 : vector<48x48xf32> to vector<48x48xbf16>
    %178 = arith.truncf %162 : vector<48x32xf32> to vector<48x32xbf16>
    %cst_95 = arith.constant dense<0.000000e+00> : vector<48x32xf32>
    %179 = tpu.matmul %177, %178, %cst_95 {dimension_numbers = #tpu.dot_dimension_numbers<[1], [0], [0], [1], [0, 0, 1, 1], [], []>} : vector<48x48xbf16>, vector<48x32xbf16>, vector<48x32xf32> -> vector<48x32xf32>
    %180 = arith.truncf %179 : vector<48x32xf32> to vector<48x32xbf16>
    %c0_96 = arith.constant 0 : index
    %c3_97 = arith.constant 3 : index
    %c0_98 = arith.constant 0 : index
    %c0_99 = arith.constant 0 : index
    %181 = vector.load %arg9[%c0_96, %c3_97, %c0_98, %c0_99] : memref<3x4x32x128xbf16, #tpu.memory_space<vmem>>, vector<1x1x32x128xbf16>
    %182 = vector.shape_cast %181 : vector<1x1x32x128xbf16> to vector<32x128xbf16>
    %cst_100 = arith.constant dense<0.000000e+00> : vector<48x128xf32>
    %183 = tpu.matmul %180, %182, %cst_100 {dimension_numbers = #tpu.dot_dimension_numbers<[1], [0], [0], [1], [0, 0, 1, 1], [], []>} : vector<48x32xbf16>, vector<32x128xbf16>, vector<48x128xf32> -> vector<48x128xf32>
    %184 = arith.addf %152, %183 : vector<48x128xf32>
    %185 = arith.addf %51, %184 : vector<48x128xf32>
    %186 = vector.extract_strided_slice %54 {offsets = [0, 0], sizes = [1, 128], strides = [1, 1]} : vector<8x128xf32> to vector<1x128xf32>
    %187 = vector.broadcast %186 : vector<1x128xf32> to vector<48x128xf32>
    %188 = arith.addf %185, %187 : vector<48x128xf32>
    %189 = vector.extract_strided_slice %54 {offsets = [3, 0], sizes = [1, 128], strides = [1, 1]} : vector<8x128xf32> to vector<1x128xf32>
    %190 = vector.extract_strided_slice %54 {offsets = [4, 0], sizes = [1, 128], strides = [1, 1]} : vector<8x128xf32> to vector<1x128xf32>
    %cst_101 = arith.constant dense<0.000000e+00> : vector<48xf32>
    %191 = vector.multi_reduction <add>, %188, %cst_101 [1] : vector<48x128xf32> to vector<48xf32>
    %192 = vector.shape_cast %191 : vector<48xf32> to vector<48x1xf32>
    %cst_102 = arith.constant 1.280000e+02 : f32
    %193 = vector.broadcast %cst_102 : f32 to vector<48x1xf32>
    %194 = arith.divf %192, %193 : vector<48x1xf32>
    %195 = arith.mulf %188, %188 : vector<48x128xf32>
    %cst_103 = arith.constant dense<0.000000e+00> : vector<48xf32>
    %196 = vector.multi_reduction <add>, %195, %cst_103 [1] : vector<48x128xf32> to vector<48xf32>
    %197 = vector.shape_cast %196 : vector<48xf32> to vector<48x1xf32>
    %cst_104 = arith.constant 1.280000e+02 : f32
    %198 = vector.broadcast %cst_104 : f32 to vector<48x1xf32>
    %199 = arith.divf %197, %198 : vector<48x1xf32>
    %200 = vector.broadcast %194 : vector<48x1xf32> to vector<48x128xf32>
    %201 = arith.subf %188, %200 : vector<48x128xf32>
    %202 = arith.mulf %194, %194 : vector<48x1xf32>
    %203 = arith.subf %199, %202 : vector<48x1xf32>
    %cst_105 = arith.constant 9.99999974E-6 : f32
    %204 = vector.broadcast %cst_105 : f32 to vector<48x1xf32>
    %205 = arith.addf %203, %204 : vector<48x1xf32>
    %206 = math.rsqrt %205 : vector<48x1xf32>
    %207 = vector.broadcast %206 : vector<48x1xf32> to vector<48x128xf32>
    %208 = arith.mulf %201, %207 : vector<48x128xf32>
    %209 = vector.broadcast %189 : vector<1x128xf32> to vector<48x128xf32>
    %210 = arith.mulf %208, %209 : vector<48x128xf32>
    %211 = vector.broadcast %190 : vector<1x128xf32> to vector<48x128xf32>
    %212 = arith.addf %210, %211 : vector<48x128xf32>
    %213 = arith.truncf %212 : vector<48x128xf32> to vector<48x128xbf16>
    %c0_106 = arith.constant 0 : index
    %c0_107 = arith.constant 0 : index
    %c0_108 = arith.constant 0 : index
    %214 = vector.load %arg10[%c0_106, %c0_107, %c0_108] : memref<3x128x128xbf16, #tpu.memory_space<vmem>>, vector<1x128x128xbf16>
    %215 = vector.shape_cast %214 : vector<1x128x128xbf16> to vector<128x128xbf16>
    %cst_109 = arith.constant dense<0.000000e+00> : vector<48x128xf32>
    %216 = tpu.matmul %213, %215, %cst_109 {dimension_numbers = #tpu.dot_dimension_numbers<[1], [0], [0], [1], [0, 0, 1, 1], [], []>} : vector<48x128xbf16>, vector<128x128xbf16>, vector<48x128xf32> -> vector<48x128xf32>
    %217 = vector.extract_strided_slice %54 {offsets = [1, 0], sizes = [1, 128], strides = [1, 1]} : vector<8x128xf32> to vector<1x128xf32>
    %218 = vector.broadcast %217 : vector<1x128xf32> to vector<48x128xf32>
    %219 = arith.addf %216, %218 : vector<48x128xf32>
    %cst_110 = arith.constant 0.000000e+00 : f32
    %220 = vector.broadcast %cst_110 : f32 to vector<48x128xf32>
    %221 = arith.maximumf %219, %220 : vector<48x128xf32>
    %222 = arith.truncf %221 : vector<48x128xf32> to vector<48x128xbf16>
    %c0_111 = arith.constant 0 : index
    %c0_112 = arith.constant 0 : index
    %c0_113 = arith.constant 0 : index
    %223 = vector.load %arg11[%c0_111, %c0_112, %c0_113] : memref<3x128x128xbf16, #tpu.memory_space<vmem>>, vector<1x128x128xbf16>
    %224 = vector.shape_cast %223 : vector<1x128x128xbf16> to vector<128x128xbf16>
    %cst_114 = arith.constant dense<0.000000e+00> : vector<48x128xf32>
    %225 = tpu.matmul %222, %224, %cst_114 {dimension_numbers = #tpu.dot_dimension_numbers<[1], [0], [0], [1], [0, 0, 1, 1], [], []>} : vector<48x128xbf16>, vector<128x128xbf16>, vector<48x128xf32> -> vector<48x128xf32>
    %226 = vector.extract_strided_slice %54 {offsets = [2, 0], sizes = [1, 128], strides = [1, 1]} : vector<8x128xf32> to vector<1x128xf32>
    %227 = vector.broadcast %226 : vector<1x128xf32> to vector<48x128xf32>
    %228 = arith.addf %225, %227 : vector<48x128xf32>
    %229 = arith.addf %212, %228 : vector<48x128xf32>
    %230 = vector.extract_strided_slice %54 {offsets = [5, 0], sizes = [1, 128], strides = [1, 1]} : vector<8x128xf32> to vector<1x128xf32>
    %231 = vector.extract_strided_slice %54 {offsets = [6, 0], sizes = [1, 128], strides = [1, 1]} : vector<8x128xf32> to vector<1x128xf32>
    %cst_115 = arith.constant dense<0.000000e+00> : vector<48xf32>
    %232 = vector.multi_reduction <add>, %229, %cst_115 [1] : vector<48x128xf32> to vector<48xf32>
    %233 = vector.shape_cast %232 : vector<48xf32> to vector<48x1xf32>
    %cst_116 = arith.constant 1.280000e+02 : f32
    %234 = vector.broadcast %cst_116 : f32 to vector<48x1xf32>
    %235 = arith.divf %233, %234 : vector<48x1xf32>
    %236 = arith.mulf %229, %229 : vector<48x128xf32>
    %cst_117 = arith.constant dense<0.000000e+00> : vector<48xf32>
    %237 = vector.multi_reduction <add>, %236, %cst_117 [1] : vector<48x128xf32> to vector<48xf32>
    %238 = vector.shape_cast %237 : vector<48xf32> to vector<48x1xf32>
    %cst_118 = arith.constant 1.280000e+02 : f32
    %239 = vector.broadcast %cst_118 : f32 to vector<48x1xf32>
    %240 = arith.divf %238, %239 : vector<48x1xf32>
    %241 = vector.broadcast %235 : vector<48x1xf32> to vector<48x128xf32>
    %242 = arith.subf %229, %241 : vector<48x128xf32>
    %243 = arith.mulf %235, %235 : vector<48x1xf32>
    %244 = arith.subf %240, %243 : vector<48x1xf32>
    %cst_119 = arith.constant 9.99999974E-6 : f32
    %245 = vector.broadcast %cst_119 : f32 to vector<48x1xf32>
    %246 = arith.addf %244, %245 : vector<48x1xf32>
    %247 = math.rsqrt %246 : vector<48x1xf32>
    %248 = vector.broadcast %247 : vector<48x1xf32> to vector<48x128xf32>
    %249 = arith.mulf %242, %248 : vector<48x128xf32>
    %250 = vector.broadcast %230 : vector<1x128xf32> to vector<48x128xf32>
    %251 = arith.mulf %249, %250 : vector<48x128xf32>
    %252 = vector.broadcast %231 : vector<1x128xf32> to vector<48x128xf32>
    %253 = arith.addf %251, %252 : vector<48x128xf32>
    %c1_120 = arith.constant 1 : index
    %c0_121 = arith.constant 0 : index
    %c0_122 = arith.constant 0 : index
    %254 = vector.load %arg12[%c1_120, %c0_121, %c0_122] : memref<3x8x128xf32, #tpu.memory_space<vmem>>, vector<1x8x128xf32>
    %255 = vector.shape_cast %254 : vector<1x8x128xf32> to vector<8x128xf32>
    %256 = arith.truncf %253 : vector<48x128xf32> to vector<48x128xbf16>
    %cst_123 = arith.constant 0.000000e+00 : f32
    %257 = vector.broadcast %cst_123 : f32 to vector<48x128xf32>
    %c1_124 = arith.constant 1 : index
    %c0_125 = arith.constant 0 : index
    %c0_126 = arith.constant 0 : index
    %c0_127 = arith.constant 0 : index
    %258 = vector.load %arg7[%c1_124, %c0_125, %c0_126, %c0_127] : memref<3x4x128x96xbf16, #tpu.memory_space<vmem>>, vector<1x1x128x96xbf16>
    %259 = vector.shape_cast %258 : vector<1x1x128x96xbf16> to vector<128x96xbf16>
    %cst_128 = arith.constant dense<0.000000e+00> : vector<48x96xf32>
    %260 = tpu.matmul %256, %259, %cst_128 {dimension_numbers = #tpu.dot_dimension_numbers<[1], [0], [0], [1], [0, 0, 1, 1], [], []>} : vector<48x128xbf16>, vector<128x96xbf16>, vector<48x96xf32> -> vector<48x96xf32>
    %c1_129 = arith.constant 1 : index
    %c0_130 = arith.constant 0 : index
    %c0_131 = arith.constant 0 : index
    %c0_132 = arith.constant 0 : index
    %261 = vector.load %arg8[%c1_129, %c0_130, %c0_131, %c0_132] : memref<3x4x1x96xf32, #tpu.memory_space<vmem>>, vector<1x1x1x96xf32>
    %262 = vector.shape_cast %261 : vector<1x1x1x96xf32> to vector<1x96xf32>
    %263 = vector.broadcast %262 : vector<1x96xf32> to vector<48x96xf32>
    %264 = arith.addf %260, %263 : vector<48x96xf32>
    %265 = vector.extract_strided_slice %264 {offsets = [0, 0], sizes = [48, 32], strides = [1, 1]} : vector<48x96xf32> to vector<48x32xf32>
    %266 = vector.extract_strided_slice %264 {offsets = [0, 32], sizes = [48, 32], strides = [1, 1]} : vector<48x96xf32> to vector<48x32xf32>
    %267 = vector.extract_strided_slice %264 {offsets = [0, 64], sizes = [48, 32], strides = [1, 1]} : vector<48x96xf32> to vector<48x32xf32>
    %cst_133 = arith.constant dense<0.000000e+00> : vector<48x48xf32>
    %268 = tpu.matmul %265, %266, %cst_133 {dimension_numbers = #tpu.dot_dimension_numbers<[1], [1], [0], [0], [0, 0, 1, 0], [], []>} : vector<48x32xf32>, vector<48x32xf32>, vector<48x48xf32> -> vector<48x48xf32>
    %cst_134 = arith.constant 0.176776692 : f32
    %269 = vector.broadcast %cst_134 : f32 to vector<48x48xf32>
    %270 = arith.mulf %268, %269 : vector<48x48xf32>
    %271 = arith.addf %270, %52 : vector<48x48xf32>
    %cst_135 = arith.constant dense<0xFF800000> : vector<48xf32>
    %272 = vector.multi_reduction <maximumf>, %271, %cst_135 [1] : vector<48x48xf32> to vector<48xf32>
    %273 = vector.shape_cast %272 : vector<48xf32> to vector<48x1xf32>
    %274 = vector.broadcast %273 : vector<48x1xf32> to vector<48x48xf32>
    %275 = arith.subf %271, %274 : vector<48x48xf32>
    %276 = math.exp %275 : vector<48x48xf32>
    %cst_136 = arith.constant dense<0.000000e+00> : vector<48xf32>
    %277 = vector.multi_reduction <add>, %276, %cst_136 [1] : vector<48x48xf32> to vector<48xf32>
    %278 = vector.shape_cast %277 : vector<48xf32> to vector<48x1xf32>
    %279 = tpu.reciprocal %278 : vector<48x1xf32> -> vector<48x1xf32>
    %280 = vector.broadcast %279 : vector<48x1xf32> to vector<48x48xf32>
    %281 = arith.mulf %276, %280 : vector<48x48xf32>
    %282 = arith.truncf %281 : vector<48x48xf32> to vector<48x48xbf16>
    %283 = arith.truncf %267 : vector<48x32xf32> to vector<48x32xbf16>
    %cst_137 = arith.constant dense<0.000000e+00> : vector<48x32xf32>
    %284 = tpu.matmul %282, %283, %cst_137 {dimension_numbers = #tpu.dot_dimension_numbers<[1], [0], [0], [1], [0, 0, 1, 1], [], []>} : vector<48x48xbf16>, vector<48x32xbf16>, vector<48x32xf32> -> vector<48x32xf32>
    %285 = arith.truncf %284 : vector<48x32xf32> to vector<48x32xbf16>
    %c1_138 = arith.constant 1 : index
    %c0_139 = arith.constant 0 : index
    %c0_140 = arith.constant 0 : index
    %c0_141 = arith.constant 0 : index
    %286 = vector.load %arg9[%c1_138, %c0_139, %c0_140, %c0_141] : memref<3x4x32x128xbf16, #tpu.memory_space<vmem>>, vector<1x1x32x128xbf16>
    %287 = vector.shape_cast %286 : vector<1x1x32x128xbf16> to vector<32x128xbf16>
    %cst_142 = arith.constant dense<0.000000e+00> : vector<48x128xf32>
    %288 = tpu.matmul %285, %287, %cst_142 {dimension_numbers = #tpu.dot_dimension_numbers<[1], [0], [0], [1], [0, 0, 1, 1], [], []>} : vector<48x32xbf16>, vector<32x128xbf16>, vector<48x128xf32> -> vector<48x128xf32>
    %289 = arith.addf %257, %288 : vector<48x128xf32>
    %c1_143 = arith.constant 1 : index
    %c1_144 = arith.constant 1 : index
    %c0_145 = arith.constant 0 : index
    %c0_146 = arith.constant 0 : index
    %290 = vector.load %arg7[%c1_143, %c1_144, %c0_145, %c0_146] : memref<3x4x128x96xbf16, #tpu.memory_space<vmem>>, vector<1x1x128x96xbf16>
    %291 = vector.shape_cast %290 : vector<1x1x128x96xbf16> to vector<128x96xbf16>
    %cst_147 = arith.constant dense<0.000000e+00> : vector<48x96xf32>
    %292 = tpu.matmul %256, %291, %cst_147 {dimension_numbers = #tpu.dot_dimension_numbers<[1], [0], [0], [1], [0, 0, 1, 1], [], []>} : vector<48x128xbf16>, vector<128x96xbf16>, vector<48x96xf32> -> vector<48x96xf32>
    %c1_148 = arith.constant 1 : index
    %c1_149 = arith.constant 1 : index
    %c0_150 = arith.constant 0 : index
    %c0_151 = arith.constant 0 : index
    %293 = vector.load %arg8[%c1_148, %c1_149, %c0_150, %c0_151] : memref<3x4x1x96xf32, #tpu.memory_space<vmem>>, vector<1x1x1x96xf32>
    %294 = vector.shape_cast %293 : vector<1x1x1x96xf32> to vector<1x96xf32>
    %295 = vector.broadcast %294 : vector<1x96xf32> to vector<48x96xf32>
    %296 = arith.addf %292, %295 : vector<48x96xf32>
    %297 = vector.extract_strided_slice %296 {offsets = [0, 0], sizes = [48, 32], strides = [1, 1]} : vector<48x96xf32> to vector<48x32xf32>
    %298 = vector.extract_strided_slice %296 {offsets = [0, 32], sizes = [48, 32], strides = [1, 1]} : vector<48x96xf32> to vector<48x32xf32>
    %299 = vector.extract_strided_slice %296 {offsets = [0, 64], sizes = [48, 32], strides = [1, 1]} : vector<48x96xf32> to vector<48x32xf32>
    %cst_152 = arith.constant dense<0.000000e+00> : vector<48x48xf32>
    %300 = tpu.matmul %297, %298, %cst_152 {dimension_numbers = #tpu.dot_dimension_numbers<[1], [1], [0], [0], [0, 0, 1, 0], [], []>} : vector<48x32xf32>, vector<48x32xf32>, vector<48x48xf32> -> vector<48x48xf32>
    %cst_153 = arith.constant 0.176776692 : f32
    %301 = vector.broadcast %cst_153 : f32 to vector<48x48xf32>
    %302 = arith.mulf %300, %301 : vector<48x48xf32>
    %303 = arith.addf %302, %52 : vector<48x48xf32>
    %cst_154 = arith.constant dense<0xFF800000> : vector<48xf32>
    %304 = vector.multi_reduction <maximumf>, %303, %cst_154 [1] : vector<48x48xf32> to vector<48xf32>
    %305 = vector.shape_cast %304 : vector<48xf32> to vector<48x1xf32>
    %306 = vector.broadcast %305 : vector<48x1xf32> to vector<48x48xf32>
    %307 = arith.subf %303, %306 : vector<48x48xf32>
    %308 = math.exp %307 : vector<48x48xf32>
    %cst_155 = arith.constant dense<0.000000e+00> : vector<48xf32>
    %309 = vector.multi_reduction <add>, %308, %cst_155 [1] : vector<48x48xf32> to vector<48xf32>
    %310 = vector.shape_cast %309 : vector<48xf32> to vector<48x1xf32>
    %311 = tpu.reciprocal %310 : vector<48x1xf32> -> vector<48x1xf32>
    %312 = vector.broadcast %311 : vector<48x1xf32> to vector<48x48xf32>
    %313 = arith.mulf %308, %312 : vector<48x48xf32>
    %314 = arith.truncf %313 : vector<48x48xf32> to vector<48x48xbf16>
    %315 = arith.truncf %299 : vector<48x32xf32> to vector<48x32xbf16>
    %cst_156 = arith.constant dense<0.000000e+00> : vector<48x32xf32>
    %316 = tpu.matmul %314, %315, %cst_156 {dimension_numbers = #tpu.dot_dimension_numbers<[1], [0], [0], [1], [0, 0, 1, 1], [], []>} : vector<48x48xbf16>, vector<48x32xbf16>, vector<48x32xf32> -> vector<48x32xf32>
    %317 = arith.truncf %316 : vector<48x32xf32> to vector<48x32xbf16>
    %c1_157 = arith.constant 1 : index
    %c1_158 = arith.constant 1 : index
    %c0_159 = arith.constant 0 : index
    %c0_160 = arith.constant 0 : index
    %318 = vector.load %arg9[%c1_157, %c1_158, %c0_159, %c0_160] : memref<3x4x32x128xbf16, #tpu.memory_space<vmem>>, vector<1x1x32x128xbf16>
    %319 = vector.shape_cast %318 : vector<1x1x32x128xbf16> to vector<32x128xbf16>
    %cst_161 = arith.constant dense<0.000000e+00> : vector<48x128xf32>
    %320 = tpu.matmul %317, %319, %cst_161 {dimension_numbers = #tpu.dot_dimension_numbers<[1], [0], [0], [1], [0, 0, 1, 1], [], []>} : vector<48x32xbf16>, vector<32x128xbf16>, vector<48x128xf32> -> vector<48x128xf32>
    %321 = arith.addf %289, %320 : vector<48x128xf32>
    %c1_162 = arith.constant 1 : index
    %c2_163 = arith.constant 2 : index
    %c0_164 = arith.constant 0 : index
    %c0_165 = arith.constant 0 : index
    %322 = vector.load %arg7[%c1_162, %c2_163, %c0_164, %c0_165] : memref<3x4x128x96xbf16, #tpu.memory_space<vmem>>, vector<1x1x128x96xbf16>
    %323 = vector.shape_cast %322 : vector<1x1x128x96xbf16> to vector<128x96xbf16>
    %cst_166 = arith.constant dense<0.000000e+00> : vector<48x96xf32>
    %324 = tpu.matmul %256, %323, %cst_166 {dimension_numbers = #tpu.dot_dimension_numbers<[1], [0], [0], [1], [0, 0, 1, 1], [], []>} : vector<48x128xbf16>, vector<128x96xbf16>, vector<48x96xf32> -> vector<48x96xf32>
    %c1_167 = arith.constant 1 : index
    %c2_168 = arith.constant 2 : index
    %c0_169 = arith.constant 0 : index
    %c0_170 = arith.constant 0 : index
    %325 = vector.load %arg8[%c1_167, %c2_168, %c0_169, %c0_170] : memref<3x4x1x96xf32, #tpu.memory_space<vmem>>, vector<1x1x1x96xf32>
    %326 = vector.shape_cast %325 : vector<1x1x1x96xf32> to vector<1x96xf32>
    %327 = vector.broadcast %326 : vector<1x96xf32> to vector<48x96xf32>
    %328 = arith.addf %324, %327 : vector<48x96xf32>
    %329 = vector.extract_strided_slice %328 {offsets = [0, 0], sizes = [48, 32], strides = [1, 1]} : vector<48x96xf32> to vector<48x32xf32>
    %330 = vector.extract_strided_slice %328 {offsets = [0, 32], sizes = [48, 32], strides = [1, 1]} : vector<48x96xf32> to vector<48x32xf32>
    %331 = vector.extract_strided_slice %328 {offsets = [0, 64], sizes = [48, 32], strides = [1, 1]} : vector<48x96xf32> to vector<48x32xf32>
    %cst_171 = arith.constant dense<0.000000e+00> : vector<48x48xf32>
    %332 = tpu.matmul %329, %330, %cst_171 {dimension_numbers = #tpu.dot_dimension_numbers<[1], [1], [0], [0], [0, 0, 1, 0], [], []>} : vector<48x32xf32>, vector<48x32xf32>, vector<48x48xf32> -> vector<48x48xf32>
    %cst_172 = arith.constant 0.176776692 : f32
    %333 = vector.broadcast %cst_172 : f32 to vector<48x48xf32>
    %334 = arith.mulf %332, %333 : vector<48x48xf32>
    %335 = arith.addf %334, %52 : vector<48x48xf32>
    %cst_173 = arith.constant dense<0xFF800000> : vector<48xf32>
    %336 = vector.multi_reduction <maximumf>, %335, %cst_173 [1] : vector<48x48xf32> to vector<48xf32>
    %337 = vector.shape_cast %336 : vector<48xf32> to vector<48x1xf32>
    %338 = vector.broadcast %337 : vector<48x1xf32> to vector<48x48xf32>
    %339 = arith.subf %335, %338 : vector<48x48xf32>
    %340 = math.exp %339 : vector<48x48xf32>
    %cst_174 = arith.constant dense<0.000000e+00> : vector<48xf32>
    %341 = vector.multi_reduction <add>, %340, %cst_174 [1] : vector<48x48xf32> to vector<48xf32>
    %342 = vector.shape_cast %341 : vector<48xf32> to vector<48x1xf32>
    %343 = tpu.reciprocal %342 : vector<48x1xf32> -> vector<48x1xf32>
    %344 = vector.broadcast %343 : vector<48x1xf32> to vector<48x48xf32>
    %345 = arith.mulf %340, %344 : vector<48x48xf32>
    %346 = arith.truncf %345 : vector<48x48xf32> to vector<48x48xbf16>
    %347 = arith.truncf %331 : vector<48x32xf32> to vector<48x32xbf16>
    %cst_175 = arith.constant dense<0.000000e+00> : vector<48x32xf32>
    %348 = tpu.matmul %346, %347, %cst_175 {dimension_numbers = #tpu.dot_dimension_numbers<[1], [0], [0], [1], [0, 0, 1, 1], [], []>} : vector<48x48xbf16>, vector<48x32xbf16>, vector<48x32xf32> -> vector<48x32xf32>
    %349 = arith.truncf %348 : vector<48x32xf32> to vector<48x32xbf16>
    %c1_176 = arith.constant 1 : index
    %c2_177 = arith.constant 2 : index
    %c0_178 = arith.constant 0 : index
    %c0_179 = arith.constant 0 : index
    %350 = vector.load %arg9[%c1_176, %c2_177, %c0_178, %c0_179] : memref<3x4x32x128xbf16, #tpu.memory_space<vmem>>, vector<1x1x32x128xbf16>
    %351 = vector.shape_cast %350 : vector<1x1x32x128xbf16> to vector<32x128xbf16>
    %cst_180 = arith.constant dense<0.000000e+00> : vector<48x128xf32>
    %352 = tpu.matmul %349, %351, %cst_180 {dimension_numbers = #tpu.dot_dimension_numbers<[1], [0], [0], [1], [0, 0, 1, 1], [], []>} : vector<48x32xbf16>, vector<32x128xbf16>, vector<48x128xf32> -> vector<48x128xf32>
    %353 = arith.addf %321, %352 : vector<48x128xf32>
    %c1_181 = arith.constant 1 : index
    %c3_182 = arith.constant 3 : index
    %c0_183 = arith.constant 0 : index
    %c0_184 = arith.constant 0 : index
    %354 = vector.load %arg7[%c1_181, %c3_182, %c0_183, %c0_184] : memref<3x4x128x96xbf16, #tpu.memory_space<vmem>>, vector<1x1x128x96xbf16>
    %355 = vector.shape_cast %354 : vector<1x1x128x96xbf16> to vector<128x96xbf16>
    %cst_185 = arith.constant dense<0.000000e+00> : vector<48x96xf32>
    %356 = tpu.matmul %256, %355, %cst_185 {dimension_numbers = #tpu.dot_dimension_numbers<[1], [0], [0], [1], [0, 0, 1, 1], [], []>} : vector<48x128xbf16>, vector<128x96xbf16>, vector<48x96xf32> -> vector<48x96xf32>
    %c1_186 = arith.constant 1 : index
    %c3_187 = arith.constant 3 : index
    %c0_188 = arith.constant 0 : index
    %c0_189 = arith.constant 0 : index
    %357 = vector.load %arg8[%c1_186, %c3_187, %c0_188, %c0_189] : memref<3x4x1x96xf32, #tpu.memory_space<vmem>>, vector<1x1x1x96xf32>
    %358 = vector.shape_cast %357 : vector<1x1x1x96xf32> to vector<1x96xf32>
    %359 = vector.broadcast %358 : vector<1x96xf32> to vector<48x96xf32>
    %360 = arith.addf %356, %359 : vector<48x96xf32>
    %361 = vector.extract_strided_slice %360 {offsets = [0, 0], sizes = [48, 32], strides = [1, 1]} : vector<48x96xf32> to vector<48x32xf32>
    %362 = vector.extract_strided_slice %360 {offsets = [0, 32], sizes = [48, 32], strides = [1, 1]} : vector<48x96xf32> to vector<48x32xf32>
    %363 = vector.extract_strided_slice %360 {offsets = [0, 64], sizes = [48, 32], strides = [1, 1]} : vector<48x96xf32> to vector<48x32xf32>
    %cst_190 = arith.constant dense<0.000000e+00> : vector<48x48xf32>
    %364 = tpu.matmul %361, %362, %cst_190 {dimension_numbers = #tpu.dot_dimension_numbers<[1], [1], [0], [0], [0, 0, 1, 0], [], []>} : vector<48x32xf32>, vector<48x32xf32>, vector<48x48xf32> -> vector<48x48xf32>
    %cst_191 = arith.constant 0.176776692 : f32
    %365 = vector.broadcast %cst_191 : f32 to vector<48x48xf32>
    %366 = arith.mulf %364, %365 : vector<48x48xf32>
    %367 = arith.addf %366, %52 : vector<48x48xf32>
    %cst_192 = arith.constant dense<0xFF800000> : vector<48xf32>
    %368 = vector.multi_reduction <maximumf>, %367, %cst_192 [1] : vector<48x48xf32> to vector<48xf32>
    %369 = vector.shape_cast %368 : vector<48xf32> to vector<48x1xf32>
    %370 = vector.broadcast %369 : vector<48x1xf32> to vector<48x48xf32>
    %371 = arith.subf %367, %370 : vector<48x48xf32>
    %372 = math.exp %371 : vector<48x48xf32>
    %cst_193 = arith.constant dense<0.000000e+00> : vector<48xf32>
    %373 = vector.multi_reduction <add>, %372, %cst_193 [1] : vector<48x48xf32> to vector<48xf32>
    %374 = vector.shape_cast %373 : vector<48xf32> to vector<48x1xf32>
    %375 = tpu.reciprocal %374 : vector<48x1xf32> -> vector<48x1xf32>
    %376 = vector.broadcast %375 : vector<48x1xf32> to vector<48x48xf32>
    %377 = arith.mulf %372, %376 : vector<48x48xf32>
    %378 = arith.truncf %377 : vector<48x48xf32> to vector<48x48xbf16>
    %379 = arith.truncf %363 : vector<48x32xf32> to vector<48x32xbf16>
    %cst_194 = arith.constant dense<0.000000e+00> : vector<48x32xf32>
    %380 = tpu.matmul %378, %379, %cst_194 {dimension_numbers = #tpu.dot_dimension_numbers<[1], [0], [0], [1], [0, 0, 1, 1], [], []>} : vector<48x48xbf16>, vector<48x32xbf16>, vector<48x32xf32> -> vector<48x32xf32>
    %381 = arith.truncf %380 : vector<48x32xf32> to vector<48x32xbf16>
    %c1_195 = arith.constant 1 : index
    %c3_196 = arith.constant 3 : index
    %c0_197 = arith.constant 0 : index
    %c0_198 = arith.constant 0 : index
    %382 = vector.load %arg9[%c1_195, %c3_196, %c0_197, %c0_198] : memref<3x4x32x128xbf16, #tpu.memory_space<vmem>>, vector<1x1x32x128xbf16>
    %383 = vector.shape_cast %382 : vector<1x1x32x128xbf16> to vector<32x128xbf16>
    %cst_199 = arith.constant dense<0.000000e+00> : vector<48x128xf32>
    %384 = tpu.matmul %381, %383, %cst_199 {dimension_numbers = #tpu.dot_dimension_numbers<[1], [0], [0], [1], [0, 0, 1, 1], [], []>} : vector<48x32xbf16>, vector<32x128xbf16>, vector<48x128xf32> -> vector<48x128xf32>
    %385 = arith.addf %353, %384 : vector<48x128xf32>
    %386 = arith.addf %253, %385 : vector<48x128xf32>
    %387 = vector.extract_strided_slice %255 {offsets = [0, 0], sizes = [1, 128], strides = [1, 1]} : vector<8x128xf32> to vector<1x128xf32>
    %388 = vector.broadcast %387 : vector<1x128xf32> to vector<48x128xf32>
    %389 = arith.addf %386, %388 : vector<48x128xf32>
    %390 = vector.extract_strided_slice %255 {offsets = [3, 0], sizes = [1, 128], strides = [1, 1]} : vector<8x128xf32> to vector<1x128xf32>
    %391 = vector.extract_strided_slice %255 {offsets = [4, 0], sizes = [1, 128], strides = [1, 1]} : vector<8x128xf32> to vector<1x128xf32>
    %cst_200 = arith.constant dense<0.000000e+00> : vector<48xf32>
    %392 = vector.multi_reduction <add>, %389, %cst_200 [1] : vector<48x128xf32> to vector<48xf32>
    %393 = vector.shape_cast %392 : vector<48xf32> to vector<48x1xf32>
    %cst_201 = arith.constant 1.280000e+02 : f32
    %394 = vector.broadcast %cst_201 : f32 to vector<48x1xf32>
    %395 = arith.divf %393, %394 : vector<48x1xf32>
    %396 = arith.mulf %389, %389 : vector<48x128xf32>
    %cst_202 = arith.constant dense<0.000000e+00> : vector<48xf32>
    %397 = vector.multi_reduction <add>, %396, %cst_202 [1] : vector<48x128xf32> to vector<48xf32>
    %398 = vector.shape_cast %397 : vector<48xf32> to vector<48x1xf32>
    %cst_203 = arith.constant 1.280000e+02 : f32
    %399 = vector.broadcast %cst_203 : f32 to vector<48x1xf32>
    %400 = arith.divf %398, %399 : vector<48x1xf32>
    %401 = vector.broadcast %395 : vector<48x1xf32> to vector<48x128xf32>
    %402 = arith.subf %389, %401 : vector<48x128xf32>
    %403 = arith.mulf %395, %395 : vector<48x1xf32>
    %404 = arith.subf %400, %403 : vector<48x1xf32>
    %cst_204 = arith.constant 9.99999974E-6 : f32
    %405 = vector.broadcast %cst_204 : f32 to vector<48x1xf32>
    %406 = arith.addf %404, %405 : vector<48x1xf32>
    %407 = math.rsqrt %406 : vector<48x1xf32>
    %408 = vector.broadcast %407 : vector<48x1xf32> to vector<48x128xf32>
    %409 = arith.mulf %402, %408 : vector<48x128xf32>
    %410 = vector.broadcast %390 : vector<1x128xf32> to vector<48x128xf32>
    %411 = arith.mulf %409, %410 : vector<48x128xf32>
    %412 = vector.broadcast %391 : vector<1x128xf32> to vector<48x128xf32>
    %413 = arith.addf %411, %412 : vector<48x128xf32>
    %414 = arith.truncf %413 : vector<48x128xf32> to vector<48x128xbf16>
    %c1_205 = arith.constant 1 : index
    %c0_206 = arith.constant 0 : index
    %c0_207 = arith.constant 0 : index
    %415 = vector.load %arg10[%c1_205, %c0_206, %c0_207] : memref<3x128x128xbf16, #tpu.memory_space<vmem>>, vector<1x128x128xbf16>
    %416 = vector.shape_cast %415 : vector<1x128x128xbf16> to vector<128x128xbf16>
    %cst_208 = arith.constant dense<0.000000e+00> : vector<48x128xf32>
    %417 = tpu.matmul %414, %416, %cst_208 {dimension_numbers = #tpu.dot_dimension_numbers<[1], [0], [0], [1], [0, 0, 1, 1], [], []>} : vector<48x128xbf16>, vector<128x128xbf16>, vector<48x128xf32> -> vector<48x128xf32>
    %418 = vector.extract_strided_slice %255 {offsets = [1, 0], sizes = [1, 128], strides = [1, 1]} : vector<8x128xf32> to vector<1x128xf32>
    %419 = vector.broadcast %418 : vector<1x128xf32> to vector<48x128xf32>
    %420 = arith.addf %417, %419 : vector<48x128xf32>
    %cst_209 = arith.constant 0.000000e+00 : f32
    %421 = vector.broadcast %cst_209 : f32 to vector<48x128xf32>
    %422 = arith.maximumf %420, %421 : vector<48x128xf32>
    %423 = arith.truncf %422 : vector<48x128xf32> to vector<48x128xbf16>
    %c1_210 = arith.constant 1 : index
    %c0_211 = arith.constant 0 : index
    %c0_212 = arith.constant 0 : index
    %424 = vector.load %arg11[%c1_210, %c0_211, %c0_212] : memref<3x128x128xbf16, #tpu.memory_space<vmem>>, vector<1x128x128xbf16>
    %425 = vector.shape_cast %424 : vector<1x128x128xbf16> to vector<128x128xbf16>
    %cst_213 = arith.constant dense<0.000000e+00> : vector<48x128xf32>
    %426 = tpu.matmul %423, %425, %cst_213 {dimension_numbers = #tpu.dot_dimension_numbers<[1], [0], [0], [1], [0, 0, 1, 1], [], []>} : vector<48x128xbf16>, vector<128x128xbf16>, vector<48x128xf32> -> vector<48x128xf32>
    %427 = vector.extract_strided_slice %255 {offsets = [2, 0], sizes = [1, 128], strides = [1, 1]} : vector<8x128xf32> to vector<1x128xf32>
    %428 = vector.broadcast %427 : vector<1x128xf32> to vector<48x128xf32>
    %429 = arith.addf %426, %428 : vector<48x128xf32>
    %430 = arith.addf %413, %429 : vector<48x128xf32>
    %431 = vector.extract_strided_slice %255 {offsets = [5, 0], sizes = [1, 128], strides = [1, 1]} : vector<8x128xf32> to vector<1x128xf32>
    %432 = vector.extract_strided_slice %255 {offsets = [6, 0], sizes = [1, 128], strides = [1, 1]} : vector<8x128xf32> to vector<1x128xf32>
    %cst_214 = arith.constant dense<0.000000e+00> : vector<48xf32>
    %433 = vector.multi_reduction <add>, %430, %cst_214 [1] : vector<48x128xf32> to vector<48xf32>
    %434 = vector.shape_cast %433 : vector<48xf32> to vector<48x1xf32>
    %cst_215 = arith.constant 1.280000e+02 : f32
    %435 = vector.broadcast %cst_215 : f32 to vector<48x1xf32>
    %436 = arith.divf %434, %435 : vector<48x1xf32>
    %437 = arith.mulf %430, %430 : vector<48x128xf32>
    %cst_216 = arith.constant dense<0.000000e+00> : vector<48xf32>
    %438 = vector.multi_reduction <add>, %437, %cst_216 [1] : vector<48x128xf32> to vector<48xf32>
    %439 = vector.shape_cast %438 : vector<48xf32> to vector<48x1xf32>
    %cst_217 = arith.constant 1.280000e+02 : f32
    %440 = vector.broadcast %cst_217 : f32 to vector<48x1xf32>
    %441 = arith.divf %439, %440 : vector<48x1xf32>
    %442 = vector.broadcast %436 : vector<48x1xf32> to vector<48x128xf32>
    %443 = arith.subf %430, %442 : vector<48x128xf32>
    %444 = arith.mulf %436, %436 : vector<48x1xf32>
    %445 = arith.subf %441, %444 : vector<48x1xf32>
    %cst_218 = arith.constant 9.99999974E-6 : f32
    %446 = vector.broadcast %cst_218 : f32 to vector<48x1xf32>
    %447 = arith.addf %445, %446 : vector<48x1xf32>
    %448 = math.rsqrt %447 : vector<48x1xf32>
    %449 = vector.broadcast %448 : vector<48x1xf32> to vector<48x128xf32>
    %450 = arith.mulf %443, %449 : vector<48x128xf32>
    %451 = vector.broadcast %431 : vector<1x128xf32> to vector<48x128xf32>
    %452 = arith.mulf %450, %451 : vector<48x128xf32>
    %453 = vector.broadcast %432 : vector<1x128xf32> to vector<48x128xf32>
    %454 = arith.addf %452, %453 : vector<48x128xf32>
    %c2_219 = arith.constant 2 : index
    %c0_220 = arith.constant 0 : index
    %c0_221 = arith.constant 0 : index
    %455 = vector.load %arg12[%c2_219, %c0_220, %c0_221] : memref<3x8x128xf32, #tpu.memory_space<vmem>>, vector<1x8x128xf32>
    %456 = vector.shape_cast %455 : vector<1x8x128xf32> to vector<8x128xf32>
    %457 = arith.truncf %454 : vector<48x128xf32> to vector<48x128xbf16>
    %cst_222 = arith.constant 0.000000e+00 : f32
    %458 = vector.broadcast %cst_222 : f32 to vector<48x128xf32>
    %c2_223 = arith.constant 2 : index
    %c0_224 = arith.constant 0 : index
    %c0_225 = arith.constant 0 : index
    %c0_226 = arith.constant 0 : index
    %459 = vector.load %arg7[%c2_223, %c0_224, %c0_225, %c0_226] : memref<3x4x128x96xbf16, #tpu.memory_space<vmem>>, vector<1x1x128x96xbf16>
    %460 = vector.shape_cast %459 : vector<1x1x128x96xbf16> to vector<128x96xbf16>
    %cst_227 = arith.constant dense<0.000000e+00> : vector<48x96xf32>
    %461 = tpu.matmul %457, %460, %cst_227 {dimension_numbers = #tpu.dot_dimension_numbers<[1], [0], [0], [1], [0, 0, 1, 1], [], []>} : vector<48x128xbf16>, vector<128x96xbf16>, vector<48x96xf32> -> vector<48x96xf32>
    %c2_228 = arith.constant 2 : index
    %c0_229 = arith.constant 0 : index
    %c0_230 = arith.constant 0 : index
    %c0_231 = arith.constant 0 : index
    %462 = vector.load %arg8[%c2_228, %c0_229, %c0_230, %c0_231] : memref<3x4x1x96xf32, #tpu.memory_space<vmem>>, vector<1x1x1x96xf32>
    %463 = vector.shape_cast %462 : vector<1x1x1x96xf32> to vector<1x96xf32>
    %464 = vector.broadcast %463 : vector<1x96xf32> to vector<48x96xf32>
    %465 = arith.addf %461, %464 : vector<48x96xf32>
    %466 = vector.extract_strided_slice %465 {offsets = [0, 0], sizes = [48, 32], strides = [1, 1]} : vector<48x96xf32> to vector<48x32xf32>
    %467 = vector.extract_strided_slice %465 {offsets = [0, 32], sizes = [48, 32], strides = [1, 1]} : vector<48x96xf32> to vector<48x32xf32>
    %468 = vector.extract_strided_slice %465 {offsets = [0, 64], sizes = [48, 32], strides = [1, 1]} : vector<48x96xf32> to vector<48x32xf32>
    %cst_232 = arith.constant dense<0.000000e+00> : vector<48x48xf32>
    %469 = tpu.matmul %466, %467, %cst_232 {dimension_numbers = #tpu.dot_dimension_numbers<[1], [1], [0], [0], [0, 0, 1, 0], [], []>} : vector<48x32xf32>, vector<48x32xf32>, vector<48x48xf32> -> vector<48x48xf32>
    %cst_233 = arith.constant 0.176776692 : f32
    %470 = vector.broadcast %cst_233 : f32 to vector<48x48xf32>
    %471 = arith.mulf %469, %470 : vector<48x48xf32>
    %472 = arith.addf %471, %52 : vector<48x48xf32>
    %cst_234 = arith.constant dense<0xFF800000> : vector<48xf32>
    %473 = vector.multi_reduction <maximumf>, %472, %cst_234 [1] : vector<48x48xf32> to vector<48xf32>
    %474 = vector.shape_cast %473 : vector<48xf32> to vector<48x1xf32>
    %475 = vector.broadcast %474 : vector<48x1xf32> to vector<48x48xf32>
    %476 = arith.subf %472, %475 : vector<48x48xf32>
    %477 = math.exp %476 : vector<48x48xf32>
    %cst_235 = arith.constant dense<0.000000e+00> : vector<48xf32>
    %478 = vector.multi_reduction <add>, %477, %cst_235 [1] : vector<48x48xf32> to vector<48xf32>
    %479 = vector.shape_cast %478 : vector<48xf32> to vector<48x1xf32>
    %480 = tpu.reciprocal %479 : vector<48x1xf32> -> vector<48x1xf32>
    %481 = vector.broadcast %480 : vector<48x1xf32> to vector<48x48xf32>
    %482 = arith.mulf %477, %481 : vector<48x48xf32>
    %483 = arith.truncf %482 : vector<48x48xf32> to vector<48x48xbf16>
    %484 = arith.truncf %468 : vector<48x32xf32> to vector<48x32xbf16>
    %cst_236 = arith.constant dense<0.000000e+00> : vector<48x32xf32>
    %485 = tpu.matmul %483, %484, %cst_236 {dimension_numbers = #tpu.dot_dimension_numbers<[1], [0], [0], [1], [0, 0, 1, 1], [], []>} : vector<48x48xbf16>, vector<48x32xbf16>, vector<48x32xf32> -> vector<48x32xf32>
    %486 = arith.truncf %485 : vector<48x32xf32> to vector<48x32xbf16>
    %c2_237 = arith.constant 2 : index
    %c0_238 = arith.constant 0 : index
    %c0_239 = arith.constant 0 : index
    %c0_240 = arith.constant 0 : index
    %487 = vector.load %arg9[%c2_237, %c0_238, %c0_239, %c0_240] : memref<3x4x32x128xbf16, #tpu.memory_space<vmem>>, vector<1x1x32x128xbf16>
    %488 = vector.shape_cast %487 : vector<1x1x32x128xbf16> to vector<32x128xbf16>
    %cst_241 = arith.constant dense<0.000000e+00> : vector<48x128xf32>
    %489 = tpu.matmul %486, %488, %cst_241 {dimension_numbers = #tpu.dot_dimension_numbers<[1], [0], [0], [1], [0, 0, 1, 1], [], []>} : vector<48x32xbf16>, vector<32x128xbf16>, vector<48x128xf32> -> vector<48x128xf32>
    %490 = arith.addf %458, %489 : vector<48x128xf32>
    %c2_242 = arith.constant 2 : index
    %c1_243 = arith.constant 1 : index
    %c0_244 = arith.constant 0 : index
    %c0_245 = arith.constant 0 : index
    %491 = vector.load %arg7[%c2_242, %c1_243, %c0_244, %c0_245] : memref<3x4x128x96xbf16, #tpu.memory_space<vmem>>, vector<1x1x128x96xbf16>
    %492 = vector.shape_cast %491 : vector<1x1x128x96xbf16> to vector<128x96xbf16>
    %cst_246 = arith.constant dense<0.000000e+00> : vector<48x96xf32>
    %493 = tpu.matmul %457, %492, %cst_246 {dimension_numbers = #tpu.dot_dimension_numbers<[1], [0], [0], [1], [0, 0, 1, 1], [], []>} : vector<48x128xbf16>, vector<128x96xbf16>, vector<48x96xf32> -> vector<48x96xf32>
    %c2_247 = arith.constant 2 : index
    %c1_248 = arith.constant 1 : index
    %c0_249 = arith.constant 0 : index
    %c0_250 = arith.constant 0 : index
    %494 = vector.load %arg8[%c2_247, %c1_248, %c0_249, %c0_250] : memref<3x4x1x96xf32, #tpu.memory_space<vmem>>, vector<1x1x1x96xf32>
    %495 = vector.shape_cast %494 : vector<1x1x1x96xf32> to vector<1x96xf32>
    %496 = vector.broadcast %495 : vector<1x96xf32> to vector<48x96xf32>
    %497 = arith.addf %493, %496 : vector<48x96xf32>
    %498 = vector.extract_strided_slice %497 {offsets = [0, 0], sizes = [48, 32], strides = [1, 1]} : vector<48x96xf32> to vector<48x32xf32>
    %499 = vector.extract_strided_slice %497 {offsets = [0, 32], sizes = [48, 32], strides = [1, 1]} : vector<48x96xf32> to vector<48x32xf32>
    %500 = vector.extract_strided_slice %497 {offsets = [0, 64], sizes = [48, 32], strides = [1, 1]} : vector<48x96xf32> to vector<48x32xf32>
    %cst_251 = arith.constant dense<0.000000e+00> : vector<48x48xf32>
    %501 = tpu.matmul %498, %499, %cst_251 {dimension_numbers = #tpu.dot_dimension_numbers<[1], [1], [0], [0], [0, 0, 1, 0], [], []>} : vector<48x32xf32>, vector<48x32xf32>, vector<48x48xf32> -> vector<48x48xf32>
    %cst_252 = arith.constant 0.176776692 : f32
    %502 = vector.broadcast %cst_252 : f32 to vector<48x48xf32>
    %503 = arith.mulf %501, %502 : vector<48x48xf32>
    %504 = arith.addf %503, %52 : vector<48x48xf32>
    %cst_253 = arith.constant dense<0xFF800000> : vector<48xf32>
    %505 = vector.multi_reduction <maximumf>, %504, %cst_253 [1] : vector<48x48xf32> to vector<48xf32>
    %506 = vector.shape_cast %505 : vector<48xf32> to vector<48x1xf32>
    %507 = vector.broadcast %506 : vector<48x1xf32> to vector<48x48xf32>
    %508 = arith.subf %504, %507 : vector<48x48xf32>
    %509 = math.exp %508 : vector<48x48xf32>
    %cst_254 = arith.constant dense<0.000000e+00> : vector<48xf32>
    %510 = vector.multi_reduction <add>, %509, %cst_254 [1] : vector<48x48xf32> to vector<48xf32>
    %511 = vector.shape_cast %510 : vector<48xf32> to vector<48x1xf32>
    %512 = tpu.reciprocal %511 : vector<48x1xf32> -> vector<48x1xf32>
    %513 = vector.broadcast %512 : vector<48x1xf32> to vector<48x48xf32>
    %514 = arith.mulf %509, %513 : vector<48x48xf32>
    %515 = arith.truncf %514 : vector<48x48xf32> to vector<48x48xbf16>
    %516 = arith.truncf %500 : vector<48x32xf32> to vector<48x32xbf16>
    %cst_255 = arith.constant dense<0.000000e+00> : vector<48x32xf32>
    %517 = tpu.matmul %515, %516, %cst_255 {dimension_numbers = #tpu.dot_dimension_numbers<[1], [0], [0], [1], [0, 0, 1, 1], [], []>} : vector<48x48xbf16>, vector<48x32xbf16>, vector<48x32xf32> -> vector<48x32xf32>
    %518 = arith.truncf %517 : vector<48x32xf32> to vector<48x32xbf16>
    %c2_256 = arith.constant 2 : index
    %c1_257 = arith.constant 1 : index
    %c0_258 = arith.constant 0 : index
    %c0_259 = arith.constant 0 : index
    %519 = vector.load %arg9[%c2_256, %c1_257, %c0_258, %c0_259] : memref<3x4x32x128xbf16, #tpu.memory_space<vmem>>, vector<1x1x32x128xbf16>
    %520 = vector.shape_cast %519 : vector<1x1x32x128xbf16> to vector<32x128xbf16>
    %cst_260 = arith.constant dense<0.000000e+00> : vector<48x128xf32>
    %521 = tpu.matmul %518, %520, %cst_260 {dimension_numbers = #tpu.dot_dimension_numbers<[1], [0], [0], [1], [0, 0, 1, 1], [], []>} : vector<48x32xbf16>, vector<32x128xbf16>, vector<48x128xf32> -> vector<48x128xf32>
    %522 = arith.addf %490, %521 : vector<48x128xf32>
    %c2_261 = arith.constant 2 : index
    %c2_262 = arith.constant 2 : index
    %c0_263 = arith.constant 0 : index
    %c0_264 = arith.constant 0 : index
    %523 = vector.load %arg7[%c2_261, %c2_262, %c0_263, %c0_264] : memref<3x4x128x96xbf16, #tpu.memory_space<vmem>>, vector<1x1x128x96xbf16>
    %524 = vector.shape_cast %523 : vector<1x1x128x96xbf16> to vector<128x96xbf16>
    %cst_265 = arith.constant dense<0.000000e+00> : vector<48x96xf32>
    %525 = tpu.matmul %457, %524, %cst_265 {dimension_numbers = #tpu.dot_dimension_numbers<[1], [0], [0], [1], [0, 0, 1, 1], [], []>} : vector<48x128xbf16>, vector<128x96xbf16>, vector<48x96xf32> -> vector<48x96xf32>
    %c2_266 = arith.constant 2 : index
    %c2_267 = arith.constant 2 : index
    %c0_268 = arith.constant 0 : index
    %c0_269 = arith.constant 0 : index
    %526 = vector.load %arg8[%c2_266, %c2_267, %c0_268, %c0_269] : memref<3x4x1x96xf32, #tpu.memory_space<vmem>>, vector<1x1x1x96xf32>
    %527 = vector.shape_cast %526 : vector<1x1x1x96xf32> to vector<1x96xf32>
    %528 = vector.broadcast %527 : vector<1x96xf32> to vector<48x96xf32>
    %529 = arith.addf %525, %528 : vector<48x96xf32>
    %530 = vector.extract_strided_slice %529 {offsets = [0, 0], sizes = [48, 32], strides = [1, 1]} : vector<48x96xf32> to vector<48x32xf32>
    %531 = vector.extract_strided_slice %529 {offsets = [0, 32], sizes = [48, 32], strides = [1, 1]} : vector<48x96xf32> to vector<48x32xf32>
    %532 = vector.extract_strided_slice %529 {offsets = [0, 64], sizes = [48, 32], strides = [1, 1]} : vector<48x96xf32> to vector<48x32xf32>
    %cst_270 = arith.constant dense<0.000000e+00> : vector<48x48xf32>
    %533 = tpu.matmul %530, %531, %cst_270 {dimension_numbers = #tpu.dot_dimension_numbers<[1], [1], [0], [0], [0, 0, 1, 0], [], []>} : vector<48x32xf32>, vector<48x32xf32>, vector<48x48xf32> -> vector<48x48xf32>
    %cst_271 = arith.constant 0.176776692 : f32
    %534 = vector.broadcast %cst_271 : f32 to vector<48x48xf32>
    %535 = arith.mulf %533, %534 : vector<48x48xf32>
    %536 = arith.addf %535, %52 : vector<48x48xf32>
    %cst_272 = arith.constant dense<0xFF800000> : vector<48xf32>
    %537 = vector.multi_reduction <maximumf>, %536, %cst_272 [1] : vector<48x48xf32> to vector<48xf32>
    %538 = vector.shape_cast %537 : vector<48xf32> to vector<48x1xf32>
    %539 = vector.broadcast %538 : vector<48x1xf32> to vector<48x48xf32>
    %540 = arith.subf %536, %539 : vector<48x48xf32>
    %541 = math.exp %540 : vector<48x48xf32>
    %cst_273 = arith.constant dense<0.000000e+00> : vector<48xf32>
    %542 = vector.multi_reduction <add>, %541, %cst_273 [1] : vector<48x48xf32> to vector<48xf32>
    %543 = vector.shape_cast %542 : vector<48xf32> to vector<48x1xf32>
    %544 = tpu.reciprocal %543 : vector<48x1xf32> -> vector<48x1xf32>
    %545 = vector.broadcast %544 : vector<48x1xf32> to vector<48x48xf32>
    %546 = arith.mulf %541, %545 : vector<48x48xf32>
    %547 = arith.truncf %546 : vector<48x48xf32> to vector<48x48xbf16>
    %548 = arith.truncf %532 : vector<48x32xf32> to vector<48x32xbf16>
    %cst_274 = arith.constant dense<0.000000e+00> : vector<48x32xf32>
    %549 = tpu.matmul %547, %548, %cst_274 {dimension_numbers = #tpu.dot_dimension_numbers<[1], [0], [0], [1], [0, 0, 1, 1], [], []>} : vector<48x48xbf16>, vector<48x32xbf16>, vector<48x32xf32> -> vector<48x32xf32>
    %550 = arith.truncf %549 : vector<48x32xf32> to vector<48x32xbf16>
    %c2_275 = arith.constant 2 : index
    %c2_276 = arith.constant 2 : index
    %c0_277 = arith.constant 0 : index
    %c0_278 = arith.constant 0 : index
    %551 = vector.load %arg9[%c2_275, %c2_276, %c0_277, %c0_278] : memref<3x4x32x128xbf16, #tpu.memory_space<vmem>>, vector<1x1x32x128xbf16>
    %552 = vector.shape_cast %551 : vector<1x1x32x128xbf16> to vector<32x128xbf16>
    %cst_279 = arith.constant dense<0.000000e+00> : vector<48x128xf32>
    %553 = tpu.matmul %550, %552, %cst_279 {dimension_numbers = #tpu.dot_dimension_numbers<[1], [0], [0], [1], [0, 0, 1, 1], [], []>} : vector<48x32xbf16>, vector<32x128xbf16>, vector<48x128xf32> -> vector<48x128xf32>
    %554 = arith.addf %522, %553 : vector<48x128xf32>
    %c2_280 = arith.constant 2 : index
    %c3_281 = arith.constant 3 : index
    %c0_282 = arith.constant 0 : index
    %c0_283 = arith.constant 0 : index
    %555 = vector.load %arg7[%c2_280, %c3_281, %c0_282, %c0_283] : memref<3x4x128x96xbf16, #tpu.memory_space<vmem>>, vector<1x1x128x96xbf16>
    %556 = vector.shape_cast %555 : vector<1x1x128x96xbf16> to vector<128x96xbf16>
    %cst_284 = arith.constant dense<0.000000e+00> : vector<48x96xf32>
    %557 = tpu.matmul %457, %556, %cst_284 {dimension_numbers = #tpu.dot_dimension_numbers<[1], [0], [0], [1], [0, 0, 1, 1], [], []>} : vector<48x128xbf16>, vector<128x96xbf16>, vector<48x96xf32> -> vector<48x96xf32>
    %c2_285 = arith.constant 2 : index
    %c3_286 = arith.constant 3 : index
    %c0_287 = arith.constant 0 : index
    %c0_288 = arith.constant 0 : index
    %558 = vector.load %arg8[%c2_285, %c3_286, %c0_287, %c0_288] : memref<3x4x1x96xf32, #tpu.memory_space<vmem>>, vector<1x1x1x96xf32>
    %559 = vector.shape_cast %558 : vector<1x1x1x96xf32> to vector<1x96xf32>
    %560 = vector.broadcast %559 : vector<1x96xf32> to vector<48x96xf32>
    %561 = arith.addf %557, %560 : vector<48x96xf32>
    %562 = vector.extract_strided_slice %561 {offsets = [0, 0], sizes = [48, 32], strides = [1, 1]} : vector<48x96xf32> to vector<48x32xf32>
    %563 = vector.extract_strided_slice %561 {offsets = [0, 32], sizes = [48, 32], strides = [1, 1]} : vector<48x96xf32> to vector<48x32xf32>
    %564 = vector.extract_strided_slice %561 {offsets = [0, 64], sizes = [48, 32], strides = [1, 1]} : vector<48x96xf32> to vector<48x32xf32>
    %cst_289 = arith.constant dense<0.000000e+00> : vector<48x48xf32>
    %565 = tpu.matmul %562, %563, %cst_289 {dimension_numbers = #tpu.dot_dimension_numbers<[1], [1], [0], [0], [0, 0, 1, 0], [], []>} : vector<48x32xf32>, vector<48x32xf32>, vector<48x48xf32> -> vector<48x48xf32>
    %cst_290 = arith.constant 0.176776692 : f32
    %566 = vector.broadcast %cst_290 : f32 to vector<48x48xf32>
    %567 = arith.mulf %565, %566 : vector<48x48xf32>
    %568 = arith.addf %567, %52 : vector<48x48xf32>
    %cst_291 = arith.constant dense<0xFF800000> : vector<48xf32>
    %569 = vector.multi_reduction <maximumf>, %568, %cst_291 [1] : vector<48x48xf32> to vector<48xf32>
    %570 = vector.shape_cast %569 : vector<48xf32> to vector<48x1xf32>
    %571 = vector.broadcast %570 : vector<48x1xf32> to vector<48x48xf32>
    %572 = arith.subf %568, %571 : vector<48x48xf32>
    %573 = math.exp %572 : vector<48x48xf32>
    %cst_292 = arith.constant dense<0.000000e+00> : vector<48xf32>
    %574 = vector.multi_reduction <add>, %573, %cst_292 [1] : vector<48x48xf32> to vector<48xf32>
    %575 = vector.shape_cast %574 : vector<48xf32> to vector<48x1xf32>
    %576 = tpu.reciprocal %575 : vector<48x1xf32> -> vector<48x1xf32>
    %577 = vector.broadcast %576 : vector<48x1xf32> to vector<48x48xf32>
    %578 = arith.mulf %573, %577 : vector<48x48xf32>
    %579 = arith.truncf %578 : vector<48x48xf32> to vector<48x48xbf16>
    %580 = arith.truncf %564 : vector<48x32xf32> to vector<48x32xbf16>
    %cst_293 = arith.constant dense<0.000000e+00> : vector<48x32xf32>
    %581 = tpu.matmul %579, %580, %cst_293 {dimension_numbers = #tpu.dot_dimension_numbers<[1], [0], [0], [1], [0, 0, 1, 1], [], []>} : vector<48x48xbf16>, vector<48x32xbf16>, vector<48x32xf32> -> vector<48x32xf32>
    %582 = arith.truncf %581 : vector<48x32xf32> to vector<48x32xbf16>
    %c2_294 = arith.constant 2 : index
    %c3_295 = arith.constant 3 : index
    %c0_296 = arith.constant 0 : index
    %c0_297 = arith.constant 0 : index
    %583 = vector.load %arg9[%c2_294, %c3_295, %c0_296, %c0_297] : memref<3x4x32x128xbf16, #tpu.memory_space<vmem>>, vector<1x1x32x128xbf16>
    %584 = vector.shape_cast %583 : vector<1x1x32x128xbf16> to vector<32x128xbf16>
    %cst_298 = arith.constant dense<0.000000e+00> : vector<48x128xf32>
    %585 = tpu.matmul %582, %584, %cst_298 {dimension_numbers = #tpu.dot_dimension_numbers<[1], [0], [0], [1], [0, 0, 1, 1], [], []>} : vector<48x32xbf16>, vector<32x128xbf16>, vector<48x128xf32> -> vector<48x128xf32>
    %586 = arith.addf %554, %585 : vector<48x128xf32>
    %587 = arith.addf %454, %586 : vector<48x128xf32>
    %588 = vector.extract_strided_slice %456 {offsets = [0, 0], sizes = [1, 128], strides = [1, 1]} : vector<8x128xf32> to vector<1x128xf32>
    %589 = vector.broadcast %588 : vector<1x128xf32> to vector<48x128xf32>
    %590 = arith.addf %587, %589 : vector<48x128xf32>
    %591 = vector.extract_strided_slice %456 {offsets = [3, 0], sizes = [1, 128], strides = [1, 1]} : vector<8x128xf32> to vector<1x128xf32>
    %592 = vector.extract_strided_slice %456 {offsets = [4, 0], sizes = [1, 128], strides = [1, 1]} : vector<8x128xf32> to vector<1x128xf32>
    %cst_299 = arith.constant dense<0.000000e+00> : vector<48xf32>
    %593 = vector.multi_reduction <add>, %590, %cst_299 [1] : vector<48x128xf32> to vector<48xf32>
    %594 = vector.shape_cast %593 : vector<48xf32> to vector<48x1xf32>
    %cst_300 = arith.constant 1.280000e+02 : f32
    %595 = vector.broadcast %cst_300 : f32 to vector<48x1xf32>
    %596 = arith.divf %594, %595 : vector<48x1xf32>
    %597 = arith.mulf %590, %590 : vector<48x128xf32>
    %cst_301 = arith.constant dense<0.000000e+00> : vector<48xf32>
    %598 = vector.multi_reduction <add>, %597, %cst_301 [1] : vector<48x128xf32> to vector<48xf32>
    %599 = vector.shape_cast %598 : vector<48xf32> to vector<48x1xf32>
    %cst_302 = arith.constant 1.280000e+02 : f32
    %600 = vector.broadcast %cst_302 : f32 to vector<48x1xf32>
    %601 = arith.divf %599, %600 : vector<48x1xf32>
    %602 = vector.broadcast %596 : vector<48x1xf32> to vector<48x128xf32>
    %603 = arith.subf %590, %602 : vector<48x128xf32>
    %604 = arith.mulf %596, %596 : vector<48x1xf32>
    %605 = arith.subf %601, %604 : vector<48x1xf32>
    %cst_303 = arith.constant 9.99999974E-6 : f32
    %606 = vector.broadcast %cst_303 : f32 to vector<48x1xf32>
    %607 = arith.addf %605, %606 : vector<48x1xf32>
    %608 = math.rsqrt %607 : vector<48x1xf32>
    %609 = vector.broadcast %608 : vector<48x1xf32> to vector<48x128xf32>
    %610 = arith.mulf %603, %609 : vector<48x128xf32>
    %611 = vector.broadcast %591 : vector<1x128xf32> to vector<48x128xf32>
    %612 = arith.mulf %610, %611 : vector<48x128xf32>
    %613 = vector.broadcast %592 : vector<1x128xf32> to vector<48x128xf32>
    %614 = arith.addf %612, %613 : vector<48x128xf32>
    %615 = arith.truncf %614 : vector<48x128xf32> to vector<48x128xbf16>
    %c2_304 = arith.constant 2 : index
    %c0_305 = arith.constant 0 : index
    %c0_306 = arith.constant 0 : index
    %616 = vector.load %arg10[%c2_304, %c0_305, %c0_306] : memref<3x128x128xbf16, #tpu.memory_space<vmem>>, vector<1x128x128xbf16>
    %617 = vector.shape_cast %616 : vector<1x128x128xbf16> to vector<128x128xbf16>
    %cst_307 = arith.constant dense<0.000000e+00> : vector<48x128xf32>
    %618 = tpu.matmul %615, %617, %cst_307 {dimension_numbers = #tpu.dot_dimension_numbers<[1], [0], [0], [1], [0, 0, 1, 1], [], []>} : vector<48x128xbf16>, vector<128x128xbf16>, vector<48x128xf32> -> vector<48x128xf32>
    %619 = vector.extract_strided_slice %456 {offsets = [1, 0], sizes = [1, 128], strides = [1, 1]} : vector<8x128xf32> to vector<1x128xf32>
    %620 = vector.broadcast %619 : vector<1x128xf32> to vector<48x128xf32>
    %621 = arith.addf %618, %620 : vector<48x128xf32>
    %cst_308 = arith.constant 0.000000e+00 : f32
    %622 = vector.broadcast %cst_308 : f32 to vector<48x128xf32>
    %623 = arith.maximumf %621, %622 : vector<48x128xf32>
    %624 = arith.truncf %623 : vector<48x128xf32> to vector<48x128xbf16>
    %c2_309 = arith.constant 2 : index
    %c0_310 = arith.constant 0 : index
    %c0_311 = arith.constant 0 : index
    %625 = vector.load %arg11[%c2_309, %c0_310, %c0_311] : memref<3x128x128xbf16, #tpu.memory_space<vmem>>, vector<1x128x128xbf16>
    %626 = vector.shape_cast %625 : vector<1x128x128xbf16> to vector<128x128xbf16>
    %cst_312 = arith.constant dense<0.000000e+00> : vector<48x128xf32>
    %627 = tpu.matmul %624, %626, %cst_312 {dimension_numbers = #tpu.dot_dimension_numbers<[1], [0], [0], [1], [0, 0, 1, 1], [], []>} : vector<48x128xbf16>, vector<128x128xbf16>, vector<48x128xf32> -> vector<48x128xf32>
    %628 = vector.extract_strided_slice %456 {offsets = [2, 0], sizes = [1, 128], strides = [1, 1]} : vector<8x128xf32> to vector<1x128xf32>
    %629 = vector.broadcast %628 : vector<1x128xf32> to vector<48x128xf32>
    %630 = arith.addf %627, %629 : vector<48x128xf32>
    %631 = arith.addf %614, %630 : vector<48x128xf32>
    %632 = vector.extract_strided_slice %456 {offsets = [5, 0], sizes = [1, 128], strides = [1, 1]} : vector<8x128xf32> to vector<1x128xf32>
    %633 = vector.extract_strided_slice %456 {offsets = [6, 0], sizes = [1, 128], strides = [1, 1]} : vector<8x128xf32> to vector<1x128xf32>
    %cst_313 = arith.constant dense<0.000000e+00> : vector<48xf32>
    %634 = vector.multi_reduction <add>, %631, %cst_313 [1] : vector<48x128xf32> to vector<48xf32>
    %635 = vector.shape_cast %634 : vector<48xf32> to vector<48x1xf32>
    %cst_314 = arith.constant 1.280000e+02 : f32
    %636 = vector.broadcast %cst_314 : f32 to vector<48x1xf32>
    %637 = arith.divf %635, %636 : vector<48x1xf32>
    %638 = arith.mulf %631, %631 : vector<48x128xf32>
    %cst_315 = arith.constant dense<0.000000e+00> : vector<48xf32>
    %639 = vector.multi_reduction <add>, %638, %cst_315 [1] : vector<48x128xf32> to vector<48xf32>
    %640 = vector.shape_cast %639 : vector<48xf32> to vector<48x1xf32>
    %cst_316 = arith.constant 1.280000e+02 : f32
    %641 = vector.broadcast %cst_316 : f32 to vector<48x1xf32>
    %642 = arith.divf %640, %641 : vector<48x1xf32>
    %643 = vector.broadcast %637 : vector<48x1xf32> to vector<48x128xf32>
    %644 = arith.subf %631, %643 : vector<48x128xf32>
    %645 = arith.mulf %637, %637 : vector<48x1xf32>
    %646 = arith.subf %642, %645 : vector<48x1xf32>
    %cst_317 = arith.constant 9.99999974E-6 : f32
    %647 = vector.broadcast %cst_317 : f32 to vector<48x1xf32>
    %648 = arith.addf %646, %647 : vector<48x1xf32>
    %649 = math.rsqrt %648 : vector<48x1xf32>
    %650 = vector.broadcast %649 : vector<48x1xf32> to vector<48x128xf32>
    %651 = arith.mulf %644, %650 : vector<48x128xf32>
    %652 = vector.broadcast %632 : vector<1x128xf32> to vector<48x128xf32>
    %653 = arith.mulf %651, %652 : vector<48x128xf32>
    %654 = vector.broadcast %633 : vector<1x128xf32> to vector<48x128xf32>
    %655 = arith.addf %653, %654 : vector<48x128xf32>
    %656 = vector.extract_strided_slice %655 {offsets = [16, 0], sizes = [8, 128], strides = [1, 1]} : vector<48x128xf32> to vector<8x128xf32>
    %c0_318 = arith.constant 0 : index
    %c0_319 = arith.constant 0 : index
    %657 = vector.load %arg13[%c0_318, %c0_319] : memref<8x128xf32, #tpu.memory_space<vmem>>, vector<8x128xf32>
    %cst_320 = arith.constant dense<0.000000e+00> : vector<8x8xf32>
    %658 = tpu.matmul %656, %657, %cst_320 {dimension_numbers = #tpu.dot_dimension_numbers<[1], [1], [0], [0], [0, 0, 1, 0], [], []>} : vector<8x128xf32>, vector<8x128xf32>, vector<8x8xf32> -> vector<8x8xf32>
    %c0_321 = arith.constant 0 : index
    %c0_322 = arith.constant 0 : index
    %659 = vector.load %arg15[%c0_321, %c0_322] : memref<8x8xf32, #tpu.memory_space<vmem>>, vector<8x8xf32>
    %660 = arith.mulf %658, %659 : vector<8x8xf32>
    %cst_323 = arith.constant dense<0.000000e+00> : vector<8xf32>
    %661 = vector.multi_reduction <add>, %660, %cst_323 [0] : vector<8x8xf32> to vector<8xf32>
    %662 = vector.shape_cast %661 : vector<8xf32> to vector<1x8xf32>
    %663 = vector.extract_strided_slice %655 {offsets = [40, 0], sizes = [8, 128], strides = [1, 1]} : vector<48x128xf32> to vector<8x128xf32>
    %c0_324 = arith.constant 0 : index
    %c0_325 = arith.constant 0 : index
    %664 = vector.load %arg13[%c0_324, %c0_325] : memref<8x128xf32, #tpu.memory_space<vmem>>, vector<8x128xf32>
    %cst_326 = arith.constant dense<0.000000e+00> : vector<8x8xf32>
    %665 = tpu.matmul %663, %664, %cst_326 {dimension_numbers = #tpu.dot_dimension_numbers<[1], [1], [0], [0], [0, 0, 1, 0], [], []>} : vector<8x128xf32>, vector<8x128xf32>, vector<8x8xf32> -> vector<8x8xf32>
    %c0_327 = arith.constant 0 : index
    %c0_328 = arith.constant 0 : index
    %666 = vector.load %arg15[%c0_327, %c0_328] : memref<8x8xf32, #tpu.memory_space<vmem>>, vector<8x8xf32>
    %667 = arith.mulf %665, %666 : vector<8x8xf32>
    %cst_329 = arith.constant dense<0.000000e+00> : vector<8xf32>
    %668 = vector.multi_reduction <add>, %667, %cst_329 [0] : vector<8x8xf32> to vector<8xf32>
    %669 = vector.shape_cast %668 : vector<8xf32> to vector<1x8xf32>
    %670 = tpu.concatenate %662, %669 in 0 : vector<1x8xf32>, vector<1x8xf32> -> vector<2x8xf32>
    %c0_330 = arith.constant 0 : index
    %c0_331 = arith.constant 0 : index
    %671 = vector.load %arg14[%c0_330, %c0_331] : memref<1x8xf32, #tpu.memory_space<vmem>>, vector<1x8xf32>
    %672 = vector.broadcast %671 : vector<1x8xf32> to vector<2x8xf32>
    %673 = arith.addf %670, %672 : vector<2x8xf32>
    %c0_332 = arith.constant 0 : index
    %c0_333 = arith.constant 0 : index
    %c0_334 = arith.constant 0 : index
    %674 = vector.load %arg16[%c0_332, %c0_333, %c0_334] : memref<1x2x8xf32, #tpu.memory_space<vmem>>, vector<1x2x8xf32>
    %675 = vector.shape_cast %674 : vector<1x2x8xf32> to vector<2x8xf32>
    %676 = vector.shape_cast %673 : vector<2x8xf32> to vector<1x2x8xf32>
    tpu.vector_store %arg16[%c0_332, %c0_333, %c0_334], %676 {strides = array<i32>} : memref<1x2x8xf32, #tpu.memory_space<vmem>>, vector<1x2x8xf32>,
    return
  }
  func.func @transform_0(%arg0: i32) -> (i32, i32) {
    %c0_i32 = arith.constant 0 : i32
    %c0_i32_0 = arith.constant 0 : i32
    return %arg0, %c0_i32 : i32, i32
  }
  func.func @transform_1(%arg0: i32) -> (i32, i32) {
    %c0_i32 = arith.constant 0 : i32
    %c0_i32_0 = arith.constant 0 : i32
    %c0_i32_1 = arith.constant 0 : i32
    return %c0_i32, %c0_i32_0 : i32, i32
  }
  func.func @transform_2(%arg0: i32) -> (i32, i32) {
    %c0_i32 = arith.constant 0 : i32
    %c0_i32_0 = arith.constant 0 : i32
    %c0_i32_1 = arith.constant 0 : i32
    return %c0_i32, %c0_i32_0 : i32, i32
  }
  func.func @transform_3(%arg0: i32) -> (i32, i32) {
    %c0_i32 = arith.constant 0 : i32
    %c0_i32_0 = arith.constant 0 : i32
    %c0_i32_1 = arith.constant 0 : i32
    return %c0_i32, %c0_i32_0 : i32, i32
  }
  func.func @transform_4(%arg0: i32) -> (i32, i32) {
    %c0_i32 = arith.constant 0 : i32
    %c0_i32_0 = arith.constant 0 : i32
    %c0_i32_1 = arith.constant 0 : i32
    return %c0_i32, %c0_i32_0 : i32, i32
  }
  func.func @transform_5(%arg0: i32) -> (i32, i32) {
    %c0_i32 = arith.constant 0 : i32
    %c0_i32_0 = arith.constant 0 : i32
    %c0_i32_1 = arith.constant 0 : i32
    return %c0_i32, %c0_i32_0 : i32, i32
  }
  func.func @transform_6(%arg0: i32) -> (i32, i32, i32, i32) {
    %c0_i32 = arith.constant 0 : i32
    %c0_i32_0 = arith.constant 0 : i32
    %c0_i32_1 = arith.constant 0 : i32
    %c0_i32_2 = arith.constant 0 : i32
    %c0_i32_3 = arith.constant 0 : i32
    return %c0_i32, %c0_i32_0, %c0_i32_1, %c0_i32_2 : i32, i32, i32, i32
  }
  func.func @transform_7(%arg0: i32) -> (i32, i32, i32, i32) {
    %c0_i32 = arith.constant 0 : i32
    %c0_i32_0 = arith.constant 0 : i32
    %c0_i32_1 = arith.constant 0 : i32
    %c0_i32_2 = arith.constant 0 : i32
    %c0_i32_3 = arith.constant 0 : i32
    return %c0_i32, %c0_i32_0, %c0_i32_1, %c0_i32_2 : i32, i32, i32, i32
  }
  func.func @transform_8(%arg0: i32) -> (i32, i32, i32, i32) {
    %c0_i32 = arith.constant 0 : i32
    %c0_i32_0 = arith.constant 0 : i32
    %c0_i32_1 = arith.constant 0 : i32
    %c0_i32_2 = arith.constant 0 : i32
    %c0_i32_3 = arith.constant 0 : i32
    return %c0_i32, %c0_i32_0, %c0_i32_1, %c0_i32_2 : i32, i32, i32, i32
  }
  func.func @transform_9(%arg0: i32) -> (i32, i32, i32) {
    %c0_i32 = arith.constant 0 : i32
    %c0_i32_0 = arith.constant 0 : i32
    %c0_i32_1 = arith.constant 0 : i32
    %c0_i32_2 = arith.constant 0 : i32
    return %c0_i32, %c0_i32_0, %c0_i32_1 : i32, i32, i32
  }
  func.func @transform_10(%arg0: i32) -> (i32, i32, i32) {
    %c0_i32 = arith.constant 0 : i32
    %c0_i32_0 = arith.constant 0 : i32
    %c0_i32_1 = arith.constant 0 : i32
    %c0_i32_2 = arith.constant 0 : i32
    return %c0_i32, %c0_i32_0, %c0_i32_1 : i32, i32, i32
  }
  func.func @transform_11(%arg0: i32) -> (i32, i32, i32) {
    %c0_i32 = arith.constant 0 : i32
    %c0_i32_0 = arith.constant 0 : i32
    %c0_i32_1 = arith.constant 0 : i32
    %c0_i32_2 = arith.constant 0 : i32
    return %c0_i32, %c0_i32_0, %c0_i32_1 : i32, i32, i32
  }
  func.func @transform_12(%arg0: i32) -> (i32, i32) {
    %c0_i32 = arith.constant 0 : i32
    %c0_i32_0 = arith.constant 0 : i32
    %c0_i32_1 = arith.constant 0 : i32
    return %c0_i32, %c0_i32_0 : i32, i32
  }
  func.func @transform_13(%arg0: i32) -> (i32, i32) {
    %c0_i32 = arith.constant 0 : i32
    %c0_i32_0 = arith.constant 0 : i32
    %c0_i32_1 = arith.constant 0 : i32
    return %c0_i32, %c0_i32_0 : i32, i32
  }
  func.func @transform_14(%arg0: i32) -> (i32, i32) {
    %c0_i32 = arith.constant 0 : i32
    %c0_i32_0 = arith.constant 0 : i32
    %c0_i32_1 = arith.constant 0 : i32
    return %c0_i32, %c0_i32_0 : i32, i32
  }
  func.func @transform_15(%arg0: i32) -> (i32, i32, i32) {
    %c0_i32 = arith.constant 0 : i32
    %c0_i32_0 = arith.constant 0 : i32
    %c0_i32_1 = arith.constant 0 : i32
    return %arg0, %c0_i32, %c0_i32_0 : i32, i32, i32
  }
}

</mosaic_0001>

<bundles_post_ra>
// kernel: ctran_forward.1
= control target key start
LH: loop header
LB: loop body
LE: loop exit
PB: predicated region body
PF: predicated region fallthrough
CT: control target
= control target key end

     0   :  { %v11391_v1 = vmov 1   ;;  %v11392_v2 = vmov 0   ;;  %v11393_v4 = vmov 2   ;;  %s14348_s0 = inlined_call_operand.vmem [shape: f32[32,3], index: 0, kind: input, shape index: {}]   ;;  %s14349_s1 = inlined_call_operand.vmem [shape: f32[3,128], index: 1, kind: input, shape index: {}]   ;;  %s14350_s2 = inlined_call_operand.vmem [shape: f32[1,128], index: 2, kind: input, shape index: {}]   ;;  %s14351_s3 = inlined_call_operand.vmem [shape: f32[8,128], index: 3, kind: input, shape index: {}]   ;;  %s14352_s4 = inlined_call_operand.vmem [shape: f32[2,128], index: 4, kind: input, shape index: {}]   ;;  %s14353_s5 = inlined_call_operand.vmem [shape: f32[48,48], index: 5, kind: input, shape index: {}]   ;;  %s14354_s6 = inlined_call_operand.vmem [shape: bf16[3,4,128,96], index: 6, kind: input, shape index: {}]   ;;  %s14355_s7 = inlined_call_operand.vmem [shape: f32[3,4,1,96], index: 7, kind: input, shape index: {}]   ;;  %s14356_s8 = inlined_call_operand.vmem [shape: bf16[3,4,32,128], index: 8, kind: input, shape index: {}]   ;;  %s14357_s9 = inlined_call_operand.vmem [shape: bf16[3,128,128], index: 9, kind: input, shape index: {}]   ;;  %s14358_s10 = inlined_call_operand.vmem [shape: bf16[3,128,128], index: 10, kind: input, shape index: {}]   ;;  %s14359_s11 = inlined_call_operand.vmem [shape: f32[3,8,128], index: 11, kind: input, shape index: {}]   ;;  %s14360_s12 = inlined_call_operand.vmem [shape: f32[8,128], index: 12, kind: input, shape index: {}]   ;;  %s14361_s13 = inlined_call_operand.vmem [shape: f32[1,8], index: 13, kind: input, shape index: {}]   ;;  %s14362_s14 = inlined_call_operand.vmem [shape: f32[8,8], index: 14, kind: input, shape index: {}]   ;;  %s14363_s15 = inlined_call_operand.hbm [shape: f32[1,2,8], index: 15, kind: output, shape index: {}]  }
   0x1   :  { %v52_v0 = vld [vmem:[%s14348_s0] sm:$0xff]  ;;  %10618 = vset.pattern.permute.xlu1 %v11391_v1  ;;  %10617 = vset.pattern.permute.xlu0 %v11392_v2  ;;  %v53_v3 = vld [vmem:[%s14348_s0 + $0x8] sm:$0xff]  ;;  %v54_v5 = vld [vmem:[%s14348_s0 + $0x10] sm:$0xff] }
   0x2   :  { %98 = vperm.xlu1 %10618, %v52_v0   ;;  %60 = vperm.xlu0 %10617, %v52_v0   ;;  %v55_v6 = vld [vmem:[%s14348_s0 + $0x18] sm:$0xff] }
   0x6   :  { %102 = vperm.xlu1 %10618, %v53_v3   ;;  %65 = vperm.xlu0 %10617, %v53_v3  }
   0xa   :  { %10620 = vset.pattern.permute.xlu1 %v11393_v4  ;;  %10619 = vset.pattern.permute.xlu0 %v11393_v4 }
   0xb   :  { %131 = vperm.xlu1 %10620, %v53_v3   ;;  %127 = vperm.xlu0 %10619, %v52_v0  }
   0xf   :  { %10621 = vset.pattern.permute.xlu1 %v11392_v2  ;;  %10622 = vset.pattern.permute.xlu0 %v11391_v1 }
  0x10   :  { %70 = vperm.xlu1 %10621, %v54_v5   ;;  %106 = vperm.xlu0 %10622, %v54_v5  }
  0x14   :  { %10623 = vset.pattern.permute.xlu1 %v11393_v4  ;;  %110 = vperm.xlu0 %10622, %v55_v6  }
  0x15   :  { %135 = vperm.xlu1 %10623, %v54_v5  }
  0x18   :  { %10806 = vset.pattern.permute.xlu0 %v11393_v4 }
  0x19   :  { %10624 = vset.pattern.permute.xlu1 %v11392_v2 }
  0x1a   :  { %75 = vperm.xlu1 %10624, %v55_v6  }
  0x1e   :  { %10625 = vset.pattern.permute.xlu1 %v11393_v4 }
  0x1f   :  { %139 = vperm.xlu1 %10625, %v55_v6  }
  0x20   :  { %20 = vsyncpa [#allocation3], 0  ;;  %v8041_v7 = vld [vmem:[%s14349_s1] ss:$0 sm:$0xff]  ;;  %v8043_v11 = vld [vmem:[%s14349_s1 + $0x1] ss:$0 sm:$0xff] }
  0x21   :  { %v8042_v12 = vld [vmem:[%s14350_s2] ss:$0 sm:$0xff]  ;;  %v8044_v20 = vld [vmem:[%s14349_s1 + $0x2] ss:$0 sm:$0xff]  ;;  %v11394_v55 = vmov 0.0   ;;  %v10808_v57 = vld [vmem:[%s14354_s6 + $0x8] sm:$0xff]  }
  0x22   :  { %v11512_v36 = vld [vmem:[%s14351_s3] sm:$0xff]  ;;  %9219 = vmatprep.subr.bf16.mxu0 %v11394_v55  ;;  %v10809_v60 = vld [vmem:[%s14354_s6 + $0x10] sm:$0xff]   ;;  %v10810_v61 = vld [vmem:[%s14354_s6 + $0x18] sm:$0xff]   ;;  %vm11395_vm0 = vmmov 0   ;;  %vm401_vm1 = vcmask 261120   ;;  %s11396_s2 = smov 96  }
  0x23   :  { %v179_v41 = vmul.f32 %v11512_v36, %v11512_v36  ;;  %v10807_v52 = vld [vmem:[%s14354_s6] sm:$0xff]   ;;  %v10812_v63 = vld [vmem:[%s14354_s6 + $0x28] sm:$0xff]   ;;  %v10813_v0 = vld [vmem:[%s14354_s6 + $0x30] sm:$0xff]   ;;  %9235 = vmatprep.mubr.msk.bf16.mxu0 %vm11395_vm0, %v11394_v55  ;;  %vm533_vm3 = vcmask 392192   ;;  %s11397_s28 = smov 64   ;;  %vm7929_vm4 = vcmask 64512  }
  0x24   :  { %9220 = vmatpush3.bf16.msra.mxu0 %v10807_v52  ;;  %v10811_v62 = vld [vmem:[%s14354_s6 + $0x20] sm:$0xff]   ;;  %v10814_v1 = vld [vmem:[%s14354_s6 + $0x38] sm:$0xff]   ;;  %vm11689_vm2 = vmpackc.low %vm401_vm1, %vm401_vm1  ;;  %vm8015_vm5 = vcmask 1040384   ;;  %s11398_s27 = smov [#allocation2]   ;;  %vm8025_vm6 = vcmask 58368  }
  0x25   :  { %9221 = vmatprep.subr.bf16.mxu0 %v11394_v55  ;;  %s8033_s0 = sshll.u32 %s11398_s27, 4  ;;  %s8034_s0 = int_to_ptr.vmem [resolvable:$true] %s8033_s0 }
  0x26   :  { %s11367_s29 = scalar_lea.vmem %s8034_s0, 32  ;;  %p11372_p1 = scmp.lt.s32.totalorder %s8034_s0, %s8034_s0 }
  0x27   :  { %p11368_p0 = scmp.ne.s32.totalorder %s8034_s0, %s11367_s29  ;;  %p11373_p2 = scmp.lt.s32.totalorder %s11367_s29, %s11367_s29 }
  0x28   :  { %9222 = vmatpush3.bf16.msra.mxu0 %v10808_v57 }
  0x29   :  { %9223 = vmatprep.subr.bf16.mxu0 %v11394_v55  ;;  %p11374_p3 = por %p11373_p2, %p11372_p1 }
  0x2b   :  { %p11375_p4 = pnand %p11374_p3, %p11368_p0 }
  0x2c   :  { %9224 = vmatpush3.bf16.msra.mxu0 %v10809_v60 }
  0x2d   :  { %9225 = vmatprep.subr.bf16.mxu0 %v11394_v55 }
  0x30   :  { %9226 = vmatpush3.bf16.msra.mxu0 %v10810_v61  ;;  %v10816_v61 = vld [vmem:[%s14354_s6 + $0x48] sm:$0xff]  }
  0x31   :  { %9227 = vmatprep.subr.bf16.mxu0 %v11394_v55 }
  0x34   :  { %9228 = vmatpush3.bf16.msra.mxu0 %v10811_v62 }
  0x35   :  { %9229 = vmatprep.subr.bf16.mxu0 %v11394_v55 }
  0x38   :  { %9230 = vmatpush3.bf16.msra.mxu0 %v10812_v63 }
  0x39   :  { %9231 = vmatprep.subr.bf16.mxu0 %v11394_v55 }
  0x3c   :  { %9232 = vmatpush3.bf16.msra.mxu0 %v10813_v0 }
  0x3d   :  { %9233 = vmatprep.subr.bf16.mxu0 %v11394_v55 }
  0x40   :  { %9234 = vmatpush3.bf16.msra.mxu0 %v10814_v1 }
  0x41   :  { %9286 = vmatprep.subr.bf16.mxu0 %v11394_v55 }
  0x81   :  { %v99_v8 = vpop.permute.xlu1 %98  ;;  %v61_v9 = vpop.permute.xlu0 %60 }
  0x82   :  { %v82_v10 = vmul.f32 %v8041_v7, %v61_v9  ;;  %v117_v16 = vmul.f32 %v8043_v11, %v99_v8 }
  0x84   :  { %v92_v17 = vadd.f32 %v8042_v12, %v82_v10 }
  0x85   :  { %v103_v13 = vpop.permute.xlu1 %102  ;;  %v66_v14 = vpop.permute.xlu0 %65 }
  0x86   :  { %v83_v15 = vmul.f32 %v8041_v7, %v66_v14  ;;  %v118_v18 = vmul.f32 %v8043_v11, %v103_v13  ;;  %v121_v25 = vadd.f32 %v117_v16, %v92_v17 }
  0x88   :  { %v93_v19 = vadd.f32 %v8042_v12, %v83_v15 }
  0x8a   :  { %v132_v21 = vpop.permute.xlu1 %131  ;;  %v122_v22 = vadd.f32 %v118_v18, %v93_v19  ;;  %v128_v23 = vpop.permute.xlu0 %127 }
  0x8b   :  { %v147_v24 = vmul.f32 %v8044_v20, %v132_v21  ;;  %v146_v26 = vmul.f32 %v8044_v20, %v128_v23 }
  0x8d   :  { %v151_v27 = vadd.f32 %v147_v24, %v122_v22  ;;  %v150_v28 = vadd.f32 %v146_v26, %v121_v25 }
  0x8f   :  { %v107_v29 = vpop.permute.xlu0 %106  ;;  %v71_v30 = vpop.permute.xlu1 %70  ;;  %v11503_v31 = vmax.f32 %v151_v27, 0.0  ;;  %v11505_v32 = vmax.f32 %v150_v28, 0.0 }
  0x90   :  { %v119_v33 = vmul.f32 %v8043_v11, %v107_v29  ;;  %v84_v34 = vmul.f32 %v8041_v7, %v71_v30 }
  0x91   :  { %163 = vadd.xlane.f32.xlu1 %v11503_v31  ;;  %161 = vadd.xlane.f32.xlu0 %v11505_v32  ;;  %v177_v37 = vmul.f32 %v11505_v32, %v11505_v32  ;;  %v178_v43 = vmul.f32 %v11503_v31, %v11503_v31 }
  0x92   :  { %v94_v35 = vadd.f32 %v8042_v12, %v84_v34 }
  0x93   :  { %v111_v44 = vpop.permute.xlu0 %110 }
  0x94   :  { %v136_v38 = vpop.permute.xlu1 %135  ;;  %v123_v39 = vadd.f32 %v119_v33, %v94_v35  ;;  %v120_v48 = vmul.f32 %v8043_v11, %v111_v44 }
  0x95   :  { %v148_v40 = vmul.f32 %v8044_v20, %v136_v38  ;;  %165 = vadd.xlane.f32.xlu1 %v11512_v36  ;;  %182 = vadd.xlane.f32.xlu0 %v177_v37 }
  0x97   :  { %v152_v42 = vadd.f32 %v148_v40, %v123_v39 }
  0x99   :  { %v76_v45 = vpop.permute.xlu1 %75  ;;  %186 = vadd.xlane.f32.xlu1 %v179_v41  ;;  %184 = vadd.xlane.f32.xlu0 %v178_v43  ;;  %v11521_v46 = vmax.f32 %v152_v42, 0.0  ;;  %v8045_v41 = vld [vmem:[%s14352_s4] ss:$0 sm:$0xff] }
  0x9a   :  { %v85_v47 = vmul.f32 %v8041_v7, %v76_v45 }
  0x9b   :  { %v180_v54 = vmul.f32 %v11521_v46, %v11521_v46 }
  0x9c   :  { %v95_v49 = vadd.f32 %v8042_v12, %v85_v47 }
  0x9d   :  { %167 = vadd.xlane.f32.xlu0 %v11521_v46 }
  0x9e   :  { %v140_v50 = vpop.permute.xlu1 %139  ;;  %v124_v51 = vadd.f32 %v120_v48, %v95_v49 }
  0x9f   :  { %v149_v53 = vmul.f32 %v8044_v20, %v140_v50  ;;  %v8046_v50 = vld [vmem:[%s14352_s4 + $0x1] ss:$0 sm:$0xff] }
  0xa1   :  { %v153_v56 = vadd.f32 %v149_v53, %v124_v51  ;;  %188 = vadd.xlane.f32.xlu0 %v180_v54 }
  0xa3   :  { %v11534_v58 = vmax.f32 %v153_v56, 0.0  ;;  %v10815_v56 = vld [vmem:[%s14354_s6 + $0x40] sm:$0xff]  }
  0xa5   :  { %169 = vadd.xlane.f32.xlu1 %v11534_v58  ;;  %v181_v59 = vmul.f32 %v11534_v58, %v11534_v58 }
  0xa7   :  { %190 = vadd.xlane.f32.xlu0 %v181_v59 }
 0x11e   :  { %v164_v2 = vpop.xlane.xlu1 %163  ;;  %v162_v3 = vpop.xlane.xlu0 %161 }
 0x11f   :  { %v172_v4 = vmul.f32 0.0078125, %v162_v3  ;;  %v173_v7 = vmul.f32 0.0078125, %v164_v2  ;;  %v10817_v3 = vld [vmem:[%s14354_s6 + $0x50] sm:$0xff]  }
 0x121   :  { %v202_v8 = vmul.f32 %v172_v4, %v172_v4  ;;  %v203_v15 = vmul.f32 %v173_v7, %v173_v7  ;;  %v197_v33 = vsub.f32 %v11505_v32, %v172_v4  ;;  %v198_v42 = vsub.f32 %v11503_v31, %v173_v7  ;;  %v10819_v7 = vld [vmem:[%s14354_s6 + $0x60] sm:$0xff]  }
 0x122   :  { %v166_v5 = vpop.xlane.xlu1 %165  ;;  %v183_v6 = vpop.xlane.xlu0 %182 }
 0x123   :  { %v174_v9 = vmul.f32 0.0078125, %v166_v5  ;;  %v192_v10 = vmul.f32 0.0078125, %v183_v6 }
 0x125   :  { %v204_v11 = vmul.f32 %v174_v9, %v174_v9  ;;  %v207_v12 = vsub.f32 %v192_v10, %v202_v8  ;;  %v199_v32 = vsub.f32 %v11512_v36, %v174_v9  ;;  %v10820_v9 = vld [vmem:[%s14354_s6 + $0x68] sm:$0xff]   ;;  %v10821_v10 = vld [vmem:[%s14354_s6 + $0x70] sm:$0xff]  }
 0x126   :  { %v187_v13 = vpop.xlane.xlu1 %186  ;;  %v185_v14 = vpop.xlane.xlu0 %184 }
 0x127   :  { %v212_v16 = vadd.f32 1e-05, %v207_v12  ;;  %v194_v17 = vmul.f32 0.0078125, %v187_v13  ;;  %v193_v18 = vmul.f32 0.0078125, %v185_v14  ;;  %v8047_v12 = vld [vmem:[%s14355_s7] ss:$0 sm:$0xff] }
 0x129   :  { %10975 = vrsqrt.f32 %v212_v16  ;;  %v209_v19 = vsub.f32 %v194_v17, %v204_v11  ;;  %v208_v20 = vsub.f32 %v193_v18, %v203_v15  ;;  %v10822_v11 = vld [vmem:[%s14354_s6 + $0x78] sm:$0xff]  }
 0x12a   :  { %v168_v21 = vpop.xlane.xlu0 %167 }
 0x12b   :  { %v214_v22 = vadd.f32 1e-05, %v209_v19  ;;  %v213_v23 = vadd.f32 1e-05, %v208_v20  ;;  %v175_v24 = vmul.f32 0.0078125, %v168_v21 }
 0x12d   :  { %10977 = vrsqrt.f32 %v213_v23  ;;  %v205_v26 = vmul.f32 %v175_v24, %v175_v24  ;;  %v200_v31 = vsub.f32 %v11521_v46, %v175_v24 }
 0x12e   :  { %v189_v25 = vpop.xlane.xlu0 %188  ;;  %10979 = vrsqrt.f32 %v214_v22 }
 0x12f   :  { %v195_v27 = vmul.f32 0.0078125, %v189_v25 }
 0x131   :  { %v210_v28 = vsub.f32 %v195_v27, %v205_v26 }
 0x132   :  { %v170_v29 = vpop.xlane.xlu1 %169 }
 0x133   :  { %v10976_v30 = vpop.eup %10975  ;;  %v215_v34 = vadd.f32 1e-05, %v210_v28  ;;  %v176_v35 = vmul.f32 0.0078125, %v170_v29 }
 0x134   :  { %v191_v37 = vpop.xlane.xlu0 %190  ;;  %v222_v40 = vmul.f32 %v10976_v30, %v197_v33 }
 0x135   :  { %10981 = vrsqrt.f32 %v215_v34  ;;  %v206_v38 = vmul.f32 %v176_v35, %v176_v35  ;;  %v196_v39 = vmul.f32 0.0078125, %v191_v37  ;;  %v201_v62 = vsub.f32 %v11534_v58, %v176_v35  ;;  %v10818_v58 = vld [vmem:[%s14354_s6 + $0x58] sm:$0xff]  }
 0x136   :  { %v231_v49 = vmul.f32 %v8045_v41, %v222_v40 }
 0x137   :  { %v211_v43 = vsub.f32 %v196_v39, %v206_v38  ;;  %v10978_v44 = vpop.eup %10977 }
 0x138   :  { %v10980_v45 = vpop.eup %10979  ;;  %v223_v48 = vmul.f32 %v10978_v44, %v198_v42  ;;  %v11575_v53 = vadd.f32 %v8046_v50, %v231_v49 }
 0x139   :  { %v216_v47 = vadd.f32 1e-05, %v211_v43  ;;  %v224_v52 = vmul.f32 %v10980_v45, %v199_v32 }
 0x13a   :  { %v232_v51 = vmul.f32 %v8045_v41, %v223_v48 }
 0x13b   :  { %10983 = vrsqrt.f32 %v216_v47  ;;  %v233_v60 = vmul.f32 %v8045_v41, %v224_v52 }
 0x13c   :  { %v11577_v54 = vadd.f32 %v8046_v50, %v232_v51 }
 0x13d   :  { %v11595_v63 = vadd.f32 %v8046_v50, %v233_v60 }
 0x13e   :  { %v11585_v36 = vpack.c.bf16 %v11577_v54, %v11575_v53 }
 0x13f   :  { %v10982_v57 = vpop.eup %10981 }
 0x140   :  { %v225_v59 = vmul.f32 %v10982_v57, %v200_v31  ;;  %9236 = vmatmul.mubr.bf16.vlgmr.msra.gmra.mrb[0].mxu0 %v11585_v36 }
 0x141   :  { %9287 = vmatpush3.bf16.msra.mxu0 %v10815_v56  ;;  %9239 = vmatprep.mubr.msk.bf16.mxu0 %vm11395_vm0, %v11394_v55 }
 0x142   :  { %v234_v46 = vmul.f32 %v8045_v41, %v225_v59  ;;  %9288 = vmatprep.subr.bf16.mxu0 %v11394_v55 }
 0x144   :  { %v11597_v0 = vadd.f32 %v8046_v50, %v234_v46 }
 0x145   :  { %v10984_v1 = vpop.eup %10983  ;;  %9289 = vmatpush3.bf16.msra.mxu0 %v10816_v61 }
 0x146   :  { %v11601_v2 = vpack.c.bf16 %v11597_v0, %v11595_v63  ;;  %v226_v4 = vmul.f32 %v10984_v1, %v201_v62  ;;  %9290 = vmatprep.subr.bf16.mxu0 %v11394_v55 }
 0x148   :  { %v235_v5 = vmul.f32 %v8045_v41, %v226_v4  ;;  %9240 = vmatmul.mubr.bf16.gmra.mrb[4].mxu0 %v11601_v2  ;;  %v11721_v4 = vld [vmem:[%s14353_s5 + $0x8] sm:$0xff] }
 0x149   :  { %9291 = vmatpush3.bf16.msra.mxu0 %v10817_v3  ;;  %9243 = vmatprep.mubr.msk.bf16.mxu0 %vm11395_vm0, %v11394_v55 }
 0x14a   :  { %9292 = vmatprep.subr.bf16.mxu0 %v11394_v55  ;;  %v11614_v6 = vadd.f32 %v8046_v50, %v235_v5 }
 0x14c   :  { %v11622_v8 = vpack.c.bf16 %v11595_v63, %v11614_v6 }
 0x14d   :  { %9293 = vmatpush3.bf16.msra.mxu0 %v10818_v58 }
 0x14e   :  { %9294 = vmatprep.subr.bf16.mxu0 %v11394_v55 }
 0x150   :  { %9244 = vmatmul.mubr.bf16.gmra.mrb[8].mxu0 %v11622_v8 }
 0x151   :  { %9295 = vmatpush3.bf16.msra.mxu0 %v10819_v7  ;;  %9302 = vmatprep.mubr.msk.bf16.mxu0 %vm11395_vm0, %v11394_v55  ;;  %v11726_v7 = vld [vmem:[%s14353_s5] sm:$0xff] }
 0x152   :  { %9296 = vmatprep.subr.bf16.mxu0 %v11394_v55 }
 0x155   :  { %9297 = vmatpush3.bf16.msra.mxu0 %v10820_v9 }
 0x156   :  { %9298 = vmatprep.subr.bf16.mxu0 %v11394_v55 }
 0x159   :  { %9299 = vmatpush3.bf16.msra.mxu0 %v10821_v10 }
 0x15a   :  { %9300 = vmatprep.subr.bf16.mxu0 %v11394_v55 }
 0x15d   :  { %9301 = vmatpush3.bf16.msra.mxu0 %v10822_v11 }
 0x15e   :  { %9353 = vmatprep.subr.bf16.mxu0 %v11394_v55 }
 0x160   :  { %9303 = vmatmul.mubr.bf16.vlgmr.msra.gmra.mrb[12].mxu0 %v11585_v36 }
 0x161   :  { %9306 = vmatprep.mubr.msk.bf16.mxu0 %vm11395_vm0, %v11394_v55 }
 0x168   :  { %9307 = vmatmul.mubr.bf16.gmra.mrb[16].mxu0 %v11601_v2 }
 0x169   :  { %9310 = vmatprep.mubr.msk.bf16.mxu0 %vm11395_vm0, %v11394_v55 }
 0x170   :  { %9311 = vmatmul.mubr.bf16.gmra.mrb[20].mxu0 %v11622_v8 }
 0x171   :  { %9357 = vmatprep.mubr.msk.bf16.mxu0 %vm11395_vm0, %v11394_v55 }
 0x213   :  { %v360_v13 = vpop.f32.mrb[0].mxu0 }
 0x214   :  { %v11652_v14 = vadd.f32 %v8047_v12, %v360_v13  ;;  %v9237_v15 = vpop.f32.mrb[1].mxu0  ;;  %v11733_v13 = vld [vmem:[%s14353_s5 + $0x18] sm:$0xff] }
 0x215   :  { %v363_v16 = vpop.f32.mrb[2].mxu0 }
 0x216   :  { %v11654_v17 = vadd.f32 %v8047_v12, %v363_v16  ;;  %v9238_v18 = vpop.f32.mrb[3].mxu0  ;;  %9259 = vmatprep.mubr.msk.f32.mxu1 %vm401_vm1, %v11652_v14 }
 0x218   :  { %v10626_v19 = vpack.i.bf16 %v11654_v17, %v11652_v14 }
 0x21a   :  { %10627 = vrot.lane.b32.xlu1 %v10626_v19, %s11396_s2  ;;  %v11739_v19 = vld [vmem:[%s14353_s5 + $0x10] sm:$0xff] }
 0x21b   :  { %v368_v20 = vpop.f32.mrb[4].mxu0 }
 0x21c   :  { %v9241_v21 = vpop.f32.mrb[5].mxu0  ;;  %v11661_v23 = vadd.f32 %v8047_v12, %v368_v20 }
 0x21d   :  { %v371_v22 = vpop.f32.mrb[6].mxu0 }
 0x21e   :  { %v11663_v24 = vadd.f32 %v8047_v12, %v371_v22  ;;  %v9242_v25 = vpop.f32.mrb[7].mxu0 }
 0x220   :  { %v10631_v26 = vpack.i.bf16 %v11663_v24, %v11661_v23 }
 0x222   :  { %10632 = vrot.lane.b32.xlu0 %v10631_v26, %s11396_s2 }
 0x223   :  { %v376_v27 = vpop.f32.mrb[8].mxu0 }
 0x224   :  { %v9245_v28 = vpop.f32.mrb[9].mxu0  ;;  %v11668_v30 = vadd.f32 %v8047_v12, %v376_v27  ;;  %v11747_v27 = vld [vmem:[%s14353_s5 + $0x28] sm:$0xff] }
 0x225   :  { %v379_v29 = vpop.f32.mrb[10].mxu0 }
 0x226   :  { %v11670_v33 = vadd.f32 %v8047_v12, %v379_v29  ;;  %v9246_v34 = vpop.f32.mrb[11].mxu0 }
 0x228   :  { %v10636_v35 = vpack.i.bf16 %v11670_v33, %v11668_v30 }
 0x22a   :  { %10637 = vrot.lane.b32.xlu1 %v10636_v35, %s11396_s2  ;;  %v11753_v35 = vld [vmem:[%s14353_s5 + $0x20] sm:$0xff] }
 0x233   :  { %v11675_v37 = vpop.f32.mrb[12].mxu0 }
 0x234   :  { %v9304_v38 = vpop.f32.mrb[13].mxu0 }
 0x235   :  { %v11677_v39 = vpop.f32.mrb[14].mxu0 }
 0x236   :  { %v9305_v40 = vpop.f32.mrb[15].mxu0 }
 0x23b   :  { %v11679_v41 = vpop.f32.mrb[16].mxu0 }
 0x23c   :  { %v9308_v42 = vpop.f32.mrb[17].mxu0 }
 0x23d   :  { %v11681_v43 = vpop.f32.mrb[18].mxu0 }
 0x23e   :  { %v9309_v44 = vpop.f32.mrb[19].mxu0 }
 0x243   :  { %v11683_v45 = vpop.f32.mrb[20].mxu0 }
 0x244   :  { %v9312_v47 = vpop.f32.mrb[21].mxu0 }
 0x245   :  { %v11685_v48 = vpop.f32.mrb[22].mxu0 }
 0x246   :  { %v9313_v49 = vpop.f32.mrb[23].mxu0 }
 0x28c   :  { %v10628_v32 = vpop.permute.xlu1 %10627 }
 0x28d   :  { %v10630_v50 = vunpack.i.h.bf16 %v10628_v32  ;;  %v10629_v51 = vunpack.i.l.bf16 %v10628_v32  ;;  %v604_v32 = vpack.c.bf16 %v11663_v24, %v11661_v23 }
 0x28f   :  { %v10393_v31 = vpack.c.bf16 %v10630_v50, %v10629_v51  ;;  %v603_v50 = vpack.c.bf16 %v11654_v17, %v11652_v14  ;;  %v605_v51 = vpack.c.bf16 %v11670_v33, %v11668_v30 }
 0x291   :  { %10395 = vmatprep.subr.msk.bf16.mxu1 %vm11689_vm2, %v10393_v31 }
 0x292   :  { %10398 = vmatpush3.bf16.xpose.msk.msra.mxu1 %vm11689_vm2, %v10393_v31 }
 0x294   :  { %v10633_v56 = vpop.permute.xlu0 %10632 }
 0x295   :  { %v10635_v57 = vunpack.i.h.bf16 %v10633_v56  ;;  %v10634_v59 = vunpack.i.l.bf16 %v10633_v56 }
 0x297   :  { %v10399_v60 = vpack.c.bf16 %v10635_v57, %v10634_v59 }
 0x299   :  { %10401 = vmatprep.subr.msk.bf16.mxu1 %vm11689_vm2, %v10399_v60 }
 0x29a   :  { %10404 = vmatpush3.bf16.xpose.msk.msra.mxu1 %vm11689_vm2, %v10399_v60 }
 0x29c   :  { %v10638_v61 = vpop.permute.xlu1 %10637 }
 0x29d   :  { %v10640_v46 = vunpack.i.h.bf16 %v10638_v61  ;;  %v10639_v62 = vunpack.i.l.bf16 %v10638_v61 }
 0x29f   :  { %v10405_v1 = vpack.c.bf16 %v10640_v46, %v10639_v62 }
 0x2a1   :  { %10407 = vmatprep.subr.msk.bf16.mxu1 %vm11689_vm2, %v10405_v1 }
 0x2a2   :  { %10410 = vmatpush3.bf16.xpose.msk.msra.mxu1 %vm11689_vm2, %v10405_v1 }
 0x2a3   :  { %9268 = vmatprep.subr.bf16.mxu1 %v11394_v55 }
 0x2a9   :  { %9260 = vmatmul.mubr.msk.f32.vlgmr.msra.gmra.mrb[0].mxu1 %vm401_vm1, %v11654_v17 }
 0x2aa   :  { %9262 = vmatprep.mubr.msk.f32.mxu1 %vm401_vm1, %v11661_v23 }
 0x2ad   :  { %9263 = vmatmul.mubr.msk.f32.gmra.mrb[2].mxu1 %vm401_vm1, %v11663_v24 }
 0x2ae   :  { %9265 = vmatprep.mubr.msk.f32.mxu1 %vm401_vm1, %v11668_v30 }
 0x2b1   :  { %9266 = vmatmul.mubr.msk.f32.gmra.mrb[4].mxu1 %vm401_vm1, %v11670_v33 }
 0x2b2   :  { %9274 = vmatprep.mubr.msk.bf16.mxu1 %vm11395_vm0, %v11394_v55 }
 0x37c   :  { %v9261_v3 = vpop.f32.mrb[0].mxu1 }
 0x37d   :  { %v522_v5 = vmul.f32 0.17677669, %v9261_v3  ;;  %v492_v58 = vpop.f32.mrb[1].mxu1 }
 0x37e   :  { %v521_v9 = vmul.f32 0.17677669, %v492_v58 }
 0x37f   :  { %v528_v10 = vadd.f32 %v522_v5, %v11721_v4 }
 0x380   :  { %v9264_v11 = vpop.f32.mrb[2].mxu1  ;;  %v527_v12 = vadd.f32 %v521_v9, %v11726_v7 }
 0x381   :  { %v524_v15 = vmul.f32 0.17677669, %v9264_v11  ;;  %v502_v16 = vpop.f32.mrb[3].mxu1  ;;  %v537_v18 = vsel %vm533_vm3, %v528_v10, -inf }
 0x382   :  { %v523_v20 = vmul.f32 0.17677669, %v502_v16  ;;  %538 = vmax.xlane.f32.xlu0 %v537_v18  ;;  %v534_v21 = vsel %vm533_vm3, %v527_v12, -inf }
 0x383   :  { %535 = vmax.xlane.f32.xlu1 %v534_v21  ;;  %v530_v22 = vadd.f32 %v524_v15, %v11733_v13 }
 0x384   :  { %v9267_v25 = vpop.f32.mrb[4].mxu1  ;;  %v529_v26 = vadd.f32 %v523_v20, %v11739_v19 }
 0x385   :  { %v526_v28 = vmul.f32 0.17677669, %v9267_v25  ;;  %v512_v29 = vpop.f32.mrb[5].mxu1  ;;  %v543_v34 = vsel %vm533_vm3, %v530_v22, -inf }
 0x386   :  { %v525_v38 = vmul.f32 0.17677669, %v512_v29  ;;  %v540_v40 = vsel %vm533_vm3, %v529_v26, -inf }
 0x387   :  { %544 = vmax.xlane.f32.xlu1 %v543_v34  ;;  %541 = vmax.xlane.f32.xlu0 %v540_v40  ;;  %v532_v42 = vadd.f32 %v526_v28, %v11747_v27 }
 0x388   :  { %v531_v44 = vadd.f32 %v525_v38, %v11753_v35  ;;  %v8088_v38 = vld [vmem:[%s14355_s7 + $0x1] ss:$0 sm:$0xff] }
 0x389   :  { %v549_v47 = vsel %vm533_vm3, %v532_v42, -inf  ;;  %v11784_v40 = vadd.f32 %v8088_v38, %v11677_v39 }
 0x38a   :  { %v546_v49 = vsel %vm533_vm3, %v531_v44, -inf }
 0x38b   :  { %550 = vmax.xlane.f32.xlu1 %v549_v47  ;;  %547 = vmax.xlane.f32.xlu0 %v546_v49  ;;  %v11793_v47 = vadd.f32 %v8088_v38, %v11679_v41  ;;  %v11796_v49 = vadd.f32 %v8088_v38, %v11685_v48 }
 0x39c   :  { %611 = vrot.lane.b32.xlu1 %v604_v32, %s11397_s28 }
 0x3a1   :  { %609 = vrot.lane.b32.xlu0 %v603_v50, %s11397_s28  ;;  %v11801_v50 = vadd.f32 %v8088_v38, %v11683_v45 }
 0x3a3   :  { %v10651_v39 = vpack.i.bf16 %v11796_v49, %v11801_v50 }
 0x3a5   :  { %613 = vrot.lane.b32.xlu0 %v605_v51, %s11397_s28 }
 0x40f   :  { %v539_v31 = vpop.xlane.xlu0 %538 }
 0x410   :  { %v553_v56 = vsub.f32 %v528_v10, %v539_v31  ;;  %v536_v57 = vpop.xlane.xlu1 %535 }
 0x411   :  { %v552_v59 = vsub.f32 %v527_v12, %v536_v57 }
 0x412   :  { %v560_v60 = vmul.f32 1.442695, %v553_v56 }
 0x413   :  { %v558_v61 = vmul.f32 1.442695, %v552_v59 }
 0x414   :  { %10985 = vpow2.f32 %v560_v60  ;;  %v545_v23 = vpop.xlane.xlu1 %544  ;;  %v542_v24 = vpop.xlane.xlu0 %541 }
 0x415   :  { %10987 = vpow2.f32 %v558_v61  ;;  %v555_v46 = vsub.f32 %v530_v22, %v545_v23  ;;  %v554_v62 = vsub.f32 %v529_v26, %v542_v24 }
 0x417   :  { %v564_v14 = vmul.f32 1.442695, %v555_v46  ;;  %v562_v17 = vmul.f32 1.442695, %v554_v62 }
 0x418   :  { %v551_v1 = vpop.xlane.xlu1 %550  ;;  %v548_v3 = vpop.xlane.xlu0 %547 }
 0x419   :  { %10989 = vpow2.f32 %v564_v14  ;;  %v557_v30 = vsub.f32 %v532_v42, %v551_v1  ;;  %v556_v33 = vsub.f32 %v531_v44, %v548_v3  ;;  %v11787_v42 = vadd.f32 %v8088_v38, %v11675_v37 }
 0x41a   :  { %10991 = vpow2.f32 %v562_v17  ;;  %v11790_v44 = vadd.f32 %v8088_v38, %v11681_v43 }
 0x41b   :  { %v568_v5 = vmul.f32 1.442695, %v557_v30  ;;  %v566_v58 = vmul.f32 1.442695, %v556_v33  ;;  %v10641_v32 = vpack.i.bf16 %v11784_v40, %v11787_v42 }
 0x41c   :  { %v610_v9 = vpop.permute.xlu0 %609  ;;  %v612_v15 = vpop.permute.xlu1 %611  ;;  %v10646_v37 = vpack.i.bf16 %v11790_v44, %v11793_v47 }
 0x41d   :  { %10993 = vpow2.f32 %v568_v5  ;;  %9269 = vmatpush3.bf16.msra.mxu1 %v610_v9 }
 0x41e   :  { %v10986_v10 = vpop.eup %10985  ;;  %9270 = vmatprep.subr.bf16.mxu1 %v11394_v55  ;;  %10995 = vpow2.f32 %v566_v58 }
 0x41f   :  { %v10988_v11 = vpop.eup %10987  ;;  %v573_v12 = vsel %vm533_vm3, %v10986_v10, 0.0 }
 0x420   :  { %574 = vadd.xlane.f32.xlu1 %v573_v12  ;;  %v570_v16 = vsel %vm533_vm3, %v10988_v11, 0.0  ;;  %v614_v21 = vpop.permute.xlu0 %613 }
 0x421   :  { %571 = vadd.xlane.f32.xlu0 %v570_v16  ;;  %9271 = vmatpush3.bf16.msra.mxu1 %v612_v15 }
 0x422   :  { %9272 = vmatprep.subr.bf16.mxu1 %v11394_v55 }
 0x423   :  { %v10990_v18 = vpop.eup %10989 }
 0x424   :  { %v10992_v20 = vpop.eup %10991  ;;  %v579_v22 = vsel %vm533_vm3, %v10990_v18, 0.0 }
 0x425   :  { %580 = vadd.xlane.f32.xlu1 %v579_v22  ;;  %v576_v25 = vsel %vm533_vm3, %v10992_v20, 0.0  ;;  %9273 = vmatpush3.bf16.msra.mxu1 %v614_v21 }
 0x426   :  { %577 = vadd.xlane.f32.xlu0 %v576_v25 }
 0x427   :  { %v11775_v26 = vpop.eup %10993 }
 0x428   :  { %v585_v28 = vsel %vm533_vm3, %v11775_v26, 0.0  ;;  %v10996_v29 = vpop.eup %10995 }
 0x429   :  { %586 = vadd.xlane.f32.xlu1 %v585_v28  ;;  %v582_v34 = vsel %vm533_vm3, %v10996_v29, 0.0 }
 0x42d   :  { %583 = vadd.xlane.f32.xlu1 %v582_v34 }
 0x43c   :  { %10642 = vrot.lane.b32.xlu0 %v10641_v32, %s11396_s2 }
 0x43e   :  { %10647 = vrot.lane.b32.xlu1 %v10646_v37, %s11396_s2 }
 0x440   :  { %10652 = vrot.lane.b32.xlu0 %v10651_v39, %s11396_s2 }
 0x4ad   :  { %v575_v41 = vpop.xlane.xlu1 %574 }
 0x4ae   :  { %10997 = vrcp.f32 %v575_v41  ;;  %v572_v43 = vpop.xlane.xlu0 %571 }
 0x4af   :  { %10999 = vrcp.f32 %v572_v43 }
 0x4b2   :  { %v581_v48 = vpop.xlane.xlu1 %580 }
 0x4b3   :  { %11001 = vrcp.f32 %v581_v48  ;;  %v578_v45 = vpop.xlane.xlu0 %577 }
 0x4b4   :  { %11003 = vrcp.f32 %v578_v45 }
 0x4b6   :  { %v587_v51 = vpop.xlane.xlu1 %586 }
 0x4b7   :  { %v10643_v31 = vpop.permute.xlu0 %10642 }
 0x4b8   :  { %v10998_v56 = vpop.eup %10997  ;;  %v10645_v57 = vunpack.i.h.bf16 %v10643_v31  ;;  %v10644_v59 = vunpack.i.l.bf16 %v10643_v31 }
 0x4b9   :  { %v11000_v60 = vpop.eup %10999  ;;  %v595_v61 = vmul.f32 %v10998_v56, %v10986_v10 }
 0x4ba   :  { %v594_v23 = vmul.f32 %v11000_v60, %v10988_v11  ;;  %v10411_v24 = vpack.c.bf16 %v10645_v57, %v10644_v59  ;;  %v584_v46 = vpop.xlane.xlu1 %583 }
 0x4bb   :  { %11005 = vrcp.f32 %v584_v46  ;;  %v10653_v3 = vpop.permute.xlu0 %10652 }
 0x4bc   :  { %v600_v62 = vpack.c.bf16 %v595_v61, %v594_v23  ;;  %10413 = vmatprep.subr.msk.bf16.mxu1 %vm11689_vm2, %v10411_v24  ;;  %11007 = vrcp.f32 %v587_v51  ;;  %v10655_v10 = vunpack.i.h.bf16 %v10653_v3  ;;  %v10654_v11 = vunpack.i.l.bf16 %v10653_v3 }
 0x4bd   :  { %v11002_v14 = vpop.eup %11001 }
 0x4be   :  { %v11004_v17 = vpop.eup %11003  ;;  %v10648_v1 = vpop.permute.xlu1 %10647  ;;  %9275 = vmatmul.mubr.msk.bf16.vlgmr.msra.gmra.mrb[8].mxu1 %vm533_vm3, %v600_v62  ;;  %v597_v58 = vmul.f32 %v11002_v14, %v10990_v18  ;;  %v10423_v16 = vpack.c.bf16 %v10655_v10, %v10654_v11 }
 0x4bf   :  { %v10650_v30 = vunpack.i.h.bf16 %v10648_v1  ;;  %v10649_v33 = vunpack.i.l.bf16 %v10648_v1  ;;  %10416 = vmatpush3.bf16.xpose.msk.msra.mxu1 %vm11689_vm2, %v10411_v24  ;;  %9278 = vmatprep.mubr.msk.bf16.mxu1 %vm11395_vm0, %v11394_v55  ;;  %v596_v5 = vmul.f32 %v11004_v17, %v10992_v20 }
 0x4c1   :  { %v10417_v9 = vpack.c.bf16 %v10650_v30, %v10649_v33  ;;  %v601_v12 = vpack.c.bf16 %v597_v58, %v596_v5 }
 0x4c3   :  { %10419 = vmatprep.subr.msk.bf16.mxu1 %vm11689_vm2, %v10417_v9 }
 0x4c5   :  { %v11006_v15 = vpop.eup %11005 }
 0x4c6   :  { %9279 = vmatmul.mubr.msk.bf16.gmra.mrb[12].mxu1 %vm533_vm3, %v601_v12  ;;  %v11008_v21 = vpop.eup %11007  ;;  %v598_v18 = vmul.f32 %v11006_v15, %v10996_v29 }
 0x4c7   :  { %10422 = vmatpush3.bf16.xpose.msk.msra.mxu1 %vm11689_vm2, %v10417_v9  ;;  %9282 = vmatprep.mubr.msk.bf16.mxu1 %vm11395_vm0, %v11394_v55  ;;  %v599_v20 = vmul.f32 %v11008_v21, %v11775_v26 }
 0x4c8   :  { %10425 = vmatprep.subr.msk.bf16.mxu1 %vm11689_vm2, %v10423_v16 }
 0x4c9   :  { %v602_v22 = vpack.c.bf16 %v599_v20, %v598_v18  ;;  %v1039_v18 = vpack.c.bf16 %v11784_v40, %v11787_v42 }
 0x4ce   :  { %9283 = vmatmul.mubr.msk.bf16.gmra.mrb[16].mxu1 %vm533_vm3, %v602_v22 }
 0x4cf   :  { %10428 = vmatpush3.bf16.xpose.msk.msra.mxu1 %vm11689_vm2, %v10423_v16  ;;  %9326 = vmatprep.mubr.msk.f32.mxu1 %vm401_vm1, %v11787_v42 }
 0x4d0   :  { %9335 = vmatprep.subr.bf16.mxu1 %v11394_v55 }
 0x4d6   :  { %9327 = vmatmul.mubr.msk.f32.vlgmr.msra.gmra.mrb[6].mxu1 %vm401_vm1, %v11784_v40 }
 0x4d7   :  { %9329 = vmatprep.mubr.msk.f32.mxu1 %vm401_vm1, %v11793_v47 }
 0x4da   :  { %9330 = vmatmul.mubr.msk.f32.gmra.mrb[20].mxu1 %vm401_vm1, %v11790_v44 }
 0x4db   :  { %9332 = vmatprep.mubr.msk.f32.mxu1 %vm401_vm1, %v11801_v50 }
 0x4de   :  { %9333 = vmatmul.mubr.msk.f32.gmra.mrb[22].mxu1 %vm401_vm1, %v11796_v49 }
 0x4df   :  { %9341 = vmatprep.mubr.msk.bf16.mxu1 %vm11395_vm0, %v11394_v55 }
 0x591   :  { %v11845_v25 = vpop.f32.mrb[8].mxu1 }
 0x592   :  { %v9276_v26 = vpop.f32.mrb[9].mxu1 }
 0x593   :  { %v11847_v28 = vpop.f32.mrb[10].mxu1 }
 0x594   :  { %v684_v29 = vpack.c.bf16 %v11847_v28, %v11845_v25  ;;  %v9277_v34 = vpop.f32.mrb[11].mxu1  ;;  %v10826_v25 = vld [vmem:[%s14356_s8 + $0x18] sm:$0xff]  }
 0x599   :  { %v11851_v38 = vpop.f32.mrb[12].mxu1 }
 0x59a   :  { %v9280_v32 = vpop.f32.mrb[13].mxu1 }
 0x59b   :  { %v11853_v37 = vpop.f32.mrb[14].mxu1 }
 0x59c   :  { %v685_v39 = vpack.c.bf16 %v11853_v37, %v11851_v38  ;;  %v9281_v41 = vpop.f32.mrb[15].mxu1  ;;  %v10827_v37 = vld [vmem:[%s14354_s6 + $0x80] sm:$0xff]  }
 0x5a1   :  { %v11857_v43 = vpop.f32.mrb[16].mxu1 }
 0x5a2   :  { %v9284_v48 = vpop.f32.mrb[17].mxu1 }
 0x5a3   :  { %v11859_v45 = vpop.f32.mrb[18].mxu1 }
 0x5a4   :  { %v686_v51 = vpack.c.bf16 %v11859_v45, %v11857_v43  ;;  %v9285_v31 = vpop.f32.mrb[19].mxu1  ;;  %v10828_v43 = vld [vmem:[%s14354_s6 + $0x88] sm:$0xff]  }
 0x5a9   :  { %v9328_v56 = vpop.f32.mrb[6].mxu1 }
 0x5aa   :  { %v959_v57 = vmul.f32 0.17677669, %v9328_v56  ;;  %v929_v59 = vpop.f32.mrb[7].mxu1 }
 0x5ab   :  { %v958_v60 = vmul.f32 0.17677669, %v929_v59 }
 0x5ac   :  { %v965_v61 = vadd.f32 %v959_v57, %v11721_v4 }
 0x5ad   :  { %v9331_v23 = vpop.f32.mrb[20].mxu1  ;;  %v964_v24 = vadd.f32 %v958_v60, %v11726_v7 }
 0x5ae   :  { %v961_v46 = vmul.f32 0.17677669, %v9331_v23  ;;  %v939_v62 = vpop.f32.mrb[21].mxu1  ;;  %v973_v14 = vsel %vm533_vm3, %v965_v61, -inf }
 0x5af   :  { %v960_v17 = vmul.f32 0.17677669, %v939_v62  ;;  %974 = vmax.xlane.f32.xlu0 %v973_v14  ;;  %v970_v1 = vsel %vm533_vm3, %v964_v24, -inf }
 0x5b0   :  { %971 = vmax.xlane.f32.xlu1 %v970_v1  ;;  %v967_v3 = vadd.f32 %v961_v46, %v11733_v13 }
 0x5b1   :  { %v9334_v30 = vpop.f32.mrb[22].mxu1  ;;  %v966_v33 = vadd.f32 %v960_v17, %v11739_v19 }
 0x5b2   :  { %v963_v5 = vmul.f32 0.17677669, %v9334_v30  ;;  %v949_v58 = vpop.f32.mrb[23].mxu1  ;;  %v979_v9 = vsel %vm533_vm3, %v967_v3, -inf }
 0x5b3   :  { %v962_v10 = vmul.f32 0.17677669, %v949_v58  ;;  %v976_v11 = vsel %vm533_vm3, %v966_v33, -inf }
 0x5b4   :  { %980 = vmax.xlane.f32.xlu1 %v979_v9  ;;  %977 = vmax.xlane.f32.xlu0 %v976_v11  ;;  %v969_v12 = vadd.f32 %v963_v5, %v11747_v27  ;;  %v1040_v9 = vpack.c.bf16 %v11790_v44, %v11793_v47 }
 0x5b5   :  { %v968_v15 = vadd.f32 %v962_v10, %v11753_v35  ;;  %v1041_v10 = vpack.c.bf16 %v11796_v49, %v11801_v50 }
 0x5b6   :  { %v985_v16 = vsel %vm533_vm3, %v969_v12, -inf }
 0x5b7   :  { %v982_v21 = vsel %vm533_vm3, %v968_v15, -inf }
 0x5b8   :  { %986 = vmax.xlane.f32.xlu1 %v985_v16  ;;  %983 = vmax.xlane.f32.xlu0 %v982_v21 }
 0x5ce   :  { %1045 = vrot.lane.b32.xlu0 %v1039_v18, %s11397_s28  ;;  %v10825_v18 = vld [vmem:[%s14356_s8 + $0x10] sm:$0xff]  }
 0x5cf   :  { %9354 = vmatpush3.bf16.msra.mxu0 %v10825_v18 }
 0x5d0   :  { %9355 = vmatprep.subr.bf16.mxu0 %v11394_v55 }
 0x5d3   :  { %9356 = vmatpush3.bf16.msra.mxu0 %v10826_v25 }
 0x5d4   :  { %9385 = vmatprep.subr.bf16.mxu0 %v11394_v55 }
 0x63c   :  { %v975_v20 = vpop.xlane.xlu0 %974 }
 0x63d   :  { %v989_v22 = vsub.f32 %v965_v61, %v975_v20  ;;  %v972_v26 = vpop.xlane.xlu1 %971 }
 0x63e   :  { %v988_v34 = vsub.f32 %v964_v24, %v972_v26 }
 0x63f   :  { %v996_v32 = vmul.f32 1.442695, %v989_v22 }
 0x640   :  { %v994_v41 = vmul.f32 1.442695, %v988_v34 }
 0x641   :  { %11009 = vpow2.f32 %v996_v32  ;;  %v981_v48 = vpop.xlane.xlu1 %980  ;;  %v978_v31 = vpop.xlane.xlu0 %977 }
 0x642   :  { %11011 = vpow2.f32 %v994_v41  ;;  %v991_v56 = vsub.f32 %v967_v3, %v981_v48  ;;  %v990_v57 = vsub.f32 %v966_v33, %v978_v31  ;;  %v10823_v31 = vld [vmem:[%s14356_s8] sm:$0xff]  }
 0x644   :  { %v1000_v59 = vmul.f32 1.442695, %v991_v56  ;;  %v998_v60 = vmul.f32 1.442695, %v990_v57 }
 0x645   :  { %v987_v23 = vpop.xlane.xlu1 %986  ;;  %v984_v46 = vpop.xlane.xlu0 %983 }
 0x646   :  { %11013 = vpow2.f32 %v1000_v59  ;;  %v993_v40 = vsub.f32 %v969_v12, %v987_v23  ;;  %v992_v11 = vsub.f32 %v968_v15, %v984_v46  ;;  %v10824_v59 = vld [vmem:[%s14356_s8 + $0x8] sm:$0xff]  }
 0x647   :  { %11015 = vpow2.f32 %v998_v60 }
 0x648   :  { %v1004_v42 = vmul.f32 1.442695, %v993_v40  ;;  %v1002_v12 = vmul.f32 1.442695, %v992_v11  ;;  %v10834_v11 = vld [vmem:[%s14354_s6 + $0xb8] sm:$0xff]  }
 0x649   :  { %v1046_v62 = vpop.permute.xlu0 %1045 }
 0x64a   :  { %11017 = vpow2.f32 %v1004_v42  ;;  %9336 = vmatpush3.bf16.msra.mxu1 %v1046_v62 }
 0x64b   :  { %v11010_v61 = vpop.eup %11009  ;;  %9337 = vmatprep.subr.bf16.mxu1 %v11394_v55  ;;  %11019 = vpow2.f32 %v1002_v12 }
 0x64c   :  { %v11012_v24 = vpop.eup %11011  ;;  %v1009_v14 = vsel %vm533_vm3, %v11010_v61, 0.0 }
 0x64d   :  { %1010 = vadd.xlane.f32.xlu1 %v1009_v14  ;;  %v1006_v17 = vsel %vm533_vm3, %v11012_v24, 0.0 }
 0x64e   :  { %1007 = vadd.xlane.f32.xlu0 %v1006_v17 }
 0x650   :  { %v11014_v1 = vpop.eup %11013 }
 0x651   :  { %v11016_v3 = vpop.eup %11015  ;;  %v1015_v30 = vsel %vm533_vm3, %v11014_v1, 0.0 }
 0x652   :  { %1016 = vadd.xlane.f32.xlu1 %v1015_v30  ;;  %v1012_v33 = vsel %vm533_vm3, %v11016_v3, 0.0 }
 0x653   :  { %1013 = vadd.xlane.f32.xlu0 %v1012_v33 }
 0x654   :  { %v11018_v5 = vpop.eup %11017 }
 0x655   :  { %v1021_v58 = vsel %vm533_vm3, %v11018_v5, 0.0  ;;  %v11020_v16 = vpop.eup %11019 }
 0x656   :  { %v1018_v21 = vsel %vm533_vm3, %v11020_v16, 0.0 }
 0x657   :  { %1022 = vadd.xlane.f32.xlu0 %v1021_v58  ;;  %v10831_v58 = vld [vmem:[%s14354_s6 + $0xa0] sm:$0xff]  }
 0x663   :  { %1047 = vrot.lane.b32.xlu1 %v1040_v9, %s11397_s28  ;;  %v10832_v9 = vld [vmem:[%s14354_s6 + $0xa8] sm:$0xff]  }
 0x66d   :  { %1049 = vrot.lane.b32.xlu0 %v1041_v10, %s11397_s28  ;;  %v10833_v10 = vld [vmem:[%s14354_s6 + $0xb0] sm:$0xff]  }
 0x687   :  { %1019 = vadd.xlane.f32.xlu1 %v1018_v21 }
 0x6da   :  { %v1011_v44 = vpop.xlane.xlu1 %1010 }
 0x6db   :  { %11021 = vrcp.f32 %v1011_v44  ;;  %v1008_v47 = vpop.xlane.xlu0 %1007 }
 0x6dc   :  { %11023 = vrcp.f32 %v1008_v47 }
 0x6df   :  { %v1017_v49 = vpop.xlane.xlu1 %1016 }
 0x6e0   :  { %11025 = vrcp.f32 %v1017_v49  ;;  %v1014_v50 = vpop.xlane.xlu0 %1013 }
 0x6e1   :  { %11027 = vrcp.f32 %v1014_v50 }
 0x6e3   :  { %v1048_v15 = vpop.permute.xlu1 %1047 }
 0x6e4   :  { %v1023_v20 = vpop.xlane.xlu0 %1022  ;;  %9338 = vmatpush3.bf16.msra.mxu1 %v1048_v15 }
 0x6e5   :  { %v11022_v22 = vpop.eup %11021  ;;  %9339 = vmatprep.subr.bf16.mxu1 %v11394_v55  ;;  %11029 = vrcp.f32 %v1023_v20 }
 0x6e6   :  { %v11024_v26 = vpop.eup %11023  ;;  %v1031_v34 = vmul.f32 %v11022_v22, %v11010_v61 }
 0x6e7   :  { %v1030_v32 = vmul.f32 %v11024_v26, %v11012_v24 }
 0x6e8   :  { %v1050_v41 = vpop.permute.xlu0 %1049 }
 0x6e9   :  { %v1036_v48 = vpack.c.bf16 %v1031_v34, %v1030_v32  ;;  %9340 = vmatpush3.bf16.msra.mxu1 %v1050_v41 }
 0x6ea   :  { %v11026_v56 = vpop.eup %11025  ;;  %9369 = vmatprep.subr.bf16.mxu1 %v11394_v55 }
 0x6eb   :  { %v11028_v57 = vpop.eup %11027  ;;  %v1033_v23 = vmul.f32 %v11026_v56, %v11014_v1 }
 0x6ec   :  { %9342 = vmatmul.mubr.msk.bf16.vlgmr.msra.gmra.mrb[24].mxu1 %vm533_vm3, %v1036_v48  ;;  %v1032_v60 = vmul.f32 %v11028_v57, %v11016_v3  ;;  %v10829_v3 = vld [vmem:[%s14354_s6 + $0x90] sm:$0xff]  }
 0x6ed   :  { %9345 = vmatprep.mubr.msk.bf16.mxu1 %vm11395_vm0, %v11394_v55  ;;  %9370 = vmatpush3.bf16.msra.mxu1 %v10823_v31 }
 0x6ee   :  { %9371 = vmatprep.subr.bf16.mxu1 %v11394_v55  ;;  %v1037_v46 = vpack.c.bf16 %v1033_v23, %v1032_v60 }
 0x6ef   :  { %v11030_v42 = vpop.eup %11029 }
 0x6f0   :  { %v1035_v24 = vmul.f32 %v11030_v42, %v11018_v5  ;;  %v10830_v5 = vld [vmem:[%s14354_s6 + $0x98] sm:$0xff]  }
 0x6f1   :  { %9372 = vmatpush3.bf16.msra.mxu1 %v10824_v59 }
 0x6f4   :  { %9346 = vmatmul.mubr.msk.bf16.gmra.mrb[28].mxu1 %vm533_vm3, %v1037_v46 }
 0x6f5   :  { %9349 = vmatprep.mubr.msk.bf16.mxu1 %vm11395_vm0, %v11394_v55 }
 0x714   :  { %v1020_v40 = vpop.xlane.xlu1 %1019 }
 0x715   :  { %11031 = vrcp.f32 %v1020_v40 }
 0x71f   :  { %v11032_v62 = vpop.eup %11031 }
 0x720   :  { %v1034_v61 = vmul.f32 %v11032_v62, %v11020_v16 }
 0x722   :  { %v1038_v14 = vpack.c.bf16 %v1035_v24, %v1034_v61 }
 0x724   :  { %9350 = vmatmul.mubr.msk.bf16.gmra.mrb[32].mxu1 %vm533_vm3, %v1038_v14 }
 0x725   :  { %9373 = vmatprep.mubr.msk.bf16.mxu1 %vm11395_vm0, %v11394_v55 }
 0x72c   :  { %9374 = vmatmul.mubr.msk.bf16.vlgmr.msra.gmra.mrb[36].mxu1 %vm401_vm1, %v684_v29 }
 0x72d   :  { %9377 = vmatprep.mubr.msk.bf16.mxu1 %vm11395_vm0, %v11394_v55 }
 0x734   :  { %9378 = vmatmul.mubr.msk.bf16.gmra.mrb[40].mxu1 %vm401_vm1, %v685_v39 }
 0x735   :  { %9381 = vmatprep.mubr.msk.bf16.mxu1 %vm11395_vm0, %v11394_v55 }
 0x73c   :  { %9382 = vmatmul.mubr.msk.bf16.gmra.mrb[44].mxu1 %vm401_vm1, %v686_v51 }
 0x7bf   :  { %v1097_v28 = vpop.f32.mrb[24].mxu1 }
 0x7c0   :  { %v9343_v29 = vpop.f32.mrb[25].mxu1 }
 0x7c1   :  { %v1100_v38 = vpop.f32.mrb[26].mxu1 }
 0x7c2   :  { %v1120_v39 = vpack.c.bf16 %v1100_v38, %v1097_v28  ;;  %v9344_v17 = vpop.f32.mrb[27].mxu1 }
 0x7c3   :  { %v8143_v17 = vld [vmem:[%s14355_s7 + $0x2] ss:$0 sm:$0xff] }
 0x7c4   :  { %9358 = vmatmul.mubr.msk.bf16.vlgmr.msra.gmra.mrb[24].mxu0 %vm401_vm1, %v1120_v39 }
 0x7c5   :  { %9361 = vmatprep.mubr.msk.bf16.mxu0 %vm11395_vm0, %v11394_v55  ;;  %9386 = vmatpush3.bf16.msra.mxu0 %v10827_v37 }
 0x7c6   :  { %9387 = vmatprep.subr.bf16.mxu0 %v11394_v55 }
 0x7c7   :  { %v1105_v45 = vpop.f32.mrb[28].mxu1 }
 0x7c8   :  { %v9347_v51 = vpop.f32.mrb[29].mxu1 }
 0x7c9   :  { %v1108_v1 = vpop.f32.mrb[30].mxu1  ;;  %9388 = vmatpush3.bf16.msra.mxu0 %v10828_v43 }
 0x7ca   :  { %v1121_v30 = vpack.c.bf16 %v1108_v1, %v1105_v45  ;;  %v9348_v33 = vpop.f32.mrb[31].mxu1  ;;  %9389 = vmatprep.subr.bf16.mxu0 %v11394_v55 }
 0x7cc   :  { %9362 = vmatmul.mubr.msk.bf16.gmra.mrb[28].mxu0 %vm401_vm1, %v1121_v30 }
 0x7cd   :  { %9390 = vmatpush3.bf16.msra.mxu0 %v10829_v3  ;;  %9365 = vmatprep.mubr.msk.bf16.mxu0 %vm11395_vm0, %v11394_v55 }
 0x7ce   :  { %9391 = vmatprep.subr.bf16.mxu0 %v11394_v55 }
 0x7d1   :  { %9392 = vmatpush3.bf16.msra.mxu0 %v10830_v5 }
 0x7d2   :  { %9393 = vmatprep.subr.bf16.mxu0 %v11394_v55 }
 0x7d5   :  { %9394 = vmatpush3.bf16.msra.mxu0 %v10831_v58 }
 0x7d6   :  { %9395 = vmatprep.subr.bf16.mxu0 %v11394_v55 }
 0x7d9   :  { %9396 = vmatpush3.bf16.msra.mxu0 %v10832_v9 }
 0x7da   :  { %9397 = vmatprep.subr.bf16.mxu0 %v11394_v55 }
 0x7dd   :  { %9398 = vmatpush3.bf16.msra.mxu0 %v10833_v10 }
 0x7de   :  { %9399 = vmatprep.subr.bf16.mxu0 %v11394_v55 }
 0x7e1   :  { %9400 = vmatpush3.bf16.msra.mxu0 %v10834_v11 }
 0x7e2   :  { %9452 = vmatprep.subr.bf16.mxu0 %v11394_v55 }
 0x7f7   :  { %v1113_v12 = vpop.f32.mrb[32].mxu1 }
 0x7f8   :  { %v9351_v16 = vpop.f32.mrb[33].mxu1 }
 0x7f9   :  { %v1116_v21 = vpop.f32.mrb[34].mxu1 }
 0x7fa   :  { %v1122_v18 = vpack.c.bf16 %v1116_v21, %v1113_v12  ;;  %v9352_v44 = vpop.f32.mrb[35].mxu1 }
 0x7fc   :  { %9366 = vmatmul.mubr.msk.bf16.gmra.mrb[32].mxu0 %vm401_vm1, %v1122_v18 }
 0x7fd   :  { %9401 = vmatprep.mubr.msk.bf16.mxu0 %vm11395_vm0, %v11394_v55 }
 0x7ff   :  { %v1261_v47 = vpop.f32.mrb[36].mxu1 }
 0x800   :  { %v9375_v49 = vpop.f32.mrb[37].mxu1 }
 0x801   :  { %v1264_v50 = vpop.f32.mrb[38].mxu1 }
 0x802   :  { %v9376_v15 = vpop.f32.mrb[39].mxu1 }
 0x804   :  { %9402 = vmatmul.mubr.bf16.vlgmr.msra.gmra.mrb[36].mxu0 %v11585_v36 }
 0x805   :  { %9405 = vmatprep.mubr.msk.bf16.mxu0 %vm11395_vm0, %v11394_v55 }
 0x807   :  { %v1269_v20 = vpop.f32.mrb[40].mxu1 }
 0x808   :  { %v9379_v22 = vpop.f32.mrb[41].mxu1 }
 0x809   :  { %v1272_v26 = vpop.f32.mrb[42].mxu1 }
 0x80a   :  { %v9380_v34 = vpop.f32.mrb[43].mxu1 }
 0x80c   :  { %9406 = vmatmul.mubr.bf16.gmra.mrb[40].mxu0 %v11601_v2 }
 0x80d   :  { %9409 = vmatprep.mubr.msk.bf16.mxu0 %vm11395_vm0, %v11394_v55 }
 0x80f   :  { %v1277_v32 = vpop.f32.mrb[44].mxu1 }
 0x810   :  { %v9383_v41 = vpop.f32.mrb[45].mxu1 }
 0x811   :  { %v1280_v48 = vpop.f32.mrb[46].mxu1 }
 0x812   :  { %v9384_v31 = vpop.f32.mrb[47].mxu1 }
 0x814   :  { %9410 = vmatmul.mubr.bf16.gmra.mrb[44].mxu0 %v11622_v8 }
 0x815   :  { %9456 = vmatprep.mubr.msk.bf16.mxu0 %vm11395_vm0, %v11394_v55 }
 0x897   :  { %v1183_v56 = vpop.f32.mrb[24].mxu0 }
 0x898   :  { %v11983_v57 = vadd.f32 %v1261_v47, %v1183_v56  ;;  %v9359_v59 = vpop.f32.mrb[25].mxu0 }
 0x899   :  { %v1186_v60 = vpop.f32.mrb[26].mxu0 }
 0x89a   :  { %v11985_v23 = vadd.f32 %v1264_v50, %v1186_v60  ;;  %v9360_v46 = vpop.f32.mrb[27].mxu0 }
 0x89f   :  { %v1191_v40 = vpop.f32.mrb[28].mxu0 }
 0x8a0   :  { %v11987_v42 = vadd.f32 %v1269_v20, %v1191_v40  ;;  %v9363_v62 = vpop.f32.mrb[29].mxu0 }
 0x8a1   :  { %v1194_v61 = vpop.f32.mrb[30].mxu0 }
 0x8a2   :  { %v11989_v24 = vadd.f32 %v1272_v26, %v1194_v61  ;;  %v9364_v14 = vpop.f32.mrb[31].mxu0 }
 0x8cf   :  { %v1199_v25 = vpop.f32.mrb[32].mxu0 }
 0x8d0   :  { %v11991_v28 = vadd.f32 %v1277_v32, %v1199_v25  ;;  %v9367_v29 = vpop.f32.mrb[33].mxu0 }
 0x8d1   :  { %v1202_v38 = vpop.f32.mrb[34].mxu0 }
 0x8d2   :  { %v11993_v37 = vadd.f32 %v1280_v48, %v1202_v38  ;;  %v9368_v39 = vpop.f32.mrb[35].mxu0 }
 0x8d7   :  { %v1391_v43 = vpop.f32.mrb[36].mxu0 }
 0x8d8   :  { %v11998_v45 = vadd.f32 %v8143_v17, %v1391_v43  ;;  %v9403_v51 = vpop.f32.mrb[37].mxu0 }
 0x8d9   :  { %v1394_v1 = vpop.f32.mrb[38].mxu0 }
 0x8da   :  { %v12000_v3 = vadd.f32 %v8143_v17, %v1394_v1  ;;  %v9404_v30 = vpop.f32.mrb[39].mxu0  ;;  %9425 = vmatprep.mubr.msk.f32.mxu1 %vm401_vm1, %v11998_v45 }
 0x8dc   :  { %v10656_v33 = vpack.i.bf16 %v12000_v3, %v11998_v45 }
 0x8de   :  { %10657 = vrot.lane.b32.xlu1 %v10656_v33, %s11396_s2 }
 0x8df   :  { %v1399_v5 = vpop.f32.mrb[40].mxu0 }
 0x8e0   :  { %v9407_v58 = vpop.f32.mrb[41].mxu0  ;;  %v12007_v10 = vadd.f32 %v8143_v17, %v1399_v5 }
 0x8e1   :  { %v1402_v9 = vpop.f32.mrb[42].mxu0 }
 0x8e2   :  { %v12009_v11 = vadd.f32 %v8143_v17, %v1402_v9  ;;  %v9408_v12 = vpop.f32.mrb[43].mxu0 }
 0x8e4   :  { %v10661_v16 = vpack.i.bf16 %v12009_v11, %v12007_v10 }
 0x8e6   :  { %10662 = vrot.lane.b32.xlu1 %v10661_v16, %s11396_s2 }
 0x8e7   :  { %v1407_v21 = vpop.f32.mrb[44].mxu0 }
 0x8e8   :  { %v9411_v18 = vpop.f32.mrb[45].mxu0  ;;  %v12014_v47 = vadd.f32 %v8143_v17, %v1407_v21 }
 0x8e9   :  { %v1410_v44 = vpop.f32.mrb[46].mxu0 }
 0x8ea   :  { %v12016_v49 = vadd.f32 %v8143_v17, %v1410_v44  ;;  %v9412_v50 = vpop.f32.mrb[47].mxu0 }
 0x8ec   :  { %v10666_v15 = vpack.i.bf16 %v12016_v49, %v12014_v47 }
 0x8ee   :  { %10667 = vrot.lane.b32.xlu0 %v10666_v15, %s11396_s2 }
 0x950   :  { %v10658_v20 = vpop.permute.xlu1 %10657 }
 0x951   :  { %v10660_v22 = vunpack.i.h.bf16 %v10658_v20  ;;  %v10659_v26 = vunpack.i.l.bf16 %v10658_v20 }
 0x953   :  { %v10429_v34 = vpack.c.bf16 %v10660_v22, %v10659_v26 }
 0x955   :  { %10431 = vmatprep.subr.msk.bf16.mxu1 %vm11689_vm2, %v10429_v34 }
 0x956   :  { %10434 = vmatpush3.bf16.xpose.msk.msra.mxu1 %vm11689_vm2, %v10429_v34 }
 0x958   :  { %v10663_v32 = vpop.permute.xlu1 %10662 }
 0x959   :  { %v10665_v41 = vunpack.i.h.bf16 %v10663_v32  ;;  %v10664_v48 = vunpack.i.l.bf16 %v10663_v32 }
 0x95b   :  { %v10435_v31 = vpack.c.bf16 %v10665_v41, %v10664_v48 }
 0x95d   :  { %10437 = vmatprep.subr.msk.bf16.mxu1 %vm11689_vm2, %v10435_v31 }
 0x95e   :  { %10440 = vmatpush3.bf16.xpose.msk.msra.mxu1 %vm11689_vm2, %v10435_v31 }
 0x960   :  { %v10668_v56 = vpop.permute.xlu0 %10667 }
 0x961   :  { %v10670_v59 = vunpack.i.h.bf16 %v10668_v56  ;;  %v10669_v60 = vunpack.i.l.bf16 %v10668_v56 }
 0x963   :  { %v10441_v46 = vpack.c.bf16 %v10670_v59, %v10669_v60 }
 0x965   :  { %10443 = vmatprep.subr.msk.bf16.mxu1 %vm11689_vm2, %v10441_v46 }
 0x966   :  { %10446 = vmatpush3.bf16.xpose.msk.msra.mxu1 %vm11689_vm2, %v10441_v46 }
 0x967   :  { %9434 = vmatprep.subr.bf16.mxu1 %v11394_v55 }
 0x96d   :  { %9426 = vmatmul.mubr.msk.f32.vlgmr.msra.gmra.mrb[48].mxu1 %vm401_vm1, %v12000_v3 }
 0x96e   :  { %9428 = vmatprep.mubr.msk.f32.mxu1 %vm401_vm1, %v12007_v10 }
 0x971   :  { %9429 = vmatmul.mubr.msk.f32.gmra.mrb[50].mxu1 %vm401_vm1, %v12009_v11 }
 0x972   :  { %9431 = vmatprep.mubr.msk.f32.mxu1 %vm401_vm1, %v12014_v47 }
 0x975   :  { %9432 = vmatmul.mubr.msk.f32.gmra.mrb[52].mxu1 %vm401_vm1, %v12016_v49 }
 0x976   :  { %9440 = vmatprep.mubr.msk.bf16.mxu1 %vm11395_vm0, %v11394_v55 }
 0xa40   :  { %v9427_v40 = vpop.f32.mrb[48].mxu1 }
 0xa41   :  { %v1552_v62 = vmul.f32 0.17677669, %v9427_v40  ;;  %v1522_v61 = vpop.f32.mrb[49].mxu1 }
 0xa42   :  { %v1551_v14 = vmul.f32 0.17677669, %v1522_v61 }
 0xa43   :  { %v1558_v25 = vadd.f32 %v1552_v62, %v11721_v4 }
 0xa44   :  { %v9430_v29 = vpop.f32.mrb[50].mxu1  ;;  %v1557_v38 = vadd.f32 %v1551_v14, %v11726_v7 }
 0xa45   :  { %v1554_v39 = vmul.f32 0.17677669, %v9430_v29  ;;  %v1532_v17 = vpop.f32.mrb[51].mxu1  ;;  %v1566_v43 = vsel %vm533_vm3, %v1558_v25, -inf }
 0xa46   :  { %v1553_v51 = vmul.f32 0.17677669, %v1532_v17  ;;  %1567 = vmax.xlane.f32.xlu0 %v1566_v43  ;;  %v1563_v1 = vsel %vm533_vm3, %v1557_v38, -inf  ;;  %v1633_v17 = vpack.c.bf16 %v12009_v11, %v12007_v10  ;;  %v1634_v43 = vpack.c.bf16 %v12016_v49, %v12014_v47  ;;  %v10843_v10 = vld [vmem:[%s14356_s8 + $0x20] sm:$0xff]  }
 0xa47   :  { %1564 = vmax.xlane.f32.xlu1 %v1563_v1  ;;  %v1560_v30 = vadd.f32 %v1554_v39, %v11733_v13  ;;  %9453 = vmatpush3.bf16.msra.mxu0 %v10843_v10 }
 0xa48   :  { %v9433_v33 = vpop.f32.mrb[52].mxu1  ;;  %v1559_v5 = vadd.f32 %v1553_v51, %v11739_v19  ;;  %v1632_v19 = vpack.c.bf16 %v12000_v3, %v11998_v45  ;;  %9454 = vmatprep.subr.bf16.mxu0 %v11394_v55 }
 0xa49   :  { %v1556_v58 = vmul.f32 0.17677669, %v9433_v33  ;;  %v1542_v9 = vpop.f32.mrb[53].mxu1  ;;  %v1572_v4 = vsel %vm533_vm3, %v1560_v30, -inf }
 0xa4a   :  { %v1555_v12 = vmul.f32 0.17677669, %v1542_v9  ;;  %v1569_v7 = vsel %vm533_vm3, %v1559_v5, -inf }
 0xa4b   :  { %1573 = vmax.xlane.f32.xlu1 %v1572_v4  ;;  %1570 = vmax.xlane.f32.xlu0 %v1569_v7  ;;  %v1562_v16 = vadd.f32 %v1556_v58, %v11747_v27 }
 0xa4c   :  { %v1561_v21 = vadd.f32 %v1555_v12, %v11753_v35 }
 0xa4d   :  { %v1578_v18 = vsel %vm533_vm3, %v1562_v16, -inf }
 0xa4e   :  { %v1575_v13 = vsel %vm533_vm3, %v1561_v21, -inf }
 0xa4f   :  { %1579 = vmax.xlane.f32.xlu1 %v1578_v18  ;;  %1576 = vmax.xlane.f32.xlu0 %v1575_v13  ;;  %v10835_v13 = vld [vmem:[%s14354_s6 + $0xc0] sm:$0xff]  }
 0xa65   :  { %1638 = vrot.lane.b32.xlu0 %v1632_v19, %s11397_s28 }
 0xad3   :  { %v1568_v44 = vpop.xlane.xlu0 %1567 }
 0xad4   :  { %v1582_v50 = vsub.f32 %v1558_v25, %v1568_v44  ;;  %v1565_v15 = vpop.xlane.xlu1 %1564 }
 0xad5   :  { %v1581_v20 = vsub.f32 %v1557_v38, %v1565_v15 }
 0xad6   :  { %v1589_v22 = vmul.f32 1.442695, %v1582_v50  ;;  %v10836_v50 = vld [vmem:[%s14354_s6 + $0xc8] sm:$0xff]  }
 0xad7   :  { %v1587_v26 = vmul.f32 1.442695, %v1581_v20 }
 0xad8   :  { %11033 = vpow2.f32 %v1589_v22  ;;  %v1574_v27 = vpop.xlane.xlu1 %1573  ;;  %v1571_v35 = vpop.xlane.xlu0 %1570  ;;  %v10837_v22 = vld [vmem:[%s14354_s6 + $0xd0] sm:$0xff]  }
 0xad9   :  { %11035 = vpow2.f32 %v1587_v26  ;;  %v1584_v34 = vsub.f32 %v1560_v30, %v1574_v27  ;;  %v1583_v32 = vsub.f32 %v1559_v5, %v1571_v35  ;;  %v10838_v27 = vld [vmem:[%s14354_s6 + $0xd8] sm:$0xff]   ;;  %v10839_v35 = vld [vmem:[%s14354_s6 + $0xe0] sm:$0xff]  }
 0xadb   :  { %v1593_v41 = vmul.f32 1.442695, %v1584_v34  ;;  %v1591_v48 = vmul.f32 1.442695, %v1583_v32  ;;  %v10840_v34 = vld [vmem:[%s14354_s6 + $0xe8] sm:$0xff]   ;;  %v10841_v32 = vld [vmem:[%s14354_s6 + $0xf0] sm:$0xff]  }
 0xadc   :  { %v1580_v31 = vpop.xlane.xlu1 %1579  ;;  %v1577_v56 = vpop.xlane.xlu0 %1576 }
 0xadd   :  { %11037 = vpow2.f32 %v1593_v41  ;;  %v1586_v45 = vsub.f32 %v1562_v16, %v1580_v31  ;;  %v1585_v51 = vsub.f32 %v1561_v21, %v1577_v56  ;;  %v10842_v41 = vld [vmem:[%s14354_s6 + $0xf8] sm:$0xff]  }
 0xade   :  { %11039 = vpow2.f32 %v1591_v48 }
 0xadf   :  { %v1597_v3 = vmul.f32 1.442695, %v1586_v45  ;;  %v1595_v1 = vmul.f32 1.442695, %v1585_v51 }
 0xae0   :  { %v1639_v59 = vpop.permute.xlu0 %1638 }
 0xae1   :  { %11041 = vpow2.f32 %v1597_v3  ;;  %9435 = vmatpush3.bf16.msra.mxu1 %v1639_v59 }
 0xae2   :  { %v11034_v60 = vpop.eup %11033  ;;  %9436 = vmatprep.subr.bf16.mxu1 %v11394_v55  ;;  %11043 = vpow2.f32 %v1595_v1  ;;  %v8193_v1 = vld [vmem:[%s14355_s7 + $0x3] ss:$0 sm:$0xff] }
 0xae3   :  { %v11036_v46 = vpop.eup %11035  ;;  %v1602_v40 = vsel %vm533_vm3, %v11034_v60, 0.0 }
 0xae4   :  { %1603 = vadd.xlane.f32.xlu1 %v1602_v40  ;;  %v1599_v62 = vsel %vm533_vm3, %v11036_v46, 0.0 }
 0xae5   :  { %1600 = vadd.xlane.f32.xlu0 %v1599_v62 }
 0xae7   :  { %v11038_v61 = vpop.eup %11037 }
 0xae8   :  { %v11040_v14 = vpop.eup %11039  ;;  %v1608_v25 = vsel %vm533_vm3, %v11038_v61, 0.0 }
 0xae9   :  { %1609 = vadd.xlane.f32.xlu1 %v1608_v25  ;;  %v1605_v29 = vsel %vm533_vm3, %v11040_v14, 0.0 }
 0xaea   :  { %1606 = vadd.xlane.f32.xlu0 %v1605_v29 }
 0xaeb   :  { %v12066_v38 = vpop.eup %11041 }
 0xaec   :  { %v1614_v39 = vsel %vm533_vm3, %v12066_v38, 0.0  ;;  %v12076_v30 = vpop.eup %11043 }
 0xaed   :  { %v1611_v33 = vsel %vm533_vm3, %v12076_v30, 0.0 }
 0xaee   :  { %1615 = vadd.xlane.f32.xlu0 %v1614_v39 }
 0xafa   :  { %1640 = vrot.lane.b32.xlu1 %v1633_v17, %s11397_s28 }
 0xb04   :  { %1642 = vrot.lane.b32.xlu0 %v1634_v43, %s11397_s28 }
 0xb1e   :  { %1612 = vadd.xlane.f32.xlu1 %v1611_v33 }
 0xb71   :  { %v1604_v11 = vpop.xlane.xlu1 %1603 }
 0xb72   :  { %11045 = vrcp.f32 %v1604_v11  ;;  %v1601_v47 = vpop.xlane.xlu0 %1600 }
 0xb73   :  { %11047 = vrcp.f32 %v1601_v47 }
 0xb76   :  { %v1610_v49 = vpop.xlane.xlu1 %1609 }
 0xb77   :  { %11049 = vrcp.f32 %v1610_v49  ;;  %v1607_v5 = vpop.xlane.xlu0 %1606 }
 0xb78   :  { %11051 = vrcp.f32 %v1607_v5 }
 0xb7a   :  { %v1641_v58 = vpop.permute.xlu1 %1640 }
 0xb7b   :  { %v1616_v9 = vpop.xlane.xlu0 %1615  ;;  %9437 = vmatpush3.bf16.msra.mxu1 %v1641_v58 }
 0xb7c   :  { %v11046_v4 = vpop.eup %11045  ;;  %9438 = vmatprep.subr.bf16.mxu1 %v11394_v55  ;;  %11053 = vrcp.f32 %v1616_v9 }
 0xb7d   :  { %v11048_v12 = vpop.eup %11047  ;;  %v1624_v7 = vmul.f32 %v11046_v4, %v11034_v60  ;;  %v10844_v60 = vld [vmem:[%s14356_s8 + $0x28] sm:$0xff]  }
 0xb7e   :  { %v1623_v16 = vmul.f32 %v11048_v12, %v11036_v46  ;;  %9455 = vmatpush3.bf16.msra.mxu0 %v10844_v60 }
 0xb7f   :  { %v1643_v21 = vpop.permute.xlu0 %1642 }
 0xb80   :  { %v1629_v18 = vpack.c.bf16 %v1624_v7, %v1623_v16  ;;  %9439 = vmatpush3.bf16.msra.mxu1 %v1643_v21 }
 0xb81   :  { %v11050_v19 = vpop.eup %11049  ;;  %9468 = vmatprep.subr.bf16.mxu1 %v11394_v55 }
 0xb82   :  { %v11052_v44 = vpop.eup %11051  ;;  %v1626_v20 = vmul.f32 %v11050_v19, %v11038_v61 }
 0xb83   :  { %9441 = vmatmul.mubr.msk.bf16.vlgmr.msra.gmra.mrb[56].mxu1 %vm533_vm3, %v1629_v18  ;;  %v1625_v15 = vmul.f32 %v11052_v44, %v11040_v14 }
 0xb84   :  { %9444 = vmatprep.mubr.msk.bf16.mxu1 %vm11395_vm0, %v11394_v55  ;;  %9469 = vmatpush3.bf16.msra.mxu1 %v10835_v13 }
 0xb85   :  { %9470 = vmatprep.subr.bf16.mxu1 %v11394_v55  ;;  %v1630_v26 = vpack.c.bf16 %v1626_v20, %v1625_v15 }
 0xb86   :  { %v11054_v31 = vpop.eup %11053 }
 0xb87   :  { %v1628_v3 = vmul.f32 %v11054_v31, %v12066_v38 }
 0xb88   :  { %9471 = vmatpush3.bf16.msra.mxu1 %v10836_v50 }
 0xb89   :  { %9472 = vmatprep.subr.bf16.mxu1 %v11394_v55 }
 0xb8b   :  { %9445 = vmatmul.mubr.msk.bf16.gmra.mrb[60].mxu1 %vm533_vm3, %v1630_v26 }
 0xb8c   :  { %9473 = vmatpush3.bf16.msra.mxu1 %v10837_v22  ;;  %9448 = vmatprep.mubr.msk.bf16.mxu1 %vm11395_vm0, %v11394_v55 }
 0xb8d   :  { %9474 = vmatprep.subr.bf16.mxu1 %v11394_v55 }
 0xb90   :  { %9475 = vmatpush3.bf16.msra.mxu1 %v10838_v27 }
 0xb91   :  { %9476 = vmatprep.subr.bf16.mxu1 %v11394_v55 }
 0xb94   :  { %9477 = vmatpush3.bf16.msra.mxu1 %v10839_v35 }
 0xb95   :  { %9478 = vmatprep.subr.bf16.mxu1 %v11394_v55 }
 0xb98   :  { %9479 = vmatpush3.bf16.msra.mxu1 %v10840_v34 }
 0xb99   :  { %9480 = vmatprep.subr.bf16.mxu1 %v11394_v55 }
 0xb9c   :  { %9481 = vmatpush3.bf16.msra.mxu1 %v10841_v32 }
 0xb9d   :  { %9482 = vmatprep.subr.bf16.mxu1 %v11394_v55 }
 0xba0   :  { %9483 = vmatpush3.bf16.msra.mxu1 %v10842_v41 }
 0xba1   :  { %9535 = vmatprep.subr.bf16.mxu1 %v11394_v55 }
 0xbab   :  { %v1613_v48 = vpop.xlane.xlu1 %1612 }
 0xbac   :  { %11055 = vrcp.f32 %v1613_v48 }
 0xbb6   :  { %v11056_v56 = vpop.eup %11055 }
 0xbb7   :  { %v1627_v45 = vmul.f32 %v11056_v56, %v12076_v30 }
 0xbb9   :  { %v1631_v59 = vpack.c.bf16 %v1628_v3, %v1627_v45 }
 0xbbb   :  { %9449 = vmatmul.mubr.msk.bf16.gmra.mrb[64].mxu1 %vm533_vm3, %v1631_v59 }
 0xbbc   :  { %9484 = vmatprep.mubr.msk.bf16.mxu1 %vm11395_vm0, %v11394_v55 }
 0xbc3   :  { %9485 = vmatmul.mubr.bf16.vlgmr.msra.gmra.mrb[68].mxu1 %v11585_v36 }
 0xbc4   :  { %9488 = vmatprep.mubr.msk.bf16.mxu1 %vm11395_vm0, %v11394_v55 }
 0xbcb   :  { %9489 = vmatmul.mubr.bf16.gmra.mrb[72].mxu1 %v11601_v2 }
 0xbcc   :  { %9492 = vmatprep.mubr.msk.bf16.mxu1 %vm11395_vm0, %v11394_v55 }
 0xbd3   :  { %9493 = vmatmul.mubr.bf16.gmra.mrb[76].mxu1 %v11622_v8 }
 0xbd4   :  { %9539 = vmatprep.mubr.msk.bf16.mxu1 %vm11395_vm0, %v11394_v55 }
 0xc56   :  { %v1690_v46 = vpop.f32.mrb[56].mxu1 }
 0xc57   :  { %v9442_v36 = vpop.f32.mrb[57].mxu1 }
 0xc58   :  { %v1693_v40 = vpop.f32.mrb[58].mxu1 }
 0xc59   :  { %v1713_v62 = vpack.c.bf16 %v1693_v40, %v1690_v46  ;;  %v9443_v61 = vpop.f32.mrb[59].mxu1 }
 0xc5b   :  { %9457 = vmatmul.mubr.msk.bf16.vlgmr.msra.gmra.mrb[48].mxu0 %vm401_vm1, %v1713_v62 }
 0xc5c   :  { %9460 = vmatprep.mubr.msk.bf16.mxu0 %vm11395_vm0, %v11394_v55 }
 0xc5e   :  { %v1698_v2 = vpop.f32.mrb[60].mxu1 }
 0xc5f   :  { %v9446_v8 = vpop.f32.mrb[61].mxu1 }
 0xc60   :  { %v1701_v14 = vpop.f32.mrb[62].mxu1 }
 0xc61   :  { %v1714_v25 = vpack.c.bf16 %v1701_v14, %v1698_v2  ;;  %v9447_v29 = vpop.f32.mrb[63].mxu1 }
 0xc63   :  { %9461 = vmatmul.mubr.msk.bf16.gmra.mrb[52].mxu0 %vm401_vm1, %v1714_v25 }
 0xc64   :  { %9464 = vmatprep.mubr.msk.bf16.mxu0 %vm11395_vm0, %v11394_v55 }
 0xc8e   :  { %v1706_v38 = vpop.f32.mrb[64].mxu1 }
 0xc8f   :  { %v9450_v39 = vpop.f32.mrb[65].mxu1 }
 0xc90   :  { %v1709_v17 = vpop.f32.mrb[66].mxu1 }
 0xc91   :  { %v1715_v43 = vpack.c.bf16 %v1709_v17, %v1706_v38  ;;  %v9451_v51 = vpop.f32.mrb[67].mxu1 }
 0xc93   :  { %9465 = vmatmul.mubr.msk.bf16.gmra.mrb[56].mxu0 %vm401_vm1, %v1715_v43 }
 0xc96   :  { %v1912_v30 = vpop.f32.mrb[68].mxu1 }
 0xc97   :  { %v12151_v33 = vadd.f32 %v8193_v1, %v1912_v30  ;;  %v9486_v10 = vpop.f32.mrb[69].mxu1 }
 0xc98   :  { %v1915_v11 = vpop.f32.mrb[70].mxu1 }
 0xc99   :  { %v12153_v47 = vadd.f32 %v8193_v1, %v1915_v11  ;;  %v9487_v49 = vpop.f32.mrb[71].mxu1  ;;  %9508 = vmatprep.mubr.msk.f32.mxu0 %vm401_vm1, %v12151_v33 }
 0xc9b   :  { %v10671_v5 = vpack.i.bf16 %v12153_v47, %v12151_v33 }
 0xc9d   :  { %10672 = vrot.lane.b32.xlu1 %v10671_v5, %s11396_s2 }
 0xc9e   :  { %v1920_v58 = vpop.f32.mrb[72].mxu1 }
 0xc9f   :  { %v9490_v9 = vpop.f32.mrb[73].mxu1  ;;  %v12160_v12 = vadd.f32 %v8193_v1, %v1920_v58 }
 0xca0   :  { %v1923_v4 = vpop.f32.mrb[74].mxu1 }
 0xca1   :  { %v12162_v7 = vadd.f32 %v8193_v1, %v1923_v4  ;;  %v9491_v16 = vpop.f32.mrb[75].mxu1 }
 0xca2   :  { %v11339_v16 = vld [vmem:[%s14353_s5 + $0x18] sm:$0xff] }
 0xca3   :  { %v10676_v21 = vpack.i.bf16 %v12162_v7, %v12160_v12 }
 0xca5   :  { %10677 = vrot.lane.b32.xlu1 %v10676_v21, %s11396_s2 }
 0xca6   :  { %v1928_v18 = vpop.f32.mrb[76].mxu1 }
 0xca7   :  { %v9494_v13 = vpop.f32.mrb[77].mxu1  ;;  %v12167_v44 = vadd.f32 %v8193_v1, %v1928_v18 }
 0xca8   :  { %v1931_v19 = vpop.f32.mrb[78].mxu1  ;;  %v11340_v13 = vld [vmem:[%s14353_s5 + $0x10] sm:$0xff] }
 0xca9   :  { %v12169_v50 = vadd.f32 %v8193_v1, %v1931_v19  ;;  %v9495_v15 = vpop.f32.mrb[79].mxu1 }
 0xcab   :  { %v10681_v20 = vpack.i.bf16 %v12169_v50, %v12167_v44 }
 0xcad   :  { %10682 = vrot.lane.b32.xlu0 %v10681_v20, %s11396_s2 }
 0xd0f   :  { %v10673_v22 = vpop.permute.xlu1 %10672 }
 0xd10   :  { %v10675_v26 = vunpack.i.h.bf16 %v10673_v22  ;;  %v10674_v27 = vunpack.i.l.bf16 %v10673_v22 }
 0xd12   :  { %v10447_v35 = vpack.c.bf16 %v10675_v26, %v10674_v27 }
 0xd14   :  { %10449 = vmatprep.subr.msk.bf16.mxu0 %vm11689_vm2, %v10447_v35 }
 0xd15   :  { %10452 = vmatpush3.bf16.xpose.msk.msra.mxu0 %vm11689_vm2, %v10447_v35  ;;  %v11341_v35 = vld [vmem:[%s14353_s5 + $0x28] sm:$0xff] }
 0xd17   :  { %v10678_v34 = vpop.permute.xlu1 %10677 }
 0xd18   :  { %v10680_v32 = vunpack.i.h.bf16 %v10678_v34  ;;  %v10679_v41 = vunpack.i.l.bf16 %v10678_v34 }
 0xd1a   :  { %v10453_v48 = vpack.c.bf16 %v10680_v32, %v10679_v41  ;;  %v11342_v32 = vld [vmem:[%s14353_s5 + $0x20] sm:$0xff] }
 0xd1c   :  { %10455 = vmatprep.subr.msk.bf16.mxu0 %vm11689_vm2, %v10453_v48 }
 0xd1d   :  { %10458 = vmatpush3.bf16.xpose.msk.msra.mxu0 %vm11689_vm2, %v10453_v48 }
 0xd1f   :  { %v10683_v31 = vpop.permute.xlu0 %10682 }
 0xd20   :  { %v10685_v56 = vunpack.i.h.bf16 %v10683_v31  ;;  %v10684_v45 = vunpack.i.l.bf16 %v10683_v31 }
 0xd22   :  { %v10459_v3 = vpack.c.bf16 %v10685_v56, %v10684_v45 }
 0xd24   :  { %10461 = vmatprep.subr.msk.bf16.mxu0 %vm11689_vm2, %v10459_v3 }
 0xd25   :  { %10464 = vmatpush3.bf16.xpose.msk.msra.mxu0 %vm11689_vm2, %v10459_v3 }
 0xd26   :  { %9517 = vmatprep.subr.bf16.mxu0 %v11394_v55 }
 0xd2c   :  { %9509 = vmatmul.mubr.msk.f32.vlgmr.msra.gmra.mrb[60].mxu0 %vm401_vm1, %v12153_v47 }
 0xd2d   :  { %9511 = vmatprep.mubr.msk.f32.mxu0 %vm401_vm1, %v12160_v12 }
 0xd2e   :  { %v1776_v59 = vpop.f32.mrb[48].mxu0 }
 0xd2f   :  { %v12192_v60 = vadd.f32 %v1776_v59, %v11983_v57  ;;  %v9458_v46 = vpop.f32.mrb[49].mxu0 }
 0xd30   :  { %v1779_v36 = vpop.f32.mrb[50].mxu0  ;;  %9512 = vmatmul.mubr.msk.f32.gmra.mrb[62].mxu0 %vm401_vm1, %v12162_v7 }
 0xd31   :  { %v12197_v40 = vadd.f32 %v1779_v36, %v11985_v23  ;;  %v9459_v62 = vpop.f32.mrb[51].mxu0  ;;  %9514 = vmatprep.mubr.msk.f32.mxu0 %vm401_vm1, %v12167_v44 }
 0xd34   :  { %9515 = vmatmul.mubr.msk.f32.gmra.mrb[64].mxu0 %vm401_vm1, %v12169_v50 }
 0xd35   :  { %9523 = vmatprep.mubr.msk.bf16.mxu0 %vm11395_vm0, %v11394_v55 }
 0xd36   :  { %v1784_v57 = vpop.f32.mrb[52].mxu0 }
 0xd37   :  { %v12206_v61 = vadd.f32 %v1784_v57, %v11987_v42  ;;  %v9462_v2 = vpop.f32.mrb[53].mxu0 }
 0xd38   :  { %v1787_v8 = vpop.f32.mrb[54].mxu0 }
 0xd39   :  { %v12209_v14 = vadd.f32 %v1787_v8, %v11989_v24  ;;  %v9463_v23 = vpop.f32.mrb[55].mxu0  ;;  %v11337_v24 = vld [vmem:[%s14353_s5 + $0x8] sm:$0xff] }
 0xd66   :  { %v1792_v25 = vpop.f32.mrb[56].mxu0 }
 0xd67   :  { %v12212_v29 = vadd.f32 %v1792_v25, %v11991_v28  ;;  %v9466_v38 = vpop.f32.mrb[57].mxu0  ;;  %v11338_v28 = vld [vmem:[%s14353_s5] sm:$0xff] }
 0xd68   :  { %v1795_v39 = vpop.f32.mrb[58].mxu0 }
 0xd69   :  { %v12215_v17 = vadd.f32 %v1795_v39, %v11993_v37  ;;  %v9467_v43 = vpop.f32.mrb[59].mxu0 }
 0xdff   :  { %v9510_v51 = vpop.f32.mrb[60].mxu0 }
 0xe00   :  { %v2073_v1 = vmul.f32 0.17677669, %v9510_v51  ;;  %v2043_v42 = vpop.f32.mrb[61].mxu0 }
 0xe01   :  { %v2072_v30 = vmul.f32 0.17677669, %v2043_v42 }
 0xe02   :  { %v2079_v10 = vadd.f32 %v11337_v24, %v2073_v1 }
 0xe03   :  { %v9513_v11 = vpop.f32.mrb[62].mxu0  ;;  %v2078_v49 = vadd.f32 %v11338_v28, %v2072_v30 }
 0xe04   :  { %v2075_v5 = vmul.f32 0.17677669, %v9513_v11  ;;  %v2053_v58 = vpop.f32.mrb[63].mxu0  ;;  %v2087_v37 = vsel %vm533_vm3, %v2079_v10, -inf }
 0xe05   :  { %v2074_v9 = vmul.f32 0.17677669, %v2053_v58  ;;  %2088 = vmax.xlane.f32.xlu0 %v2087_v37  ;;  %v2084_v4 = vsel %vm533_vm3, %v2078_v49, -inf }
 0xe06   :  { %2085 = vmax.xlane.f32.xlu1 %v2084_v4  ;;  %v2081_v21 = vadd.f32 %v11339_v16, %v2075_v5 }
 0xe07   :  { %v9516_v18 = vpop.f32.mrb[64].mxu0  ;;  %v2080_v19 = vadd.f32 %v11340_v13, %v2074_v9  ;;  %v2153_v13 = vpack.c.bf16 %v12153_v47, %v12151_v33 }
 0xe08   :  { %v2077_v15 = vmul.f32 0.17677669, %v9516_v18  ;;  %v2063_v20 = vpop.f32.mrb[65].mxu0  ;;  %v2093_v22 = vsel %vm533_vm3, %v2081_v21, -inf  ;;  %v2155_v18 = vpack.c.bf16 %v12169_v50, %v12167_v44 }
 0xe09   :  { %v2076_v26 = vmul.f32 0.17677669, %v2063_v20  ;;  %v2090_v27 = vsel %vm533_vm3, %v2080_v19, -inf }
 0xe0a   :  { %2094 = vmax.xlane.f32.xlu1 %v2093_v22  ;;  %2091 = vmax.xlane.f32.xlu0 %v2090_v27  ;;  %v2083_v34 = vadd.f32 %v11341_v35, %v2077_v15 }
 0xe0b   :  { %v2082_v41 = vadd.f32 %v11342_v32, %v2076_v26 }
 0xe0c   :  { %v2099_v48 = vsel %vm533_vm3, %v2083_v34, -inf }
 0xe0d   :  { %v2096_v31 = vsel %vm533_vm3, %v2082_v41, -inf }
 0xe0e   :  { %2100 = vmax.xlane.f32.xlu1 %v2099_v48  ;;  %2097 = vmax.xlane.f32.xlu0 %v2096_v31 }
 0xe92   :  { %v2089_v56 = vpop.xlane.xlu0 %2088 }
 0xe93   :  { %v2103_v45 = vsub.f32 %v2079_v10, %v2089_v56  ;;  %v2086_v3 = vpop.xlane.xlu1 %2085 }
 0xe94   :  { %v2102_v59 = vsub.f32 %v2078_v49, %v2086_v3 }
 0xe95   :  { %v2110_v46 = vmul.f32 1.442695, %v2103_v45 }
 0xe96   :  { %v2108_v36 = vmul.f32 1.442695, %v2102_v59 }
 0xe97   :  { %11057 = vpow2.f32 %v2110_v46  ;;  %v2095_v62 = vpop.xlane.xlu1 %2094  ;;  %v2092_v57 = vpop.xlane.xlu0 %2091 }
 0xe98   :  { %11059 = vpow2.f32 %v2108_v36  ;;  %v2105_v2 = vsub.f32 %v2081_v21, %v2095_v62  ;;  %v2104_v8 = vsub.f32 %v2080_v19, %v2092_v57  ;;  %v2154_v21 = vpack.c.bf16 %v12162_v7, %v12160_v12  ;;  %v10845_v19 = vld [vmem:[%s14356_s8 + $0x30] sm:$0xff]   ;;  %v10846_v12 = vld [vmem:[%s14356_s8 + $0x38] sm:$0xff]  }
 0xe99   :  { %9536 = vmatpush3.bf16.msra.mxu1 %v10845_v19 }
 0xe9a   :  { %v2114_v23 = vmul.f32 1.442695, %v2105_v2  ;;  %v2112_v25 = vmul.f32 1.442695, %v2104_v8  ;;  %9537 = vmatprep.subr.bf16.mxu1 %v11394_v55 }
 0xe9b   :  { %v2101_v38 = vpop.xlane.xlu1 %2100  ;;  %v2098_v39 = vpop.xlane.xlu0 %2097 }
 0xe9c   :  { %11061 = vpow2.f32 %v2114_v23  ;;  %v2107_v43 = vsub.f32 %v2083_v34, %v2101_v38  ;;  %v2106_v51 = vsub.f32 %v2082_v41, %v2098_v39 }
 0xe9d   :  { %11063 = vpow2.f32 %v2112_v25  ;;  %9538 = vmatpush3.bf16.msra.mxu1 %v10846_v12 }
 0xe9e   :  { %v2118_v1 = vmul.f32 1.442695, %v2107_v43  ;;  %v2116_v42 = vmul.f32 1.442695, %v2106_v51  ;;  %9579 = vmatprep.subr.bf16.mxu1 %v11394_v55 }
 0xea0   :  { %11065 = vpow2.f32 %v2118_v1 }
 0xea1   :  { %v11058_v30 = vpop.eup %11057  ;;  %11067 = vpow2.f32 %v2116_v42 }
 0xea2   :  { %v11060_v24 = vpop.eup %11059  ;;  %v2123_v10 = vsel %vm533_vm3, %v11058_v30, 0.0 }
 0xea3   :  { %2124 = vadd.xlane.f32.xlu1 %v2123_v10  ;;  %v2120_v11 = vsel %vm533_vm3, %v11060_v24, 0.0 }
 0xea4   :  { %2121 = vadd.xlane.f32.xlu0 %v2120_v11 }
 0xea6   :  { %v11062_v28 = vpop.eup %11061 }
 0xea7   :  { %v11064_v49 = vpop.eup %11063  ;;  %v2129_v5 = vsel %vm533_vm3, %v11062_v28, 0.0 }
 0xea8   :  { %2130 = vadd.xlane.f32.xlu1 %v2129_v5  ;;  %v2126_v58 = vsel %vm533_vm3, %v11064_v49, 0.0 }
 0xea9   :  { %2127 = vadd.xlane.f32.xlu0 %v2126_v58 }
 0xeaa   :  { %v11066_v37 = vpop.eup %11065 }
 0xeab   :  { %v11068_v9 = vpop.eup %11067  ;;  %v2135_v4 = vsel %vm533_vm3, %v11066_v37, 0.0 }
 0xeac   :  { %2136 = vadd.xlane.f32.xlu1 %v2135_v4  ;;  %v2132_v16 = vsel %vm533_vm3, %v11068_v9, 0.0 }
 0xead   :  { %2133 = vadd.xlane.f32.xlu0 %v2132_v16 }
 0xebd   :  { %2161 = vrot.lane.b32.xlu1 %v2154_v21, %s11397_s28 }
 0xec1   :  { %2163 = vrot.lane.b32.xlu1 %v2155_v18, %s11397_s28 }
 0xec3   :  { %2159 = vrot.lane.b32.xlu0 %v2153_v13, %s11397_s28 }
 0xf30   :  { %v2125_v7 = vpop.xlane.xlu1 %2124 }
 0xf31   :  { %v2122_v44 = vpop.xlane.xlu0 %2121  ;;  %11069 = vrcp.f32 %v2125_v7 }
 0xf32   :  { %11071 = vrcp.f32 %v2122_v44 }
 0xf35   :  { %v2131_v50 = vpop.xlane.xlu1 %2130 }
 0xf36   :  { %v2128_v33 = vpop.xlane.xlu0 %2127  ;;  %11073 = vrcp.f32 %v2131_v50 }
 0xf37   :  { %11075 = vrcp.f32 %v2128_v33 }
 0xf39   :  { %v2137_v47 = vpop.xlane.xlu1 %2136 }
 0xf3a   :  { %v2134_v15 = vpop.xlane.xlu0 %2133  ;;  %11077 = vrcp.f32 %v2137_v47 }
 0xf3b   :  { %v11070_v22 = vpop.eup %11069  ;;  %11079 = vrcp.f32 %v2134_v15 }
 0xf3c   :  { %v11072_v27 = vpop.eup %11071  ;;  %v2145_v35 = vmul.f32 %v11070_v22, %v11058_v30 }
 0xf3d   :  { %v2162_v26 = vpop.permute.xlu1 %2161  ;;  %v2144_v34 = vmul.f32 %v11072_v27, %v11060_v24 }
 0xf3e   :  { %v2160_v20 = vpop.permute.xlu0 %2159 }
 0xf3f   :  { %9518 = vmatpush3.bf16.msra.mxu0 %v2160_v20  ;;  %v2150_v48 = vpack.c.bf16 %v2145_v35, %v2144_v34 }
 0xf40   :  { %9519 = vmatprep.subr.bf16.mxu0 %v11394_v55  ;;  %v11074_v41 = vpop.eup %11073 }
 0xf41   :  { %v2164_v32 = vpop.permute.xlu1 %2163  ;;  %v11076_v31 = vpop.eup %11075  ;;  %v2147_v45 = vmul.f32 %v11074_v41, %v11062_v28 }
 0xf42   :  { %v2146_v56 = vmul.f32 %v11076_v31, %v11064_v49  ;;  %v2332_v49 = vlaneseq }
 0xf43   :  { %9520 = vmatpush3.bf16.msra.mxu0 %v2162_v26 }
 0xf44   :  { %9521 = vmatprep.subr.bf16.mxu0 %v11394_v55  ;;  %v11078_v3 = vpop.eup %11077  ;;  %v2151_v59 = vpack.c.bf16 %v2147_v45, %v2146_v56  ;;  %v12285_v5 = vshrl.u32 %v2332_v49, 7 }
 0xf45   :  { %v11080_v46 = vpop.eup %11079  ;;  %v2149_v62 = vmul.f32 %v11078_v3, %v11066_v37  ;;  %v12293_v37 = vld [vmem:[%s14359_s11] sm:$0xff] }
 0xf46   :  { %v2148_v36 = vmul.f32 %v11080_v46, %v11068_v9  ;;  %v12288_v58 = vsub.s32 0, %v12285_v5  ;;  %v10847_v3 = vld [vmem:[%s14357_s9] sm:$0xff]   ;;  %v10849_v46 = vld [vmem:[%s14357_s9 + $0x10] sm:$0xff]  }
 0xf47   :  { %9522 = vmatpush3.bf16.msra.mxu0 %v2164_v32 }
 0xf48   :  { %9551 = vmatprep.subr.bf16.mxu0 %v11394_v55  ;;  %v2152_v57 = vpack.c.bf16 %v2149_v62, %v2148_v36  ;;  %v2335_v21 = vrot.slane %v12293_v37, %v12288_v58  ;;  %v10850_v36 = vld [vmem:[%s14357_s9 + $0x18] sm:$0xff]   ;;  %v10851_v62 = vld [vmem:[%s14357_s9 + $0x20] sm:$0xff]  }
 0xf4a   :  { %9524 = vmatmul.mubr.msk.bf16.vlgmr.msra.gmra.mrb[68].mxu0 %vm533_vm3, %v2150_v48 }
 0xf4b   :  { %9527 = vmatprep.mubr.msk.bf16.mxu0 %vm11395_vm0, %v11394_v55  ;;  %9552 = vmatpush3.bf16.msra.mxu0 %v10847_v3 }
 0xf4c   :  { %9553 = vmatprep.subr.bf16.mxu0 %v11394_v55 }
 0xf52   :  { %9528 = vmatmul.mubr.msk.bf16.gmra.mrb[72].mxu0 %vm533_vm3, %v2151_v59 }
 0xf53   :  { %9531 = vmatprep.mubr.msk.bf16.mxu0 %vm11395_vm0, %v11394_v55 }
 0xf5a   :  { %9532 = vmatmul.mubr.msk.bf16.gmra.mrb[76].mxu0 %vm533_vm3, %v2152_v57  ;;  %v10852_v57 = vld [vmem:[%s14357_s9 + $0x28] sm:$0xff]  }
 0xf5b   :  { %9567 = vmatprep.mubr.msk.bf16.mxu0 %vm11395_vm0, %v11394_v55 }
0x101d   :  { %v2211_v2 = vpop.f32.mrb[68].mxu0 }
0x101e   :  { %v9525_v8 = vpop.f32.mrb[69].mxu0 }
0x101f   :  { %v2214_v23 = vpop.f32.mrb[70].mxu0  ;;  %v10854_v8 = vld [vmem:[%s14357_s9 + $0x38] sm:$0xff]  }
0x1020   :  { %v2234_v25 = vpack.c.bf16 %v2214_v23, %v2211_v2  ;;  %v9526_v38 = vpop.f32.mrb[71].mxu0  ;;  %v10853_v2 = vld [vmem:[%s14357_s9 + $0x30] sm:$0xff]   ;;  %v10855_v23 = vld [vmem:[%s14358_s10] sm:$0xff]  }
0x1021   :  { %v10857_v38 = vld [vmem:[%s14358_s10 + $0x10] sm:$0xff]  }
0x1022   :  { %9540 = vmatmul.mubr.msk.bf16.vlgmr.msra.gmra.mrb[80].mxu1 %vm401_vm1, %v2234_v25  ;;  %v10856_v25 = vld [vmem:[%s14358_s10 + $0x8] sm:$0xff]  }
0x1023   :  { %9543 = vmatprep.mubr.msk.bf16.mxu1 %vm11395_vm0, %v11394_v55  ;;  %9580 = vmatpush3.bf16.msra.mxu1 %v10855_v23 }
0x1024   :  { %9581 = vmatprep.subr.bf16.mxu1 %v11394_v55 }
0x1025   :  { %v2219_v39 = vpop.f32.mrb[72].mxu0 }
0x1026   :  { %v9529_v43 = vpop.f32.mrb[73].mxu0 }
0x1027   :  { %v2222_v51 = vpop.f32.mrb[74].mxu0  ;;  %9582 = vmatpush3.bf16.msra.mxu1 %v10856_v25  ;;  %v10859_v43 = vld [vmem:[%s14358_s10 + $0x20] sm:$0xff]  }
0x1028   :  { %v2235_v1 = vpack.c.bf16 %v2222_v51, %v2219_v39  ;;  %v9530_v42 = vpop.f32.mrb[75].mxu0  ;;  %9583 = vmatprep.subr.bf16.mxu1 %v11394_v55  ;;  %v10858_v39 = vld [vmem:[%s14358_s10 + $0x18] sm:$0xff]   ;;  %v10860_v51 = vld [vmem:[%s14358_s10 + $0x28] sm:$0xff]  }
0x102a   :  { %9544 = vmatmul.mubr.msk.bf16.gmra.mrb[84].mxu1 %vm401_vm1, %v2235_v1 }
0x102b   :  { %9547 = vmatprep.mubr.msk.bf16.mxu1 %vm11395_vm0, %v11394_v55  ;;  %9584 = vmatpush3.bf16.msra.mxu1 %v10857_v38 }
0x102c   :  { %9585 = vmatprep.subr.bf16.mxu1 %v11394_v55 }
0x102d   :  { %v2227_v30 = vpop.f32.mrb[76].mxu0 }
0x102e   :  { %v9533_v24 = vpop.f32.mrb[77].mxu0 }
0x102f   :  { %v2230_v10 = vpop.f32.mrb[78].mxu0  ;;  %9586 = vmatpush3.bf16.msra.mxu1 %v10858_v39 }
0x1030   :  { %v2236_v11 = vpack.c.bf16 %v2230_v10, %v2227_v30  ;;  %v9534_v28 = vpop.f32.mrb[79].mxu0  ;;  %9587 = vmatprep.subr.bf16.mxu1 %v11394_v55 }
0x1032   :  { %9548 = vmatmul.mubr.msk.bf16.gmra.mrb[88].mxu1 %vm401_vm1, %v2236_v11 }
0x1033   :  { %9595 = vmatprep.mubr.msk.bf16.mxu1 %vm11395_vm0, %v11394_v55  ;;  %9588 = vmatpush3.bf16.msra.mxu1 %v10859_v43 }
0x1034   :  { %9589 = vmatprep.subr.bf16.mxu1 %v11394_v55 }
0x1037   :  { %9590 = vmatpush3.bf16.msra.mxu1 %v10860_v51 }
0x1038   :  { %9591 = vmatprep.subr.bf16.mxu1 %v11394_v55 }
0x10f5   :  { %v2297_v9 = vpop.f32.mrb[80].mxu1 }
0x10f6   :  { %v2320_v4 = vadd.f32 %v2297_v9, %v12192_v60  ;;  %v9541_v16 = vpop.f32.mrb[81].mxu1 }
0x10f7   :  { %v2300_v18 = vpop.f32.mrb[82].mxu1 }
0x10f8   :  { %v2326_v13 = vadd.f32 %v2320_v4, %v11575_v53  ;;  %v2321_v19 = vadd.f32 %v2300_v18, %v12197_v40  ;;  %v9542_v12 = vpop.f32.mrb[83].mxu1 }
0x10fa   :  { %v2327_v7 = vadd.f32 %v2321_v19, %v11577_v54  ;;  %v12301_v44 = vadd.f32 %v2335_v21, %v2326_v13 }
0x10fc   :  { %2342 = vadd.xlane.f32.xlu0 %v12301_v44  ;;  %v12304_v50 = vadd.f32 %v2335_v21, %v2327_v7  ;;  %v2360_v53 = vmul.f32 %v12301_v44, %v12301_v44 }
0x10fd   :  { %v2305_v33 = vpop.f32.mrb[84].mxu1 }
0x10fe   :  { %v2322_v60 = vadd.f32 %v2305_v33, %v12206_v61  ;;  %2344 = vadd.xlane.f32.xlu1 %v12304_v50  ;;  %v9545_v47 = vpop.f32.mrb[85].mxu1  ;;  %v2361_v26 = vmul.f32 %v12304_v50, %v12304_v50 }
0x10ff   :  { %v2308_v15 = vpop.f32.mrb[86].mxu1 }
0x1100   :  { %v2328_v40 = vadd.f32 %v2322_v60, %v11595_v63  ;;  %v2323_v54 = vadd.f32 %v2308_v15, %v12209_v14  ;;  %2366 = vadd.xlane.f32.xlu0 %v2360_v53  ;;  %v9546_v20 = vpop.f32.mrb[87].mxu1 }
0x1102   :  { %v2329_v22 = vadd.f32 %v2323_v54, %v11597_v0  ;;  %v12315_v27 = vadd.f32 %v2335_v21, %v2328_v40 }
0x1104   :  { %2368 = vadd.xlane.f32.xlu0 %v2361_v26  ;;  %2346 = vadd.xlane.f32.xlu1 %v12315_v27  ;;  %v2362_v32 = vmul.f32 %v12315_v27, %v12315_v27  ;;  %v12321_v14 = vadd.f32 %v2335_v21, %v2329_v22 }
0x1105   :  { %v2313_v61 = vpop.f32.mrb[88].mxu1 }
0x1106   :  { %v2324_v35 = vadd.f32 %v2313_v61, %v12212_v29  ;;  %v9549_v34 = vpop.f32.mrb[89].mxu1  ;;  %v2363_v29 = vmul.f32 %v12321_v14, %v12321_v14 }
0x1107   :  { %v2316_v41 = vpop.f32.mrb[90].mxu1 }
0x1108   :  { %v2330_v0 = vadd.f32 %v2324_v35, %v11614_v6  ;;  %v2325_v48 = vadd.f32 %v2316_v41, %v12215_v17  ;;  %2370 = vadd.xlane.f32.xlu1 %v2362_v32  ;;  %2348 = vadd.xlane.f32.xlu0 %v12321_v14  ;;  %v9550_v31 = vpop.f32.mrb[91].mxu1  ;;  %v12396_v35 = vsub.s32 3, %v12285_v5 }
0x110a   :  { %v2331_v56 = vadd.f32 %v2325_v48, %v11595_v63  ;;  %v12329_v45 = vadd.f32 %v2335_v21, %v2330_v0  ;;  %v10848_v63 = vld [vmem:[%s14357_s9 + $0x8] sm:$0xff]  }
0x110b   :  { %9554 = vmatpush3.bf16.msra.mxu0 %v10848_v63  ;;  %v2423_v63 = vrot.slane %v12293_v37, %v12396_v35 }
0x110c   :  { %2372 = vadd.xlane.f32.xlu0 %v2363_v29  ;;  %2350 = vadd.xlane.f32.xlu1 %v12329_v45  ;;  %v2364_v6 = vmul.f32 %v12329_v45, %v12329_v45  ;;  %v12337_v17 = vadd.f32 %v2335_v21, %v2331_v56 }
0x110d   :  { %9555 = vmatprep.subr.bf16.mxu0 %v11394_v55 }
0x110e   :  { %v2365_v59 = vmul.f32 %v12337_v17, %v12337_v17 }
0x110f   :  { %9556 = vmatpush3.bf16.msra.mxu0 %v10849_v46 }
0x1110   :  { %2374 = vadd.xlane.f32.xlu1 %v2364_v6  ;;  %2352 = vadd.xlane.f32.xlu0 %v12337_v17 }
0x1111   :  { %9557 = vmatprep.subr.bf16.mxu0 %v11394_v55 }
0x1113   :  { %9558 = vmatpush3.bf16.msra.mxu0 %v10850_v36 }
0x1114   :  { %2376 = vadd.xlane.f32.xlu0 %v2365_v59  ;;  %9559 = vmatprep.subr.bf16.mxu0 %v11394_v55  ;;  %v12402_v59 = vsub.s32 4, %v12285_v5 }
0x1116   :  { %v2433_v38 = vrot.slane %v12293_v37, %v12402_v59 }
0x1117   :  { %9560 = vmatpush3.bf16.msra.mxu0 %v10851_v62 }
0x1118   :  { %9561 = vmatprep.subr.bf16.mxu0 %v11394_v55 }
0x111b   :  { %9562 = vmatpush3.bf16.msra.mxu0 %v10852_v57 }
0x111c   :  { %9563 = vmatprep.subr.bf16.mxu0 %v11394_v55 }
0x111f   :  { %9564 = vmatpush3.bf16.msra.mxu0 %v10853_v2 }
0x1120   :  { %9565 = vmatprep.subr.bf16.mxu0 %v11394_v55 }
0x1123   :  { %9566 = vmatpush3.bf16.msra.mxu0 %v10854_v8 }
0x1124   :  { %9607 = vmatprep.subr.bf16.mxu0 %v11394_v55 }
0x1189   :  { %v2343_v1 = vpop.xlane.xlu0 %2342 }
0x118a   :  { %v2354_v42 = vmul.f32 0.0078125, %v2343_v1 }
0x118b   :  { %v2345_v30 = vpop.xlane.xlu1 %2344 }
0x118c   :  { %v2390_v10 = vmul.f32 %v2354_v42, %v2354_v42  ;;  %v2355_v11 = vmul.f32 0.0078125, %v2345_v30  ;;  %v2384_v32 = vsub.f32 %v12301_v44, %v2354_v42 }
0x118d   :  { %v2367_v24 = vpop.xlane.xlu0 %2366 }
0x118e   :  { %v2378_v28 = vmul.f32 0.0078125, %v2367_v24  ;;  %v2391_v16 = vmul.f32 %v2355_v11, %v2355_v11  ;;  %v2385_v36 = vsub.f32 %v12304_v50, %v2355_v11 }
0x1190   :  { %v2396_v49 = vsub.f32 %v2378_v28, %v2390_v10 }
0x1191   :  { %v2369_v9 = vpop.xlane.xlu0 %2368  ;;  %v2347_v4 = vpop.xlane.xlu1 %2346 }
0x1192   :  { %v2402_v21 = vadd.f32 1e-05, %v2396_v49  ;;  %v2379_v18 = vmul.f32 0.0078125, %v2369_v9  ;;  %v2356_v13 = vmul.f32 0.0078125, %v2347_v4 }
0x1194   :  { %11081 = vrsqrt.f32 %v2402_v21  ;;  %v2397_v19 = vsub.f32 %v2379_v18, %v2391_v16  ;;  %v2392_v60 = vmul.f32 %v2356_v13, %v2356_v13  ;;  %v2386_v43 = vsub.f32 %v12315_v27, %v2356_v13 }
0x1195   :  { %v2371_v12 = vpop.xlane.xlu1 %2370  ;;  %v2349_v7 = vpop.xlane.xlu0 %2348 }
0x1196   :  { %v2403_v33 = vadd.f32 1e-05, %v2397_v19  ;;  %v2380_v47 = vmul.f32 0.0078125, %v2371_v12  ;;  %v2357_v53 = vmul.f32 0.0078125, %v2349_v7 }
0x1198   :  { %11083 = vrsqrt.f32 %v2403_v33  ;;  %v2398_v15 = vsub.f32 %v2380_v47, %v2392_v60  ;;  %v2393_v22 = vmul.f32 %v2357_v53, %v2357_v53  ;;  %v2387_v10 = vsub.f32 %v12321_v14, %v2357_v53 }
0x1199   :  { %v2373_v40 = vpop.xlane.xlu0 %2372  ;;  %v2351_v54 = vpop.xlane.xlu1 %2350 }
0x119a   :  { %v2404_v20 = vadd.f32 1e-05, %v2398_v15  ;;  %v2381_v26 = vmul.f32 0.0078125, %v2373_v40  ;;  %v2358_v61 = vmul.f32 0.0078125, %v2351_v54  ;;  %v10862_v15 = vld [vmem:[%s14358_s10 + $0x38] sm:$0xff]   ;;  %v12443_v40 = vsub.s32 1, %v12285_v5 }
0x119c   :  { %11085 = vrsqrt.f32 %v2404_v20  ;;  %v2399_v34 = vsub.f32 %v2381_v26, %v2393_v22  ;;  %v2394_v56 = vmul.f32 %v2358_v61, %v2358_v61  ;;  %v2388_v27 = vsub.f32 %v12329_v45, %v2358_v61 }
0x119d   :  { %v2375_v41 = vpop.xlane.xlu1 %2374  ;;  %v2353_v0 = vpop.xlane.xlu0 %2352  ;;  %v2462_v54 = vrot.slane %v12293_v37, %v12443_v40 }
0x119e   :  { %v11082_v48 = vpop.eup %11081  ;;  %v2405_v31 = vadd.f32 1e-05, %v2399_v34  ;;  %v2382_v29 = vmul.f32 0.0078125, %v2375_v41  ;;  %v2359_v3 = vmul.f32 0.0078125, %v2353_v0 }
0x119f   :  { %v2414_v6 = vmul.f32 %v11082_v48, %v2384_v32 }
0x11a0   :  { %11087 = vrsqrt.f32 %v2405_v31  ;;  %v2400_v46 = vsub.f32 %v2382_v29, %v2394_v56  ;;  %v2395_v2 = vmul.f32 %v2359_v3, %v2359_v3  ;;  %v2389_v14 = vsub.f32 %v12337_v17, %v2359_v3  ;;  %v10861_v17 = vld [vmem:[%s14358_s10 + $0x30] sm:$0xff]  }
0x11a1   :  { %v2377_v62 = vpop.xlane.xlu0 %2376  ;;  %v2424_v25 = vmul.f32 %v2423_v63, %v2414_v6  ;;  %9592 = vmatpush3.bf16.msra.mxu1 %v10861_v17 }
0x11a2   :  { %v11084_v44 = vpop.eup %11083  ;;  %v2406_v57 = vadd.f32 1e-05, %v2400_v46  ;;  %v2383_v8 = vmul.f32 0.0078125, %v2377_v62  ;;  %9593 = vmatprep.subr.bf16.mxu1 %v11394_v55 }
0x11a3   :  { %v2415_v23 = vmul.f32 %v11084_v44, %v2385_v36  ;;  %v12408_v30 = vadd.f32 %v2433_v38, %v2424_v25 }
0x11a4   :  { %11089 = vrsqrt.f32 %v2406_v57  ;;  %v2401_v39 = vsub.f32 %v2383_v8, %v2395_v2 }
0x11a5   :  { %v2425_v51 = vmul.f32 %v2423_v63, %v2415_v23  ;;  %9594 = vmatpush3.bf16.msra.mxu1 %v10862_v15 }
0x11a6   :  { %v11086_v1 = vpop.eup %11085  ;;  %v2407_v42 = vadd.f32 1e-05, %v2401_v39 }
0x11a7   :  { %v12410_v50 = vadd.f32 %v2433_v38, %v2425_v51  ;;  %v2416_v24 = vmul.f32 %v11086_v1, %v2386_v43  ;;  %v10863_v51 = vld [vmem:[%s14354_s6 + $0x100] sm:$0xff]   ;;  %v12456_v1 = vsub.s32 2, %v12285_v5 }
0x11a8   :  { %11091 = vrsqrt.f32 %v2407_v42 }
0x11a9   :  { %v2440_v11 = vpack.c.bf16 %v12410_v50, %v12408_v30  ;;  %v2426_v9 = vmul.f32 %v2423_v63, %v2416_v24  ;;  %v2596_v42 = vrot.slane %v12293_v37, %v12456_v1 }
0x11aa   :  { %v11088_v28 = vpop.eup %11087 }
0x11ab   :  { %9568 = vmatmul.mubr.bf16.vlgmr.msra.gmra.mrb[80].mxu0 %v2440_v11  ;;  %v2417_v49 = vmul.f32 %v11088_v28, %v2387_v10  ;;  %v12418_v21 = vadd.f32 %v2433_v38, %v2426_v9 }
0x11ac   :  { %9571 = vmatprep.mubr.msk.bf16.mxu0 %vm11395_vm0, %v11394_v55  ;;  %9608 = vmatpush3.bf16.msra.mxu0 %v10863_v51 }
0x11ad   :  { %v2427_v4 = vmul.f32 %v2423_v63, %v2417_v49  ;;  %9609 = vmatprep.subr.bf16.mxu0 %v11394_v55 }
0x11ae   :  { %v11090_v16 = vpop.eup %11089 }
0x11af   :  { %v12420_v18 = vadd.f32 %v2433_v38, %v2427_v4  ;;  %v2418_v13 = vmul.f32 %v11090_v16, %v2388_v27 }
0x11b1   :  { %v2441_v19 = vpack.c.bf16 %v12420_v18, %v12418_v21  ;;  %v2428_v33 = vmul.f32 %v2423_v63, %v2418_v13 }
0x11b2   :  { %v11092_v12 = vpop.eup %11091 }
0x11b3   :  { %9572 = vmatmul.mubr.bf16.gmra.mrb[84].mxu0 %v2441_v19  ;;  %v2419_v7 = vmul.f32 %v11092_v12, %v2389_v14  ;;  %v12427_v60 = vadd.f32 %v2433_v38, %v2428_v33 }
0x11b4   :  { %9575 = vmatprep.mubr.msk.bf16.mxu0 %vm11395_vm0, %v11394_v55 }
0x11b5   :  { %v2429_v45 = vmul.f32 %v2423_v63, %v2419_v7 }
0x11b7   :  { %v12429_v47 = vadd.f32 %v2433_v38, %v2429_v45 }
0x11b9   :  { %v2442_v53 = vpack.c.bf16 %v12429_v47, %v12427_v60 }
0x11bb   :  { %9576 = vmatmul.mubr.bf16.gmra.mrb[88].mxu0 %v2442_v53 }
0x11bc   :  { %9623 = vmatprep.mubr.msk.bf16.mxu0 %vm11395_vm0, %v11394_v55 }
0x127e   :  { %v2545_v20 = vpop.f32.mrb[80].mxu0 }
0x127f   :  { %v2546_v22 = vadd.f32 %v2545_v20, %v2462_v54  ;;  %v9569_v26 = vpop.f32.mrb[81].mxu0 }
0x1280   :  { %v2548_v61 = vpop.f32.mrb[82].mxu0 }
0x1281   :  { %v2549_v34 = vadd.f32 %v2548_v61, %v2462_v54  ;;  %v9570_v32 = vpop.f32.mrb[83].mxu0  ;;  %v2568_v41 = vmax.f32 %v2546_v22, 0.0  ;;  %v10864_v61 = vld [vmem:[%s14354_s6 + $0x108] sm:$0xff]  }
0x1282   :  { %9610 = vmatpush3.bf16.msra.mxu0 %v10864_v61 }
0x1283   :  { %v2569_v0 = vmax.f32 %v2549_v34, 0.0  ;;  %9611 = vmatprep.subr.bf16.mxu0 %v11394_v55 }
0x1285   :  { %v2574_v48 = vpack.c.bf16 %v2569_v0, %v2568_v41  ;;  %v10867_v0 = vld [vmem:[%s14354_s6 + $0x120] sm:$0xff]  }
0x1286   :  { %v2553_v31 = vpop.f32.mrb[84].mxu0 }
0x1287   :  { %v2554_v56 = vadd.f32 %v2553_v31, %v2462_v54  ;;  %v9573_v29 = vpop.f32.mrb[85].mxu0  ;;  %9596 = vmatmul.mubr.bf16.vlgmr.msra.gmra.mrb[92].mxu1 %v2574_v48  ;;  %v10868_v48 = vld [vmem:[%s14354_s6 + $0x128] sm:$0xff]   ;;  %v10869_v31 = vld [vmem:[%s14354_s6 + $0x130] sm:$0xff]  }
0x1288   :  { %v2556_v3 = vpop.f32.mrb[86].mxu0  ;;  %9599 = vmatprep.mubr.msk.bf16.mxu1 %vm11395_vm0, %v11394_v55 }
0x1289   :  { %v2557_v6 = vadd.f32 %v2556_v3, %v2462_v54  ;;  %v9574_v63 = vpop.f32.mrb[87].mxu0  ;;  %v2570_v46 = vmax.f32 %v2554_v56, 0.0  ;;  %v10870_v56 = vld [vmem:[%s14354_s6 + $0x138] sm:$0xff]  }
0x128b   :  { %v2571_v36 = vmax.f32 %v2557_v6, 0.0 }
0x128d   :  { %v2575_v62 = vpack.c.bf16 %v2571_v36, %v2570_v46 }
0x128e   :  { %v2561_v44 = vpop.f32.mrb[88].mxu0 }
0x128f   :  { %v2562_v57 = vadd.f32 %v2561_v44, %v2462_v54  ;;  %v9577_v2 = vpop.f32.mrb[89].mxu0  ;;  %9600 = vmatmul.mubr.bf16.gmra.mrb[96].mxu1 %v2575_v62 }
0x1290   :  { %v2564_v8 = vpop.f32.mrb[90].mxu0  ;;  %9603 = vmatprep.mubr.msk.bf16.mxu1 %vm11395_vm0, %v11394_v55 }
0x1291   :  { %v2565_v23 = vadd.f32 %v2564_v8, %v2462_v54  ;;  %v9578_v25 = vpop.f32.mrb[91].mxu0  ;;  %v2572_v38 = vmax.f32 %v2562_v57, 0.0 }
0x1293   :  { %v2573_v39 = vmax.f32 %v2565_v23, 0.0 }
0x1295   :  { %v2576_v43 = vpack.c.bf16 %v2573_v39, %v2572_v38 }
0x1297   :  { %9604 = vmatmul.mubr.bf16.gmra.mrb[100].mxu1 %v2576_v43 }
0x135a   :  { %v2679_v24 = vpop.f32.mrb[92].mxu1 }
0x135b   :  { %v2680_v10 = vadd.f32 %v2679_v24, %v2596_v42  ;;  %v9597_v11 = vpop.f32.mrb[93].mxu1 }
0x135c   :  { %v2682_v28 = vpop.f32.mrb[94].mxu1 }
0x135d   :  { %v12461_v49 = vadd.f32 %v2680_v10, %v12408_v30  ;;  %v2683_v9 = vadd.f32 %v2682_v28, %v2596_v42  ;;  %v9598_v27 = vpop.f32.mrb[95].mxu1 }
0x135f   :  { %v12464_v4 = vadd.f32 %v2683_v9, %v12410_v50  ;;  %2708 = vadd.xlane.f32.xlu1 %v12461_v49  ;;  %v2726_v16 = vmul.f32 %v12461_v49, %v12461_v49 }
0x1361   :  { %2710 = vadd.xlane.f32.xlu0 %v12464_v4  ;;  %v2727_v30 = vmul.f32 %v12464_v4, %v12464_v4 }
0x1362   :  { %v2687_v13 = vpop.f32.mrb[96].mxu1 }
0x1363   :  { %v2688_v14 = vadd.f32 %v2687_v13, %v2596_v42  ;;  %2732 = vadd.xlane.f32.xlu1 %v2726_v16  ;;  %v9601_v19 = vpop.f32.mrb[97].mxu1 }
0x1364   :  { %v2690_v12 = vpop.f32.mrb[98].mxu1 }
0x1365   :  { %v12473_v7 = vadd.f32 %v2688_v14, %v12418_v21  ;;  %v2691_v50 = vadd.f32 %v2690_v12, %v2596_v42  ;;  %2734 = vadd.xlane.f32.xlu0 %v2727_v30  ;;  %v9602_v33 = vpop.f32.mrb[99].mxu1  ;;  %v12525_v14 = vsub.s32 5, %v12285_v5 }
0x1367   :  { %v12476_v45 = vadd.f32 %v2691_v50, %v12420_v18  ;;  %2712 = vadd.xlane.f32.xlu1 %v12473_v7  ;;  %v2728_v53 = vmul.f32 %v12473_v7, %v12473_v7 }
0x1369   :  { %2714 = vadd.xlane.f32.xlu0 %v12476_v45  ;;  %v2729_v21 = vmul.f32 %v12476_v45, %v12476_v45 }
0x136a   :  { %v2695_v17 = vpop.f32.mrb[100].mxu1 }
0x136b   :  { %v2696_v15 = vadd.f32 %v2695_v17, %v2596_v42  ;;  %2736 = vadd.xlane.f32.xlu1 %v2728_v53  ;;  %v9605_v54 = vpop.f32.mrb[101].mxu1 }
0x136c   :  { %v2698_v20 = vpop.f32.mrb[102].mxu1  ;;  %v2789_v54 = vrot.slane %v12293_v37, %v12525_v14 }
0x136d   :  { %v12485_v22 = vadd.f32 %v2696_v15, %v12427_v60  ;;  %v2699_v18 = vadd.f32 %v2698_v20, %v2596_v42  ;;  %2738 = vadd.xlane.f32.xlu0 %v2729_v21  ;;  %v9606_v26 = vpop.f32.mrb[103].mxu1  ;;  %v10865_v60 = vld [vmem:[%s14354_s6 + $0x110] sm:$0xff]   ;;  %v12531_v21 = vsub.s32 6, %v12285_v5 }
0x136e   :  { %9612 = vmatpush3.bf16.msra.mxu0 %v10865_v60 }
0x136f   :  { %v12491_v34 = vadd.f32 %v2699_v18, %v12429_v47  ;;  %2716 = vadd.xlane.f32.xlu1 %v12485_v22  ;;  %v2730_v32 = vmul.f32 %v12485_v22, %v12485_v22  ;;  %9613 = vmatprep.subr.bf16.mxu0 %v11394_v55  ;;  %v10866_v47 = vld [vmem:[%s14354_s6 + $0x118] sm:$0xff]  }
0x1371   :  { %2718 = vadd.xlane.f32.xlu0 %v12491_v34  ;;  %v2731_v41 = vmul.f32 %v12491_v34, %v12491_v34 }
0x1372   :  { %9614 = vmatpush3.bf16.msra.mxu0 %v10866_v47 }
0x1373   :  { %2740 = vadd.xlane.f32.xlu1 %v2730_v32  ;;  %9615 = vmatprep.subr.bf16.mxu0 %v11394_v55 }
0x1375   :  { %2742 = vadd.xlane.f32.xlu0 %v2731_v41 }
0x1376   :  { %9616 = vmatpush3.bf16.msra.mxu0 %v10867_v0 }
0x1377   :  { %9617 = vmatprep.subr.bf16.mxu0 %v11394_v55 }
0x137a   :  { %9618 = vmatpush3.bf16.msra.mxu0 %v10868_v48 }
0x137b   :  { %9619 = vmatprep.subr.bf16.mxu0 %v11394_v55 }
0x137e   :  { %9620 = vmatpush3.bf16.msra.mxu0 %v10869_v31 }
0x137f   :  { %9621 = vmatprep.subr.bf16.mxu0 %v11394_v55 }
0x1382   :  { %9622 = vmatpush3.bf16.msra.mxu0 %v10870_v56  ;;  %v2799_v56 = vrot.slane %v12293_v37, %v12531_v21 }
0x1383   :  { %9674 = vmatprep.subr.bf16.mxu0 %v11394_v55 }
0x13ec   :  { %v2709_v29 = vpop.xlane.xlu1 %2708 }
0x13ed   :  { %v2720_v3 = vmul.f32 0.0078125, %v2709_v29 }
0x13ee   :  { %v2711_v6 = vpop.xlane.xlu0 %2710 }
0x13ef   :  { %v2721_v63 = vmul.f32 0.0078125, %v2711_v6  ;;  %v2756_v36 = vmul.f32 %v2720_v3, %v2720_v3  ;;  %v2750_v53 = vsub.f32 %v12461_v49, %v2720_v3 }
0x13f0   :  { %v2733_v46 = vpop.xlane.xlu1 %2732 }
0x13f1   :  { %v2744_v62 = vmul.f32 0.0078125, %v2733_v46  ;;  %v2757_v57 = vmul.f32 %v2721_v63, %v2721_v63  ;;  %v2751_v61 = vsub.f32 %v12464_v4, %v2721_v63 }
0x13f2   :  { %v2735_v44 = vpop.xlane.xlu0 %2734 }
0x13f3   :  { %v2762_v2 = vsub.f32 %v2744_v62, %v2756_v36  ;;  %v2745_v8 = vmul.f32 0.0078125, %v2735_v44  ;;  %v10871_v62 = vld [vmem:[%s14354_s6 + $0x140] sm:$0xff]  }
0x13f4   :  { %v2713_v23 = vpop.xlane.xlu1 %2712 }
0x13f5   :  { %v2768_v25 = vadd.f32 1e-05, %v2762_v2  ;;  %v2763_v38 = vsub.f32 %v2745_v8, %v2757_v57  ;;  %v2722_v39 = vmul.f32 0.0078125, %v2713_v23  ;;  %v10872_v23 = vld [vmem:[%s14354_s6 + $0x148] sm:$0xff]  }
0x13f6   :  { %v2715_v43 = vpop.xlane.xlu0 %2714 }
0x13f7   :  { %11093 = vrsqrt.f32 %v2768_v25  ;;  %v2769_v51 = vadd.f32 1e-05, %v2763_v38  ;;  %v2723_v42 = vmul.f32 0.0078125, %v2715_v43  ;;  %v2758_v10 = vmul.f32 %v2722_v39, %v2722_v39 }
0x13f8   :  { %v2737_v24 = vpop.xlane.xlu1 %2736  ;;  %v2752_v46 = vsub.f32 %v12473_v7, %v2722_v39 }
0x13f9   :  { %11095 = vrsqrt.f32 %v2769_v51  ;;  %v2746_v11 = vmul.f32 0.0078125, %v2737_v24  ;;  %v2759_v9 = vmul.f32 %v2723_v42, %v2723_v42  ;;  %v2753_v44 = vsub.f32 %v12476_v45, %v2723_v42  ;;  %v10873_v51 = vld [vmem:[%s14354_s6 + $0x150] sm:$0xff]  }
0x13fa   :  { %v2739_v28 = vpop.xlane.xlu0 %2738 }
0x13fb   :  { %v2764_v27 = vsub.f32 %v2746_v11, %v2758_v10  ;;  %v2747_v16 = vmul.f32 0.0078125, %v2739_v28 }
0x13fc   :  { %v2717_v13 = vpop.xlane.xlu1 %2716 }
0x13fd   :  { %v2770_v19 = vadd.f32 1e-05, %v2764_v27  ;;  %v2765_v30 = vsub.f32 %v2747_v16, %v2759_v9  ;;  %v2724_v12 = vmul.f32 0.0078125, %v2717_v13  ;;  %v10874_v9 = vld [vmem:[%s14354_s6 + $0x158] sm:$0xff]   ;;  %v10875_v13 = vld [vmem:[%s14354_s6 + $0x160] sm:$0xff]  }
0x13fe   :  { %v2719_v50 = vpop.xlane.xlu0 %2718 }
0x13ff   :  { %11097 = vrsqrt.f32 %v2770_v19  ;;  %v2771_v33 = vadd.f32 1e-05, %v2765_v30  ;;  %v2725_v17 = vmul.f32 0.0078125, %v2719_v50  ;;  %v2760_v18 = vmul.f32 %v2724_v12, %v2724_v12  ;;  %v10876_v30 = vld [vmem:[%s14354_s6 + $0x168] sm:$0xff]   ;;  %v10878_v50 = vld [vmem:[%s14354_s6 + $0x178] sm:$0xff]  }
0x1400   :  { %v2741_v15 = vpop.xlane.xlu1 %2740  ;;  %v2754_v25 = vsub.f32 %v12485_v22, %v2724_v12  ;;  %v10877_v12 = vld [vmem:[%s14354_s6 + $0x170] sm:$0xff]  }
0x1401   :  { %v11094_v20 = vpop.eup %11093  ;;  %11099 = vrsqrt.f32 %v2771_v33  ;;  %v2748_v26 = vmul.f32 0.0078125, %v2741_v15  ;;  %v2761_v47 = vmul.f32 %v2725_v17, %v2725_v17  ;;  %v2755_v42 = vsub.f32 %v12491_v34, %v2725_v17  ;;  %v8260_v33 = vld [vmem:[%s14355_s7 + $0x4] ss:$0 sm:$0xff] }
0x1402   :  { %v2780_v32 = vmul.f32 %v11094_v20, %v2750_v53  ;;  %v2743_v60 = vpop.xlane.xlu0 %2742 }
0x1403   :  { %v11096_v41 = vpop.eup %11095  ;;  %v2766_v0 = vsub.f32 %v2748_v26, %v2760_v18  ;;  %v2749_v49 = vmul.f32 0.0078125, %v2743_v60 }
0x1404   :  { %v2781_v48 = vmul.f32 %v11096_v41, %v2751_v61  ;;  %v2790_v31 = vmul.f32 %v2789_v54, %v2780_v32 }
0x1405   :  { %v2772_v29 = vadd.f32 1e-05, %v2766_v0  ;;  %v2767_v5 = vsub.f32 %v2749_v49, %v2761_v47 }
0x1406   :  { %v2791_v3 = vmul.f32 %v2789_v54, %v2781_v48  ;;  %v12537_v36 = vadd.f32 %v2799_v56, %v2790_v31 }
0x1407   :  { %11101 = vrsqrt.f32 %v2772_v29  ;;  %v2773_v6 = vadd.f32 1e-05, %v2767_v5 }
0x1408   :  { %v12539_v4 = vadd.f32 %v2799_v56, %v2791_v3 }
0x1409   :  { %v11098_v63 = vpop.eup %11097  ;;  %11103 = vrsqrt.f32 %v2773_v6 }
0x140a   :  { %v12547_v37 = vpack.c.bf16 %v12539_v4, %v12537_v36  ;;  %v2782_v57 = vmul.f32 %v11098_v63, %v2752_v46 }
0x140b   :  { %v11100_v2 = vpop.eup %11099 }
0x140c   :  { %9624 = vmatmul.mubr.bf16.vlgmr.msra.gmra.mrb[92].mxu0 %v12547_v37  ;;  %v2783_v7 = vmul.f32 %v11100_v2, %v2753_v44  ;;  %v2792_v8 = vmul.f32 %v2789_v54, %v2782_v57 }
0x140d   :  { %9675 = vmatpush3.bf16.msra.mxu0 %v10871_v62  ;;  %9627 = vmatprep.mubr.msk.bf16.mxu0 %vm11395_vm0, %v11394_v55 }
0x140e   :  { %9676 = vmatprep.subr.bf16.mxu0 %v11394_v55  ;;  %v2793_v45 = vmul.f32 %v2789_v54, %v2783_v7  ;;  %v12557_v38 = vadd.f32 %v2799_v56, %v2792_v8 }
0x1410   :  { %v12559_v39 = vadd.f32 %v2799_v56, %v2793_v45 }
0x1411   :  { %v11102_v43 = vpop.eup %11101  ;;  %9677 = vmatpush3.bf16.msra.mxu0 %v10872_v23 }
0x1412   :  { %9678 = vmatprep.subr.bf16.mxu0 %v11394_v55  ;;  %v12568_v24 = vpack.c.bf16 %v12559_v39, %v12557_v38  ;;  %v2784_v10 = vmul.f32 %v11102_v43, %v2754_v25 }
0x1413   :  { %v11104_v22 = vpop.eup %11103 }
0x1414   :  { %9628 = vmatmul.mubr.bf16.gmra.mrb[96].mxu0 %v12568_v24  ;;  %v2785_v11 = vmul.f32 %v11104_v22, %v2755_v42  ;;  %v2794_v28 = vmul.f32 %v2789_v54, %v2784_v10 }
0x1415   :  { %9679 = vmatpush3.bf16.msra.mxu0 %v10873_v51  ;;  %9631 = vmatprep.mubr.msk.bf16.mxu0 %vm11395_vm0, %v11394_v55 }
0x1416   :  { %9680 = vmatprep.subr.bf16.mxu0 %v11394_v55  ;;  %v2795_v34 = vmul.f32 %v2789_v54, %v2785_v11  ;;  %v12577_v27 = vadd.f32 %v2799_v56, %v2794_v28 }
0x1418   :  { %v12579_v16 = vadd.f32 %v2799_v56, %v2795_v34 }
0x1419   :  { %9681 = vmatpush3.bf16.msra.mxu0 %v10874_v9 }
0x141a   :  { %9682 = vmatprep.subr.bf16.mxu0 %v11394_v55  ;;  %v12587_v19 = vpack.c.bf16 %v12579_v16, %v12577_v27 }
0x141c   :  { %9632 = vmatmul.mubr.bf16.gmra.mrb[100].mxu0 %v12587_v19 }
0x141d   :  { %9683 = vmatpush3.bf16.msra.mxu0 %v10875_v13  ;;  %9690 = vmatprep.mubr.msk.bf16.mxu0 %vm11395_vm0, %v11394_v55 }
0x141e   :  { %9684 = vmatprep.subr.bf16.mxu0 %v11394_v55 }
0x1421   :  { %9685 = vmatpush3.bf16.msra.mxu0 %v10876_v30 }
0x1422   :  { %9686 = vmatprep.subr.bf16.mxu0 %v11394_v55 }
0x1425   :  { %9687 = vmatpush3.bf16.msra.mxu0 %v10877_v12 }
0x1426   :  { %9688 = vmatprep.subr.bf16.mxu0 %v11394_v55 }
0x1429   :  { %9689 = vmatpush3.bf16.msra.mxu0 %v10878_v50 }
0x142a   :  { %9741 = vmatprep.subr.bf16.mxu0 %v11394_v55 }
0x142c   :  { %9691 = vmatmul.mubr.bf16.vlgmr.msra.gmra.mrb[104].mxu0 %v12547_v37 }
0x142d   :  { %9694 = vmatprep.mubr.msk.bf16.mxu0 %vm11395_vm0, %v11394_v55 }
0x1434   :  { %9695 = vmatmul.mubr.bf16.gmra.mrb[108].mxu0 %v12568_v24 }
0x1435   :  { %9698 = vmatprep.mubr.msk.bf16.mxu0 %vm11395_vm0, %v11394_v55 }
0x143c   :  { %9699 = vmatmul.mubr.bf16.gmra.mrb[112].mxu0 %v12587_v19 }
0x143d   :  { %9745 = vmatprep.mubr.msk.bf16.mxu0 %vm11395_vm0, %v11394_v55 }
0x14df   :  { %v2918_v53 = vpop.f32.mrb[92].mxu0 }
0x14e0   :  { %v12617_v17 = vadd.f32 %v8260_v33, %v2918_v53  ;;  %v9625_v15 = vpop.f32.mrb[93].mxu0 }
0x14e1   :  { %v2921_v54 = vpop.f32.mrb[94].mxu0 }
0x14e2   :  { %v12619_v20 = vadd.f32 %v8260_v33, %v2921_v54  ;;  %v9626_v18 = vpop.f32.mrb[95].mxu0  ;;  %9647 = vmatprep.mubr.msk.f32.mxu1 %vm401_vm1, %v12617_v17 }
0x14e3   :  { %v12680_v18 = vld [vmem:[%s14353_s5 + $0x8] sm:$0xff] }
0x14e4   :  { %v10686_v26 = vpack.i.bf16 %v12619_v20, %v12617_v17 }
0x14e6   :  { %10687 = vrot.lane.b32.xlu1 %v10686_v26, %s11396_s2 }
0x14e7   :  { %v2926_v61 = vpop.f32.mrb[96].mxu0 }
0x14e8   :  { %v9629_v32 = vpop.f32.mrb[97].mxu0  ;;  %v12626_v41 = vadd.f32 %v8260_v33, %v2926_v61  ;;  %v12686_v61 = vld [vmem:[%s14353_s5] sm:$0xff] }
0x14e9   :  { %v2929_v60 = vpop.f32.mrb[98].mxu0 }
0x14ea   :  { %v12628_v47 = vadd.f32 %v8260_v33, %v2929_v60  ;;  %v9630_v0 = vpop.f32.mrb[99].mxu0 }
0x14ec   :  { %v10691_v49 = vpack.i.bf16 %v12628_v47, %v12626_v41 }
0x14ee   :  { %10692 = vrot.lane.b32.xlu0 %v10691_v49, %s11396_s2 }
0x14ef   :  { %v2934_v48 = vpop.f32.mrb[100].mxu0 }
0x14f0   :  { %v9633_v31 = vpop.f32.mrb[101].mxu0  ;;  %v12633_v29 = vadd.f32 %v8260_v33, %v2934_v48 }
0x14f1   :  { %v2937_v56 = vpop.f32.mrb[102].mxu0 }
0x14f2   :  { %v12635_v5 = vadd.f32 %v8260_v33, %v2937_v56  ;;  %v9634_v3 = vpop.f32.mrb[103].mxu0 }
0x14f3   :  { %v12694_v3 = vld [vmem:[%s14353_s5 + $0x18] sm:$0xff] }
0x14f4   :  { %v10696_v6 = vpack.i.bf16 %v12635_v5, %v12633_v29 }
0x14f6   :  { %10697 = vrot.lane.b32.xlu1 %v10696_v6, %s11396_s2 }
0x14ff   :  { %v12640_v46 = vpop.f32.mrb[104].mxu0 }
0x1500   :  { %v9692_v63 = vpop.f32.mrb[105].mxu0 }
0x1501   :  { %v12642_v62 = vpop.f32.mrb[106].mxu0  ;;  %v12700_v63 = vld [vmem:[%s14353_s5 + $0x10] sm:$0xff] }
0x1502   :  { %v9693_v44 = vpop.f32.mrb[107].mxu0 }
0x1507   :  { %v12644_v57 = vpop.f32.mrb[108].mxu0 }
0x1508   :  { %v9696_v2 = vpop.f32.mrb[109].mxu0 }
0x1509   :  { %v12646_v7 = vpop.f32.mrb[110].mxu0 }
0x150a   :  { %v9697_v8 = vpop.f32.mrb[111].mxu0 }
0x150f   :  { %v12648_v23 = vpop.f32.mrb[112].mxu0 }
0x1510   :  { %v9700_v45 = vpop.f32.mrb[113].mxu0 }
0x1511   :  { %v12650_v25 = vpop.f32.mrb[114].mxu0 }
0x1512   :  { %v9701_v43 = vpop.f32.mrb[115].mxu0 }
0x1558   :  { %v10688_v51 = vpop.permute.xlu1 %10687 }
0x1559   :  { %v10690_v42 = vunpack.i.h.bf16 %v10688_v51  ;;  %v10689_v10 = vunpack.i.l.bf16 %v10688_v51 }
0x155b   :  { %v10465_v22 = vpack.c.bf16 %v10690_v42, %v10689_v10  ;;  %v12708_v10 = vld [vmem:[%s14353_s5 + $0x28] sm:$0xff] }
0x155d   :  { %10467 = vmatprep.subr.msk.bf16.mxu1 %vm11689_vm2, %v10465_v22 }
0x155e   :  { %10470 = vmatpush3.bf16.xpose.msk.msra.mxu1 %vm11689_vm2, %v10465_v22 }
0x1560   :  { %v10693_v11 = vpop.permute.xlu0 %10692 }
0x1561   :  { %v10695_v28 = vunpack.i.h.bf16 %v10693_v11  ;;  %v10694_v9 = vunpack.i.l.bf16 %v10693_v11  ;;  %v12714_v11 = vld [vmem:[%s14353_s5 + $0x20] sm:$0xff] }
0x1563   :  { %v10471_v34 = vpack.c.bf16 %v10695_v28, %v10694_v9 }
0x1565   :  { %10473 = vmatprep.subr.msk.bf16.mxu1 %vm11689_vm2, %v10471_v34 }
0x1566   :  { %10476 = vmatpush3.bf16.xpose.msk.msra.mxu1 %vm11689_vm2, %v10471_v34 }
0x1568   :  { %v10698_v13 = vpop.permute.xlu1 %10697 }
0x1569   :  { %v10700_v30 = vunpack.i.h.bf16 %v10698_v13  ;;  %v10699_v12 = vunpack.i.l.bf16 %v10698_v13  ;;  %v3160_v13 = vpack.c.bf16 %v12628_v47, %v12626_v41 }
0x156b   :  { %v10477_v50 = vpack.c.bf16 %v10700_v30, %v10699_v12  ;;  %v3159_v30 = vpack.c.bf16 %v12619_v20, %v12617_v17  ;;  %v3161_v12 = vpack.c.bf16 %v12635_v5, %v12633_v29 }
0x156d   :  { %10479 = vmatprep.subr.msk.bf16.mxu1 %vm11689_vm2, %v10477_v50 }
0x156e   :  { %10482 = vmatpush3.bf16.xpose.msk.msra.mxu1 %vm11689_vm2, %v10477_v50 }
0x156f   :  { %9656 = vmatprep.subr.bf16.mxu1 %v11394_v55 }
0x1575   :  { %9648 = vmatmul.mubr.msk.f32.vlgmr.msra.gmra.mrb[54].mxu1 %vm401_vm1, %v12619_v20 }
0x1576   :  { %9650 = vmatprep.mubr.msk.f32.mxu1 %vm401_vm1, %v12626_v41 }
0x1579   :  { %9651 = vmatmul.mubr.msk.f32.gmra.mrb[104].mxu1 %vm401_vm1, %v12628_v47 }
0x157a   :  { %9653 = vmatprep.mubr.msk.f32.mxu1 %vm401_vm1, %v12633_v29 }
0x157d   :  { %9654 = vmatmul.mubr.msk.f32.gmra.mrb[106].mxu1 %vm401_vm1, %v12635_v5 }
0x157e   :  { %9662 = vmatprep.mubr.msk.bf16.mxu1 %vm11395_vm0, %v11394_v55 }
0x1648   :  { %v9649_v33 = vpop.f32.mrb[54].mxu1 }
0x1649   :  { %v3079_v53 = vmul.f32 0.17677669, %v9649_v33  ;;  %v3049_v15 = vpop.f32.mrb[55].mxu1 }
0x164a   :  { %v3078_v54 = vmul.f32 0.17677669, %v3049_v15 }
0x164b   :  { %v3085_v26 = vadd.f32 %v12680_v18, %v3079_v53 }
0x164c   :  { %v3084_v32 = vadd.f32 %v12686_v61, %v3078_v54  ;;  %v9652_v60 = vpop.f32.mrb[104].mxu1 }
0x164d   :  { %v3081_v0 = vmul.f32 0.17677669, %v9652_v60  ;;  %v3059_v49 = vpop.f32.mrb[105].mxu1  ;;  %v3093_v48 = vsel %vm533_vm3, %v3085_v26, -inf }
0x164e   :  { %v3080_v31 = vmul.f32 0.17677669, %v3059_v49  ;;  %3094 = vmax.xlane.f32.xlu0 %v3093_v48  ;;  %v3090_v56 = vsel %vm533_vm3, %v3084_v32, -inf }
0x164f   :  { %v3087_v6 = vadd.f32 %v12694_v3, %v3081_v0  ;;  %3091 = vmax.xlane.f32.xlu1 %v3090_v56 }
0x1650   :  { %v3086_v44 = vadd.f32 %v12700_v63, %v3080_v31  ;;  %v9655_v2 = vpop.f32.mrb[106].mxu1 }
0x1651   :  { %v3083_v8 = vmul.f32 0.17677669, %v9655_v2  ;;  %v3069_v45 = vpop.f32.mrb[107].mxu1  ;;  %v3099_v43 = vsel %vm533_vm3, %v3087_v6, -inf }
0x1652   :  { %v3082_v51 = vmul.f32 0.17677669, %v3069_v45  ;;  %v3096_v42 = vsel %vm533_vm3, %v3086_v44, -inf }
0x1653   :  { %v3089_v22 = vadd.f32 %v12708_v10, %v3083_v8  ;;  %3100 = vmax.xlane.f32.xlu1 %v3099_v43  ;;  %3097 = vmax.xlane.f32.xlu0 %v3096_v42 }
0x1654   :  { %v3088_v28 = vadd.f32 %v12714_v11, %v3082_v51 }
0x1655   :  { %v3105_v9 = vsel %vm533_vm3, %v3089_v22, -inf }
0x1656   :  { %v3102_v34 = vsel %vm533_vm3, %v3088_v28, -inf }
0x1657   :  { %3106 = vmax.xlane.f32.xlu1 %v3105_v9  ;;  %3103 = vmax.xlane.f32.xlu0 %v3102_v34 }
0x1668   :  { %3167 = vrot.lane.b32.xlu1 %v3160_v13, %s11397_s28 }
0x166d   :  { %3165 = vrot.lane.b32.xlu0 %v3159_v30, %s11397_s28 }
0x1671   :  { %3169 = vrot.lane.b32.xlu0 %v3161_v12, %s11397_s28  ;;  %v8305_v12 = vld [vmem:[%s14355_s7 + $0x5] ss:$0 sm:$0xff] }
0x16db   :  { %v3095_v50 = vpop.xlane.xlu0 %3094 }
0x16dc   :  { %v3109_v33 = vsub.f32 %v3085_v26, %v3095_v50  ;;  %v3092_v53 = vpop.xlane.xlu1 %3091  ;;  %v12743_v50 = vadd.f32 %v8305_v12, %v12642_v62  ;;  %v12762_v62 = vadd.f32 %v8305_v12, %v12648_v23 }
0x16dd   :  { %v3108_v15 = vsub.f32 %v3084_v32, %v3092_v53  ;;  %v12749_v53 = vadd.f32 %v8305_v12, %v12646_v7 }
0x16de   :  { %v3116_v54 = vmul.f32 1.442695, %v3109_v33  ;;  %v12746_v33 = vadd.f32 %v8305_v12, %v12640_v46 }
0x16df   :  { %v3114_v60 = vmul.f32 1.442695, %v3108_v15 }
0x16e0   :  { %11105 = vpow2.f32 %v3116_v54  ;;  %v3101_v41 = vpop.xlane.xlu1 %3100  ;;  %v3098_v47 = vpop.xlane.xlu0 %3097  ;;  %v10701_v15 = vpack.i.bf16 %v12743_v50, %v12746_v33  ;;  %v12754_v54 = vadd.f32 %v8305_v12, %v12644_v57 }
0x16e1   :  { %11107 = vpow2.f32 %v3114_v60  ;;  %v3111_v0 = vsub.f32 %v3087_v6, %v3101_v41  ;;  %v3110_v49 = vsub.f32 %v3086_v44, %v3098_v47  ;;  %v12757_v60 = vadd.f32 %v8305_v12, %v12650_v25 }
0x16e2   :  { %v10706_v41 = vpack.i.bf16 %v12749_v53, %v12754_v54 }
0x16e3   :  { %v3120_v17 = vmul.f32 1.442695, %v3111_v0  ;;  %v3118_v20 = vmul.f32 1.442695, %v3110_v49  ;;  %v10711_v46 = vpack.i.bf16 %v12757_v60, %v12762_v62 }
0x16e4   :  { %v3107_v48 = vpop.xlane.xlu1 %3106  ;;  %v3104_v31 = vpop.xlane.xlu0 %3103 }
0x16e5   :  { %11109 = vpow2.f32 %v3120_v17  ;;  %v3113_v29 = vsub.f32 %v3089_v22, %v3107_v48  ;;  %v3112_v5 = vsub.f32 %v3088_v28, %v3104_v31 }
0x16e6   :  { %11111 = vpow2.f32 %v3118_v20 }
0x16e7   :  { %v3124_v56 = vmul.f32 1.442695, %v3113_v29  ;;  %v3122_v26 = vmul.f32 1.442695, %v3112_v5 }
0x16e8   :  { %v3166_v2 = vpop.permute.xlu0 %3165  ;;  %v3168_v44 = vpop.permute.xlu1 %3167 }
0x16e9   :  { %11113 = vpow2.f32 %v3124_v56  ;;  %9657 = vmatpush3.bf16.msra.mxu1 %v3166_v2 }
0x16ea   :  { %v11106_v32 = vpop.eup %11105  ;;  %9658 = vmatprep.subr.bf16.mxu1 %v11394_v55  ;;  %11115 = vpow2.f32 %v3122_v26 }
0x16eb   :  { %v11108_v8 = vpop.eup %11107  ;;  %v3129_v6 = vsel %vm533_vm3, %v11106_v32, 0.0 }
0x16ec   :  { %3130 = vadd.xlane.f32.xlu1 %v3129_v6  ;;  %v3126_v45 = vsel %vm533_vm3, %v11108_v8, 0.0  ;;  %v3170_v42 = vpop.permute.xlu0 %3169 }
0x16ed   :  { %3127 = vadd.xlane.f32.xlu0 %v3126_v45  ;;  %9659 = vmatpush3.bf16.msra.mxu1 %v3168_v44 }
0x16ee   :  { %9660 = vmatprep.subr.bf16.mxu1 %v11394_v55 }
0x16ef   :  { %v11110_v43 = vpop.eup %11109 }
0x16f0   :  { %v11112_v51 = vpop.eup %11111  ;;  %v3135_v22 = vsel %vm533_vm3, %v11110_v43, 0.0 }
0x16f1   :  { %3136 = vadd.xlane.f32.xlu1 %v3135_v22  ;;  %v3132_v28 = vsel %vm533_vm3, %v11112_v51, 0.0  ;;  %9661 = vmatpush3.bf16.msra.mxu1 %v3170_v42 }
0x16f2   :  { %3133 = vadd.xlane.f32.xlu0 %v3132_v28 }
0x16f3   :  { %v12734_v9 = vpop.eup %11113 }
0x16f4   :  { %v3141_v34 = vsel %vm533_vm3, %v12734_v9, 0.0  ;;  %v11116_v13 = vpop.eup %11115 }
0x16f5   :  { %3142 = vadd.xlane.f32.xlu1 %v3141_v34  ;;  %v3138_v30 = vsel %vm533_vm3, %v11116_v13, 0.0 }
0x16f9   :  { %3139 = vadd.xlane.f32.xlu1 %v3138_v30 }
0x1708   :  { %10702 = vrot.lane.b32.xlu0 %v10701_v15, %s11396_s2 }
0x170a   :  { %10707 = vrot.lane.b32.xlu1 %v10706_v41, %s11396_s2 }
0x170c   :  { %10712 = vrot.lane.b32.xlu0 %v10711_v46, %s11396_s2 }
0x1779   :  { %v3131_v57 = vpop.xlane.xlu1 %3130 }
0x177a   :  { %11117 = vrcp.f32 %v3131_v57  ;;  %v3128_v7 = vpop.xlane.xlu0 %3127 }
0x177b   :  { %11119 = vrcp.f32 %v3128_v7 }
0x177e   :  { %v3137_v25 = vpop.xlane.xlu1 %3136 }
0x177f   :  { %11121 = vrcp.f32 %v3137_v25  ;;  %v3134_v47 = vpop.xlane.xlu0 %3133 }
0x1780   :  { %11123 = vrcp.f32 %v3134_v47 }
0x1782   :  { %v3143_v0 = vpop.xlane.xlu1 %3142 }
0x1783   :  { %v10703_v23 = vpop.permute.xlu0 %10702 }
0x1784   :  { %v11118_v49 = vpop.eup %11117  ;;  %v10705_v17 = vunpack.i.h.bf16 %v10703_v23  ;;  %v10704_v20 = vunpack.i.l.bf16 %v10703_v23 }
0x1785   :  { %v11120_v48 = vpop.eup %11119  ;;  %v3151_v31 = vmul.f32 %v11118_v49, %v11106_v32 }
0x1786   :  { %v3150_v29 = vmul.f32 %v11120_v48, %v11108_v8  ;;  %v10483_v5 = vpack.c.bf16 %v10705_v17, %v10704_v20  ;;  %v3140_v56 = vpop.xlane.xlu1 %3139 }
0x1787   :  { %11125 = vrcp.f32 %v3140_v56  ;;  %v10713_v45 = vpop.permute.xlu0 %10712 }
0x1788   :  { %v3156_v26 = vpack.c.bf16 %v3151_v31, %v3150_v29  ;;  %10485 = vmatprep.subr.msk.bf16.mxu1 %vm11689_vm2, %v10483_v5  ;;  %11127 = vrcp.f32 %v3143_v0  ;;  %v10715_v34 = vunpack.i.h.bf16 %v10713_v45  ;;  %v10714_v30 = vunpack.i.l.bf16 %v10713_v45 }
0x1789   :  { %v11122_v2 = vpop.eup %11121 }
0x178a   :  { %v11124_v6 = vpop.eup %11123  ;;  %v10708_v44 = vpop.permute.xlu1 %10707  ;;  %9663 = vmatmul.mubr.msk.bf16.vlgmr.msra.gmra.mrb[108].mxu1 %vm533_vm3, %v3156_v26  ;;  %v3153_v8 = vmul.f32 %v11122_v2, %v11110_v43  ;;  %v10495_v41 = vpack.c.bf16 %v10715_v34, %v10714_v30 }
0x178b   :  { %v10710_v42 = vunpack.i.h.bf16 %v10708_v44  ;;  %v10709_v22 = vunpack.i.l.bf16 %v10708_v44  ;;  %10488 = vmatpush3.bf16.xpose.msk.msra.mxu1 %vm11689_vm2, %v10483_v5  ;;  %9666 = vmatprep.mubr.msk.bf16.mxu1 %vm11395_vm0, %v11394_v55  ;;  %v3152_v32 = vmul.f32 %v11124_v6, %v11112_v51 }
0x178d   :  { %v10489_v28 = vpack.c.bf16 %v10710_v42, %v10709_v22  ;;  %v3157_v12 = vpack.c.bf16 %v3153_v8, %v3152_v32 }
0x178f   :  { %10491 = vmatprep.subr.msk.bf16.mxu1 %vm11689_vm2, %v10489_v28 }
0x1791   :  { %v11126_v15 = vpop.eup %11125 }
0x1792   :  { %9667 = vmatmul.mubr.msk.bf16.gmra.mrb[112].mxu1 %vm533_vm3, %v3157_v12  ;;  %v11128_v46 = vpop.eup %11127  ;;  %v3154_v43 = vmul.f32 %v11126_v15, %v11116_v13 }
0x1793   :  { %10494 = vmatpush3.bf16.xpose.msk.msra.mxu1 %vm11689_vm2, %v10489_v28  ;;  %9670 = vmatprep.mubr.msk.bf16.mxu1 %vm11395_vm0, %v11394_v55  ;;  %v3155_v51 = vmul.f32 %v11128_v46, %v12734_v9 }
0x1794   :  { %10497 = vmatprep.subr.msk.bf16.mxu1 %vm11689_vm2, %v10495_v41 }
0x1795   :  { %v3158_v57 = vpack.c.bf16 %v3155_v51, %v3154_v43 }
0x179a   :  { %9671 = vmatmul.mubr.msk.bf16.gmra.mrb[116].mxu1 %vm533_vm3, %v3158_v57 }
0x179b   :  { %10500 = vmatpush3.bf16.xpose.msk.msra.mxu1 %vm11689_vm2, %v10495_v41  ;;  %9714 = vmatprep.mubr.msk.f32.mxu1 %vm401_vm1, %v12746_v33 }
0x179c   :  { %9723 = vmatprep.subr.bf16.mxu1 %v11394_v55 }
0x17a2   :  { %9715 = vmatmul.mubr.msk.f32.vlgmr.msra.gmra.mrb[120].mxu1 %vm401_vm1, %v12743_v50 }
0x17a3   :  { %9717 = vmatprep.mubr.msk.f32.mxu1 %vm401_vm1, %v12754_v54 }
0x17a6   :  { %9718 = vmatmul.mubr.msk.f32.gmra.mrb[122].mxu1 %vm401_vm1, %v12749_v53 }
0x17a7   :  { %9720 = vmatprep.mubr.msk.f32.mxu1 %vm401_vm1, %v12762_v62 }
0x17aa   :  { %9721 = vmatmul.mubr.msk.f32.gmra.mrb[124].mxu1 %vm401_vm1, %v12757_v60 }
0x17ab   :  { %9729 = vmatprep.mubr.msk.bf16.mxu1 %vm11395_vm0, %v11394_v55 }
0x185d   :  { %v12804_v9 = vpop.f32.mrb[108].mxu1 }
0x185e   :  { %v9664_v13 = vpop.f32.mrb[109].mxu1 }
0x185f   :  { %v12806_v7 = vpop.f32.mrb[110].mxu1 }
0x1860   :  { %v3240_v25 = vpack.c.bf16 %v12806_v7, %v12804_v9  ;;  %v9665_v47 = vpop.f32.mrb[111].mxu1  ;;  %v10882_v9 = vld [vmem:[%s14356_s8 + $0x58] sm:$0xff]  }
0x1865   :  { %v12810_v0 = vpop.f32.mrb[112].mxu1 }
0x1866   :  { %v9668_v23 = vpop.f32.mrb[113].mxu1 }
0x1867   :  { %v12812_v49 = vpop.f32.mrb[114].mxu1 }
0x1868   :  { %v3241_v17 = vpack.c.bf16 %v12812_v49, %v12810_v0  ;;  %v9669_v20 = vpop.f32.mrb[115].mxu1  ;;  %v10883_v49 = vld [vmem:[%s14354_s6 + $0x180] sm:$0xff]  }
0x186d   :  { %v12816_v48 = vpop.f32.mrb[116].mxu1 }
0x186e   :  { %v9672_v31 = vpop.f32.mrb[117].mxu1 }
0x186f   :  { %v12818_v29 = vpop.f32.mrb[118].mxu1 }
0x1870   :  { %v3242_v5 = vpack.c.bf16 %v12818_v29, %v12816_v48  ;;  %v9673_v56 = vpop.f32.mrb[119].mxu1  ;;  %v10884_v48 = vld [vmem:[%s14354_s6 + $0x188] sm:$0xff]  }
0x1871   :  { %v3596_v56 = vpack.c.bf16 %v12743_v50, %v12746_v33 }
0x1875   :  { %v9716_v26 = vpop.f32.mrb[120].mxu1 }
0x1876   :  { %v3516_v2 = vmul.f32 0.17677669, %v9716_v26  ;;  %v3486_v6 = vpop.f32.mrb[121].mxu1 }
0x1877   :  { %v3515_v44 = vmul.f32 0.17677669, %v3486_v6 }
0x1878   :  { %v3522_v45 = vadd.f32 %v12680_v18, %v3516_v2 }
0x1879   :  { %v3521_v42 = vadd.f32 %v12686_v61, %v3515_v44  ;;  %v9719_v22 = vpop.f32.mrb[122].mxu1 }
0x187a   :  { %v3518_v32 = vmul.f32 0.17677669, %v9719_v22  ;;  %v3496_v8 = vpop.f32.mrb[123].mxu1  ;;  %v3530_v28 = vsel %vm533_vm3, %v3522_v45, -inf }
0x187b   :  { %v3517_v34 = vmul.f32 0.17677669, %v3496_v8  ;;  %3531 = vmax.xlane.f32.xlu0 %v3530_v28  ;;  %v3527_v30 = vsel %vm533_vm3, %v3521_v42, -inf }
0x187c   :  { %v3524_v12 = vadd.f32 %v12694_v3, %v3518_v32  ;;  %3528 = vmax.xlane.f32.xlu1 %v3527_v30 }
0x187d   :  { %v3523_v15 = vadd.f32 %v12700_v63, %v3517_v34  ;;  %v9722_v41 = vpop.f32.mrb[124].mxu1 }
0x187e   :  { %v3520_v46 = vmul.f32 0.17677669, %v9722_v41  ;;  %v3506_v43 = vpop.f32.mrb[125].mxu1  ;;  %v3536_v51 = vsel %vm533_vm3, %v3524_v12, -inf }
0x187f   :  { %v3519_v57 = vmul.f32 0.17677669, %v3506_v43  ;;  %v3533_v13 = vsel %vm533_vm3, %v3523_v15, -inf }
0x1880   :  { %v3526_v47 = vadd.f32 %v12708_v10, %v3520_v46  ;;  %3537 = vmax.xlane.f32.xlu1 %v3536_v51  ;;  %3534 = vmax.xlane.f32.xlu0 %v3533_v13 }
0x1881   :  { %v3525_v23 = vadd.f32 %v12714_v11, %v3519_v57 }
0x1882   :  { %v3542_v20 = vsel %vm533_vm3, %v3526_v47, -inf }
0x1883   :  { %v3539_v31 = vsel %vm533_vm3, %v3525_v23, -inf }
0x1884   :  { %3543 = vmax.xlane.f32.xlu1 %v3542_v20  ;;  %3540 = vmax.xlane.f32.xlu0 %v3539_v31 }
0x189a   :  { %3602 = vrot.lane.b32.xlu0 %v3596_v56, %s11397_s28 }
0x1908   :  { %v3532_v26 = vpop.xlane.xlu0 %3531 }
0x1909   :  { %v3546_v2 = vsub.f32 %v3522_v45, %v3532_v26  ;;  %v3529_v6 = vpop.xlane.xlu1 %3528 }
0x190a   :  { %v3545_v44 = vsub.f32 %v3521_v42, %v3529_v6  ;;  %v3598_v6 = vpack.c.bf16 %v12757_v60, %v12762_v62 }
0x190b   :  { %v3553_v22 = vmul.f32 1.442695, %v3546_v2  ;;  %v3597_v2 = vpack.c.bf16 %v12749_v53, %v12754_v54 }
0x190c   :  { %v3551_v32 = vmul.f32 1.442695, %v3545_v44 }
0x190d   :  { %11129 = vpow2.f32 %v3553_v22  ;;  %v3538_v8 = vpop.xlane.xlu1 %3537  ;;  %v3535_v28 = vpop.xlane.xlu0 %3534 }
0x190e   :  { %11131 = vpow2.f32 %v3551_v32  ;;  %v3548_v34 = vsub.f32 %v3524_v12, %v3538_v8  ;;  %v3547_v30 = vsub.f32 %v3523_v15, %v3535_v28  ;;  %v10881_v28 = vld [vmem:[%s14356_s8 + $0x50] sm:$0xff]  }
0x190f   :  { %9742 = vmatpush3.bf16.msra.mxu0 %v10881_v28  ;;  %v10886_v28 = vld [vmem:[%s14354_s6 + $0x198] sm:$0xff]  }
0x1910   :  { %v3557_v41 = vmul.f32 1.442695, %v3548_v34  ;;  %v3555_v46 = vmul.f32 1.442695, %v3547_v30  ;;  %9743 = vmatprep.subr.bf16.mxu0 %v11394_v55 }
0x1911   :  { %v3544_v43 = vpop.xlane.xlu1 %3543  ;;  %v3541_v51 = vpop.xlane.xlu0 %3540 }
0x1912   :  { %11133 = vpow2.f32 %v3557_v41  ;;  %v3550_v50 = vsub.f32 %v3526_v47, %v3544_v43  ;;  %v3549_v44 = vsub.f32 %v3525_v23, %v3541_v51 }
0x1913   :  { %11135 = vpow2.f32 %v3555_v46  ;;  %9744 = vmatpush3.bf16.msra.mxu0 %v10882_v9 }
0x1914   :  { %v3561_v33 = vmul.f32 1.442695, %v3550_v50  ;;  %v3559_v22 = vmul.f32 1.442695, %v3549_v44  ;;  %9773 = vmatprep.subr.bf16.mxu0 %v11394_v55 }
0x1915   :  { %v3603_v57 = vpop.permute.xlu0 %3602 }
0x1916   :  { %11137 = vpow2.f32 %v3561_v33  ;;  %9724 = vmatpush3.bf16.msra.mxu1 %v3603_v57  ;;  %v10879_v33 = vld [vmem:[%s14356_s8 + $0x40] sm:$0xff]  }
0x1917   :  { %v11130_v45 = vpop.eup %11129  ;;  %9725 = vmatprep.subr.bf16.mxu1 %v11394_v55  ;;  %11139 = vpow2.f32 %v3559_v22 }
0x1918   :  { %v11132_v42 = vpop.eup %11131  ;;  %v3566_v13 = vsel %vm533_vm3, %v11130_v45, 0.0 }
0x1919   :  { %3567 = vadd.xlane.f32.xlu1 %v3566_v13  ;;  %v3563_v12 = vsel %vm533_vm3, %v11132_v42, 0.0 }
0x191a   :  { %3564 = vadd.xlane.f32.xlu0 %v3563_v12 }
0x191c   :  { %v11134_v15 = vpop.eup %11133 }
0x191d   :  { %v11136_v20 = vpop.eup %11135  ;;  %v3572_v31 = vsel %vm533_vm3, %v11134_v15, 0.0 }
0x191e   :  { %3573 = vadd.xlane.f32.xlu1 %v3572_v31  ;;  %v3569_v47 = vsel %vm533_vm3, %v11136_v20, 0.0 }
0x191f   :  { %3570 = vadd.xlane.f32.xlu0 %v3569_v47 }
0x1920   :  { %v11138_v56 = vpop.eup %11137 }
0x1921   :  { %v3578_v26 = vsel %vm533_vm3, %v11138_v56, 0.0  ;;  %v11140_v32 = vpop.eup %11139 }
0x1922   :  { %v3575_v8 = vsel %vm533_vm3, %v11140_v32, 0.0 }
0x1923   :  { %3579 = vadd.xlane.f32.xlu0 %v3578_v26 }
0x192f   :  { %3604 = vrot.lane.b32.xlu1 %v3597_v2, %s11397_s28 }
0x1939   :  { %3606 = vrot.lane.b32.xlu0 %v3598_v6, %s11397_s28 }
0x1953   :  { %3576 = vadd.xlane.f32.xlu1 %v3575_v8 }
0x19a6   :  { %v3568_v53 = vpop.xlane.xlu1 %3567 }
0x19a7   :  { %11141 = vrcp.f32 %v3568_v53  ;;  %v3565_v54 = vpop.xlane.xlu0 %3564  ;;  %v10887_v53 = vld [vmem:[%s14354_s6 + $0x1a0] sm:$0xff]  }
0x19a8   :  { %11143 = vrcp.f32 %v3565_v54  ;;  %v10888_v54 = vld [vmem:[%s14354_s6 + $0x1a8] sm:$0xff]  }
0x19ab   :  { %v3574_v60 = vpop.xlane.xlu1 %3573 }
0x19ac   :  { %11145 = vrcp.f32 %v3574_v60  ;;  %v3571_v62 = vpop.xlane.xlu0 %3570  ;;  %v10889_v60 = vld [vmem:[%s14354_s6 + $0x1b0] sm:$0xff]  }
0x19ad   :  { %11147 = vrcp.f32 %v3571_v62  ;;  %v10890_v62 = vld [vmem:[%s14354_s6 + $0x1b8] sm:$0xff]  }
0x19af   :  { %v3605_v23 = vpop.permute.xlu1 %3604 }
0x19b0   :  { %v3580_v34 = vpop.xlane.xlu0 %3579  ;;  %9726 = vmatpush3.bf16.msra.mxu1 %v3605_v23 }
0x19b1   :  { %v11142_v30 = vpop.eup %11141  ;;  %9727 = vmatprep.subr.bf16.mxu1 %v11394_v55  ;;  %11149 = vrcp.f32 %v3580_v34 }
0x19b2   :  { %v11144_v41 = vpop.eup %11143  ;;  %v3588_v46 = vmul.f32 %v11142_v30, %v11130_v45  ;;  %v10880_v45 = vld [vmem:[%s14356_s8 + $0x48] sm:$0xff]  }
0x19b3   :  { %v3587_v43 = vmul.f32 %v11144_v41, %v11132_v42 }
0x19b4   :  { %v3607_v51 = vpop.permute.xlu0 %3606 }
0x19b5   :  { %v3593_v50 = vpack.c.bf16 %v3588_v46, %v3587_v43  ;;  %9728 = vmatpush3.bf16.msra.mxu1 %v3607_v51 }
0x19b6   :  { %v11146_v57 = vpop.eup %11145  ;;  %9757 = vmatprep.subr.bf16.mxu1 %v11394_v55 }
0x19b7   :  { %v11148_v13 = vpop.eup %11147  ;;  %v3590_v12 = vmul.f32 %v11146_v57, %v11134_v15 }
0x19b8   :  { %9730 = vmatmul.mubr.msk.bf16.vlgmr.msra.gmra.mrb[128].mxu1 %vm533_vm3, %v3593_v50  ;;  %v3589_v42 = vmul.f32 %v11148_v13, %v11136_v20 }
0x19b9   :  { %9733 = vmatprep.mubr.msk.bf16.mxu1 %vm11395_vm0, %v11394_v55  ;;  %9758 = vmatpush3.bf16.msra.mxu1 %v10879_v33 }
0x19ba   :  { %9759 = vmatprep.subr.bf16.mxu1 %v11394_v55  ;;  %v3594_v31 = vpack.c.bf16 %v3590_v12, %v3589_v42 }
0x19bb   :  { %v11150_v26 = vpop.eup %11149 }
0x19bc   :  { %v3592_v44 = vmul.f32 %v11150_v26, %v11138_v56  ;;  %v10885_v56 = vld [vmem:[%s14354_s6 + $0x190] sm:$0xff]  }
0x19bd   :  { %9760 = vmatpush3.bf16.msra.mxu1 %v10880_v45 }
0x19c0   :  { %9734 = vmatmul.mubr.msk.bf16.gmra.mrb[132].mxu1 %vm533_vm3, %v3594_v31 }
0x19c1   :  { %9737 = vmatprep.mubr.msk.bf16.mxu1 %vm11395_vm0, %v11394_v55 }
0x19e0   :  { %v3577_v47 = vpop.xlane.xlu1 %3576 }
0x19e1   :  { %11151 = vrcp.f32 %v3577_v47 }
0x19eb   :  { %v11152_v2 = vpop.eup %11151 }
0x19ec   :  { %v3591_v6 = vmul.f32 %v11152_v2, %v11140_v32 }
0x19ee   :  { %v3595_v22 = vpack.c.bf16 %v3592_v44, %v3591_v6 }
0x19f0   :  { %9738 = vmatmul.mubr.msk.bf16.gmra.mrb[136].mxu1 %vm533_vm3, %v3595_v22 }
0x19f1   :  { %9761 = vmatprep.mubr.msk.bf16.mxu1 %vm11395_vm0, %v11394_v55 }
0x19f8   :  { %9762 = vmatmul.mubr.msk.bf16.vlgmr.msra.gmra.mrb[140].mxu1 %vm401_vm1, %v3240_v25 }
0x19f9   :  { %9765 = vmatprep.mubr.msk.bf16.mxu1 %vm11395_vm0, %v11394_v55 }
0x1a00   :  { %9766 = vmatmul.mubr.msk.bf16.gmra.mrb[144].mxu1 %vm401_vm1, %v3241_v17 }
0x1a01   :  { %9769 = vmatprep.mubr.msk.bf16.mxu1 %vm11395_vm0, %v11394_v55 }
0x1a08   :  { %9770 = vmatmul.mubr.msk.bf16.gmra.mrb[148].mxu1 %vm401_vm1, %v3242_v5 }
0x1a8b   :  { %v3654_v7 = vpop.f32.mrb[128].mxu1 }
0x1a8c   :  { %v9731_v25 = vpop.f32.mrb[129].mxu1 }
0x1a8d   :  { %v3657_v0 = vpop.f32.mrb[130].mxu1 }
0x1a8e   :  { %v3677_v17 = vpack.c.bf16 %v3657_v0, %v3654_v7  ;;  %v9732_v15 = vpop.f32.mrb[131].mxu1 }
0x1a90   :  { %9746 = vmatmul.mubr.msk.bf16.vlgmr.msra.gmra.mrb[116].mxu0 %vm401_vm1, %v3677_v17 }
0x1a91   :  { %9749 = vmatprep.mubr.msk.bf16.mxu0 %vm11395_vm0, %v11394_v55  ;;  %9774 = vmatpush3.bf16.msra.mxu0 %v10883_v49 }
0x1a92   :  { %9775 = vmatprep.subr.bf16.mxu0 %v11394_v55 }
0x1a93   :  { %v3662_v29 = vpop.f32.mrb[132].mxu1 }
0x1a94   :  { %v9735_v5 = vpop.f32.mrb[133].mxu1 }
0x1a95   :  { %v3665_v20 = vpop.f32.mrb[134].mxu1  ;;  %9776 = vmatpush3.bf16.msra.mxu0 %v10884_v48 }
0x1a96   :  { %v3678_v32 = vpack.c.bf16 %v3665_v20, %v3662_v29  ;;  %v9736_v8 = vpop.f32.mrb[135].mxu1  ;;  %9777 = vmatprep.subr.bf16.mxu0 %v11394_v55 }
0x1a98   :  { %9750 = vmatmul.mubr.msk.bf16.gmra.mrb[120].mxu0 %vm401_vm1, %v3678_v32 }
0x1a99   :  { %9778 = vmatpush3.bf16.msra.mxu0 %v10885_v56  ;;  %9753 = vmatprep.mubr.msk.bf16.mxu0 %vm11395_vm0, %v11394_v55 }
0x1a9a   :  { %9779 = vmatprep.subr.bf16.mxu0 %v11394_v55 }
0x1a9d   :  { %9780 = vmatpush3.bf16.msra.mxu0 %v10886_v28  ;;  %v8360_v28 = vld [vmem:[%s14355_s7 + $0x6] ss:$0 sm:$0xff] }
0x1a9e   :  { %9781 = vmatprep.subr.bf16.mxu0 %v11394_v55 }
0x1aa1   :  { %9782 = vmatpush3.bf16.msra.mxu0 %v10887_v53 }
0x1aa2   :  { %9783 = vmatprep.subr.bf16.mxu0 %v11394_v55 }
0x1aa5   :  { %9784 = vmatpush3.bf16.msra.mxu0 %v10888_v54 }
0x1aa6   :  { %9785 = vmatprep.subr.bf16.mxu0 %v11394_v55 }
0x1aa9   :  { %9786 = vmatpush3.bf16.msra.mxu0 %v10889_v60 }
0x1aaa   :  { %9787 = vmatprep.subr.bf16.mxu0 %v11394_v55 }
0x1aad   :  { %9788 = vmatpush3.bf16.msra.mxu0 %v10890_v62 }
0x1aae   :  { %9840 = vmatprep.subr.bf16.mxu0 %v11394_v55 }
0x1ac3   :  { %v3670_v23 = vpop.f32.mrb[136].mxu1 }
0x1ac4   :  { %v9739_v34 = vpop.f32.mrb[137].mxu1 }
0x1ac5   :  { %v3673_v30 = vpop.f32.mrb[138].mxu1 }
0x1ac6   :  { %v3679_v41 = vpack.c.bf16 %v3673_v30, %v3670_v23  ;;  %v9740_v46 = vpop.f32.mrb[139].mxu1 }
0x1ac8   :  { %9754 = vmatmul.mubr.msk.bf16.gmra.mrb[124].mxu0 %vm401_vm1, %v3679_v41 }
0x1ac9   :  { %9789 = vmatprep.mubr.msk.bf16.mxu0 %vm11395_vm0, %v11394_v55 }
0x1acb   :  { %v3818_v43 = vpop.f32.mrb[140].mxu1 }
0x1acc   :  { %v9763_v51 = vpop.f32.mrb[141].mxu1 }
0x1acd   :  { %v3821_v50 = vpop.f32.mrb[142].mxu1 }
0x1ace   :  { %v9764_v33 = vpop.f32.mrb[143].mxu1 }
0x1ad0   :  { %9790 = vmatmul.mubr.bf16.vlgmr.msra.gmra.mrb[128].mxu0 %v12547_v37 }
0x1ad1   :  { %9793 = vmatprep.mubr.msk.bf16.mxu0 %vm11395_vm0, %v11394_v55 }
0x1ad3   :  { %v3826_v57 = vpop.f32.mrb[144].mxu1 }
0x1ad4   :  { %v9767_v13 = vpop.f32.mrb[145].mxu1 }
0x1ad5   :  { %v3829_v45 = vpop.f32.mrb[146].mxu1 }
0x1ad6   :  { %v9768_v42 = vpop.f32.mrb[147].mxu1 }
0x1ad8   :  { %9794 = vmatmul.mubr.bf16.gmra.mrb[132].mxu0 %v12568_v24 }
0x1ad9   :  { %9797 = vmatprep.mubr.msk.bf16.mxu0 %vm11395_vm0, %v11394_v55 }
0x1adb   :  { %v3834_v12 = vpop.f32.mrb[148].mxu1 }
0x1adc   :  { %v9771_v31 = vpop.f32.mrb[149].mxu1 }
0x1add   :  { %v3837_v47 = vpop.f32.mrb[150].mxu1 }
0x1ade   :  { %v9772_v26 = vpop.f32.mrb[151].mxu1 }
0x1ae0   :  { %9798 = vmatmul.mubr.bf16.gmra.mrb[136].mxu0 %v12587_v19 }
0x1ae1   :  { %9844 = vmatprep.mubr.msk.bf16.mxu0 %vm11395_vm0, %v11394_v55 }
0x1b63   :  { %v3740_v2 = vpop.f32.mrb[116].mxu0 }
0x1b64   :  { %v12942_v6 = vadd.f32 %v3818_v43, %v3740_v2  ;;  %v9747_v44 = vpop.f32.mrb[117].mxu0 }
0x1b65   :  { %v3743_v22 = vpop.f32.mrb[118].mxu0 }
0x1b66   :  { %v12944_v9 = vadd.f32 %v3821_v50, %v3743_v22  ;;  %v9748_v7 = vpop.f32.mrb[119].mxu0 }
0x1b6b   :  { %v3748_v25 = vpop.f32.mrb[120].mxu0 }
0x1b6c   :  { %v12946_v0 = vadd.f32 %v3826_v57, %v3748_v25  ;;  %v9751_v49 = vpop.f32.mrb[121].mxu0 }
0x1b6d   :  { %v3751_v17 = vpop.f32.mrb[122].mxu0 }
0x1b6e   :  { %v12948_v15 = vadd.f32 %v3829_v45, %v3751_v17  ;;  %v9752_v48 = vpop.f32.mrb[123].mxu0 }
0x1b9b   :  { %v3756_v29 = vpop.f32.mrb[124].mxu0 }
0x1b9c   :  { %v12950_v5 = vadd.f32 %v3834_v12, %v3756_v29  ;;  %v9755_v20 = vpop.f32.mrb[125].mxu0 }
0x1b9d   :  { %v3759_v56 = vpop.f32.mrb[126].mxu0 }
0x1b9e   :  { %v12952_v32 = vadd.f32 %v3837_v47, %v3759_v56  ;;  %v9756_v8 = vpop.f32.mrb[127].mxu0 }
0x1ba3   :  { %v3948_v53 = vpop.f32.mrb[128].mxu0 }
0x1ba4   :  { %v12957_v54 = vadd.f32 %v8360_v28, %v3948_v53  ;;  %v9791_v60 = vpop.f32.mrb[129].mxu0 }
0x1ba5   :  { %v3951_v62 = vpop.f32.mrb[130].mxu0 }
0x1ba6   :  { %v12959_v23 = vadd.f32 %v8360_v28, %v3951_v62  ;;  %v9792_v34 = vpop.f32.mrb[131].mxu0  ;;  %9813 = vmatprep.mubr.msk.f32.mxu1 %vm401_vm1, %v12957_v54 }
0x1ba8   :  { %v10716_v30 = vpack.i.bf16 %v12959_v23, %v12957_v54 }
0x1baa   :  { %10717 = vrot.lane.b32.xlu1 %v10716_v30, %s11396_s2 }
0x1bab   :  { %v3956_v41 = vpop.f32.mrb[132].mxu0 }
0x1bac   :  { %v9795_v46 = vpop.f32.mrb[133].mxu0  ;;  %v12966_v51 = vadd.f32 %v8360_v28, %v3956_v41 }
0x1bad   :  { %v3959_v43 = vpop.f32.mrb[134].mxu0 }
0x1bae   :  { %v12968_v50 = vadd.f32 %v8360_v28, %v3959_v43  ;;  %v9796_v33 = vpop.f32.mrb[135].mxu0 }
0x1bb0   :  { %v10721_v57 = vpack.i.bf16 %v12968_v50, %v12966_v51 }
0x1bb2   :  { %10722 = vrot.lane.b32.xlu1 %v10721_v57, %s11396_s2 }
0x1bb3   :  { %v3964_v13 = vpop.f32.mrb[136].mxu0 }
0x1bb4   :  { %v9799_v45 = vpop.f32.mrb[137].mxu0  ;;  %v12973_v12 = vadd.f32 %v8360_v28, %v3964_v13 }
0x1bb5   :  { %v3967_v42 = vpop.f32.mrb[138].mxu0 }
0x1bb6   :  { %v12975_v31 = vadd.f32 %v8360_v28, %v3967_v42  ;;  %v9800_v47 = vpop.f32.mrb[139].mxu0 }
0x1bb8   :  { %v10726_v26 = vpack.i.bf16 %v12975_v31, %v12973_v12 }
0x1bba   :  { %10727 = vrot.lane.b32.xlu0 %v10726_v26, %s11396_s2 }
0x1c1c   :  { %v10718_v2 = vpop.permute.xlu1 %10717 }
0x1c1d   :  { %v10720_v44 = vunpack.i.h.bf16 %v10718_v2  ;;  %v10719_v22 = vunpack.i.l.bf16 %v10718_v2 }
0x1c1f   :  { %v10501_v7 = vpack.c.bf16 %v10720_v44, %v10719_v22 }
0x1c21   :  { %10503 = vmatprep.subr.msk.bf16.mxu1 %vm11689_vm2, %v10501_v7 }
0x1c22   :  { %10506 = vmatpush3.bf16.xpose.msk.msra.mxu1 %vm11689_vm2, %v10501_v7 }
0x1c24   :  { %v10723_v25 = vpop.permute.xlu1 %10722 }
0x1c25   :  { %v10725_v49 = vunpack.i.h.bf16 %v10723_v25  ;;  %v10724_v17 = vunpack.i.l.bf16 %v10723_v25 }
0x1c27   :  { %v10507_v48 = vpack.c.bf16 %v10725_v49, %v10724_v17 }
0x1c29   :  { %10509 = vmatprep.subr.msk.bf16.mxu1 %vm11689_vm2, %v10507_v48 }
0x1c2a   :  { %10512 = vmatpush3.bf16.xpose.msk.msra.mxu1 %vm11689_vm2, %v10507_v48 }
0x1c2c   :  { %v10728_v29 = vpop.permute.xlu0 %10727 }
0x1c2d   :  { %v10730_v20 = vunpack.i.h.bf16 %v10728_v29  ;;  %v10729_v56 = vunpack.i.l.bf16 %v10728_v29 }
0x1c2f   :  { %v10513_v8 = vpack.c.bf16 %v10730_v20, %v10729_v56 }
0x1c31   :  { %10515 = vmatprep.subr.msk.bf16.mxu1 %vm11689_vm2, %v10513_v8 }
0x1c32   :  { %10518 = vmatpush3.bf16.xpose.msk.msra.mxu1 %vm11689_vm2, %v10513_v8 }
0x1c33   :  { %9822 = vmatprep.subr.bf16.mxu1 %v11394_v55 }
0x1c39   :  { %9814 = vmatmul.mubr.msk.f32.vlgmr.msra.gmra.mrb[126].mxu1 %vm401_vm1, %v12959_v23 }
0x1c3a   :  { %9816 = vmatprep.mubr.msk.f32.mxu1 %vm401_vm1, %v12966_v51 }
0x1c3d   :  { %9817 = vmatmul.mubr.msk.f32.gmra.mrb[152].mxu1 %vm401_vm1, %v12968_v50 }
0x1c3e   :  { %9819 = vmatprep.mubr.msk.f32.mxu1 %vm401_vm1, %v12973_v12 }
0x1c41   :  { %9820 = vmatmul.mubr.msk.f32.gmra.mrb[154].mxu1 %vm401_vm1, %v12975_v31 }
0x1c42   :  { %9828 = vmatprep.mubr.msk.bf16.mxu1 %vm11395_vm0, %v11394_v55 }
0x1d0c   :  { %v9815_v28 = vpop.f32.mrb[126].mxu1 }
0x1d0d   :  { %v4109_v53 = vmul.f32 0.17677669, %v9815_v28  ;;  %v4079_v60 = vpop.f32.mrb[127].mxu1 }
0x1d0e   :  { %v4108_v62 = vmul.f32 0.17677669, %v4079_v60 }
0x1d0f   :  { %v4115_v34 = vadd.f32 %v12680_v18, %v4109_v53 }
0x1d10   :  { %v4114_v30 = vadd.f32 %v12686_v61, %v4108_v62  ;;  %v9818_v41 = vpop.f32.mrb[152].mxu1 }
0x1d11   :  { %v4111_v46 = vmul.f32 0.17677669, %v9818_v41  ;;  %v4089_v43 = vpop.f32.mrb[153].mxu1  ;;  %v4123_v33 = vsel %vm533_vm3, %v4115_v34, -inf }
0x1d12   :  { %v4110_v57 = vmul.f32 0.17677669, %v4089_v43  ;;  %4124 = vmax.xlane.f32.xlu0 %v4123_v33  ;;  %v4120_v13 = vsel %vm533_vm3, %v4114_v30, -inf }
0x1d13   :  { %v4117_v45 = vadd.f32 %v12694_v3, %v4111_v46  ;;  %4121 = vmax.xlane.f32.xlu1 %v4120_v13 }
0x1d14   :  { %v4116_v42 = vadd.f32 %v12700_v63, %v4110_v57  ;;  %v9821_v47 = vpop.f32.mrb[154].mxu1  ;;  %v4189_v63 = vpack.c.bf16 %v12959_v23, %v12957_v54 }
0x1d15   :  { %v4113_v26 = vmul.f32 0.17677669, %v9821_v47  ;;  %v4099_v2 = vpop.f32.mrb[155].mxu1  ;;  %v4129_v18 = vsel %vm533_vm3, %v4117_v45, -inf }
0x1d16   :  { %v4112_v61 = vmul.f32 0.17677669, %v4099_v2  ;;  %v4126_v44 = vsel %vm533_vm3, %v4116_v42, -inf  ;;  %v4190_v2 = vpack.c.bf16 %v12968_v50, %v12966_v51  ;;  %v10899_v51 = vld [vmem:[%s14356_s8 + $0x60] sm:$0xff]  }
0x1d17   :  { %v4119_v22 = vadd.f32 %v12708_v10, %v4113_v26  ;;  %4130 = vmax.xlane.f32.xlu1 %v4129_v18  ;;  %4127 = vmax.xlane.f32.xlu0 %v4126_v44  ;;  %v4191_v18 = vpack.c.bf16 %v12975_v31, %v12973_v12 }
0x1d18   :  { %v4118_v7 = vadd.f32 %v12714_v11, %v4112_v61  ;;  %9841 = vmatpush3.bf16.msra.mxu0 %v10899_v51 }
0x1d19   :  { %v4135_v25 = vsel %vm533_vm3, %v4119_v22, -inf  ;;  %9842 = vmatprep.subr.bf16.mxu0 %v11394_v55 }
0x1d1a   :  { %v4132_v3 = vsel %vm533_vm3, %v4118_v7, -inf }
0x1d1b   :  { %4136 = vmax.xlane.f32.xlu1 %v4135_v25  ;;  %4133 = vmax.xlane.f32.xlu0 %v4132_v3 }
0x1d31   :  { %4195 = vrot.lane.b32.xlu0 %v4189_v63, %s11397_s28 }
0x1d9f   :  { %v4125_v49 = vpop.xlane.xlu0 %4124 }
0x1da0   :  { %v4139_v17 = vsub.f32 %v4115_v34, %v4125_v49  ;;  %v4122_v48 = vpop.xlane.xlu1 %4121 }
0x1da1   :  { %v4138_v29 = vsub.f32 %v4114_v30, %v4122_v48 }
0x1da2   :  { %v4146_v10 = vmul.f32 1.442695, %v4139_v17 }
0x1da3   :  { %v4144_v20 = vmul.f32 1.442695, %v4138_v29 }
0x1da4   :  { %11153 = vpow2.f32 %v4146_v10  ;;  %v4131_v56 = vpop.xlane.xlu1 %4130  ;;  %v4128_v11 = vpop.xlane.xlu0 %4127 }
0x1da5   :  { %11155 = vpow2.f32 %v4144_v20  ;;  %v4141_v8 = vsub.f32 %v4117_v45, %v4131_v56  ;;  %v4140_v28 = vsub.f32 %v4116_v42, %v4128_v11  ;;  %v10891_v56 = vld [vmem:[%s14354_s6 + $0x1c0] sm:$0xff]  }
0x1da7   :  { %v4150_v53 = vmul.f32 1.442695, %v4141_v8  ;;  %v4148_v60 = vmul.f32 1.442695, %v4140_v28  ;;  %v10892_v28 = vld [vmem:[%s14354_s6 + $0x1c8] sm:$0xff]  }
0x1da8   :  { %v4137_v62 = vpop.xlane.xlu1 %4136  ;;  %v4134_v41 = vpop.xlane.xlu0 %4133 }
0x1da9   :  { %11157 = vpow2.f32 %v4150_v53  ;;  %v4143_v54 = vsub.f32 %v4119_v22, %v4137_v62  ;;  %v4142_v61 = vsub.f32 %v4118_v7, %v4134_v41  ;;  %v10893_v62 = vld [vmem:[%s14354_s6 + $0x1d0] sm:$0xff]  }
0x1daa   :  { %11159 = vpow2.f32 %v4148_v60 }
0x1dab   :  { %v4154_v23 = vmul.f32 1.442695, %v4143_v54  ;;  %v4152_v44 = vmul.f32 1.442695, %v4142_v61  ;;  %v10894_v54 = vld [vmem:[%s14354_s6 + $0x1d8] sm:$0xff]  }
0x1dac   :  { %v4196_v46 = vpop.permute.xlu0 %4195 }
0x1dad   :  { %11161 = vpow2.f32 %v4154_v23  ;;  %9823 = vmatpush3.bf16.msra.mxu1 %v4196_v46  ;;  %v10895_v23 = vld [vmem:[%s14354_s6 + $0x1e0] sm:$0xff]   ;;  %v10896_v46 = vld [vmem:[%s14354_s6 + $0x1e8] sm:$0xff]  }
0x1dae   :  { %v11154_v34 = vpop.eup %11153  ;;  %9824 = vmatprep.subr.bf16.mxu1 %v11394_v55  ;;  %11163 = vpow2.f32 %v4152_v44 }
0x1daf   :  { %v11156_v30 = vpop.eup %11155  ;;  %v4159_v43 = vsel %vm533_vm3, %v11154_v34, 0.0 }
0x1db0   :  { %4160 = vadd.xlane.f32.xlu1 %v4159_v43  ;;  %v4156_v33 = vsel %vm533_vm3, %v11156_v30, 0.0 }
0x1db1   :  { %4157 = vadd.xlane.f32.xlu0 %v4156_v33 }
0x1db3   :  { %v11158_v57 = vpop.eup %11157 }
0x1db4   :  { %v11160_v13 = vpop.eup %11159  ;;  %v4165_v45 = vsel %vm533_vm3, %v11158_v57, 0.0 }
0x1db5   :  { %4166 = vadd.xlane.f32.xlu1 %v4165_v45  ;;  %v4162_v42 = vsel %vm533_vm3, %v11160_v13, 0.0 }
0x1db6   :  { %4163 = vadd.xlane.f32.xlu0 %v4162_v42 }
0x1db7   :  { %v13025_v47 = vpop.eup %11161 }
0x1db8   :  { %v4171_v26 = vsel %vm533_vm3, %v13025_v47, 0.0  ;;  %v13035_v22 = vpop.eup %11163 }
0x1db9   :  { %v4168_v25 = vsel %vm533_vm3, %v13035_v22, 0.0 }
0x1dba   :  { %4172 = vadd.xlane.f32.xlu0 %v4171_v26 }
0x1dc6   :  { %4197 = vrot.lane.b32.xlu1 %v4190_v2, %s11397_s28 }
0x1dd0   :  { %4199 = vrot.lane.b32.xlu0 %v4191_v18, %s11397_s28 }
0x1dea   :  { %4169 = vadd.xlane.f32.xlu1 %v4168_v25 }
0x1e3d   :  { %v4161_v50 = vpop.xlane.xlu1 %4160 }
0x1e3e   :  { %11165 = vrcp.f32 %v4161_v50  ;;  %v4158_v12 = vpop.xlane.xlu0 %4157 }
0x1e3f   :  { %11167 = vrcp.f32 %v4158_v12 }
0x1e42   :  { %v4167_v31 = vpop.xlane.xlu1 %4166 }
0x1e43   :  { %11169 = vrcp.f32 %v4167_v31  ;;  %v4164_v7 = vpop.xlane.xlu0 %4163 }
0x1e44   :  { %11171 = vrcp.f32 %v4164_v7 }
0x1e46   :  { %v4198_v3 = vpop.permute.xlu1 %4197 }
0x1e47   :  { %v4173_v63 = vpop.xlane.xlu0 %4172  ;;  %9825 = vmatpush3.bf16.msra.mxu1 %v4198_v3  ;;  %v8410_v3 = vld [vmem:[%s14355_s7 + $0x7] ss:$0 sm:$0xff] }
0x1e48   :  { %v11166_v49 = vpop.eup %11165  ;;  %9826 = vmatprep.subr.bf16.mxu1 %v11394_v55  ;;  %11173 = vrcp.f32 %v4173_v63 }
0x1e49   :  { %v11168_v17 = vpop.eup %11167  ;;  %v4181_v48 = vmul.f32 %v11166_v49, %v11154_v34  ;;  %v10897_v34 = vld [vmem:[%s14354_s6 + $0x1f0] sm:$0xff]  }
0x1e4a   :  { %v4180_v29 = vmul.f32 %v11168_v17, %v11156_v30  ;;  %v10898_v30 = vld [vmem:[%s14354_s6 + $0x1f8] sm:$0xff]  }
0x1e4b   :  { %v4200_v10 = vpop.permute.xlu0 %4199 }
0x1e4c   :  { %v4186_v20 = vpack.c.bf16 %v4181_v48, %v4180_v29  ;;  %9827 = vmatpush3.bf16.msra.mxu1 %v4200_v10 }
0x1e4d   :  { %v11170_v11 = vpop.eup %11169  ;;  %9856 = vmatprep.subr.bf16.mxu1 %v11394_v55 }
0x1e4e   :  { %v11172_v8 = vpop.eup %11171  ;;  %v4183_v60 = vmul.f32 %v11170_v11, %v11158_v57 }
0x1e4f   :  { %9829 = vmatmul.mubr.msk.bf16.vlgmr.msra.gmra.mrb[156].mxu1 %vm533_vm3, %v4186_v20  ;;  %v4182_v53 = vmul.f32 %v11172_v8, %v11160_v13 }
0x1e50   :  { %9832 = vmatprep.mubr.msk.bf16.mxu1 %vm11395_vm0, %v11394_v55  ;;  %9857 = vmatpush3.bf16.msra.mxu1 %v10891_v56 }
0x1e51   :  { %9858 = vmatprep.subr.bf16.mxu1 %v11394_v55  ;;  %v4187_v41 = vpack.c.bf16 %v4183_v60, %v4182_v53 }
0x1e52   :  { %v11174_v33 = vpop.eup %11173 }
0x1e53   :  { %v4185_v45 = vmul.f32 %v11174_v33, %v13025_v47  ;;  %v10900_v47 = vld [vmem:[%s14356_s8 + $0x68] sm:$0xff]  }
0x1e54   :  { %9859 = vmatpush3.bf16.msra.mxu1 %v10892_v28  ;;  %9843 = vmatpush3.bf16.msra.mxu0 %v10900_v47 }
0x1e55   :  { %9860 = vmatprep.subr.bf16.mxu1 %v11394_v55 }
0x1e57   :  { %9833 = vmatmul.mubr.msk.bf16.gmra.mrb[160].mxu1 %vm533_vm3, %v4187_v41 }
0x1e58   :  { %9861 = vmatpush3.bf16.msra.mxu1 %v10893_v62  ;;  %9836 = vmatprep.mubr.msk.bf16.mxu1 %vm11395_vm0, %v11394_v55 }
0x1e59   :  { %9862 = vmatprep.subr.bf16.mxu1 %v11394_v55 }
0x1e5c   :  { %9863 = vmatpush3.bf16.msra.mxu1 %v10894_v54 }
0x1e5d   :  { %9864 = vmatprep.subr.bf16.mxu1 %v11394_v55 }
0x1e60   :  { %9865 = vmatpush3.bf16.msra.mxu1 %v10895_v23 }
0x1e61   :  { %9866 = vmatprep.subr.bf16.mxu1 %v11394_v55 }
0x1e64   :  { %9867 = vmatpush3.bf16.msra.mxu1 %v10896_v46 }
0x1e65   :  { %9868 = vmatprep.subr.bf16.mxu1 %v11394_v55 }
0x1e68   :  { %9869 = vmatpush3.bf16.msra.mxu1 %v10897_v34 }
0x1e69   :  { %9870 = vmatprep.subr.bf16.mxu1 %v11394_v55 }
0x1e6c   :  { %9871 = vmatpush3.bf16.msra.mxu1 %v10898_v30 }
0x1e6d   :  { %9923 = vmatprep.subr.bf16.mxu1 %v11394_v55 }
0x1e77   :  { %v4170_v43 = vpop.xlane.xlu1 %4169 }
0x1e78   :  { %11175 = vrcp.f32 %v4170_v43 }
0x1e82   :  { %v11176_v57 = vpop.eup %11175 }
0x1e83   :  { %v4184_v13 = vmul.f32 %v11176_v57, %v13035_v22 }
0x1e85   :  { %v4188_v42 = vpack.c.bf16 %v4185_v45, %v4184_v13 }
0x1e87   :  { %9837 = vmatmul.mubr.msk.bf16.gmra.mrb[164].mxu1 %vm533_vm3, %v4188_v42 }
0x1e88   :  { %9872 = vmatprep.mubr.msk.bf16.mxu1 %vm11395_vm0, %v11394_v55 }
0x1e8f   :  { %9873 = vmatmul.mubr.bf16.vlgmr.msra.gmra.mrb[168].mxu1 %v12547_v37 }
0x1e90   :  { %9876 = vmatprep.mubr.msk.bf16.mxu1 %vm11395_vm0, %v11394_v55 }
0x1e97   :  { %9877 = vmatmul.mubr.bf16.gmra.mrb[172].mxu1 %v12568_v24 }
0x1e98   :  { %9880 = vmatprep.mubr.msk.bf16.mxu1 %vm11395_vm0, %v11394_v55 }
0x1e9f   :  { %9881 = vmatmul.mubr.bf16.gmra.mrb[176].mxu1 %v12587_v19 }
0x1ea0   :  { %9927 = vmatprep.mubr.msk.bf16.mxu1 %vm11395_vm0, %v11394_v55 }
0x1f22   :  { %v4247_v26 = vpop.f32.mrb[156].mxu1 }
0x1f23   :  { %v9830_v37 = vpop.f32.mrb[157].mxu1 }
0x1f24   :  { %v4250_v2 = vpop.f32.mrb[158].mxu1 }
0x1f25   :  { %v4270_v18 = vpack.c.bf16 %v4250_v2, %v4247_v26  ;;  %v9831_v61 = vpop.f32.mrb[159].mxu1 }
0x1f27   :  { %9845 = vmatmul.mubr.msk.bf16.vlgmr.msra.gmra.mrb[140].mxu0 %vm401_vm1, %v4270_v18 }
0x1f28   :  { %9848 = vmatprep.mubr.msk.bf16.mxu0 %vm11395_vm0, %v11394_v55 }
0x1f2a   :  { %v4255_v24 = vpop.f32.mrb[160].mxu1 }
0x1f2b   :  { %v9834_v19 = vpop.f32.mrb[161].mxu1 }
0x1f2c   :  { %v4258_v44 = vpop.f32.mrb[162].mxu1 }
0x1f2d   :  { %v4271_v22 = vpack.c.bf16 %v4258_v44, %v4255_v24  ;;  %v9835_v25 = vpop.f32.mrb[163].mxu1 }
0x1f2f   :  { %9849 = vmatmul.mubr.msk.bf16.gmra.mrb[144].mxu0 %vm401_vm1, %v4271_v22 }
0x1f30   :  { %9852 = vmatprep.mubr.msk.bf16.mxu0 %vm11395_vm0, %v11394_v55 }
0x1f5a   :  { %v4263_v51 = vpop.f32.mrb[164].mxu1 }
0x1f5b   :  { %v9838_v50 = vpop.f32.mrb[165].mxu1 }
0x1f5c   :  { %v4266_v12 = vpop.f32.mrb[166].mxu1 }
0x1f5d   :  { %v4272_v31 = vpack.c.bf16 %v4266_v12, %v4263_v51  ;;  %v9839_v7 = vpop.f32.mrb[167].mxu1 }
0x1f5f   :  { %9853 = vmatmul.mubr.msk.bf16.gmra.mrb[148].mxu0 %vm401_vm1, %v4272_v31 }
0x1f62   :  { %v4469_v63 = vpop.f32.mrb[168].mxu1 }
0x1f63   :  { %v13110_v49 = vadd.f32 %v8410_v3, %v4469_v63  ;;  %v9874_v17 = vpop.f32.mrb[169].mxu1 }
0x1f64   :  { %v4472_v48 = vpop.f32.mrb[170].mxu1 }
0x1f65   :  { %v13112_v29 = vadd.f32 %v8410_v3, %v4472_v48  ;;  %v9875_v10 = vpop.f32.mrb[171].mxu1  ;;  %9896 = vmatprep.mubr.msk.f32.mxu0 %vm401_vm1, %v13110_v49 }
0x1f67   :  { %v10731_v20 = vpack.i.bf16 %v13112_v29, %v13110_v49 }
0x1f69   :  { %10732 = vrot.lane.b32.xlu1 %v10731_v20, %s11396_s2 }
0x1f6a   :  { %v4477_v56 = vpop.f32.mrb[172].mxu1 }
0x1f6b   :  { %v9878_v11 = vpop.f32.mrb[173].mxu1  ;;  %v13119_v28 = vadd.f32 %v8410_v3, %v4477_v56 }
0x1f6c   :  { %v4480_v8 = vpop.f32.mrb[174].mxu1 }
0x1f6d   :  { %v13121_v53 = vadd.f32 %v8410_v3, %v4480_v8  ;;  %v9879_v60 = vpop.f32.mrb[175].mxu1 }
0x1f6f   :  { %v10736_v62 = vpack.i.bf16 %v13121_v53, %v13119_v28 }
0x1f71   :  { %10737 = vrot.lane.b32.xlu1 %v10736_v62, %s11396_s2 }
0x1f72   :  { %v4485_v41 = vpop.f32.mrb[176].mxu1 }
0x1f73   :  { %v9882_v54 = vpop.f32.mrb[177].mxu1  ;;  %v13126_v46 = vadd.f32 %v8410_v3, %v4485_v41 }
0x1f74   :  { %v4488_v23 = vpop.f32.mrb[178].mxu1 }
0x1f75   :  { %v13128_v34 = vadd.f32 %v8410_v3, %v4488_v23  ;;  %v9883_v30 = vpop.f32.mrb[179].mxu1 }
0x1f77   :  { %v10741_v43 = vpack.i.bf16 %v13128_v34, %v13126_v46 }
0x1f79   :  { %10742 = vrot.lane.b32.xlu0 %v10741_v43, %s11396_s2 }
0x1fdb   :  { %v10733_v33 = vpop.permute.xlu1 %10732 }
0x1fdc   :  { %v10735_v57 = vunpack.i.h.bf16 %v10733_v33  ;;  %v10734_v13 = vunpack.i.l.bf16 %v10733_v33 }
0x1fde   :  { %v10519_v45 = vpack.c.bf16 %v10735_v57, %v10734_v13  ;;  %v11351_v57 = vld [vmem:[%s14353_s5 + $0x18] sm:$0xff] }
0x1fe0   :  { %10521 = vmatprep.subr.msk.bf16.mxu0 %vm11689_vm2, %v10519_v45 }
0x1fe1   :  { %10524 = vmatpush3.bf16.xpose.msk.msra.mxu0 %vm11689_vm2, %v10519_v45  ;;  %v11352_v45 = vld [vmem:[%s14353_s5 + $0x10] sm:$0xff] }
0x1fe3   :  { %v10738_v42 = vpop.permute.xlu1 %10737 }
0x1fe4   :  { %v10740_v47 = vunpack.i.h.bf16 %v10738_v42  ;;  %v10739_v26 = vunpack.i.l.bf16 %v10738_v42 }
0x1fe6   :  { %v10525_v37 = vpack.c.bf16 %v10740_v47, %v10739_v26 }
0x1fe8   :  { %10527 = vmatprep.subr.msk.bf16.mxu0 %vm11689_vm2, %v10525_v37 }
0x1fe9   :  { %10530 = vmatpush3.bf16.xpose.msk.msra.mxu0 %vm11689_vm2, %v10525_v37 }
0x1feb   :  { %v10743_v2 = vpop.permute.xlu0 %10742 }
0x1fec   :  { %v10745_v18 = vunpack.i.h.bf16 %v10743_v2  ;;  %v10744_v61 = vunpack.i.l.bf16 %v10743_v2 }
0x1fee   :  { %v10531_v24 = vpack.c.bf16 %v10745_v18, %v10744_v61 }
0x1ff0   :  { %10533 = vmatprep.subr.msk.bf16.mxu0 %vm11689_vm2, %v10531_v24 }
0x1ff1   :  { %10536 = vmatpush3.bf16.xpose.msk.msra.mxu0 %vm11689_vm2, %v10531_v24  ;;  %v11353_v24 = vld [vmem:[%s14353_s5 + $0x28] sm:$0xff] }
0x1ff2   :  { %9905 = vmatprep.subr.bf16.mxu0 %v11394_v55 }
0x1ff8   :  { %9897 = vmatmul.mubr.msk.f32.vlgmr.msra.gmra.mrb[66].mxu0 %vm401_vm1, %v13112_v29 }
0x1ff9   :  { %9899 = vmatprep.mubr.msk.f32.mxu0 %vm401_vm1, %v13119_v28 }
0x1ffa   :  { %v4333_v19 = vpop.f32.mrb[140].mxu0 }
0x1ffb   :  { %v13151_v44 = vadd.f32 %v4333_v19, %v12942_v6  ;;  %v9846_v22 = vpop.f32.mrb[141].mxu0 }
0x1ffc   :  { %v4336_v25 = vpop.f32.mrb[142].mxu0  ;;  %9900 = vmatmul.mubr.msk.f32.gmra.mrb[152].mxu0 %vm401_vm1, %v13121_v53  ;;  %v11354_v22 = vld [vmem:[%s14353_s5 + $0x20] sm:$0xff] }
0x1ffd   :  { %v13156_v51 = vadd.f32 %v4336_v25, %v12944_v9  ;;  %v9847_v50 = vpop.f32.mrb[143].mxu0  ;;  %9902 = vmatprep.mubr.msk.f32.mxu0 %vm401_vm1, %v13126_v46 }
0x2000   :  { %9903 = vmatmul.mubr.msk.f32.gmra.mrb[154].mxu0 %vm401_vm1, %v13128_v34 }
0x2001   :  { %9911 = vmatprep.mubr.msk.bf16.mxu0 %vm11395_vm0, %v11394_v55 }
0x2002   :  { %v4341_v6 = vpop.f32.mrb[144].mxu0 }
0x2003   :  { %v13165_v12 = vadd.f32 %v4341_v6, %v12946_v0  ;;  %v9850_v31 = vpop.f32.mrb[145].mxu0 }
0x2004   :  { %v4344_v7 = vpop.f32.mrb[146].mxu0 }
0x2005   :  { %v13168_v3 = vadd.f32 %v4344_v7, %v12948_v15  ;;  %v9851_v9 = vpop.f32.mrb[147].mxu0  ;;  %v11349_v15 = vld [vmem:[%s14353_s5 + $0x8] sm:$0xff] }
0x2032   :  { %v4349_v63 = vpop.f32.mrb[148].mxu0 }
0x2033   :  { %v13171_v17 = vadd.f32 %v4349_v63, %v12950_v5  ;;  %v9854_v48 = vpop.f32.mrb[149].mxu0  ;;  %v11350_v5 = vld [vmem:[%s14353_s5] sm:$0xff] }
0x2034   :  { %v4352_v10 = vpop.f32.mrb[150].mxu0 }
0x2035   :  { %v13174_v20 = vadd.f32 %v4352_v10, %v12952_v32  ;;  %v9855_v56 = vpop.f32.mrb[151].mxu0 }
0x20cb   :  { %v9898_v11 = vpop.f32.mrb[66].mxu0 }
0x20cc   :  { %v4630_v8 = vmul.f32 0.17677669, %v9898_v11  ;;  %v4600_v0 = vpop.f32.mrb[67].mxu0 }
0x20cd   :  { %v4629_v60 = vmul.f32 0.17677669, %v4600_v0 }
0x20ce   :  { %v4636_v62 = vadd.f32 %v11349_v15, %v4630_v8 }
0x20cf   :  { %v4635_v41 = vadd.f32 %v11350_v5, %v4629_v60  ;;  %v9901_v54 = vpop.f32.mrb[152].mxu0 }
0x20d0   :  { %v4632_v23 = vmul.f32 0.17677669, %v9901_v54  ;;  %v4610_v30 = vpop.f32.mrb[153].mxu0  ;;  %v4644_v32 = vsel %vm533_vm3, %v4636_v62, -inf }
0x20d1   :  { %v4631_v43 = vmul.f32 0.17677669, %v4610_v30  ;;  %4645 = vmax.xlane.f32.xlu0 %v4644_v32  ;;  %v4641_v33 = vsel %vm533_vm3, %v4635_v41, -inf }
0x20d2   :  { %v4638_v13 = vadd.f32 %v11351_v57, %v4632_v23  ;;  %4642 = vmax.xlane.f32.xlu1 %v4641_v33 }
0x20d3   :  { %v4637_v42 = vadd.f32 %v11352_v45, %v4631_v43  ;;  %v9904_v47 = vpop.f32.mrb[154].mxu0 }
0x20d4   :  { %v4634_v26 = vmul.f32 0.17677669, %v9904_v47  ;;  %v4620_v37 = vpop.f32.mrb[155].mxu0  ;;  %v4650_v2 = vsel %vm533_vm3, %v4638_v13, -inf }
0x20d5   :  { %v4633_v18 = vmul.f32 0.17677669, %v4620_v37  ;;  %v4647_v61 = vsel %vm533_vm3, %v4637_v42, -inf }
0x20d6   :  { %v4640_v19 = vadd.f32 %v11353_v24, %v4634_v26  ;;  %4651 = vmax.xlane.f32.xlu1 %v4650_v2  ;;  %4648 = vmax.xlane.f32.xlu0 %v4647_v61  ;;  %v4711_v61 = vpack.c.bf16 %v13121_v53, %v13119_v28  ;;  %v4712_v24 = vpack.c.bf16 %v13128_v34, %v13126_v46  ;;  %v10902_v28 = vld [vmem:[%s14356_s8 + $0x78] sm:$0xff]  }
0x20d7   :  { %v4639_v25 = vadd.f32 %v11354_v22, %v4633_v18  ;;  %v10901_v22 = vld [vmem:[%s14356_s8 + $0x70] sm:$0xff]  }
0x20d8   :  { %v4656_v50 = vsel %vm533_vm3, %v4640_v19, -inf  ;;  %9924 = vmatpush3.bf16.msra.mxu1 %v10901_v22 }
0x20d9   :  { %v4653_v6 = vsel %vm533_vm3, %v4639_v25, -inf  ;;  %9925 = vmatprep.subr.bf16.mxu1 %v11394_v55 }
0x20da   :  { %4657 = vmax.xlane.f32.xlu1 %v4656_v50  ;;  %4654 = vmax.xlane.f32.xlu0 %v4653_v6 }
0x20dc   :  { %9926 = vmatpush3.bf16.msra.mxu1 %v10902_v28 }
0x20dd   :  { %9967 = vmatprep.subr.bf16.mxu1 %v11394_v55 }
0x215e   :  { %v4646_v31 = vpop.xlane.xlu0 %4645 }
0x215f   :  { %v4660_v7 = vsub.f32 %v4636_v62, %v4646_v31  ;;  %v4643_v9 = vpop.xlane.xlu1 %4642 }
0x2160   :  { %v4659_v63 = vsub.f32 %v4635_v41, %v4643_v9 }
0x2161   :  { %v4667_v48 = vmul.f32 1.442695, %v4660_v7 }
0x2162   :  { %v4665_v10 = vmul.f32 1.442695, %v4659_v63 }
0x2163   :  { %11177 = vpow2.f32 %v4667_v48  ;;  %v4652_v56 = vpop.xlane.xlu1 %4651  ;;  %v4649_v11 = vpop.xlane.xlu0 %4648 }
0x2164   :  { %11179 = vpow2.f32 %v4665_v10  ;;  %v4662_v8 = vsub.f32 %v4638_v13, %v4652_v56  ;;  %v4661_v0 = vsub.f32 %v4637_v42, %v4649_v11 }
0x2166   :  { %v4671_v60 = vmul.f32 1.442695, %v4662_v8  ;;  %v4669_v15 = vmul.f32 1.442695, %v4661_v0 }
0x2167   :  { %v4658_v5 = vpop.xlane.xlu1 %4657  ;;  %v4655_v54 = vpop.xlane.xlu0 %4654 }
0x2168   :  { %11181 = vpow2.f32 %v4671_v60  ;;  %v4664_v23 = vsub.f32 %v4640_v19, %v4658_v5  ;;  %v4663_v30 = vsub.f32 %v4639_v25, %v4655_v54  ;;  %v4710_v19 = vpack.c.bf16 %v13112_v29, %v13110_v49 }
0x2169   :  { %11183 = vpow2.f32 %v4669_v15 }
0x216a   :  { %v4675_v32 = vmul.f32 1.442695, %v4664_v23  ;;  %v4673_v62 = vmul.f32 1.442695, %v4663_v30 }
0x216c   :  { %11185 = vpow2.f32 %v4675_v32 }
0x216d   :  { %v11178_v41 = vpop.eup %11177  ;;  %11187 = vpow2.f32 %v4673_v62 }
0x216e   :  { %v11180_v43 = vpop.eup %11179  ;;  %v4680_v33 = vsel %vm533_vm3, %v11178_v41, 0.0 }
0x216f   :  { %4681 = vadd.xlane.f32.xlu1 %v4680_v33  ;;  %v4677_v57 = vsel %vm533_vm3, %v11180_v43, 0.0 }
0x2170   :  { %4678 = vadd.xlane.f32.xlu0 %v4677_v57 }
0x2172   :  { %v11182_v13 = vpop.eup %11181 }
0x2173   :  { %v11184_v45 = vpop.eup %11183  ;;  %v4686_v42 = vsel %vm533_vm3, %v11182_v13, 0.0 }
0x2174   :  { %4687 = vadd.xlane.f32.xlu1 %v4686_v42  ;;  %v4683_v47 = vsel %vm533_vm3, %v11184_v45, 0.0 }
0x2175   :  { %4684 = vadd.xlane.f32.xlu0 %v4683_v47 }
0x2176   :  { %v11186_v26 = vpop.eup %11185 }
0x2177   :  { %v11188_v37 = vpop.eup %11187  ;;  %v4692_v2 = vsel %vm533_vm3, %v11186_v26, 0.0 }
0x2178   :  { %4693 = vadd.xlane.f32.xlu1 %v4692_v2  ;;  %v4689_v18 = vsel %vm533_vm3, %v11188_v37, 0.0 }
0x2179   :  { %4690 = vadd.xlane.f32.xlu0 %v4689_v18 }
0x2189   :  { %4718 = vrot.lane.b32.xlu1 %v4711_v61, %s11397_s28 }
0x218d   :  { %4720 = vrot.lane.b32.xlu1 %v4712_v24, %s11397_s28  ;;  %v13247_v24 = vld [vmem:[%s14359_s11 + $0x8] sm:$0xff] }
0x218f   :  { %4716 = vrot.lane.b32.xlu0 %v4710_v19, %s11397_s28 }
0x21fc   :  { %v4682_v53 = vpop.xlane.xlu1 %4681 }
0x21fd   :  { %v4679_v49 = vpop.xlane.xlu0 %4678  ;;  %11189 = vrcp.f32 %v4682_v53  ;;  %v4892_v53 = vrot.slane %v13247_v24, %v12288_v58 }
0x21fe   :  { %11191 = vrcp.f32 %v4679_v49 }
0x2201   :  { %v4688_v29 = vpop.xlane.xlu1 %4687 }
0x2202   :  { %v4685_v46 = vpop.xlane.xlu0 %4684  ;;  %11193 = vrcp.f32 %v4688_v29 }
0x2203   :  { %11195 = vrcp.f32 %v4685_v46 }
0x2205   :  { %v4694_v34 = vpop.xlane.xlu1 %4693 }
0x2206   :  { %v4691_v25 = vpop.xlane.xlu0 %4690  ;;  %11197 = vrcp.f32 %v4694_v34 }
0x2207   :  { %v11190_v6 = vpop.eup %11189  ;;  %11199 = vrcp.f32 %v4691_v25 }
0x2208   :  { %v11192_v7 = vpop.eup %11191  ;;  %v4702_v9 = vmul.f32 %v11190_v6, %v11178_v41 }
0x2209   :  { %v4719_v31 = vpop.permute.xlu1 %4718  ;;  %v4701_v63 = vmul.f32 %v11192_v7, %v11180_v43 }
0x220a   :  { %v4717_v50 = vpop.permute.xlu0 %4716 }
0x220b   :  { %9906 = vmatpush3.bf16.msra.mxu0 %v4717_v50  ;;  %v4707_v56 = vpack.c.bf16 %v4702_v9, %v4701_v63 }
0x220c   :  { %9907 = vmatprep.subr.bf16.mxu0 %v11394_v55  ;;  %v11194_v10 = vpop.eup %11193 }
0x220d   :  { %v4721_v48 = vpop.permute.xlu1 %4720  ;;  %v11196_v11 = vpop.eup %11195  ;;  %v4704_v0 = vmul.f32 %v11194_v10, %v11182_v13 }
0x220e   :  { %v4703_v8 = vmul.f32 %v11196_v11, %v11184_v45 }
0x220f   :  { %9908 = vmatpush3.bf16.msra.mxu0 %v4719_v31 }
0x2210   :  { %9909 = vmatprep.subr.bf16.mxu0 %v11394_v55  ;;  %v11198_v60 = vpop.eup %11197  ;;  %v4708_v15 = vpack.c.bf16 %v4704_v0, %v4703_v8 }
0x2211   :  { %v11200_v5 = vpop.eup %11199  ;;  %v4706_v23 = vmul.f32 %v11198_v60, %v11186_v26 }
0x2212   :  { %v4705_v54 = vmul.f32 %v11200_v5, %v11188_v37 }
0x2213   :  { %9910 = vmatpush3.bf16.msra.mxu0 %v4721_v48 }
0x2214   :  { %9939 = vmatprep.subr.bf16.mxu0 %v11394_v55  ;;  %v4709_v30 = vpack.c.bf16 %v4706_v23, %v4705_v54  ;;  %v10903_v23 = vld [vmem:[%s14357_s9 + $0x40] sm:$0xff]  }
0x2216   :  { %9912 = vmatmul.mubr.msk.bf16.vlgmr.msra.gmra.mrb[156].mxu0 %vm533_vm3, %v4707_v56 }
0x2217   :  { %9915 = vmatprep.mubr.msk.bf16.mxu0 %vm11395_vm0, %v11394_v55  ;;  %9940 = vmatpush3.bf16.msra.mxu0 %v10903_v23 }
0x2218   :  { %9941 = vmatprep.subr.bf16.mxu0 %v11394_v55 }
0x221e   :  { %9916 = vmatmul.mubr.msk.bf16.gmra.mrb[160].mxu0 %vm533_vm3, %v4708_v15 }
0x221f   :  { %9919 = vmatprep.mubr.msk.bf16.mxu0 %vm11395_vm0, %v11394_v55 }
0x2226   :  { %9920 = vmatmul.mubr.msk.bf16.gmra.mrb[164].mxu0 %vm533_vm3, %v4709_v30 }
0x2227   :  { %9955 = vmatprep.mubr.msk.bf16.mxu0 %vm11395_vm0, %v11394_v55 }
0x22e9   :  { %v4768_v32 = vpop.f32.mrb[156].mxu0 }
0x22ea   :  { %v9913_v62 = vpop.f32.mrb[157].mxu0 }
0x22eb   :  { %v4771_v41 = vpop.f32.mrb[158].mxu0  ;;  %v10906_v62 = vld [vmem:[%s14357_s9 + $0x58] sm:$0xff]  }
0x22ec   :  { %v4791_v43 = vpack.c.bf16 %v4771_v41, %v4768_v32  ;;  %v9914_v33 = vpop.f32.mrb[159].mxu0  ;;  %v10905_v32 = vld [vmem:[%s14357_s9 + $0x50] sm:$0xff]   ;;  %v10907_v41 = vld [vmem:[%s14357_s9 + $0x60] sm:$0xff]  }
0x22ed   :  { %v10909_v33 = vld [vmem:[%s14357_s9 + $0x70] sm:$0xff]  }
0x22ee   :  { %9928 = vmatmul.mubr.msk.bf16.vlgmr.msra.gmra.mrb[180].mxu1 %vm401_vm1, %v4791_v43  ;;  %v10908_v43 = vld [vmem:[%s14357_s9 + $0x68] sm:$0xff]  }
0x22ef   :  { %9931 = vmatprep.mubr.msk.bf16.mxu1 %vm11395_vm0, %v11394_v55 }
0x22f1   :  { %v4776_v57 = vpop.f32.mrb[160].mxu0 }
0x22f2   :  { %v9917_v13 = vpop.f32.mrb[161].mxu0 }
0x22f3   :  { %v4779_v45 = vpop.f32.mrb[162].mxu0  ;;  %v10911_v13 = vld [vmem:[%s14358_s10 + $0x40] sm:$0xff]  }
0x22f4   :  { %v4792_v42 = vpack.c.bf16 %v4779_v45, %v4776_v57  ;;  %v9918_v47 = vpop.f32.mrb[163].mxu0  ;;  %v10910_v57 = vld [vmem:[%s14357_s9 + $0x78] sm:$0xff]   ;;  %9968 = vmatpush3.bf16.msra.mxu1 %v10911_v13  ;;  %v10912_v45 = vld [vmem:[%s14358_s10 + $0x48] sm:$0xff]  }
0x22f5   :  { %9969 = vmatprep.subr.bf16.mxu1 %v11394_v55  ;;  %v10914_v47 = vld [vmem:[%s14358_s10 + $0x58] sm:$0xff]  }
0x22f6   :  { %9932 = vmatmul.mubr.msk.bf16.gmra.mrb[184].mxu1 %vm401_vm1, %v4792_v42  ;;  %v10913_v42 = vld [vmem:[%s14358_s10 + $0x50] sm:$0xff]  }
0x22f7   :  { %9935 = vmatprep.mubr.msk.bf16.mxu1 %vm11395_vm0, %v11394_v55 }
0x22f8   :  { %9970 = vmatpush3.bf16.msra.mxu1 %v10912_v45 }
0x22f9   :  { %v4784_v26 = vpop.f32.mrb[164].mxu0  ;;  %9971 = vmatprep.subr.bf16.mxu1 %v11394_v55 }
0x22fa   :  { %v9921_v37 = vpop.f32.mrb[165].mxu0 }
0x22fb   :  { %v4787_v2 = vpop.f32.mrb[166].mxu0  ;;  %v10916_v37 = vld [vmem:[%s14358_s10 + $0x68] sm:$0xff]  }
0x22fc   :  { %v4793_v18 = vpack.c.bf16 %v4787_v2, %v4784_v26  ;;  %v9922_v61 = vpop.f32.mrb[167].mxu0  ;;  %9972 = vmatpush3.bf16.msra.mxu1 %v10913_v42  ;;  %v10915_v26 = vld [vmem:[%s14358_s10 + $0x60] sm:$0xff]  }
0x22fd   :  { %9973 = vmatprep.subr.bf16.mxu1 %v11394_v55 }
0x22fe   :  { %9936 = vmatmul.mubr.msk.bf16.gmra.mrb[188].mxu1 %vm401_vm1, %v4793_v18 }
0x22ff   :  { %9983 = vmatprep.mubr.msk.bf16.mxu1 %vm11395_vm0, %v11394_v55 }
0x2300   :  { %9974 = vmatpush3.bf16.msra.mxu1 %v10914_v47 }
0x2301   :  { %9975 = vmatprep.subr.bf16.mxu1 %v11394_v55 }
0x2304   :  { %9976 = vmatpush3.bf16.msra.mxu1 %v10915_v26 }
0x2305   :  { %9977 = vmatprep.subr.bf16.mxu1 %v11394_v55 }
0x2308   :  { %9978 = vmatpush3.bf16.msra.mxu1 %v10916_v37  ;;  %v4990_v37 = vrot.slane %v13247_v24, %v12402_v59 }
0x2309   :  { %9979 = vmatprep.subr.bf16.mxu1 %v11394_v55 }
0x23c1   :  { %v4854_v19 = vpop.f32.mrb[180].mxu1 }
0x23c2   :  { %v4877_v22 = vadd.f32 %v4854_v19, %v13151_v44  ;;  %v9929_v28 = vpop.f32.mrb[181].mxu1 }
0x23c3   :  { %v4857_v49 = vpop.f32.mrb[182].mxu1 }
0x23c4   :  { %v4883_v29 = vadd.f32 %v4877_v22, %v12537_v36  ;;  %v4878_v46 = vadd.f32 %v4857_v49, %v13156_v51  ;;  %v9930_v34 = vpop.f32.mrb[183].mxu1 }
0x23c6   :  { %v4884_v25 = vadd.f32 %v4878_v46, %v12539_v4  ;;  %v13255_v50 = vadd.f32 %v4892_v53, %v4883_v29 }
0x23c8   :  { %4899 = vadd.xlane.f32.xlu0 %v13255_v50  ;;  %v13258_v6 = vadd.f32 %v4892_v53, %v4884_v25  ;;  %v4917_v36 = vmul.f32 %v13255_v50, %v13255_v50 }
0x23c9   :  { %v4862_v31 = vpop.f32.mrb[184].mxu1 }
0x23ca   :  { %v4879_v44 = vadd.f32 %v4862_v31, %v13165_v12  ;;  %4901 = vadd.xlane.f32.xlu1 %v13258_v6  ;;  %v9933_v7 = vpop.f32.mrb[185].mxu1  ;;  %v4918_v10 = vmul.f32 %v13258_v6, %v13258_v6 }
0x23cb   :  { %v4865_v9 = vpop.f32.mrb[186].mxu1 }
0x23cc   :  { %v4885_v51 = vadd.f32 %v4879_v44, %v12557_v38  ;;  %v4880_v4 = vadd.f32 %v4865_v9, %v13168_v3  ;;  %4923 = vadd.xlane.f32.xlu0 %v4917_v36  ;;  %v9934_v63 = vpop.f32.mrb[187].mxu1 }
0x23ce   :  { %v4886_v48 = vadd.f32 %v4880_v4, %v12559_v39  ;;  %v13269_v56 = vadd.f32 %v4892_v53, %v4885_v51 }
0x23d0   :  { %4925 = vadd.xlane.f32.xlu0 %v4918_v10  ;;  %4903 = vadd.xlane.f32.xlu1 %v13269_v56  ;;  %v4919_v38 = vmul.f32 %v13269_v56, %v13269_v56  ;;  %v13275_v3 = vadd.f32 %v4892_v53, %v4886_v48 }
0x23d1   :  { %v4870_v12 = vpop.f32.mrb[188].mxu1 }
0x23d2   :  { %v4881_v11 = vadd.f32 %v4870_v12, %v13171_v17  ;;  %v9937_v8 = vpop.f32.mrb[189].mxu1  ;;  %v4920_v17 = vmul.f32 %v13275_v3, %v13275_v3 }
0x23d3   :  { %v4873_v0 = vpop.f32.mrb[190].mxu1 }
0x23d4   :  { %v4887_v39 = vadd.f32 %v4881_v11, %v12577_v27  ;;  %v4882_v60 = vadd.f32 %v4873_v0, %v13174_v20  ;;  %4927 = vadd.xlane.f32.xlu1 %v4919_v38  ;;  %4905 = vadd.xlane.f32.xlu0 %v13275_v3  ;;  %v9938_v15 = vpop.f32.mrb[191].mxu1 }
0x23d6   :  { %v4888_v5 = vadd.f32 %v4882_v60, %v12579_v16  ;;  %v13283_v54 = vadd.f32 %v4892_v53, %v4887_v39  ;;  %v10904_v16 = vld [vmem:[%s14357_s9 + $0x48] sm:$0xff]  }
0x23d7   :  { %9942 = vmatpush3.bf16.msra.mxu0 %v10904_v16 }
0x23d8   :  { %4929 = vadd.xlane.f32.xlu0 %v4920_v17  ;;  %4907 = vadd.xlane.f32.xlu1 %v13283_v54  ;;  %v4921_v27 = vmul.f32 %v13283_v54, %v13283_v54  ;;  %v13291_v20 = vadd.f32 %v4892_v53, %v4888_v5 }
0x23d9   :  { %9943 = vmatprep.subr.bf16.mxu0 %v11394_v55 }
0x23da   :  { %v4922_v30 = vmul.f32 %v13291_v20, %v13291_v20 }
0x23db   :  { %9944 = vmatpush3.bf16.msra.mxu0 %v10905_v32 }
0x23dc   :  { %4931 = vadd.xlane.f32.xlu1 %v4921_v27  ;;  %4909 = vadd.xlane.f32.xlu0 %v13291_v20 }
0x23dd   :  { %9945 = vmatprep.subr.bf16.mxu0 %v11394_v55 }
0x23df   :  { %9946 = vmatpush3.bf16.msra.mxu0 %v10906_v62 }
0x23e0   :  { %4933 = vadd.xlane.f32.xlu0 %v4922_v30  ;;  %9947 = vmatprep.subr.bf16.mxu0 %v11394_v55 }
0x23e3   :  { %9948 = vmatpush3.bf16.msra.mxu0 %v10907_v41  ;;  %v4980_v41 = vrot.slane %v13247_v24, %v12396_v35 }
0x23e4   :  { %9949 = vmatprep.subr.bf16.mxu0 %v11394_v55 }
0x23e7   :  { %9950 = vmatpush3.bf16.msra.mxu0 %v10908_v43 }
0x23e8   :  { %9951 = vmatprep.subr.bf16.mxu0 %v11394_v55 }
0x23eb   :  { %9952 = vmatpush3.bf16.msra.mxu0 %v10909_v33 }
0x23ec   :  { %9953 = vmatprep.subr.bf16.mxu0 %v11394_v55 }
0x23ef   :  { %9954 = vmatpush3.bf16.msra.mxu0 %v10910_v57 }
0x23f0   :  { %9995 = vmatprep.subr.bf16.mxu0 %v11394_v55 }
0x2455   :  { %v4900_v2 = vpop.xlane.xlu0 %4899 }
0x2456   :  { %v4911_v18 = vmul.f32 0.0078125, %v4900_v2 }
0x2457   :  { %v4902_v61 = vpop.xlane.xlu1 %4901 }
0x2458   :  { %v4947_v22 = vmul.f32 %v4911_v18, %v4911_v18  ;;  %v4912_v28 = vmul.f32 0.0078125, %v4902_v61  ;;  %v4941_v15 = vsub.f32 %v13255_v50, %v4911_v18 }
0x2459   :  { %v4924_v19 = vpop.xlane.xlu0 %4923 }
0x245a   :  { %v4935_v53 = vmul.f32 0.0078125, %v4924_v19  ;;  %v4948_v34 = vmul.f32 %v4912_v28, %v4912_v28  ;;  %v4942_v33 = vsub.f32 %v13258_v6, %v4912_v28 }
0x245c   :  { %v4953_v49 = vsub.f32 %v4935_v53, %v4947_v22 }
0x245d   :  { %v4926_v29 = vpop.xlane.xlu0 %4925  ;;  %v4904_v46 = vpop.xlane.xlu1 %4903 }
0x245e   :  { %v4959_v25 = vadd.f32 1e-05, %v4953_v49  ;;  %v4936_v31 = vmul.f32 0.0078125, %v4926_v29  ;;  %v4913_v44 = vmul.f32 0.0078125, %v4904_v46 }
0x2460   :  { %11201 = vrsqrt.f32 %v4959_v25  ;;  %v4954_v7 = vsub.f32 %v4936_v31, %v4948_v34  ;;  %v4949_v4 = vmul.f32 %v4913_v44, %v4913_v44  ;;  %v4943_v18 = vsub.f32 %v13269_v56, %v4913_v44 }
0x2461   :  { %v4928_v36 = vpop.xlane.xlu1 %4927  ;;  %v4906_v9 = vpop.xlane.xlu0 %4905 }
0x2462   :  { %v4960_v51 = vadd.f32 1e-05, %v4954_v7  ;;  %v4937_v63 = vmul.f32 0.0078125, %v4928_v36  ;;  %v4914_v48 = vmul.f32 0.0078125, %v4906_v9 }
0x2464   :  { %11203 = vrsqrt.f32 %v4960_v51  ;;  %v4955_v10 = vsub.f32 %v4937_v63, %v4949_v4  ;;  %v4950_v38 = vmul.f32 %v4914_v48, %v4914_v48  ;;  %v4944_v49 = vsub.f32 %v13275_v3, %v4914_v48 }
0x2465   :  { %v4930_v12 = vpop.xlane.xlu0 %4929  ;;  %v4908_v11 = vpop.xlane.xlu1 %4907 }
0x2466   :  { %v4961_v8 = vadd.f32 1e-05, %v4955_v10  ;;  %v4938_v0 = vmul.f32 0.0078125, %v4930_v12  ;;  %v4915_v39 = vmul.f32 0.0078125, %v4908_v11 }
0x2468   :  { %11205 = vrsqrt.f32 %v4961_v8  ;;  %v4956_v60 = vsub.f32 %v4938_v0, %v4950_v38  ;;  %v4951_v16 = vmul.f32 %v4915_v39, %v4915_v39  ;;  %v4945_v56 = vsub.f32 %v13283_v54, %v4915_v39  ;;  %v10918_v8 = vld [vmem:[%s14358_s10 + $0x78] sm:$0xff]  }
0x2469   :  { %v4932_v5 = vpop.xlane.xlu1 %4931  ;;  %v4910_v17 = vpop.xlane.xlu0 %4909  ;;  %v5020_v38 = vrot.slane %v13247_v24, %v12443_v40 }
0x246a   :  { %v11202_v23 = vpop.eup %11201  ;;  %v4962_v27 = vadd.f32 1e-05, %v4956_v60  ;;  %v4939_v30 = vmul.f32 0.0078125, %v4932_v5  ;;  %v4916_v32 = vmul.f32 0.0078125, %v4910_v17 }
0x246b   :  { %v4971_v62 = vmul.f32 %v11202_v23, %v4941_v15 }
0x246c   :  { %11207 = vrsqrt.f32 %v4962_v27  ;;  %v4957_v43 = vsub.f32 %v4939_v30, %v4951_v16  ;;  %v4952_v42 = vmul.f32 %v4916_v32, %v4916_v32  ;;  %v4946_v3 = vsub.f32 %v13291_v20, %v4916_v32  ;;  %v10917_v20 = vld [vmem:[%s14358_s10 + $0x70] sm:$0xff]  }
0x246d   :  { %v4934_v57 = vpop.xlane.xlu0 %4933  ;;  %v4981_v26 = vmul.f32 %v4980_v41, %v4971_v62  ;;  %9980 = vmatpush3.bf16.msra.mxu1 %v10917_v20 }
0x246e   :  { %v11204_v13 = vpop.eup %11203  ;;  %v4963_v45 = vadd.f32 1e-05, %v4957_v43  ;;  %v4940_v50 = vmul.f32 0.0078125, %v4934_v57  ;;  %9981 = vmatprep.subr.bf16.mxu1 %v11394_v55 }
0x246f   :  { %v4972_v47 = vmul.f32 %v11204_v13, %v4942_v33  ;;  %v13356_v53 = vadd.f32 %v4990_v37, %v4981_v26 }
0x2470   :  { %11209 = vrsqrt.f32 %v4963_v45  ;;  %v4958_v2 = vsub.f32 %v4940_v50, %v4952_v42 }
0x2471   :  { %v4982_v61 = vmul.f32 %v4980_v41, %v4972_v47  ;;  %9982 = vmatpush3.bf16.msra.mxu1 %v10918_v8 }
0x2472   :  { %v11206_v19 = vpop.eup %11205  ;;  %v4964_v22 = vadd.f32 1e-05, %v4958_v2 }
0x2473   :  { %v13358_v6 = vadd.f32 %v4990_v37, %v4982_v61  ;;  %v4973_v28 = vmul.f32 %v11206_v19, %v4943_v18 }
0x2474   :  { %11211 = vrsqrt.f32 %v4964_v22  ;;  %v10919_v22 = vld [vmem:[%s14354_s6 + $0x200] sm:$0xff]  }
0x2475   :  { %v4997_v29 = vpack.c.bf16 %v13358_v6, %v13356_v53  ;;  %v4983_v25 = vmul.f32 %v4980_v41, %v4973_v28  ;;  %v5155_v28 = vrot.slane %v13247_v24, %v12456_v1 }
0x2476   :  { %v11208_v46 = vpop.eup %11207 }
0x2477   :  { %9956 = vmatmul.mubr.bf16.vlgmr.msra.gmra.mrb[168].mxu0 %v4997_v29  ;;  %v4974_v34 = vmul.f32 %v11208_v46, %v4944_v49  ;;  %v13366_v7 = vadd.f32 %v4990_v37, %v4983_v25 }
0x2478   :  { %9959 = vmatprep.mubr.msk.bf16.mxu0 %vm11395_vm0, %v11394_v55  ;;  %9996 = vmatpush3.bf16.msra.mxu0 %v10919_v22 }
0x2479   :  { %v4984_v31 = vmul.f32 %v4980_v41, %v4974_v34  ;;  %9997 = vmatprep.subr.bf16.mxu0 %v11394_v55 }
0x247a   :  { %v11210_v44 = vpop.eup %11209 }
0x247b   :  { %v13368_v36 = vadd.f32 %v4990_v37, %v4984_v31  ;;  %v4975_v9 = vmul.f32 %v11210_v44, %v4945_v56 }
0x247d   :  { %v4998_v51 = vpack.c.bf16 %v13368_v36, %v13366_v7  ;;  %v4985_v48 = vmul.f32 %v4980_v41, %v4975_v9 }
0x247e   :  { %v11212_v4 = vpop.eup %11211 }
0x247f   :  { %9960 = vmatmul.mubr.bf16.gmra.mrb[172].mxu0 %v4998_v51  ;;  %v4976_v63 = vmul.f32 %v11212_v4, %v4946_v3  ;;  %v13375_v10 = vadd.f32 %v4990_v37, %v4985_v48 }
0x2480   :  { %9963 = vmatprep.mubr.msk.bf16.mxu0 %vm11395_vm0, %v11394_v55 }
0x2481   :  { %v4986_v54 = vmul.f32 %v4980_v41, %v4976_v63 }
0x2483   :  { %v13377_v12 = vadd.f32 %v4990_v37, %v4986_v54 }
0x2485   :  { %v4999_v11 = vpack.c.bf16 %v13377_v12, %v13375_v10 }
0x2487   :  { %9964 = vmatmul.mubr.bf16.gmra.mrb[176].mxu0 %v4999_v11 }
0x2488   :  { %10011 = vmatprep.mubr.msk.bf16.mxu0 %vm11395_vm0, %v11394_v55 }
0x254a   :  { %v5103_v0 = vpop.f32.mrb[168].mxu0 }
0x254b   :  { %v5104_v39 = vadd.f32 %v5103_v0, %v5020_v38  ;;  %v9957_v60 = vpop.f32.mrb[169].mxu0 }
0x254c   :  { %v5106_v15 = vpop.f32.mrb[170].mxu0 }
0x254d   :  { %v5107_v5 = vadd.f32 %v5106_v15, %v5020_v38  ;;  %v9958_v17 = vpop.f32.mrb[171].mxu0  ;;  %v5126_v23 = vmax.f32 %v5104_v39, 0.0 }
0x254f   :  { %v5127_v27 = vmax.f32 %v5107_v5, 0.0  ;;  %v10920_v5 = vld [vmem:[%s14354_s6 + $0x208] sm:$0xff]  }
0x2550   :  { %9998 = vmatpush3.bf16.msra.mxu0 %v10920_v5 }
0x2551   :  { %v5132_v16 = vpack.c.bf16 %v5127_v27, %v5126_v23  ;;  %9999 = vmatprep.subr.bf16.mxu0 %v11394_v55 }
0x2552   :  { %v5111_v30 = vpop.f32.mrb[172].mxu0 }
0x2553   :  { %v5112_v32 = vadd.f32 %v5111_v30, %v5020_v38  ;;  %v9961_v62 = vpop.f32.mrb[173].mxu0  ;;  %9984 = vmatmul.mubr.bf16.vlgmr.msra.gmra.mrb[192].mxu1 %v5132_v16  ;;  %v10923_v16 = vld [vmem:[%s14354_s6 + $0x220] sm:$0xff]   ;;  %v10924_v30 = vld [vmem:[%s14354_s6 + $0x228] sm:$0xff]  }
0x2554   :  { %v5114_v41 = vpop.f32.mrb[174].mxu0  ;;  %9987 = vmatprep.mubr.msk.bf16.mxu1 %vm11395_vm0, %v11394_v55  ;;  %v10926_v62 = vld [vmem:[%s14354_s6 + $0x238] sm:$0xff]  }
0x2555   :  { %v5115_v43 = vadd.f32 %v5114_v41, %v5020_v38  ;;  %v9962_v33 = vpop.f32.mrb[175].mxu0  ;;  %v5128_v57 = vmax.f32 %v5112_v32, 0.0  ;;  %v10925_v32 = vld [vmem:[%s14354_s6 + $0x230] sm:$0xff]  }
0x2557   :  { %v5129_v13 = vmax.f32 %v5115_v43, 0.0 }
0x2559   :  { %v5133_v45 = vpack.c.bf16 %v5129_v13, %v5128_v57 }
0x255a   :  { %v5119_v42 = vpop.f32.mrb[176].mxu0 }
0x255b   :  { %v5120_v50 = vadd.f32 %v5119_v42, %v5020_v38  ;;  %v9965_v47 = vpop.f32.mrb[177].mxu0  ;;  %9988 = vmatmul.mubr.bf16.gmra.mrb[196].mxu1 %v5133_v45 }
0x255c   :  { %v5122_v26 = vpop.f32.mrb[178].mxu0  ;;  %9991 = vmatprep.mubr.msk.bf16.mxu1 %vm11395_vm0, %v11394_v55 }
0x255d   :  { %v5123_v37 = vadd.f32 %v5122_v26, %v5020_v38  ;;  %v9966_v2 = vpop.f32.mrb[179].mxu0  ;;  %v5130_v18 = vmax.f32 %v5120_v50, 0.0 }
0x255f   :  { %v5131_v61 = vmax.f32 %v5123_v37, 0.0 }
0x2561   :  { %v5134_v19 = vpack.c.bf16 %v5131_v61, %v5130_v18 }
0x2563   :  { %9992 = vmatmul.mubr.bf16.gmra.mrb[200].mxu1 %v5134_v19 }
0x2626   :  { %v5238_v49 = vpop.f32.mrb[192].mxu1 }
0x2627   :  { %v5239_v29 = vadd.f32 %v5238_v49, %v5155_v28  ;;  %v9985_v46 = vpop.f32.mrb[193].mxu1 }
0x2628   :  { %v5241_v34 = vpop.f32.mrb[194].mxu1 }
0x2629   :  { %v13403_v25 = vadd.f32 %v5239_v29, %v13356_v53  ;;  %v5242_v56 = vadd.f32 %v5241_v34, %v5155_v28  ;;  %v9986_v31 = vpop.f32.mrb[195].mxu1 }
0x262b   :  { %v13406_v44 = vadd.f32 %v5242_v56, %v13358_v6  ;;  %5267 = vadd.xlane.f32.xlu1 %v13403_v25  ;;  %v5285_v9 = vmul.f32 %v13403_v25, %v13403_v25 }
0x262d   :  { %5269 = vadd.xlane.f32.xlu0 %v13406_v44  ;;  %v5286_v53 = vmul.f32 %v13406_v44, %v13406_v44 }
0x262e   :  { %v5246_v3 = vpop.f32.mrb[196].mxu1 }
0x262f   :  { %v5247_v51 = vadd.f32 %v5246_v3, %v5155_v28  ;;  %5291 = vadd.xlane.f32.xlu1 %v5285_v9  ;;  %v9989_v4 = vpop.f32.mrb[197].mxu1 }
0x2630   :  { %v5249_v63 = vpop.f32.mrb[198].mxu1 }
0x2631   :  { %v13415_v48 = vadd.f32 %v5247_v51, %v13366_v7  ;;  %v5250_v6 = vadd.f32 %v5249_v63, %v5155_v28  ;;  %5293 = vadd.xlane.f32.xlu0 %v5286_v53  ;;  %v9990_v54 = vpop.f32.mrb[199].mxu1 }
0x2633   :  { %v13418_v11 = vadd.f32 %v5250_v6, %v13368_v36  ;;  %5271 = vadd.xlane.f32.xlu1 %v13415_v48  ;;  %v5287_v20 = vmul.f32 %v13415_v48, %v13415_v48 }
0x2635   :  { %5273 = vadd.xlane.f32.xlu0 %v13418_v11  ;;  %v5288_v7 = vmul.f32 %v13418_v11, %v13418_v11 }
0x2636   :  { %v5254_v8 = vpop.f32.mrb[200].mxu1 }
0x2637   :  { %v5255_v38 = vadd.f32 %v5254_v8, %v5155_v28  ;;  %5295 = vadd.xlane.f32.xlu1 %v5287_v20  ;;  %v9993_v0 = vpop.f32.mrb[201].mxu1 }
0x2638   :  { %v5257_v39 = vpop.f32.mrb[202].mxu1  ;;  %v5348_v0 = vrot.slane %v13247_v24, %v12525_v14 }
0x2639   :  { %v13427_v60 = vadd.f32 %v5255_v38, %v13375_v10  ;;  %v5258_v36 = vadd.f32 %v5257_v39, %v5155_v28  ;;  %5297 = vadd.xlane.f32.xlu0 %v5288_v7  ;;  %v9994_v15 = vpop.f32.mrb[203].mxu1  ;;  %v10921_v10 = vld [vmem:[%s14354_s6 + $0x210] sm:$0xff]  }
0x263a   :  { %10000 = vmatpush3.bf16.msra.mxu0 %v10921_v10 }
0x263b   :  { %v13433_v17 = vadd.f32 %v5258_v36, %v13377_v12  ;;  %5275 = vadd.xlane.f32.xlu1 %v13427_v60  ;;  %v5289_v23 = vmul.f32 %v13427_v60, %v13427_v60  ;;  %10001 = vmatprep.subr.bf16.mxu0 %v11394_v55  ;;  %v10922_v12 = vld [vmem:[%s14354_s6 + $0x218] sm:$0xff]  }
0x263d   :  { %5277 = vadd.xlane.f32.xlu0 %v13433_v17  ;;  %v5290_v27 = vmul.f32 %v13433_v17, %v13433_v17 }
0x263e   :  { %10002 = vmatpush3.bf16.msra.mxu0 %v10922_v12 }
0x263f   :  { %5299 = vadd.xlane.f32.xlu1 %v5289_v23  ;;  %10003 = vmatprep.subr.bf16.mxu0 %v11394_v55 }
0x2641   :  { %5301 = vadd.xlane.f32.xlu0 %v5290_v27 }
0x2642   :  { %10004 = vmatpush3.bf16.msra.mxu0 %v10923_v16 }
0x2643   :  { %10005 = vmatprep.subr.bf16.mxu0 %v11394_v55 }
0x2646   :  { %10006 = vmatpush3.bf16.msra.mxu0 %v10924_v30 }
0x2647   :  { %10007 = vmatprep.subr.bf16.mxu0 %v11394_v55 }
0x264a   :  { %10008 = vmatpush3.bf16.msra.mxu0 %v10925_v32 }
0x264b   :  { %10009 = vmatprep.subr.bf16.mxu0 %v11394_v55 }
0x264e   :  { %10010 = vmatpush3.bf16.msra.mxu0 %v10926_v62 }
0x264f   :  { %10062 = vmatprep.subr.bf16.mxu0 %v11394_v55 }
0x26b8   :  { %v5268_v41 = vpop.xlane.xlu1 %5267 }
0x26b9   :  { %v5279_v43 = vmul.f32 0.0078125, %v5268_v41 }
0x26ba   :  { %v5270_v33 = vpop.xlane.xlu0 %5269 }
0x26bb   :  { %v5280_v57 = vmul.f32 0.0078125, %v5270_v33  ;;  %v5315_v45 = vmul.f32 %v5279_v43, %v5279_v43  ;;  %v5309_v20 = vsub.f32 %v13403_v25, %v5279_v43  ;;  %v5358_v25 = vrot.slane %v13247_v24, %v12531_v21 }
0x26bc   :  { %v5292_v13 = vpop.xlane.xlu1 %5291 }
0x26bd   :  { %v5303_v42 = vmul.f32 0.0078125, %v5292_v13  ;;  %v5316_v47 = vmul.f32 %v5280_v57, %v5280_v57  ;;  %v5310_v15 = vsub.f32 %v13406_v44, %v5280_v57 }
0x26be   :  { %v5294_v50 = vpop.xlane.xlu0 %5293 }
0x26bf   :  { %v5321_v26 = vsub.f32 %v5303_v42, %v5315_v45  ;;  %v5304_v37 = vmul.f32 0.0078125, %v5294_v50  ;;  %v10927_v42 = vld [vmem:[%s14354_s6 + $0x240] sm:$0xff]  }
0x26c0   :  { %v5272_v2 = vpop.xlane.xlu1 %5271 }
0x26c1   :  { %v5327_v18 = vadd.f32 1e-05, %v5321_v26  ;;  %v5322_v61 = vsub.f32 %v5304_v37, %v5316_v47  ;;  %v5281_v19 = vmul.f32 0.0078125, %v5272_v2  ;;  %v10928_v2 = vld [vmem:[%s14354_s6 + $0x248] sm:$0xff]  }
0x26c2   :  { %v5274_v22 = vpop.xlane.xlu0 %5273 }
0x26c3   :  { %11213 = vrsqrt.f32 %v5327_v18  ;;  %v5328_v28 = vadd.f32 1e-05, %v5322_v61  ;;  %v5282_v49 = vmul.f32 0.0078125, %v5274_v22  ;;  %v5317_v46 = vmul.f32 %v5281_v19, %v5281_v19 }
0x26c4   :  { %v5296_v29 = vpop.xlane.xlu1 %5295  ;;  %v5311_v13 = vsub.f32 %v13415_v48, %v5281_v19 }
0x26c5   :  { %11215 = vrsqrt.f32 %v5328_v28  ;;  %v5305_v34 = vmul.f32 0.0078125, %v5296_v29  ;;  %v5318_v31 = vmul.f32 %v5282_v49, %v5282_v49  ;;  %v5312_v50 = vsub.f32 %v13418_v11, %v5282_v49  ;;  %v10929_v28 = vld [vmem:[%s14354_s6 + $0x250] sm:$0xff]  }
0x26c6   :  { %v5298_v56 = vpop.xlane.xlu0 %5297 }
0x26c7   :  { %v5323_v9 = vsub.f32 %v5305_v34, %v5317_v46  ;;  %v5306_v3 = vmul.f32 0.0078125, %v5298_v56 }
0x26c8   :  { %v5276_v51 = vpop.xlane.xlu1 %5275 }
0x26c9   :  { %v5329_v4 = vadd.f32 1e-05, %v5323_v9  ;;  %v5324_v53 = vsub.f32 %v5306_v3, %v5318_v31  ;;  %v5283_v63 = vmul.f32 0.0078125, %v5276_v51  ;;  %v10930_v31 = vld [vmem:[%s14354_s6 + $0x258] sm:$0xff]   ;;  %v10931_v51 = vld [vmem:[%s14354_s6 + $0x260] sm:$0xff]  }
0x26ca   :  { %v5278_v6 = vpop.xlane.xlu0 %5277 }
0x26cb   :  { %11217 = vrsqrt.f32 %v5329_v4  ;;  %v5330_v54 = vadd.f32 1e-05, %v5324_v53  ;;  %v5284_v8 = vmul.f32 0.0078125, %v5278_v6  ;;  %v5319_v39 = vmul.f32 %v5283_v63, %v5283_v63  ;;  %v10932_v53 = vld [vmem:[%s14354_s6 + $0x268] sm:$0xff]   ;;  %v10934_v6 = vld [vmem:[%s14354_s6 + $0x278] sm:$0xff]  }
0x26cc   :  { %v5300_v38 = vpop.xlane.xlu1 %5299  ;;  %v5313_v18 = vsub.f32 %v13427_v60, %v5283_v63  ;;  %v10933_v63 = vld [vmem:[%s14354_s6 + $0x270] sm:$0xff]  }
0x26cd   :  { %v11214_v7 = vpop.eup %11213  ;;  %11219 = vrsqrt.f32 %v5330_v54  ;;  %v5307_v36 = vmul.f32 0.0078125, %v5300_v38  ;;  %v5320_v27 = vmul.f32 %v5284_v8, %v5284_v8  ;;  %v5314_v49 = vsub.f32 %v13433_v17, %v5284_v8  ;;  %v8509_v54 = vld [vmem:[%s14355_s7 + $0x8] ss:$0 sm:$0xff] }
0x26ce   :  { %v5339_v5 = vmul.f32 %v11214_v7, %v5309_v20  ;;  %v5302_v23 = vpop.xlane.xlu0 %5301 }
0x26cf   :  { %v11216_v10 = vpop.eup %11215  ;;  %v5325_v12 = vsub.f32 %v5307_v36, %v5319_v39  ;;  %v5308_v16 = vmul.f32 0.0078125, %v5302_v23 }
0x26d0   :  { %v5340_v30 = vmul.f32 %v11216_v10, %v5310_v15  ;;  %v5349_v32 = vmul.f32 %v5348_v0, %v5339_v5 }
0x26d1   :  { %v5331_v62 = vadd.f32 1e-05, %v5325_v12  ;;  %v5326_v41 = vsub.f32 %v5308_v16, %v5320_v27 }
0x26d2   :  { %v5350_v43 = vmul.f32 %v5348_v0, %v5340_v30  ;;  %v13473_v45 = vadd.f32 %v5358_v25, %v5349_v32 }
0x26d3   :  { %11221 = vrsqrt.f32 %v5331_v62  ;;  %v5332_v33 = vadd.f32 1e-05, %v5326_v41 }
0x26d4   :  { %v13475_v44 = vadd.f32 %v5358_v25, %v5350_v43 }
0x26d5   :  { %v11218_v57 = vpop.eup %11217  ;;  %11223 = vrsqrt.f32 %v5332_v33 }
0x26d6   :  { %v13483_v24 = vpack.c.bf16 %v13475_v44, %v13473_v45  ;;  %v5341_v47 = vmul.f32 %v11218_v57, %v5311_v13 }
0x26d7   :  { %v11220_v26 = vpop.eup %11219 }
0x26d8   :  { %10012 = vmatmul.mubr.bf16.vlgmr.msra.gmra.mrb[180].mxu0 %v13483_v24  ;;  %v5342_v48 = vmul.f32 %v11220_v26, %v5312_v50  ;;  %v5351_v37 = vmul.f32 %v5348_v0, %v5341_v47 }
0x26d9   :  { %10063 = vmatpush3.bf16.msra.mxu0 %v10927_v42  ;;  %10015 = vmatprep.mubr.msk.bf16.mxu0 %vm11395_vm0, %v11394_v55 }
0x26da   :  { %10064 = vmatprep.subr.bf16.mxu0 %v11394_v55  ;;  %v5352_v11 = vmul.f32 %v5348_v0, %v5342_v48  ;;  %v13493_v61 = vadd.f32 %v5358_v25, %v5351_v37 }
0x26dc   :  { %v13495_v19 = vadd.f32 %v5358_v25, %v5352_v11 }
0x26dd   :  { %v11222_v22 = vpop.eup %11221  ;;  %10065 = vmatpush3.bf16.msra.mxu0 %v10928_v2 }
0x26de   :  { %10066 = vmatprep.subr.bf16.mxu0 %v11394_v55  ;;  %v13504_v29 = vpack.c.bf16 %v13495_v19, %v13493_v61  ;;  %v5343_v46 = vmul.f32 %v11222_v22, %v5313_v18 }
0x26df   :  { %v11224_v60 = vpop.eup %11223 }
0x26e0   :  { %10016 = vmatmul.mubr.bf16.gmra.mrb[184].mxu0 %v13504_v29  ;;  %v5344_v34 = vmul.f32 %v11224_v60, %v5314_v49  ;;  %v5353_v56 = vmul.f32 %v5348_v0, %v5343_v46 }
0x26e1   :  { %10067 = vmatpush3.bf16.msra.mxu0 %v10929_v28  ;;  %10019 = vmatprep.mubr.msk.bf16.mxu0 %vm11395_vm0, %v11394_v55 }
0x26e2   :  { %10068 = vmatprep.subr.bf16.mxu0 %v11394_v55  ;;  %v5354_v17 = vmul.f32 %v5348_v0, %v5344_v34  ;;  %v13513_v9 = vadd.f32 %v5358_v25, %v5353_v56 }
0x26e4   :  { %v13515_v3 = vadd.f32 %v5358_v25, %v5354_v17 }
0x26e5   :  { %10069 = vmatpush3.bf16.msra.mxu0 %v10930_v31 }
0x26e6   :  { %10070 = vmatprep.subr.bf16.mxu0 %v11394_v55  ;;  %v13523_v4 = vpack.c.bf16 %v13515_v3, %v13513_v9 }
0x26e8   :  { %10020 = vmatmul.mubr.bf16.gmra.mrb[188].mxu0 %v13523_v4 }
0x26e9   :  { %10071 = vmatpush3.bf16.msra.mxu0 %v10931_v51  ;;  %10078 = vmatprep.mubr.msk.bf16.mxu0 %vm11395_vm0, %v11394_v55 }
0x26ea   :  { %10072 = vmatprep.subr.bf16.mxu0 %v11394_v55 }
0x26ed   :  { %10073 = vmatpush3.bf16.msra.mxu0 %v10932_v53 }
0x26ee   :  { %10074 = vmatprep.subr.bf16.mxu0 %v11394_v55 }
0x26f1   :  { %10075 = vmatpush3.bf16.msra.mxu0 %v10933_v63 }
0x26f2   :  { %10076 = vmatprep.subr.bf16.mxu0 %v11394_v55 }
0x26f5   :  { %10077 = vmatpush3.bf16.msra.mxu0 %v10934_v6 }
0x26f6   :  { %10111 = vmatprep.subr.bf16.mxu0 %v11394_v55 }
0x26f8   :  { %10079 = vmatmul.mubr.bf16.vlgmr.msra.gmra.mrb[192].mxu0 %v13483_v24 }
0x26f9   :  { %10082 = vmatprep.mubr.msk.bf16.mxu0 %vm11395_vm0, %v11394_v55 }
0x2700   :  { %10083 = vmatmul.mubr.bf16.gmra.mrb[196].mxu0 %v13504_v29 }
0x2701   :  { %10086 = vmatprep.mubr.msk.bf16.mxu0 %vm11395_vm0, %v11394_v55 }
0x2708   :  { %10087 = vmatmul.mubr.bf16.gmra.mrb[200].mxu0 %v13523_v4 }
0x2709   :  { %10117 = vmatprep.mubr.msk.bf16.mxu0 %vm11395_vm0, %v11394_v55 }
0x27ab   :  { %v5477_v20 = vpop.f32.mrb[180].mxu0 }
0x27ac   :  { %v13553_v8 = vadd.f32 %v8509_v54, %v5477_v20  ;;  %v10013_v38 = vpop.f32.mrb[181].mxu0 }
0x27ad   :  { %v5480_v0 = vpop.f32.mrb[182].mxu0 }
0x27ae   :  { %v13555_v7 = vadd.f32 %v8509_v54, %v5480_v0  ;;  %v10014_v39 = vpop.f32.mrb[183].mxu0  ;;  %10035 = vmatprep.mubr.msk.f32.mxu1 %vm401_vm1, %v13553_v8 }
0x27af   :  { %v13616_v39 = vld [vmem:[%s14353_s5 + $0x8] sm:$0xff] }
0x27b0   :  { %v10746_v36 = vpack.i.bf16 %v13555_v7, %v13553_v8 }
0x27b2   :  { %10747 = vrot.lane.b32.xlu1 %v10746_v36, %s11396_s2 }
0x27b3   :  { %v5485_v15 = vpop.f32.mrb[184].mxu0 }
0x27b4   :  { %v10017_v5 = vpop.f32.mrb[185].mxu0  ;;  %v13562_v10 = vadd.f32 %v8509_v54, %v5485_v15  ;;  %v13622_v15 = vld [vmem:[%s14353_s5] sm:$0xff] }
0x27b5   :  { %v5488_v23 = vpop.f32.mrb[186].mxu0 }
0x27b6   :  { %v13564_v27 = vadd.f32 %v8509_v54, %v5488_v23  ;;  %v10018_v12 = vpop.f32.mrb[187].mxu0 }
0x27b8   :  { %v10751_v16 = vpack.i.bf16 %v13564_v27, %v13562_v10 }
0x27ba   :  { %10752 = vrot.lane.b32.xlu0 %v10751_v16, %s11396_s2 }
0x27bb   :  { %v5493_v30 = vpop.f32.mrb[188].mxu0 }
0x27bc   :  { %v10021_v32 = vpop.f32.mrb[189].mxu0  ;;  %v13569_v62 = vadd.f32 %v8509_v54, %v5493_v30 }
0x27bd   :  { %v5496_v25 = vpop.f32.mrb[190].mxu0 }
0x27be   :  { %v13571_v41 = vadd.f32 %v8509_v54, %v5496_v25  ;;  %v10022_v43 = vpop.f32.mrb[191].mxu0 }
0x27bf   :  { %v13630_v43 = vld [vmem:[%s14353_s5 + $0x18] sm:$0xff] }
0x27c0   :  { %v10756_v33 = vpack.i.bf16 %v13571_v41, %v13569_v62 }
0x27c2   :  { %10757 = vrot.lane.b32.xlu1 %v10756_v33, %s11396_s2 }
0x27cb   :  { %v13576_v13 = vpop.f32.mrb[192].mxu0 }
0x27cc   :  { %v10080_v57 = vpop.f32.mrb[193].mxu0 }
0x27cd   :  { %v13578_v42 = vpop.f32.mrb[194].mxu0  ;;  %v13636_v57 = vld [vmem:[%s14353_s5 + $0x10] sm:$0xff] }
0x27ce   :  { %v10081_v50 = vpop.f32.mrb[195].mxu0 }
0x27d3   :  { %v13580_v47 = vpop.f32.mrb[196].mxu0 }
0x27d4   :  { %v10084_v26 = vpop.f32.mrb[197].mxu0 }
0x27d5   :  { %v13582_v48 = vpop.f32.mrb[198].mxu0 }
0x27d6   :  { %v10085_v37 = vpop.f32.mrb[199].mxu0 }
0x27db   :  { %v13584_v2 = vpop.f32.mrb[200].mxu0 }
0x27dc   :  { %v10088_v11 = vpop.f32.mrb[201].mxu0 }
0x27dd   :  { %v13586_v18 = vpop.f32.mrb[202].mxu0 }
0x27de   :  { %v10089_v22 = vpop.f32.mrb[203].mxu0 }
0x2824   :  { %v10748_v28 = vpop.permute.xlu1 %10747 }
0x2825   :  { %v10750_v49 = vunpack.i.h.bf16 %v10748_v28  ;;  %v10749_v46 = vunpack.i.l.bf16 %v10748_v28 }
0x2827   :  { %v10537_v60 = vpack.c.bf16 %v10750_v49, %v10749_v46  ;;  %v13644_v46 = vld [vmem:[%s14353_s5 + $0x28] sm:$0xff] }
0x2829   :  { %10539 = vmatprep.subr.msk.bf16.mxu1 %vm11689_vm2, %v10537_v60 }
0x282a   :  { %10542 = vmatpush3.bf16.xpose.msk.msra.mxu1 %vm11689_vm2, %v10537_v60 }
0x282c   :  { %v10753_v34 = vpop.permute.xlu0 %10752 }
0x282d   :  { %v10755_v56 = vunpack.i.h.bf16 %v10753_v34  ;;  %v10754_v31 = vunpack.i.l.bf16 %v10753_v34  ;;  %v13650_v34 = vld [vmem:[%s14353_s5 + $0x20] sm:$0xff] }
0x282f   :  { %v10543_v17 = vpack.c.bf16 %v10755_v56, %v10754_v31 }
0x2831   :  { %10545 = vmatprep.subr.msk.bf16.mxu1 %vm11689_vm2, %v10543_v17 }
0x2832   :  { %10548 = vmatpush3.bf16.xpose.msk.msra.mxu1 %vm11689_vm2, %v10543_v17 }
0x2834   :  { %v10758_v51 = vpop.permute.xlu1 %10757 }
0x2835   :  { %v10760_v53 = vunpack.i.h.bf16 %v10758_v51  ;;  %v10759_v63 = vunpack.i.l.bf16 %v10758_v51  ;;  %v5719_v51 = vpack.c.bf16 %v13564_v27, %v13562_v10 }
0x2837   :  { %v10549_v6 = vpack.c.bf16 %v10760_v53, %v10759_v63  ;;  %v5718_v53 = vpack.c.bf16 %v13555_v7, %v13553_v8  ;;  %v5720_v63 = vpack.c.bf16 %v13571_v41, %v13569_v62 }
0x2839   :  { %10551 = vmatprep.subr.msk.bf16.mxu1 %vm11689_vm2, %v10549_v6 }
0x283a   :  { %10554 = vmatpush3.bf16.xpose.msk.msra.mxu1 %vm11689_vm2, %v10549_v6 }
0x283b   :  { %10044 = vmatprep.subr.bf16.mxu1 %v11394_v55 }
0x2841   :  { %10036 = vmatmul.mubr.msk.f32.vlgmr.msra.gmra.mrb[204].mxu1 %vm401_vm1, %v13555_v7 }
0x2842   :  { %10038 = vmatprep.mubr.msk.f32.mxu1 %vm401_vm1, %v13562_v10 }
0x2845   :  { %10039 = vmatmul.mubr.msk.f32.gmra.mrb[206].mxu1 %vm401_vm1, %v13564_v27 }
0x2846   :  { %10041 = vmatprep.mubr.msk.f32.mxu1 %vm401_vm1, %v13569_v62 }
0x2849   :  { %10042 = vmatmul.mubr.msk.f32.gmra.mrb[208].mxu1 %vm401_vm1, %v13571_v41 }
0x284a   :  { %10050 = vmatprep.mubr.msk.bf16.mxu1 %vm11395_vm0, %v11394_v55 }
0x2914   :  { %v10037_v54 = vpop.f32.mrb[204].mxu1 }
0x2915   :  { %v5638_v20 = vmul.f32 0.17677669, %v10037_v54  ;;  %v5608_v38 = vpop.f32.mrb[205].mxu1 }
0x2916   :  { %v5637_v0 = vmul.f32 0.17677669, %v5608_v38 }
0x2917   :  { %v5644_v36 = vadd.f32 %v13616_v39, %v5638_v20 }
0x2918   :  { %v5643_v5 = vadd.f32 %v13622_v15, %v5637_v0  ;;  %v10040_v23 = vpop.f32.mrb[206].mxu1 }
0x2919   :  { %v5640_v12 = vmul.f32 0.17677669, %v10040_v23  ;;  %v5618_v16 = vpop.f32.mrb[207].mxu1  ;;  %v5652_v30 = vsel %vm533_vm3, %v5644_v36, -inf }
0x291a   :  { %v5639_v32 = vmul.f32 0.17677669, %v5618_v16  ;;  %5653 = vmax.xlane.f32.xlu0 %v5652_v30  ;;  %v5649_v25 = vsel %vm533_vm3, %v5643_v5, -inf }
0x291b   :  { %v5646_v33 = vadd.f32 %v13630_v43, %v5640_v12  ;;  %5650 = vmax.xlane.f32.xlu1 %v5649_v25 }
0x291c   :  { %v5645_v50 = vadd.f32 %v13636_v57, %v5639_v32  ;;  %v10043_v26 = vpop.f32.mrb[208].mxu1 }
0x291d   :  { %v5642_v37 = vmul.f32 0.17677669, %v10043_v26  ;;  %v5628_v11 = vpop.f32.mrb[209].mxu1  ;;  %v5658_v22 = vsel %vm533_vm3, %v5646_v33, -inf }
0x291e   :  { %v5641_v28 = vmul.f32 0.17677669, %v5628_v11  ;;  %v5655_v49 = vsel %vm533_vm3, %v5645_v50, -inf }
0x291f   :  { %v5648_v60 = vadd.f32 %v13644_v46, %v5642_v37  ;;  %5659 = vmax.xlane.f32.xlu1 %v5658_v22  ;;  %5656 = vmax.xlane.f32.xlu0 %v5655_v49 }
0x2920   :  { %v5647_v56 = vadd.f32 %v13650_v34, %v5641_v28 }
0x2921   :  { %v5664_v31 = vsel %vm533_vm3, %v5648_v60, -inf }
0x2922   :  { %v5661_v17 = vsel %vm533_vm3, %v5647_v56, -inf }
0x2923   :  { %5665 = vmax.xlane.f32.xlu1 %v5664_v31  ;;  %5662 = vmax.xlane.f32.xlu0 %v5661_v17 }
0x2934   :  { %5726 = vrot.lane.b32.xlu1 %v5719_v51, %s11397_s28 }
0x2939   :  { %5724 = vrot.lane.b32.xlu0 %v5718_v53, %s11397_s28 }
0x293d   :  { %5728 = vrot.lane.b32.xlu0 %v5720_v63, %s11397_s28  ;;  %v8554_v63 = vld [vmem:[%s14355_s7 + $0x9] ss:$0 sm:$0xff] }
0x29a7   :  { %v5654_v6 = vpop.xlane.xlu0 %5653 }
0x29a8   :  { %v5668_v54 = vsub.f32 %v5644_v36, %v5654_v6  ;;  %v5651_v20 = vpop.xlane.xlu1 %5650  ;;  %v13679_v6 = vadd.f32 %v8554_v63, %v13578_v42  ;;  %v13698_v42 = vadd.f32 %v8554_v63, %v13584_v2 }
0x29a9   :  { %v5667_v38 = vsub.f32 %v5643_v5, %v5651_v20  ;;  %v13685_v20 = vadd.f32 %v8554_v63, %v13582_v48 }
0x29aa   :  { %v5675_v0 = vmul.f32 1.442695, %v5668_v54  ;;  %v13682_v54 = vadd.f32 %v8554_v63, %v13576_v13 }
0x29ab   :  { %v5673_v23 = vmul.f32 1.442695, %v5667_v38 }
0x29ac   :  { %11225 = vpow2.f32 %v5675_v0  ;;  %v5660_v10 = vpop.xlane.xlu1 %5659  ;;  %v5657_v27 = vpop.xlane.xlu0 %5656  ;;  %v10761_v38 = vpack.i.bf16 %v13679_v6, %v13682_v54  ;;  %v13690_v0 = vadd.f32 %v8554_v63, %v13580_v47 }
0x29ad   :  { %11227 = vpow2.f32 %v5673_v23  ;;  %v5670_v12 = vsub.f32 %v5646_v33, %v5660_v10  ;;  %v5669_v16 = vsub.f32 %v5645_v50, %v5657_v27  ;;  %v13693_v23 = vadd.f32 %v8554_v63, %v13586_v18 }
0x29ae   :  { %v10766_v10 = vpack.i.bf16 %v13685_v20, %v13690_v0 }
0x29af   :  { %v5679_v8 = vmul.f32 1.442695, %v5670_v12  ;;  %v5677_v7 = vmul.f32 1.442695, %v5669_v16  ;;  %v10771_v13 = vpack.i.bf16 %v13693_v23, %v13698_v42 }
0x29b0   :  { %v5666_v30 = vpop.xlane.xlu1 %5665  ;;  %v5663_v32 = vpop.xlane.xlu0 %5662 }
0x29b1   :  { %11229 = vpow2.f32 %v5679_v8  ;;  %v5672_v62 = vsub.f32 %v5648_v60, %v5666_v30  ;;  %v5671_v41 = vsub.f32 %v5647_v56, %v5663_v32 }
0x29b2   :  { %11231 = vpow2.f32 %v5677_v7 }
0x29b3   :  { %v5683_v25 = vmul.f32 1.442695, %v5672_v62  ;;  %v5681_v36 = vmul.f32 1.442695, %v5671_v41 }
0x29b4   :  { %v5725_v26 = vpop.permute.xlu0 %5724  ;;  %v5727_v50 = vpop.permute.xlu1 %5726 }
0x29b5   :  { %11233 = vpow2.f32 %v5683_v25  ;;  %10045 = vmatpush3.bf16.msra.mxu1 %v5725_v26 }
0x29b6   :  { %v11226_v5 = vpop.eup %11225  ;;  %10046 = vmatprep.subr.bf16.mxu1 %v11394_v55  ;;  %11235 = vpow2.f32 %v5681_v36 }
0x29b7   :  { %v11228_v37 = vpop.eup %11227  ;;  %v5688_v33 = vsel %vm533_vm3, %v11226_v5, 0.0 }
0x29b8   :  { %5689 = vadd.xlane.f32.xlu1 %v5688_v33  ;;  %v5685_v11 = vsel %vm533_vm3, %v11228_v37, 0.0  ;;  %v5729_v49 = vpop.permute.xlu0 %5728 }
0x29b9   :  { %5686 = vadd.xlane.f32.xlu0 %v5685_v11  ;;  %10047 = vmatpush3.bf16.msra.mxu1 %v5727_v50 }
0x29ba   :  { %10048 = vmatprep.subr.bf16.mxu1 %v11394_v55 }
0x29bb   :  { %v11230_v22 = vpop.eup %11229 }
0x29bc   :  { %v11232_v28 = vpop.eup %11231  ;;  %v5694_v60 = vsel %vm533_vm3, %v11230_v22, 0.0 }
0x29bd   :  { %5695 = vadd.xlane.f32.xlu1 %v5694_v60  ;;  %v5691_v56 = vsel %vm533_vm3, %v11232_v28, 0.0  ;;  %10049 = vmatpush3.bf16.msra.mxu1 %v5729_v49 }
0x29be   :  { %5692 = vadd.xlane.f32.xlu0 %v5691_v56 }
0x29bf   :  { %v13670_v31 = vpop.eup %11233 }
0x29c0   :  { %v5700_v17 = vsel %vm533_vm3, %v13670_v31, 0.0  ;;  %v11236_v51 = vpop.eup %11235 }
0x29c1   :  { %5701 = vadd.xlane.f32.xlu1 %v5700_v17  ;;  %v5697_v53 = vsel %vm533_vm3, %v11236_v51, 0.0 }
0x29c5   :  { %5698 = vadd.xlane.f32.xlu1 %v5697_v53 }
0x29d4   :  { %10762 = vrot.lane.b32.xlu0 %v10761_v38, %s11396_s2 }
0x29d6   :  { %10767 = vrot.lane.b32.xlu1 %v10766_v10, %s11396_s2 }
0x29d8   :  { %10772 = vrot.lane.b32.xlu0 %v10771_v13, %s11396_s2 }
0x2a45   :  { %v5690_v47 = vpop.xlane.xlu1 %5689 }
0x2a46   :  { %11237 = vrcp.f32 %v5690_v47  ;;  %v5687_v48 = vpop.xlane.xlu0 %5686 }
0x2a47   :  { %11239 = vrcp.f32 %v5687_v48 }
0x2a4a   :  { %v5696_v18 = vpop.xlane.xlu1 %5695 }
0x2a4b   :  { %11241 = vrcp.f32 %v5696_v18  ;;  %v5693_v27 = vpop.xlane.xlu0 %5692 }
0x2a4c   :  { %11243 = vrcp.f32 %v5693_v27 }
0x2a4e   :  { %v5702_v12 = vpop.xlane.xlu1 %5701 }
0x2a4f   :  { %v10763_v2 = vpop.permute.xlu0 %10762 }
0x2a50   :  { %v11238_v16 = vpop.eup %11237  ;;  %v10765_v8 = vunpack.i.h.bf16 %v10763_v2  ;;  %v10764_v7 = vunpack.i.l.bf16 %v10763_v2 }
0x2a51   :  { %v11240_v30 = vpop.eup %11239  ;;  %v5710_v32 = vmul.f32 %v11238_v16, %v11226_v5 }
0x2a52   :  { %v5709_v62 = vmul.f32 %v11240_v30, %v11228_v37  ;;  %v10555_v41 = vpack.c.bf16 %v10765_v8, %v10764_v7  ;;  %v5699_v25 = vpop.xlane.xlu1 %5698 }
0x2a53   :  { %11245 = vrcp.f32 %v5699_v25  ;;  %v10773_v11 = vpop.permute.xlu0 %10772 }
0x2a54   :  { %v5715_v36 = vpack.c.bf16 %v5710_v32, %v5709_v62  ;;  %10557 = vmatprep.subr.msk.bf16.mxu1 %vm11689_vm2, %v10555_v41  ;;  %11247 = vrcp.f32 %v5702_v12  ;;  %v10775_v17 = vunpack.i.h.bf16 %v10773_v11  ;;  %v10774_v53 = vunpack.i.l.bf16 %v10773_v11 }
0x2a55   :  { %v11242_v26 = vpop.eup %11241 }
0x2a56   :  { %v11244_v33 = vpop.eup %11243  ;;  %v10768_v50 = vpop.permute.xlu1 %10767  ;;  %10051 = vmatmul.mubr.msk.bf16.vlgmr.msra.gmra.mrb[212].mxu1 %vm533_vm3, %v5715_v36  ;;  %v5712_v37 = vmul.f32 %v11242_v26, %v11230_v22  ;;  %v10567_v10 = vpack.c.bf16 %v10775_v17, %v10774_v53 }
0x2a57   :  { %v10770_v49 = vunpack.i.h.bf16 %v10768_v50  ;;  %v10769_v60 = vunpack.i.l.bf16 %v10768_v50  ;;  %10560 = vmatpush3.bf16.xpose.msk.msra.mxu1 %vm11689_vm2, %v10555_v41  ;;  %10054 = vmatprep.mubr.msk.bf16.mxu1 %vm11395_vm0, %v11394_v55  ;;  %v5711_v5 = vmul.f32 %v11244_v33, %v11232_v28 }
0x2a59   :  { %v10561_v56 = vpack.c.bf16 %v10770_v49, %v10769_v60  ;;  %v5716_v63 = vpack.c.bf16 %v5712_v37, %v5711_v5 }
0x2a5b   :  { %10563 = vmatprep.subr.msk.bf16.mxu1 %vm11689_vm2, %v10561_v56 }
0x2a5d   :  { %v11246_v38 = vpop.eup %11245 }
0x2a5e   :  { %10055 = vmatmul.mubr.msk.bf16.gmra.mrb[216].mxu1 %vm533_vm3, %v5716_v63  ;;  %v11248_v13 = vpop.eup %11247  ;;  %v5713_v22 = vmul.f32 %v11246_v38, %v11236_v51 }
0x2a5f   :  { %10566 = vmatpush3.bf16.xpose.msk.msra.mxu1 %vm11689_vm2, %v10561_v56  ;;  %10058 = vmatprep.mubr.msk.bf16.mxu1 %vm11395_vm0, %v11394_v55  ;;  %v5714_v28 = vmul.f32 %v11248_v13, %v13670_v31 }
0x2a60   :  { %10569 = vmatprep.subr.msk.bf16.mxu1 %vm11689_vm2, %v10567_v10 }
0x2a61   :  { %v5717_v47 = vpack.c.bf16 %v5714_v28, %v5713_v22 }
0x2a66   :  { %10059 = vmatmul.mubr.msk.bf16.gmra.mrb[220].mxu1 %vm533_vm3, %v5717_v47 }
0x2a67   :  { %10572 = vmatpush3.bf16.xpose.msk.msra.mxu1 %vm11689_vm2, %v10567_v10  ;;  %10102 = vmatprep.mubr.msk.f32.mxu1 %vm401_vm1, %v13682_v54 }
0x2a68   :  { %10129 = vmatprep.subr.bf16.mxu1 %v11394_v55 }
0x2a6e   :  { %10103 = vmatmul.mubr.msk.f32.vlgmr.msra.gmra.mrb[210].mxu1 %vm401_vm1, %v13679_v6 }
0x2a6f   :  { %10105 = vmatprep.mubr.msk.f32.mxu1 %vm401_vm1, %v13690_v0 }
0x2a72   :  { %10106 = vmatmul.mubr.msk.f32.gmra.mrb[224].mxu1 %vm401_vm1, %v13685_v20 }
0x2a73   :  { %10108 = vmatprep.mubr.msk.f32.mxu1 %vm401_vm1, %v13698_v42 }
0x2a76   :  { %10109 = vmatmul.mubr.msk.f32.gmra.mrb[226].mxu1 %vm401_vm1, %v13693_v23 }
0x2a77   :  { %10133 = vmatprep.mubr.msk.bf16.mxu1 %vm11395_vm0, %v11394_v55 }
0x2b29   :  { %v13740_v31 = vpop.f32.mrb[212].mxu1 }
0x2b2a   :  { %v10052_v51 = vpop.f32.mrb[213].mxu1 }
0x2b2b   :  { %v13742_v48 = vpop.f32.mrb[214].mxu1 }
0x2b2c   :  { %v5799_v18 = vpack.c.bf16 %v13742_v48, %v13740_v31  ;;  %v10053_v27 = vpop.f32.mrb[215].mxu1  ;;  %v10938_v31 = vld [vmem:[%s14356_s8 + $0x98] sm:$0xff]  }
0x2b31   :  { %v13746_v12 = vpop.f32.mrb[216].mxu1 }
0x2b32   :  { %v10056_v2 = vpop.f32.mrb[217].mxu1 }
0x2b33   :  { %v13748_v16 = vpop.f32.mrb[218].mxu1 }
0x2b34   :  { %v5800_v8 = vpack.c.bf16 %v13748_v16, %v13746_v12  ;;  %v10057_v7 = vpop.f32.mrb[219].mxu1  ;;  %v10939_v16 = vld [vmem:[%s14354_s6 + $0x280] sm:$0xff]  }
0x2b39   :  { %v13752_v30 = vpop.f32.mrb[220].mxu1 }
0x2b3a   :  { %v10060_v32 = vpop.f32.mrb[221].mxu1 }
0x2b3b   :  { %v13754_v62 = vpop.f32.mrb[222].mxu1 }
0x2b3c   :  { %v5801_v41 = vpack.c.bf16 %v13754_v62, %v13752_v30  ;;  %v10061_v25 = vpop.f32.mrb[223].mxu1  ;;  %v10940_v30 = vld [vmem:[%s14354_s6 + $0x288] sm:$0xff]  }
0x2b3d   :  { %v6155_v25 = vpack.c.bf16 %v13679_v6, %v13682_v54 }
0x2b41   :  { %v10104_v36 = vpop.f32.mrb[210].mxu1 }
0x2b42   :  { %v6075_v26 = vmul.f32 0.17677669, %v10104_v36  ;;  %v6045_v33 = vpop.f32.mrb[211].mxu1 }
0x2b43   :  { %v6074_v50 = vmul.f32 0.17677669, %v6045_v33 }
0x2b44   :  { %v6081_v11 = vadd.f32 %v13616_v39, %v6075_v26 }
0x2b45   :  { %v6080_v49 = vadd.f32 %v13622_v15, %v6074_v50  ;;  %v10107_v60 = vpop.f32.mrb[224].mxu1 }
0x2b46   :  { %v6077_v5 = vmul.f32 0.17677669, %v10107_v60  ;;  %v6055_v37 = vpop.f32.mrb[225].mxu1  ;;  %v6089_v56 = vsel %vm533_vm3, %v6081_v11, -inf }
0x2b47   :  { %v6076_v17 = vmul.f32 0.17677669, %v6055_v37  ;;  %6090 = vmax.xlane.f32.xlu0 %v6089_v56  ;;  %v6086_v53 = vsel %vm533_vm3, %v6080_v49, -inf }
0x2b48   :  { %v6083_v63 = vadd.f32 %v13630_v43, %v6077_v5  ;;  %6087 = vmax.xlane.f32.xlu1 %v6086_v53 }
0x2b49   :  { %v6082_v38 = vadd.f32 %v13636_v57, %v6076_v17  ;;  %v10110_v10 = vpop.f32.mrb[226].mxu1 }
0x2b4a   :  { %v6079_v13 = vmul.f32 0.17677669, %v10110_v10  ;;  %v6065_v22 = vpop.f32.mrb[227].mxu1  ;;  %v6095_v28 = vsel %vm533_vm3, %v6083_v63, -inf }
0x2b4b   :  { %v6078_v47 = vmul.f32 0.17677669, %v6065_v22  ;;  %v6092_v51 = vsel %vm533_vm3, %v6082_v38, -inf }
0x2b4c   :  { %v6085_v27 = vadd.f32 %v13644_v46, %v6079_v13  ;;  %6096 = vmax.xlane.f32.xlu1 %v6095_v28  ;;  %6093 = vmax.xlane.f32.xlu0 %v6092_v51 }
0x2b4d   :  { %v6084_v2 = vadd.f32 %v13650_v34, %v6078_v47 }
0x2b4e   :  { %v6101_v7 = vsel %vm533_vm3, %v6085_v27, -inf }
0x2b4f   :  { %v6098_v32 = vsel %vm533_vm3, %v6084_v2, -inf }
0x2b50   :  { %6102 = vmax.xlane.f32.xlu1 %v6101_v7  ;;  %6099 = vmax.xlane.f32.xlu0 %v6098_v32 }
0x2b66   :  { %6161 = vrot.lane.b32.xlu0 %v6155_v25, %s11397_s28 }
0x2bd4   :  { %v6091_v36 = vpop.xlane.xlu0 %6090 }
0x2bd5   :  { %v6105_v26 = vsub.f32 %v6081_v11, %v6091_v36  ;;  %v6088_v33 = vpop.xlane.xlu1 %6087 }
0x2bd6   :  { %v6104_v50 = vsub.f32 %v6080_v49, %v6088_v33  ;;  %v6157_v33 = vpack.c.bf16 %v13693_v23, %v13698_v42 }
0x2bd7   :  { %v6112_v60 = vmul.f32 1.442695, %v6105_v26  ;;  %v6156_v26 = vpack.c.bf16 %v13685_v20, %v13690_v0 }
0x2bd8   :  { %v6110_v5 = vmul.f32 1.442695, %v6104_v50 }
0x2bd9   :  { %11249 = vpow2.f32 %v6112_v60  ;;  %v6097_v37 = vpop.xlane.xlu1 %6096  ;;  %v6094_v56 = vpop.xlane.xlu0 %6093 }
0x2bda   :  { %11251 = vpow2.f32 %v6110_v5  ;;  %v6107_v17 = vsub.f32 %v6083_v63, %v6097_v37  ;;  %v6106_v53 = vsub.f32 %v6082_v38, %v6094_v56  ;;  %v10937_v56 = vld [vmem:[%s14356_s8 + $0x90] sm:$0xff]  }
0x2bdb   :  { %10130 = vmatpush3.bf16.msra.mxu1 %v10937_v56  ;;  %v10942_v56 = vld [vmem:[%s14354_s6 + $0x298] sm:$0xff]  }
0x2bdc   :  { %v6116_v10 = vmul.f32 1.442695, %v6107_v17  ;;  %v6114_v13 = vmul.f32 1.442695, %v6106_v53  ;;  %10131 = vmatprep.subr.bf16.mxu1 %v11394_v55 }
0x2bdd   :  { %v6103_v22 = vpop.xlane.xlu1 %6102  ;;  %v6100_v28 = vpop.xlane.xlu0 %6099 }
0x2bde   :  { %11253 = vpow2.f32 %v6116_v10  ;;  %v6109_v6 = vsub.f32 %v6085_v27, %v6103_v22  ;;  %v6108_v50 = vsub.f32 %v6084_v2, %v6100_v28 }
0x2bdf   :  { %11255 = vpow2.f32 %v6114_v13  ;;  %10132 = vmatpush3.bf16.msra.mxu1 %v10938_v31 }
0x2be0   :  { %v6120_v54 = vmul.f32 1.442695, %v6109_v6  ;;  %v6118_v60 = vmul.f32 1.442695, %v6108_v50  ;;  %10161 = vmatprep.subr.bf16.mxu1 %v11394_v55 }
0x2be1   :  { %v6162_v47 = vpop.permute.xlu0 %6161 }
0x2be2   :  { %11257 = vpow2.f32 %v6120_v54  ;;  %10112 = vmatpush3.bf16.msra.mxu0 %v6162_v47  ;;  %v10935_v54 = vld [vmem:[%s14356_s8 + $0x80] sm:$0xff]  }
0x2be3   :  { %v11250_v11 = vpop.eup %11249  ;;  %10113 = vmatprep.subr.bf16.mxu0 %v11394_v55  ;;  %11259 = vpow2.f32 %v6118_v60 }
0x2be4   :  { %v11252_v49 = vpop.eup %11251  ;;  %v6125_v51 = vsel %vm533_vm3, %v11250_v11, 0.0 }
0x2be5   :  { %6126 = vadd.xlane.f32.xlu1 %v6125_v51  ;;  %v6122_v63 = vsel %vm533_vm3, %v11252_v49, 0.0 }
0x2be6   :  { %6123 = vadd.xlane.f32.xlu0 %v6122_v63 }
0x2be8   :  { %v11254_v38 = vpop.eup %11253 }
0x2be9   :  { %v11256_v7 = vpop.eup %11255  ;;  %v6131_v32 = vsel %vm533_vm3, %v11254_v38, 0.0 }
0x2bea   :  { %6132 = vadd.xlane.f32.xlu1 %v6131_v32  ;;  %v6128_v27 = vsel %vm533_vm3, %v11256_v7, 0.0 }
0x2beb   :  { %6129 = vadd.xlane.f32.xlu0 %v6128_v27 }
0x2bec   :  { %v11258_v25 = vpop.eup %11257 }
0x2bed   :  { %v6137_v36 = vsel %vm533_vm3, %v11258_v25, 0.0  ;;  %v11260_v5 = vpop.eup %11259 }
0x2bee   :  { %v6134_v37 = vsel %vm533_vm3, %v11260_v5, 0.0 }
0x2bef   :  { %6138 = vadd.xlane.f32.xlu0 %v6137_v36 }
0x2bfb   :  { %6163 = vrot.lane.b32.xlu1 %v6156_v26, %s11397_s28 }
0x2c05   :  { %6165 = vrot.lane.b32.xlu0 %v6157_v33, %s11397_s28 }
0x2c1f   :  { %6135 = vadd.xlane.f32.xlu1 %v6134_v37 }
0x2c72   :  { %v6127_v20 = vpop.xlane.xlu1 %6126 }
0x2c73   :  { %11261 = vrcp.f32 %v6127_v20  ;;  %v6124_v0 = vpop.xlane.xlu0 %6123  ;;  %v10943_v20 = vld [vmem:[%s14354_s6 + $0x2a0] sm:$0xff]  }
0x2c74   :  { %11263 = vrcp.f32 %v6124_v0  ;;  %v10944_v0 = vld [vmem:[%s14354_s6 + $0x2a8] sm:$0xff]  }
0x2c77   :  { %v6133_v23 = vpop.xlane.xlu1 %6132 }
0x2c78   :  { %11265 = vrcp.f32 %v6133_v23  ;;  %v6130_v42 = vpop.xlane.xlu0 %6129  ;;  %v10945_v23 = vld [vmem:[%s14354_s6 + $0x2b0] sm:$0xff]  }
0x2c79   :  { %11267 = vrcp.f32 %v6130_v42  ;;  %v10946_v42 = vld [vmem:[%s14354_s6 + $0x2b8] sm:$0xff]  }
0x2c7b   :  { %v6164_v2 = vpop.permute.xlu1 %6163 }
0x2c7c   :  { %v6139_v17 = vpop.xlane.xlu0 %6138  ;;  %10114 = vmatpush3.bf16.msra.mxu0 %v6164_v2 }
0x2c7d   :  { %v11262_v53 = vpop.eup %11261  ;;  %10115 = vmatprep.subr.bf16.mxu0 %v11394_v55  ;;  %11269 = vrcp.f32 %v6139_v17 }
0x2c7e   :  { %v11264_v10 = vpop.eup %11263  ;;  %v6147_v13 = vmul.f32 %v11262_v53, %v11250_v11  ;;  %v10936_v11 = vld [vmem:[%s14356_s8 + $0x88] sm:$0xff]  }
0x2c7f   :  { %v6146_v22 = vmul.f32 %v11264_v10, %v11252_v49 }
0x2c80   :  { %v6166_v28 = vpop.permute.xlu0 %6165 }
0x2c81   :  { %v6152_v6 = vpack.c.bf16 %v6147_v13, %v6146_v22  ;;  %10116 = vmatpush3.bf16.msra.mxu0 %v6166_v28 }
0x2c82   :  { %v11266_v47 = vpop.eup %11265  ;;  %10145 = vmatprep.subr.bf16.mxu0 %v11394_v55 }
0x2c83   :  { %v11268_v51 = vpop.eup %11267  ;;  %v6149_v63 = vmul.f32 %v11266_v47, %v11254_v38 }
0x2c84   :  { %10118 = vmatmul.mubr.msk.bf16.vlgmr.msra.gmra.mrb[204].mxu0 %vm533_vm3, %v6152_v6  ;;  %v6148_v49 = vmul.f32 %v11268_v51, %v11256_v7 }
0x2c85   :  { %10121 = vmatprep.mubr.msk.bf16.mxu0 %vm11395_vm0, %v11394_v55  ;;  %10146 = vmatpush3.bf16.msra.mxu0 %v10935_v54 }
0x2c86   :  { %10147 = vmatprep.subr.bf16.mxu0 %v11394_v55  ;;  %v6153_v32 = vpack.c.bf16 %v6149_v63, %v6148_v49 }
0x2c87   :  { %v11270_v36 = vpop.eup %11269 }
0x2c88   :  { %v6151_v50 = vmul.f32 %v11270_v36, %v11258_v25  ;;  %v10941_v25 = vld [vmem:[%s14354_s6 + $0x290] sm:$0xff]  }
0x2c89   :  { %10148 = vmatpush3.bf16.msra.mxu0 %v10936_v11 }
0x2c8c   :  { %10122 = vmatmul.mubr.msk.bf16.gmra.mrb[208].mxu0 %vm533_vm3, %v6153_v32 }
0x2c8d   :  { %10125 = vmatprep.mubr.msk.bf16.mxu0 %vm11395_vm0, %v11394_v55 }
0x2cac   :  { %v6136_v27 = vpop.xlane.xlu1 %6135 }
0x2cad   :  { %11271 = vrcp.f32 %v6136_v27 }
0x2cb7   :  { %v11272_v26 = vpop.eup %11271 }
0x2cb8   :  { %v6150_v33 = vmul.f32 %v11272_v26, %v11260_v5 }
0x2cba   :  { %v6154_v60 = vpack.c.bf16 %v6151_v50, %v6150_v33 }
0x2cbc   :  { %10126 = vmatmul.mubr.msk.bf16.gmra.mrb[212].mxu0 %vm533_vm3, %v6154_v60 }
0x2cbd   :  { %10149 = vmatprep.mubr.msk.bf16.mxu0 %vm11395_vm0, %v11394_v55 }
0x2cc4   :  { %10150 = vmatmul.mubr.msk.bf16.vlgmr.msra.gmra.mrb[216].mxu0 %vm401_vm1, %v5799_v18 }
0x2cc5   :  { %10153 = vmatprep.mubr.msk.bf16.mxu0 %vm11395_vm0, %v11394_v55 }
0x2ccc   :  { %10154 = vmatmul.mubr.msk.bf16.gmra.mrb[220].mxu0 %vm401_vm1, %v5800_v8 }
0x2ccd   :  { %10157 = vmatprep.mubr.msk.bf16.mxu0 %vm11395_vm0, %v11394_v55 }
0x2cd4   :  { %10158 = vmatmul.mubr.msk.bf16.gmra.mrb[224].mxu0 %vm401_vm1, %v5801_v41 }
0x2d57   :  { %v6213_v48 = vpop.f32.mrb[204].mxu0 }
0x2d58   :  { %v10119_v18 = vpop.f32.mrb[205].mxu0 }
0x2d59   :  { %v6216_v12 = vpop.f32.mrb[206].mxu0 }
0x2d5a   :  { %v6236_v8 = vpack.c.bf16 %v6216_v12, %v6213_v48  ;;  %v10120_v38 = vpop.f32.mrb[207].mxu0 }
0x2d5c   :  { %10134 = vmatmul.mubr.msk.bf16.vlgmr.msra.gmra.mrb[228].mxu1 %vm401_vm1, %v6236_v8 }
0x2d5d   :  { %10137 = vmatprep.mubr.msk.bf16.mxu1 %vm11395_vm0, %v11394_v55  ;;  %10162 = vmatpush3.bf16.msra.mxu1 %v10939_v16 }
0x2d5e   :  { %10163 = vmatprep.subr.bf16.mxu1 %v11394_v55 }
0x2d5f   :  { %v6221_v62 = vpop.f32.mrb[208].mxu0 }
0x2d60   :  { %v10123_v41 = vpop.f32.mrb[209].mxu0 }
0x2d61   :  { %v6224_v7 = vpop.f32.mrb[210].mxu0  ;;  %10164 = vmatpush3.bf16.msra.mxu1 %v10940_v30 }
0x2d62   :  { %v6237_v5 = vpack.c.bf16 %v6224_v7, %v6221_v62  ;;  %v10124_v37 = vpop.f32.mrb[211].mxu0  ;;  %10165 = vmatprep.subr.bf16.mxu1 %v11394_v55 }
0x2d64   :  { %10138 = vmatmul.mubr.msk.bf16.gmra.mrb[232].mxu1 %vm401_vm1, %v6237_v5 }
0x2d65   :  { %10166 = vmatpush3.bf16.msra.mxu1 %v10941_v25  ;;  %10141 = vmatprep.mubr.msk.bf16.mxu1 %vm11395_vm0, %v11394_v55 }
0x2d66   :  { %10167 = vmatprep.subr.bf16.mxu1 %v11394_v55 }
0x2d69   :  { %10168 = vmatpush3.bf16.msra.mxu1 %v10942_v56  ;;  %v8609_v56 = vld [vmem:[%s14355_s7 + $0xa] ss:$0 sm:$0xff] }
0x2d6a   :  { %10169 = vmatprep.subr.bf16.mxu1 %v11394_v55 }
0x2d6d   :  { %10170 = vmatpush3.bf16.msra.mxu1 %v10943_v20 }
0x2d6e   :  { %10171 = vmatprep.subr.bf16.mxu1 %v11394_v55 }
0x2d71   :  { %10172 = vmatpush3.bf16.msra.mxu1 %v10944_v0 }
0x2d72   :  { %10173 = vmatprep.subr.bf16.mxu1 %v11394_v55 }
0x2d75   :  { %10174 = vmatpush3.bf16.msra.mxu1 %v10945_v23 }
0x2d76   :  { %10175 = vmatprep.subr.bf16.mxu1 %v11394_v55 }
0x2d79   :  { %10176 = vmatpush3.bf16.msra.mxu1 %v10946_v42 }
0x2d7a   :  { %10210 = vmatprep.subr.bf16.mxu1 %v11394_v55 }
0x2d8f   :  { %v6229_v2 = vpop.f32.mrb[212].mxu0 }
0x2d90   :  { %v10127_v17 = vpop.f32.mrb[213].mxu0 }
0x2d91   :  { %v6232_v53 = vpop.f32.mrb[214].mxu0 }
0x2d92   :  { %v6238_v10 = vpack.c.bf16 %v6232_v53, %v6229_v2  ;;  %v10128_v13 = vpop.f32.mrb[215].mxu0 }
0x2d94   :  { %10142 = vmatmul.mubr.msk.bf16.gmra.mrb[236].mxu1 %vm401_vm1, %v6238_v10 }
0x2d95   :  { %10177 = vmatprep.mubr.msk.bf16.mxu1 %vm11395_vm0, %v11394_v55 }
0x2d97   :  { %v6377_v22 = vpop.f32.mrb[216].mxu0 }
0x2d98   :  { %v10151_v28 = vpop.f32.mrb[217].mxu0 }
0x2d99   :  { %v6380_v6 = vpop.f32.mrb[218].mxu0 }
0x2d9a   :  { %v10152_v54 = vpop.f32.mrb[219].mxu0 }
0x2d9c   :  { %10178 = vmatmul.mubr.bf16.vlgmr.msra.gmra.mrb[240].mxu1 %v13483_v24 }
0x2d9d   :  { %10181 = vmatprep.mubr.msk.bf16.mxu1 %vm11395_vm0, %v11394_v55 }
0x2d9f   :  { %v6385_v47 = vpop.f32.mrb[220].mxu0 }
0x2da0   :  { %v10155_v51 = vpop.f32.mrb[221].mxu0 }
0x2da1   :  { %v6388_v11 = vpop.f32.mrb[222].mxu0 }
0x2da2   :  { %v10156_v49 = vpop.f32.mrb[223].mxu0 }
0x2da4   :  { %10182 = vmatmul.mubr.bf16.gmra.mrb[244].mxu1 %v13504_v29 }
0x2da5   :  { %10185 = vmatprep.mubr.msk.bf16.mxu1 %vm11395_vm0, %v11394_v55 }
0x2da7   :  { %v6393_v63 = vpop.f32.mrb[224].mxu0 }
0x2da8   :  { %v10159_v32 = vpop.f32.mrb[225].mxu0 }
0x2da9   :  { %v6396_v27 = vpop.f32.mrb[226].mxu0 }
0x2daa   :  { %v10160_v36 = vpop.f32.mrb[227].mxu0 }
0x2dac   :  { %10186 = vmatmul.mubr.bf16.gmra.mrb[248].mxu1 %v13523_v4 }
0x2dad   :  { %10216 = vmatprep.mubr.msk.bf16.mxu1 %vm11395_vm0, %v11394_v55 }
0x2e2f   :  { %v6299_v26 = vpop.f32.mrb[228].mxu1 }
0x2e30   :  { %v13878_v33 = vadd.f32 %v6377_v22, %v6299_v26  ;;  %v10135_v50 = vpop.f32.mrb[229].mxu1 }
0x2e31   :  { %v6302_v60 = vpop.f32.mrb[230].mxu1 }
0x2e32   :  { %v13880_v31 = vadd.f32 %v6380_v6, %v6302_v60  ;;  %v10136_v48 = vpop.f32.mrb[231].mxu1 }
0x2e37   :  { %v6307_v18 = vpop.f32.mrb[232].mxu1 }
0x2e38   :  { %v13882_v12 = vadd.f32 %v6385_v47, %v6307_v18  ;;  %v10139_v16 = vpop.f32.mrb[233].mxu1 }
0x2e39   :  { %v6310_v8 = vpop.f32.mrb[234].mxu1 }
0x2e3a   :  { %v13884_v38 = vadd.f32 %v6388_v11, %v6310_v8  ;;  %v10140_v30 = vpop.f32.mrb[235].mxu1 }
0x2e67   :  { %v6315_v62 = vpop.f32.mrb[236].mxu1 }
0x2e68   :  { %v13886_v41 = vadd.f32 %v6393_v63, %v6315_v62  ;;  %v10143_v7 = vpop.f32.mrb[237].mxu1 }
0x2e69   :  { %v6318_v25 = vpop.f32.mrb[238].mxu1 }
0x2e6a   :  { %v13888_v5 = vadd.f32 %v6396_v27, %v6318_v25  ;;  %v10144_v37 = vpop.f32.mrb[239].mxu1 }
0x2e6f   :  { %v6507_v20 = vpop.f32.mrb[240].mxu1 }
0x2e70   :  { %v13893_v0 = vadd.f32 %v8609_v56, %v6507_v20  ;;  %v10179_v23 = vpop.f32.mrb[241].mxu1 }
0x2e71   :  { %v6510_v42 = vpop.f32.mrb[242].mxu1 }
0x2e72   :  { %v13895_v2 = vadd.f32 %v8609_v56, %v6510_v42  ;;  %v10180_v17 = vpop.f32.mrb[243].mxu1  ;;  %10201 = vmatprep.mubr.msk.f32.mxu0 %vm401_vm1, %v13893_v0 }
0x2e74   :  { %v10776_v53 = vpack.i.bf16 %v13895_v2, %v13893_v0 }
0x2e76   :  { %10777 = vrot.lane.b32.xlu1 %v10776_v53, %s11396_s2 }
0x2e77   :  { %v6515_v10 = vpop.f32.mrb[244].mxu1 }
0x2e78   :  { %v10183_v13 = vpop.f32.mrb[245].mxu1  ;;  %v13902_v28 = vadd.f32 %v8609_v56, %v6515_v10 }
0x2e79   :  { %v6518_v22 = vpop.f32.mrb[246].mxu1 }
0x2e7a   :  { %v13904_v6 = vadd.f32 %v8609_v56, %v6518_v22  ;;  %v10184_v54 = vpop.f32.mrb[247].mxu1 }
0x2e7c   :  { %v10781_v47 = vpack.i.bf16 %v13904_v6, %v13902_v28 }
0x2e7e   :  { %10782 = vrot.lane.b32.xlu1 %v10781_v47, %s11396_s2 }
0x2e7f   :  { %v6523_v51 = vpop.f32.mrb[248].mxu1 }
0x2e80   :  { %v10187_v11 = vpop.f32.mrb[249].mxu1  ;;  %v13909_v63 = vadd.f32 %v8609_v56, %v6523_v51 }
0x2e81   :  { %v6526_v49 = vpop.f32.mrb[250].mxu1 }
0x2e82   :  { %v13911_v32 = vadd.f32 %v8609_v56, %v6526_v49  ;;  %v10188_v27 = vpop.f32.mrb[251].mxu1 }
0x2e84   :  { %v10786_v36 = vpack.i.bf16 %v13911_v32, %v13909_v63 }
0x2e86   :  { %10787 = vrot.lane.b32.xlu0 %v10786_v36, %s11396_s2 }
0x2ee8   :  { %v10778_v26 = vpop.permute.xlu1 %10777 }
0x2ee9   :  { %v10780_v50 = vunpack.i.h.bf16 %v10778_v26  ;;  %v10779_v60 = vunpack.i.l.bf16 %v10778_v26 }
0x2eeb   :  { %v10573_v48 = vpack.c.bf16 %v10780_v50, %v10779_v60 }
0x2eed   :  { %10575 = vmatprep.subr.msk.bf16.mxu0 %vm11689_vm2, %v10573_v48 }
0x2eee   :  { %10578 = vmatpush3.bf16.xpose.msk.msra.mxu0 %vm11689_vm2, %v10573_v48 }
0x2ef0   :  { %v10783_v18 = vpop.permute.xlu1 %10782 }
0x2ef1   :  { %v10785_v16 = vunpack.i.h.bf16 %v10783_v18  ;;  %v10784_v8 = vunpack.i.l.bf16 %v10783_v18 }
0x2ef3   :  { %v10579_v30 = vpack.c.bf16 %v10785_v16, %v10784_v8 }
0x2ef5   :  { %10581 = vmatprep.subr.msk.bf16.mxu0 %vm11689_vm2, %v10579_v30 }
0x2ef6   :  { %10584 = vmatpush3.bf16.xpose.msk.msra.mxu0 %vm11689_vm2, %v10579_v30 }
0x2ef8   :  { %v10788_v62 = vpop.permute.xlu0 %10787 }
0x2ef9   :  { %v10790_v7 = vunpack.i.h.bf16 %v10788_v62  ;;  %v10789_v25 = vunpack.i.l.bf16 %v10788_v62 }
0x2efb   :  { %v10585_v37 = vpack.c.bf16 %v10790_v7, %v10789_v25 }
0x2efd   :  { %10587 = vmatprep.subr.msk.bf16.mxu0 %vm11689_vm2, %v10585_v37 }
0x2efe   :  { %10590 = vmatpush3.bf16.xpose.msk.msra.mxu0 %vm11689_vm2, %v10585_v37 }
0x2eff   :  { %10228 = vmatprep.subr.bf16.mxu0 %v11394_v55 }
0x2f05   :  { %10202 = vmatmul.mubr.msk.f32.vlgmr.msra.gmra.mrb[228].mxu0 %vm401_vm1, %v13895_v2 }
0x2f06   :  { %10204 = vmatprep.mubr.msk.f32.mxu0 %vm401_vm1, %v13902_v28 }
0x2f09   :  { %10205 = vmatmul.mubr.msk.f32.gmra.mrb[230].mxu0 %vm401_vm1, %v13904_v6 }
0x2f0a   :  { %10207 = vmatprep.mubr.msk.f32.mxu0 %vm401_vm1, %v13909_v63 }
0x2f0d   :  { %10208 = vmatmul.mubr.msk.f32.gmra.mrb[232].mxu0 %vm401_vm1, %v13911_v32 }
0x2f0e   :  { %10232 = vmatprep.mubr.msk.bf16.mxu0 %vm11395_vm0, %v11394_v55 }
0x2fd8   :  { %v10203_v56 = vpop.f32.mrb[228].mxu0 }
0x2fd9   :  { %v6668_v20 = vmul.f32 0.17677669, %v10203_v56  ;;  %v6638_v23 = vpop.f32.mrb[229].mxu0 }
0x2fda   :  { %v6667_v42 = vmul.f32 0.17677669, %v6638_v23 }
0x2fdb   :  { %v6674_v17 = vadd.f32 %v13616_v39, %v6668_v20 }
0x2fdc   :  { %v6673_v53 = vadd.f32 %v13622_v15, %v6667_v42  ;;  %v10206_v10 = vpop.f32.mrb[230].mxu0 }
0x2fdd   :  { %v6670_v13 = vmul.f32 0.17677669, %v10206_v10  ;;  %v6648_v22 = vpop.f32.mrb[231].mxu0  ;;  %v6682_v54 = vsel %vm533_vm3, %v6674_v17, -inf }
0x2fde   :  { %v6669_v47 = vmul.f32 0.17677669, %v6648_v22  ;;  %6683 = vmax.xlane.f32.xlu0 %v6682_v54  ;;  %v6679_v51 = vsel %vm533_vm3, %v6673_v53, -inf }
0x2fdf   :  { %v6676_v11 = vadd.f32 %v13630_v43, %v6670_v13  ;;  %6680 = vmax.xlane.f32.xlu1 %v6679_v51 }
0x2fe0   :  { %v6675_v49 = vadd.f32 %v13636_v57, %v6669_v47  ;;  %v10209_v27 = vpop.f32.mrb[232].mxu0  ;;  %v6748_v57 = vpack.c.bf16 %v13895_v2, %v13893_v0 }
0x2fe1   :  { %v6672_v36 = vmul.f32 0.17677669, %v10209_v27  ;;  %v6658_v26 = vpop.f32.mrb[233].mxu0  ;;  %v6688_v39 = vsel %vm533_vm3, %v6676_v11, -inf }
0x2fe2   :  { %v6671_v15 = vmul.f32 0.17677669, %v6658_v26  ;;  %v6685_v50 = vsel %vm533_vm3, %v6675_v49, -inf  ;;  %v6749_v26 = vpack.c.bf16 %v13904_v6, %v13902_v28  ;;  %v10955_v28 = vld [vmem:[%s14356_s8 + $0xa0] sm:$0xff]  }
0x2fe3   :  { %v6678_v60 = vadd.f32 %v13644_v46, %v6672_v36  ;;  %6689 = vmax.xlane.f32.xlu1 %v6688_v39  ;;  %6686 = vmax.xlane.f32.xlu0 %v6685_v50  ;;  %v6750_v39 = vpack.c.bf16 %v13911_v32, %v13909_v63 }
0x2fe4   :  { %v6677_v48 = vadd.f32 %v13650_v34, %v6671_v15  ;;  %10229 = vmatpush3.bf16.msra.mxu0 %v10955_v28 }
0x2fe5   :  { %v6694_v18 = vsel %vm533_vm3, %v6678_v60, -inf  ;;  %10230 = vmatprep.subr.bf16.mxu0 %v11394_v55 }
0x2fe6   :  { %v6691_v43 = vsel %vm533_vm3, %v6677_v48, -inf }
0x2fe7   :  { %6695 = vmax.xlane.f32.xlu1 %v6694_v18  ;;  %6692 = vmax.xlane.f32.xlu0 %v6691_v43 }
0x2ffd   :  { %6754 = vrot.lane.b32.xlu0 %v6748_v57, %s11397_s28 }
0x306b   :  { %v6684_v16 = vpop.xlane.xlu0 %6683 }
0x306c   :  { %v6698_v8 = vsub.f32 %v6674_v17, %v6684_v16  ;;  %v6681_v30 = vpop.xlane.xlu1 %6680 }
0x306d   :  { %v6697_v62 = vsub.f32 %v6673_v53, %v6681_v30 }
0x306e   :  { %v6705_v46 = vmul.f32 1.442695, %v6698_v8 }
0x306f   :  { %v6703_v7 = vmul.f32 1.442695, %v6697_v62 }
0x3070   :  { %11273 = vpow2.f32 %v6705_v46  ;;  %v6690_v25 = vpop.xlane.xlu1 %6689  ;;  %v6687_v34 = vpop.xlane.xlu0 %6686 }
0x3071   :  { %11275 = vpow2.f32 %v6703_v7  ;;  %v6700_v37 = vsub.f32 %v6676_v11, %v6690_v25  ;;  %v6699_v56 = vsub.f32 %v6675_v49, %v6687_v34  ;;  %v10947_v25 = vld [vmem:[%s14354_s6 + $0x2c0] sm:$0xff]  }
0x3073   :  { %v6709_v20 = vmul.f32 1.442695, %v6700_v37  ;;  %v6707_v23 = vmul.f32 1.442695, %v6699_v56  ;;  %v10948_v56 = vld [vmem:[%s14354_s6 + $0x2c8] sm:$0xff]  }
0x3074   :  { %v6696_v42 = vpop.xlane.xlu1 %6695  ;;  %v6693_v10 = vpop.xlane.xlu0 %6692 }
0x3075   :  { %11277 = vpow2.f32 %v6709_v20  ;;  %v6702_v0 = vsub.f32 %v6678_v60, %v6696_v42  ;;  %v6701_v15 = vsub.f32 %v6677_v48, %v6693_v10  ;;  %v10949_v42 = vld [vmem:[%s14354_s6 + $0x2d0] sm:$0xff]  }
0x3076   :  { %11279 = vpow2.f32 %v6707_v23 }
0x3077   :  { %v6713_v2 = vmul.f32 1.442695, %v6702_v0  ;;  %v6711_v50 = vmul.f32 1.442695, %v6701_v15  ;;  %v10950_v0 = vld [vmem:[%s14354_s6 + $0x2d8] sm:$0xff]  }
0x3078   :  { %v6755_v13 = vpop.permute.xlu0 %6754 }
0x3079   :  { %11281 = vpow2.f32 %v6713_v2  ;;  %10211 = vmatpush3.bf16.msra.mxu1 %v6755_v13  ;;  %v10951_v2 = vld [vmem:[%s14354_s6 + $0x2e0] sm:$0xff]   ;;  %v10952_v13 = vld [vmem:[%s14354_s6 + $0x2e8] sm:$0xff]  }
0x307a   :  { %v11274_v17 = vpop.eup %11273  ;;  %10212 = vmatprep.subr.bf16.mxu1 %v11394_v55  ;;  %11283 = vpow2.f32 %v6711_v50 }
0x307b   :  { %v11276_v53 = vpop.eup %11275  ;;  %v6718_v22 = vsel %vm533_vm3, %v11274_v17, 0.0 }
0x307c   :  { %6719 = vadd.xlane.f32.xlu1 %v6718_v22  ;;  %v6715_v54 = vsel %vm533_vm3, %v11276_v53, 0.0 }
0x307d   :  { %6716 = vadd.xlane.f32.xlu0 %v6715_v54 }
0x307f   :  { %v11278_v47 = vpop.eup %11277 }
0x3080   :  { %v11280_v51 = vpop.eup %11279  ;;  %v6724_v11 = vsel %vm533_vm3, %v11278_v47, 0.0 }
0x3081   :  { %6725 = vadd.xlane.f32.xlu1 %v6724_v11  ;;  %v6721_v49 = vsel %vm533_vm3, %v11280_v51, 0.0 }
0x3082   :  { %6722 = vadd.xlane.f32.xlu0 %v6721_v49 }
0x3083   :  { %v13961_v27 = vpop.eup %11281 }
0x3084   :  { %v6730_v36 = vsel %vm533_vm3, %v13961_v27, 0.0  ;;  %v13971_v60 = vpop.eup %11283 }
0x3085   :  { %v6727_v18 = vsel %vm533_vm3, %v13971_v60, 0.0 }
0x3086   :  { %6731 = vadd.xlane.f32.xlu0 %v6730_v36 }
0x3092   :  { %6756 = vrot.lane.b32.xlu1 %v6749_v26, %s11397_s28 }
0x309c   :  { %6758 = vrot.lane.b32.xlu0 %v6750_v39, %s11397_s28 }
0x30b6   :  { %6728 = vadd.xlane.f32.xlu1 %v6727_v18 }
0x3109   :  { %v6720_v6 = vpop.xlane.xlu1 %6719 }
0x310a   :  { %11285 = vrcp.f32 %v6720_v6  ;;  %v6717_v63 = vpop.xlane.xlu0 %6716 }
0x310b   :  { %11287 = vrcp.f32 %v6717_v63 }
0x310e   :  { %v6726_v32 = vpop.xlane.xlu1 %6725 }
0x310f   :  { %11289 = vrcp.f32 %v6726_v32  ;;  %v6723_v48 = vpop.xlane.xlu0 %6722 }
0x3110   :  { %11291 = vrcp.f32 %v6723_v48 }
0x3112   :  { %v6757_v43 = vpop.permute.xlu1 %6756 }
0x3113   :  { %v6732_v57 = vpop.xlane.xlu0 %6731  ;;  %10213 = vmatpush3.bf16.msra.mxu1 %v6757_v43  ;;  %v8659_v43 = vld [vmem:[%s14355_s7 + $0xb] ss:$0 sm:$0xff] }
0x3114   :  { %v11286_v16 = vpop.eup %11285  ;;  %10214 = vmatprep.subr.bf16.mxu1 %v11394_v55  ;;  %11293 = vrcp.f32 %v6732_v57 }
0x3115   :  { %v11288_v8 = vpop.eup %11287  ;;  %v6740_v30 = vmul.f32 %v11286_v16, %v11274_v17  ;;  %v10953_v17 = vld [vmem:[%s14354_s6 + $0x2f0] sm:$0xff]  }
0x3116   :  { %v6739_v62 = vmul.f32 %v11288_v8, %v11276_v53  ;;  %v10954_v53 = vld [vmem:[%s14354_s6 + $0x2f8] sm:$0xff]  }
0x3117   :  { %v6759_v46 = vpop.permute.xlu0 %6758 }
0x3118   :  { %v6745_v7 = vpack.c.bf16 %v6740_v30, %v6739_v62  ;;  %10215 = vmatpush3.bf16.msra.mxu1 %v6759_v46 }
0x3119   :  { %v11290_v34 = vpop.eup %11289  ;;  %10244 = vmatprep.subr.bf16.mxu1 %v11394_v55 }
0x311a   :  { %v11292_v37 = vpop.eup %11291  ;;  %v6742_v20 = vmul.f32 %v11290_v34, %v11278_v47 }
0x311b   :  { %10217 = vmatmul.mubr.msk.bf16.vlgmr.msra.gmra.mrb[252].mxu1 %vm533_vm3, %v6745_v7  ;;  %v6741_v23 = vmul.f32 %v11292_v37, %v11280_v51 }
0x311c   :  { %10220 = vmatprep.mubr.msk.bf16.mxu1 %vm11395_vm0, %v11394_v55  ;;  %10245 = vmatpush3.bf16.msra.mxu1 %v10947_v25 }
0x311d   :  { %10246 = vmatprep.subr.bf16.mxu1 %v11394_v55  ;;  %v6746_v10 = vpack.c.bf16 %v6742_v20, %v6741_v23 }
0x311e   :  { %v11294_v54 = vpop.eup %11293 }
0x311f   :  { %v6744_v51 = vmul.f32 %v11294_v54, %v13961_v27  ;;  %v10956_v27 = vld [vmem:[%s14356_s8 + $0xa8] sm:$0xff]  }
0x3120   :  { %10247 = vmatpush3.bf16.msra.mxu1 %v10948_v56  ;;  %10231 = vmatpush3.bf16.msra.mxu0 %v10956_v27 }
0x3121   :  { %10248 = vmatprep.subr.bf16.mxu1 %v11394_v55 }
0x3123   :  { %10221 = vmatmul.mubr.msk.bf16.gmra.mrb[0].mxu1 %vm533_vm3, %v6746_v10 }
0x3124   :  { %10249 = vmatpush3.bf16.msra.mxu1 %v10949_v42  ;;  %10224 = vmatprep.mubr.msk.bf16.mxu1 %vm11395_vm0, %v11394_v55 }
0x3125   :  { %10250 = vmatprep.subr.bf16.mxu1 %v11394_v55 }
0x3128   :  { %10251 = vmatpush3.bf16.msra.mxu1 %v10950_v0 }
0x3129   :  { %10252 = vmatprep.subr.bf16.mxu1 %v11394_v55 }
0x312c   :  { %10253 = vmatpush3.bf16.msra.mxu1 %v10951_v2 }
0x312d   :  { %10254 = vmatprep.subr.bf16.mxu1 %v11394_v55 }
0x3130   :  { %10255 = vmatpush3.bf16.msra.mxu1 %v10952_v13 }
0x3131   :  { %10256 = vmatprep.subr.bf16.mxu1 %v11394_v55 }
0x3134   :  { %10257 = vmatpush3.bf16.msra.mxu1 %v10953_v17 }
0x3135   :  { %10258 = vmatprep.subr.bf16.mxu1 %v11394_v55 }
0x3138   :  { %10259 = vmatpush3.bf16.msra.mxu1 %v10954_v53 }
0x3139   :  { %10311 = vmatprep.subr.bf16.mxu1 %v11394_v55 }
0x3143   :  { %v6729_v22 = vpop.xlane.xlu1 %6728 }
0x3144   :  { %11295 = vrcp.f32 %v6729_v22 }
0x314e   :  { %v11296_v47 = vpop.eup %11295 }
0x314f   :  { %v6743_v11 = vmul.f32 %v11296_v47, %v13971_v60 }
0x3151   :  { %v6747_v49 = vpack.c.bf16 %v6744_v51, %v6743_v11 }
0x3153   :  { %10225 = vmatmul.mubr.msk.bf16.gmra.mrb[8].mxu1 %vm533_vm3, %v6747_v49 }
0x3154   :  { %10260 = vmatprep.mubr.msk.bf16.mxu1 %vm11395_vm0, %v11394_v55 }
0x315b   :  { %10261 = vmatmul.mubr.bf16.vlgmr.msra.gmra.mrb[12].mxu1 %v13483_v24 }
0x315c   :  { %10264 = vmatprep.mubr.msk.bf16.mxu1 %vm11395_vm0, %v11394_v55 }
0x3163   :  { %10265 = vmatmul.mubr.bf16.gmra.mrb[16].mxu1 %v13504_v29 }
0x3164   :  { %10268 = vmatprep.mubr.msk.bf16.mxu1 %vm11395_vm0, %v11394_v55 }
0x316b   :  { %10269 = vmatmul.mubr.bf16.gmra.mrb[4].mxu1 %v13523_v4 }
0x316c   :  { %10315 = vmatprep.mubr.msk.bf16.mxu1 %vm11395_vm0, %v11394_v55 }
0x31ee   :  { %v6806_v36 = vpop.f32.mrb[252].mxu1 }
0x31ef   :  { %v10218_v24 = vpop.f32.mrb[253].mxu1 }
0x31f0   :  { %v6809_v26 = vpop.f32.mrb[254].mxu1 }
0x31f1   :  { %v6829_v39 = vpack.c.bf16 %v6809_v26, %v6806_v36  ;;  %v10219_v15 = vpop.f32.mrb[255].mxu1 }
0x31f3   :  { %10233 = vmatmul.mubr.msk.bf16.vlgmr.msra.gmra.mrb[236].mxu0 %vm401_vm1, %v6829_v39 }
0x31f4   :  { %10236 = vmatprep.mubr.msk.bf16.mxu0 %vm11395_vm0, %v11394_v55 }
0x31f6   :  { %v6814_v29 = vpop.f32.mrb[0].mxu1 }
0x31f7   :  { %v10222_v4 = vpop.f32.mrb[1].mxu1 }
0x31f8   :  { %v6817_v50 = vpop.f32.mrb[2].mxu1 }
0x31f9   :  { %v6830_v60 = vpack.c.bf16 %v6817_v50, %v6814_v29  ;;  %v10223_v18 = vpop.f32.mrb[3].mxu1 }
0x31fb   :  { %10237 = vmatmul.mubr.msk.bf16.gmra.mrb[240].mxu0 %vm401_vm1, %v6830_v60 }
0x31fc   :  { %10240 = vmatprep.mubr.msk.bf16.mxu0 %vm11395_vm0, %v11394_v55 }
0x3226   :  { %v6822_v28 = vpop.f32.mrb[8].mxu1 }
0x3227   :  { %v10226_v6 = vpop.f32.mrb[9].mxu1 }
0x3228   :  { %v6825_v63 = vpop.f32.mrb[10].mxu1 }
0x3229   :  { %v6831_v32 = vpack.c.bf16 %v6825_v63, %v6822_v28  ;;  %v10227_v48 = vpop.f32.mrb[11].mxu1 }
0x322b   :  { %10241 = vmatmul.mubr.msk.bf16.gmra.mrb[244].mxu0 %vm401_vm1, %v6831_v32 }
0x322e   :  { %v7028_v57 = vpop.f32.mrb[12].mxu1 }
0x322f   :  { %v14046_v16 = vadd.f32 %v8659_v43, %v7028_v57  ;;  %v10262_v8 = vpop.f32.mrb[13].mxu1 }
0x3230   :  { %v7031_v30 = vpop.f32.mrb[14].mxu1 }
0x3231   :  { %v14048_v62 = vadd.f32 %v8659_v43, %v7031_v30  ;;  %v10263_v46 = vpop.f32.mrb[15].mxu1  ;;  %10284 = vmatprep.mubr.msk.f32.mxu0 %vm401_vm1, %v14046_v16 }
0x3233   :  { %v10791_v7 = vpack.i.bf16 %v14048_v62, %v14046_v16 }
0x3235   :  { %10792 = vrot.lane.b32.xlu1 %v10791_v7, %s11396_s2 }
0x3236   :  { %v7036_v25 = vpop.f32.mrb[16].mxu1 }
0x3237   :  { %v10266_v34 = vpop.f32.mrb[17].mxu1  ;;  %v14055_v56 = vadd.f32 %v8659_v43, %v7036_v25 }
0x3238   :  { %v7039_v37 = vpop.f32.mrb[18].mxu1 }
0x3239   :  { %v14057_v20 = vadd.f32 %v8659_v43, %v7039_v37  ;;  %v10267_v23 = vpop.f32.mrb[19].mxu1 }
0x323b   :  { %v10796_v42 = vpack.i.bf16 %v14057_v20, %v14055_v56 }
0x323d   :  { %10797 = vrot.lane.b32.xlu1 %v10796_v42, %s11396_s2 }
0x323e   :  { %v7044_v10 = vpop.f32.mrb[4].mxu1 }
0x323f   :  { %v10270_v0 = vpop.f32.mrb[5].mxu1  ;;  %v14062_v13 = vadd.f32 %v8659_v43, %v7044_v10 }
0x3240   :  { %v7047_v2 = vpop.f32.mrb[6].mxu1 }
0x3241   :  { %v14064_v17 = vadd.f32 %v8659_v43, %v7047_v2  ;;  %v10271_v53 = vpop.f32.mrb[7].mxu1 }
0x3243   :  { %v10801_v22 = vpack.i.bf16 %v14064_v17, %v14062_v13 }
0x3245   :  { %10802 = vrot.lane.b32.xlu0 %v10801_v22, %s11396_s2 }
0x32a7   :  { %v10793_v54 = vpop.permute.xlu1 %10792 }
0x32a8   :  { %v10795_v47 = vunpack.i.h.bf16 %v10793_v54  ;;  %v10794_v51 = vunpack.i.l.bf16 %v10793_v54  ;;  %v11363_v54 = vld [vmem:[%s14353_s5 + $0x18] sm:$0xff] }
0x32aa   :  { %v10591_v11 = vpack.c.bf16 %v10795_v47, %v10794_v51  ;;  %v11364_v51 = vld [vmem:[%s14353_s5 + $0x10] sm:$0xff] }
0x32ac   :  { %10593 = vmatprep.subr.msk.bf16.mxu0 %vm11689_vm2, %v10591_v11 }
0x32ad   :  { %10596 = vmatpush3.bf16.xpose.msk.msra.mxu0 %vm11689_vm2, %v10591_v11 }
0x32af   :  { %v10798_v49 = vpop.permute.xlu1 %10797 }
0x32b0   :  { %v10800_v27 = vunpack.i.h.bf16 %v10798_v49  ;;  %v10799_v36 = vunpack.i.l.bf16 %v10798_v49 }
0x32b2   :  { %v10597_v24 = vpack.c.bf16 %v10800_v27, %v10799_v36 }
0x32b4   :  { %10599 = vmatprep.subr.msk.bf16.mxu0 %vm11689_vm2, %v10597_v24 }
0x32b5   :  { %10602 = vmatpush3.bf16.xpose.msk.msra.mxu0 %vm11689_vm2, %v10597_v24 }
0x32b7   :  { %v10803_v26 = vpop.permute.xlu0 %10802 }
0x32b8   :  { %v10805_v39 = vunpack.i.h.bf16 %v10803_v26  ;;  %v10804_v15 = vunpack.i.l.bf16 %v10803_v26 }
0x32ba   :  { %v10603_v29 = vpack.c.bf16 %v10805_v39, %v10804_v15  ;;  %v11365_v15 = vld [vmem:[%s14353_s5 + $0x28] sm:$0xff] }
0x32bc   :  { %10605 = vmatprep.subr.msk.bf16.mxu0 %vm11689_vm2, %v10603_v29 }
0x32bd   :  { %10608 = vmatpush3.bf16.xpose.msk.msra.mxu0 %vm11689_vm2, %v10603_v29 }
0x32be   :  { %10293 = vmatprep.subr.bf16.mxu0 %v11394_v55 }
0x32c4   :  { %10285 = vmatmul.mubr.msk.f32.vlgmr.msra.gmra.mrb[234].mxu0 %vm401_vm1, %v14048_v62 }
0x32c5   :  { %10287 = vmatprep.mubr.msk.f32.mxu0 %vm401_vm1, %v14055_v56 }
0x32c6   :  { %v6892_v4 = vpop.f32.mrb[236].mxu0 }
0x32c7   :  { %v14087_v50 = vadd.f32 %v6892_v4, %v13878_v33  ;;  %v10234_v60 = vpop.f32.mrb[237].mxu0  ;;  %v11366_v4 = vld [vmem:[%s14353_s5 + $0x20] sm:$0xff] }
0x32c8   :  { %v6895_v18 = vpop.f32.mrb[238].mxu0  ;;  %10288 = vmatmul.mubr.msk.f32.gmra.mrb[248].mxu0 %vm401_vm1, %v14057_v20 }
0x32c9   :  { %v14092_v52 = vadd.f32 %v6895_v18, %v13880_v31  ;;  %v10235_v28 = vpop.f32.mrb[239].mxu0  ;;  %10290 = vmatprep.mubr.msk.f32.mxu0 %vm401_vm1, %v14062_v13 }
0x32cc   :  { %10291 = vmatmul.mubr.msk.f32.gmra.mrb[250].mxu0 %vm401_vm1, %v14064_v17 }
0x32cd   :  { %10299 = vmatprep.mubr.msk.bf16.mxu0 %vm11395_vm0, %v11394_v55 }
0x32ce   :  { %v6900_v33 = vpop.f32.mrb[240].mxu0 }
0x32cf   :  { %v14101_v6 = vadd.f32 %v6900_v33, %v13882_v12  ;;  %v10238_v63 = vpop.f32.mrb[241].mxu0 }
0x32d0   :  { %v6903_v32 = vpop.f32.mrb[242].mxu0 }
0x32d1   :  { %v14104_v48 = vadd.f32 %v6903_v32, %v13884_v38  ;;  %v10239_v31 = vpop.f32.mrb[243].mxu0  ;;  %v11361_v38 = vld [vmem:[%s14353_s5 + $0x8] sm:$0xff] }
0x32fe   :  { %v6908_v43 = vpop.f32.mrb[244].mxu0 }
0x32ff   :  { %v14107_v57 = vadd.f32 %v6908_v43, %v13886_v41  ;;  %v10242_v8 = vpop.f32.mrb[245].mxu0  ;;  %v11362_v41 = vld [vmem:[%s14353_s5] sm:$0xff] }
0x3300   :  { %v6911_v30 = vpop.f32.mrb[246].mxu0 }
0x3301   :  { %v14110_v46 = vadd.f32 %v6911_v30, %v13888_v5  ;;  %v10243_v7 = vpop.f32.mrb[247].mxu0 }
0x3397   :  { %v10286_v25 = vpop.f32.mrb[234].mxu0 }
0x3398   :  { %v7189_v34 = vmul.f32 0.17677669, %v10286_v25  ;;  %v7159_v12 = vpop.f32.mrb[235].mxu0 }
0x3399   :  { %v7188_v37 = vmul.f32 0.17677669, %v7159_v12 }
0x339a   :  { %v7195_v23 = vadd.f32 %v11361_v38, %v7189_v34 }
0x339b   :  { %v7194_v42 = vadd.f32 %v11362_v41, %v7188_v37  ;;  %v10289_v10 = vpop.f32.mrb[248].mxu0 }
0x339c   :  { %v7191_v0 = vmul.f32 0.17677669, %v10289_v10  ;;  %v7169_v2 = vpop.f32.mrb[249].mxu0  ;;  %v7203_v5 = vsel %vm533_vm3, %v7195_v23, -inf }
0x339d   :  { %v7190_v53 = vmul.f32 0.17677669, %v7169_v2  ;;  %7204 = vmax.xlane.f32.xlu0 %v7203_v5  ;;  %v7200_v22 = vsel %vm533_vm3, %v7194_v42, -inf }
0x339e   :  { %v7197_v47 = vadd.f32 %v11363_v54, %v7191_v0  ;;  %7201 = vmax.xlane.f32.xlu1 %v7200_v22 }
0x339f   :  { %v7196_v11 = vadd.f32 %v11364_v51, %v7190_v53  ;;  %v10292_v49 = vpop.f32.mrb[250].mxu0 }
0x33a0   :  { %v7193_v27 = vmul.f32 0.17677669, %v10292_v49  ;;  %v7179_v36 = vpop.f32.mrb[251].mxu0  ;;  %v7209_v24 = vsel %vm533_vm3, %v7197_v47, -inf }
0x33a1   :  { %v7192_v26 = vmul.f32 0.17677669, %v7179_v36  ;;  %v7206_v39 = vsel %vm533_vm3, %v7196_v11, -inf }
0x33a2   :  { %v7199_v29 = vadd.f32 %v11365_v15, %v7193_v27  ;;  %7210 = vmax.xlane.f32.xlu1 %v7209_v24  ;;  %7207 = vmax.xlane.f32.xlu0 %v7206_v39  ;;  %v7271_v39 = vpack.c.bf16 %v14064_v17, %v14062_v13  ;;  %v7269_v15 = vpack.c.bf16 %v14048_v62, %v14046_v16 }
0x33a3   :  { %v7198_v60 = vadd.f32 %v11366_v4, %v7192_v26  ;;  %v7270_v26 = vpack.c.bf16 %v14057_v20, %v14055_v56  ;;  %v10958_v56 = vld [vmem:[%s14356_s8 + $0xb8] sm:$0xff]  }
0x33a4   :  { %v7215_v18 = vsel %vm533_vm3, %v7199_v29, -inf }
0x33a5   :  { %v7212_v28 = vsel %vm533_vm3, %v7198_v60, -inf }
0x33a6   :  { %7216 = vmax.xlane.f32.xlu1 %v7215_v18  ;;  %7213 = vmax.xlane.f32.xlu0 %v7212_v28 }
0x342a   :  { %v7205_v33 = vpop.xlane.xlu0 %7204 }
0x342b   :  { %v7219_v63 = vsub.f32 %v7195_v23, %v7205_v33  ;;  %v7202_v32 = vpop.xlane.xlu1 %7201 }
0x342c   :  { %v7218_v31 = vsub.f32 %v7194_v42, %v7202_v32 }
0x342d   :  { %v7226_v43 = vmul.f32 1.442695, %v7219_v63 }
0x342e   :  { %v7224_v8 = vmul.f32 1.442695, %v7218_v31 }
0x342f   :  { %11297 = vpow2.f32 %v7226_v43  ;;  %v7211_v30 = vpop.xlane.xlu1 %7210  ;;  %v7208_v7 = vpop.xlane.xlu0 %7207 }
0x3430   :  { %11299 = vpow2.f32 %v7224_v8  ;;  %v7221_v25 = vsub.f32 %v7197_v47, %v7211_v30  ;;  %v7220_v34 = vsub.f32 %v7196_v11, %v7208_v7 }
0x3432   :  { %v7230_v12 = vmul.f32 1.442695, %v7221_v25  ;;  %v7228_v37 = vmul.f32 1.442695, %v7220_v34 }
0x3433   :  { %v7217_v38 = vpop.xlane.xlu1 %7216  ;;  %v7214_v41 = vpop.xlane.xlu0 %7213 }
0x3434   :  { %11301 = vpow2.f32 %v7230_v12  ;;  %v7223_v10 = vsub.f32 %v7199_v29, %v7217_v38  ;;  %v7222_v0 = vsub.f32 %v7198_v60, %v7214_v41  ;;  %v10957_v29 = vld [vmem:[%s14356_s8 + $0xb0] sm:$0xff]  }
0x3435   :  { %11303 = vpow2.f32 %v7228_v37  ;;  %10312 = vmatpush3.bf16.msra.mxu1 %v10957_v29 }
0x3436   :  { %v7234_v2 = vmul.f32 1.442695, %v7223_v10  ;;  %v7232_v23 = vmul.f32 1.442695, %v7222_v0  ;;  %10313 = vmatprep.subr.bf16.mxu1 %v11394_v55 }
0x3438   :  { %11305 = vpow2.f32 %v7234_v2 }
0x3439   :  { %v11298_v42 = vpop.eup %11297  ;;  %11307 = vpow2.f32 %v7232_v23  ;;  %10314 = vmatpush3.bf16.msra.mxu1 %v10958_v56 }
0x343a   :  { %v11300_v5 = vpop.eup %11299  ;;  %v7239_v53 = vsel %vm533_vm3, %v11298_v42, 0.0  ;;  %10355 = vmatprep.subr.bf16.mxu1 %v11394_v55 }
0x343b   :  { %7240 = vadd.xlane.f32.xlu1 %v7239_v53  ;;  %v7236_v22 = vsel %vm533_vm3, %v11300_v5, 0.0 }
0x343c   :  { %7237 = vadd.xlane.f32.xlu0 %v7236_v22 }
0x343e   :  { %v11302_v54 = vpop.eup %11301 }
0x343f   :  { %v11304_v47 = vpop.eup %11303  ;;  %v7245_v51 = vsel %vm533_vm3, %v11302_v54, 0.0 }
0x3440   :  { %7246 = vadd.xlane.f32.xlu1 %v7245_v51  ;;  %v7242_v11 = vsel %vm533_vm3, %v11304_v47, 0.0 }
0x3441   :  { %7243 = vadd.xlane.f32.xlu0 %v7242_v11 }
0x3442   :  { %v11306_v49 = vpop.eup %11305 }
0x3443   :  { %v11308_v27 = vpop.eup %11307  ;;  %v7251_v36 = vsel %vm533_vm3, %v11306_v49, 0.0 }
0x3444   :  { %7252 = vadd.xlane.f32.xlu1 %v7251_v36  ;;  %v7248_v24 = vsel %vm533_vm3, %v11308_v27, 0.0 }
0x3445   :  { %7249 = vadd.xlane.f32.xlu0 %v7248_v24 }
0x3455   :  { %7277 = vrot.lane.b32.xlu1 %v7270_v26, %s11397_s28  ;;  %v14183_v26 = vld [vmem:[%s14359_s11 + $0x10] sm:$0xff] }
0x3456   :  { %v7451_v56 = vrot.slane %v14183_v26, %v12288_v58 }
0x3459   :  { %7279 = vrot.lane.b32.xlu1 %v7271_v39, %s11397_s28 }
0x345b   :  { %7275 = vrot.lane.b32.xlu0 %v7269_v15, %s11397_s28 }
0x34c8   :  { %v7241_v20 = vpop.xlane.xlu1 %7240 }
0x34c9   :  { %v7238_v16 = vpop.xlane.xlu0 %7237  ;;  %11309 = vrcp.f32 %v7241_v20 }
0x34ca   :  { %11311 = vrcp.f32 %v7238_v16 }
0x34cd   :  { %v7247_v62 = vpop.xlane.xlu1 %7246 }
0x34ce   :  { %v7244_v13 = vpop.xlane.xlu0 %7243  ;;  %11313 = vrcp.f32 %v7247_v62 }
0x34cf   :  { %11315 = vrcp.f32 %v7244_v13 }
0x34d1   :  { %v7253_v17 = vpop.xlane.xlu1 %7252 }
0x34d2   :  { %v7250_v4 = vpop.xlane.xlu0 %7249  ;;  %11317 = vrcp.f32 %v7253_v17 }
0x34d3   :  { %v11310_v18 = vpop.eup %11309  ;;  %11319 = vrcp.f32 %v7250_v4 }
0x34d4   :  { %v11312_v33 = vpop.eup %11311  ;;  %v7261_v63 = vmul.f32 %v11310_v18, %v11298_v42 }
0x34d5   :  { %v7278_v28 = vpop.permute.xlu1 %7277  ;;  %v7260_v32 = vmul.f32 %v11312_v33, %v11300_v5 }
0x34d6   :  { %v7276_v60 = vpop.permute.xlu0 %7275 }
0x34d7   :  { %10294 = vmatpush3.bf16.msra.mxu0 %v7276_v60  ;;  %v7266_v8 = vpack.c.bf16 %v7261_v63, %v7260_v32 }
0x34d8   :  { %10295 = vmatprep.subr.bf16.mxu0 %v11394_v55  ;;  %v11314_v43 = vpop.eup %11313 }
0x34d9   :  { %v7280_v31 = vpop.permute.xlu1 %7279  ;;  %v11316_v30 = vpop.eup %11315  ;;  %v7263_v7 = vmul.f32 %v11314_v43, %v11302_v54 }
0x34da   :  { %v7262_v25 = vmul.f32 %v11316_v30, %v11304_v47 }
0x34db   :  { %10296 = vmatpush3.bf16.msra.mxu0 %v7278_v28 }
0x34dc   :  { %10297 = vmatprep.subr.bf16.mxu0 %v11394_v55  ;;  %v11318_v34 = vpop.eup %11317  ;;  %v7267_v12 = vpack.c.bf16 %v7263_v7, %v7262_v25 }
0x34dd   :  { %v11320_v37 = vpop.eup %11319  ;;  %v7265_v38 = vmul.f32 %v11318_v34, %v11306_v49 }
0x34de   :  { %v7264_v41 = vmul.f32 %v11320_v37, %v11308_v27  ;;  %v10959_v37 = vld [vmem:[%s14357_s9 + $0x80] sm:$0xff]  }
0x34df   :  { %10298 = vmatpush3.bf16.msra.mxu0 %v7280_v31 }
0x34e0   :  { %10327 = vmatprep.subr.bf16.mxu0 %v11394_v55  ;;  %v7268_v10 = vpack.c.bf16 %v7265_v38, %v7264_v41  ;;  %v10961_v41 = vld [vmem:[%s14357_s9 + $0x90] sm:$0xff]  }
0x34e2   :  { %10300 = vmatmul.mubr.msk.bf16.vlgmr.msra.gmra.mrb[252].mxu0 %vm533_vm3, %v7266_v8 }
0x34e3   :  { %10303 = vmatprep.mubr.msk.bf16.mxu0 %vm11395_vm0, %v11394_v55  ;;  %10328 = vmatpush3.bf16.msra.mxu0 %v10959_v37 }
0x34e4   :  { %10329 = vmatprep.subr.bf16.mxu0 %v11394_v55 }
0x34ea   :  { %10304 = vmatmul.mubr.msk.bf16.gmra.mrb[0].mxu0 %vm533_vm3, %v7267_v12 }
0x34eb   :  { %10307 = vmatprep.mubr.msk.bf16.mxu0 %vm11395_vm0, %v11394_v55 }
0x34f2   :  { %10308 = vmatmul.mubr.msk.bf16.gmra.mrb[4].mxu0 %vm533_vm3, %v7268_v10  ;;  %v10962_v10 = vld [vmem:[%s14357_s9 + $0x98] sm:$0xff]  }
0x34f3   :  { %10343 = vmatprep.mubr.msk.bf16.mxu0 %vm11395_vm0, %v11394_v55 }
0x35b5   :  { %v7327_v0 = vpop.f32.mrb[252].mxu0 }
0x35b6   :  { %v10301_v2 = vpop.f32.mrb[253].mxu0 }
0x35b7   :  { %v7330_v23 = vpop.f32.mrb[254].mxu0  ;;  %v10964_v2 = vld [vmem:[%s14357_s9 + $0xa8] sm:$0xff]  }
0x35b8   :  { %v7350_v42 = vpack.c.bf16 %v7330_v23, %v7327_v0  ;;  %v10302_v5 = vpop.f32.mrb[255].mxu0  ;;  %v10963_v0 = vld [vmem:[%s14357_s9 + $0xa0] sm:$0xff]   ;;  %v10965_v23 = vld [vmem:[%s14357_s9 + $0xb0] sm:$0xff]  }
0x35b9   :  { %v10967_v5 = vld [vmem:[%s14358_s10 + $0x80] sm:$0xff]  }
0x35ba   :  { %10316 = vmatmul.mubr.msk.bf16.vlgmr.msra.gmra.mrb[20].mxu1 %vm401_vm1, %v7350_v42  ;;  %v10966_v42 = vld [vmem:[%s14357_s9 + $0xb8] sm:$0xff]  }
0x35bb   :  { %10319 = vmatprep.mubr.msk.bf16.mxu1 %vm11395_vm0, %v11394_v55  ;;  %10356 = vmatpush3.bf16.msra.mxu1 %v10967_v5 }
0x35bc   :  { %10357 = vmatprep.subr.bf16.mxu1 %v11394_v55 }
0x35bd   :  { %v7335_v53 = vpop.f32.mrb[0].mxu0 }
0x35be   :  { %v10305_v22 = vpop.f32.mrb[1].mxu0 }
0x35bf   :  { %v7338_v54 = vpop.f32.mrb[2].mxu0  ;;  %v10969_v22 = vld [vmem:[%s14358_s10 + $0x90] sm:$0xff]  }
0x35c0   :  { %v7351_v47 = vpack.c.bf16 %v7338_v54, %v7335_v53  ;;  %v10306_v51 = vpop.f32.mrb[3].mxu0  ;;  %v10968_v53 = vld [vmem:[%s14358_s10 + $0x88] sm:$0xff]   ;;  %v10970_v54 = vld [vmem:[%s14358_s10 + $0x98] sm:$0xff]  }
0x35c1   :  { %10358 = vmatpush3.bf16.msra.mxu1 %v10968_v53  ;;  %v10972_v51 = vld [vmem:[%s14358_s10 + $0xa8] sm:$0xff]   ;;  %v7549_v53 = vrot.slane %v14183_v26, %v12402_v59 }
0x35c2   :  { %10320 = vmatmul.mubr.msk.bf16.gmra.mrb[24].mxu1 %vm401_vm1, %v7351_v47  ;;  %10359 = vmatprep.subr.bf16.mxu1 %v11394_v55  ;;  %v10971_v47 = vld [vmem:[%s14358_s10 + $0xa0] sm:$0xff]  }
0x35c3   :  { %10323 = vmatprep.mubr.msk.bf16.mxu1 %vm11395_vm0, %v11394_v55 }
0x35c5   :  { %v7343_v11 = vpop.f32.mrb[4].mxu0  ;;  %10360 = vmatpush3.bf16.msra.mxu1 %v10969_v22 }
0x35c6   :  { %v10309_v49 = vpop.f32.mrb[5].mxu0  ;;  %10361 = vmatprep.subr.bf16.mxu1 %v11394_v55 }
0x35c7   :  { %v7346_v27 = vpop.f32.mrb[6].mxu0 }
0x35c8   :  { %v7352_v36 = vpack.c.bf16 %v7346_v27, %v7343_v11  ;;  %v10310_v24 = vpop.f32.mrb[7].mxu0 }
0x35c9   :  { %10362 = vmatpush3.bf16.msra.mxu1 %v10970_v54 }
0x35ca   :  { %10324 = vmatmul.mubr.msk.bf16.gmra.mrb[28].mxu1 %vm401_vm1, %v7352_v36  ;;  %10363 = vmatprep.subr.bf16.mxu1 %v11394_v55 }
0x35cb   :  { %10371 = vmatprep.mubr.msk.bf16.mxu1 %vm11395_vm0, %v11394_v55 }
0x35cd   :  { %10364 = vmatpush3.bf16.msra.mxu1 %v10971_v47 }
0x35ce   :  { %10365 = vmatprep.subr.bf16.mxu1 %v11394_v55 }
0x35d1   :  { %10366 = vmatpush3.bf16.msra.mxu1 %v10972_v51 }
0x35d2   :  { %10367 = vmatprep.subr.bf16.mxu1 %v11394_v55 }
0x368d   :  { %v7413_v39 = vpop.f32.mrb[20].mxu1 }
0x368e   :  { %v7436_v15 = vadd.f32 %v7413_v39, %v14087_v50  ;;  %v10317_v29 = vpop.f32.mrb[21].mxu1 }
0x368f   :  { %v7416_v20 = vpop.f32.mrb[22].mxu1 }
0x3690   :  { %v7442_v16 = vadd.f32 %v7436_v15, %v13473_v45  ;;  %v7437_v62 = vadd.f32 %v7416_v20, %v14092_v52  ;;  %v10318_v13 = vpop.f32.mrb[23].mxu1 }
0x3692   :  { %v7443_v17 = vadd.f32 %v7437_v62, %v13475_v44  ;;  %v14191_v4 = vadd.f32 %v7451_v56, %v7442_v16 }
0x3694   :  { %7458 = vadd.xlane.f32.xlu0 %v14191_v4  ;;  %v14194_v60 = vadd.f32 %v7451_v56, %v7443_v17  ;;  %v7476_v45 = vmul.f32 %v14191_v4, %v14191_v4 }
0x3695   :  { %v7421_v18 = vpop.f32.mrb[24].mxu1 }
0x3696   :  { %v7438_v50 = vadd.f32 %v7421_v18, %v14101_v6  ;;  %7460 = vadd.xlane.f32.xlu1 %v14194_v60  ;;  %v10321_v58 = vpop.f32.mrb[25].mxu1  ;;  %v7477_v32 = vmul.f32 %v14194_v60, %v14194_v60 }
0x3697   :  { %v7424_v28 = vpop.f32.mrb[26].mxu1 }
0x3698   :  { %v7444_v52 = vadd.f32 %v7438_v50, %v13493_v61  ;;  %v7439_v44 = vadd.f32 %v7424_v28, %v14104_v48  ;;  %7482 = vadd.xlane.f32.xlu0 %v7476_v45  ;;  %v10322_v33 = vpop.f32.mrb[27].mxu1 }
0x369a   :  { %v7445_v63 = vadd.f32 %v7439_v44, %v13495_v19  ;;  %v14205_v31 = vadd.f32 %v7451_v56, %v7444_v52 }
0x369c   :  { %7484 = vadd.xlane.f32.xlu0 %v7477_v32  ;;  %7462 = vadd.xlane.f32.xlu1 %v14205_v31  ;;  %v7478_v61 = vmul.f32 %v14205_v31, %v14205_v31  ;;  %v14211_v48 = vadd.f32 %v7451_v56, %v7445_v63 }
0x369d   :  { %v7429_v6 = vpop.f32.mrb[28].mxu1 }
0x369e   :  { %v7440_v43 = vadd.f32 %v7429_v6, %v14107_v57  ;;  %v10325_v8 = vpop.f32.mrb[29].mxu1  ;;  %v7479_v57 = vmul.f32 %v14211_v48, %v14211_v48 }
0x369f   :  { %v7432_v30 = vpop.f32.mrb[30].mxu1 }
0x36a0   :  { %v7446_v19 = vadd.f32 %v7440_v43, %v13513_v9  ;;  %v7441_v7 = vadd.f32 %v7432_v30, %v14110_v46  ;;  %7486 = vadd.xlane.f32.xlu1 %v7478_v61  ;;  %7464 = vadd.xlane.f32.xlu0 %v14211_v48  ;;  %v10326_v25 = vpop.f32.mrb[31].mxu1 }
0x36a2   :  { %v7447_v34 = vadd.f32 %v7441_v7, %v13515_v3  ;;  %v14219_v12 = vadd.f32 %v7451_v56, %v7446_v19  ;;  %v10960_v3 = vld [vmem:[%s14357_s9 + $0x88] sm:$0xff]  }
0x36a3   :  { %10330 = vmatpush3.bf16.msra.mxu0 %v10960_v3 }
0x36a4   :  { %7488 = vadd.xlane.f32.xlu0 %v7479_v57  ;;  %7466 = vadd.xlane.f32.xlu1 %v14219_v12  ;;  %v7480_v9 = vmul.f32 %v14219_v12, %v14219_v12  ;;  %v14227_v46 = vadd.f32 %v7451_v56, %v7447_v34 }
0x36a5   :  { %10331 = vmatprep.subr.bf16.mxu0 %v11394_v55 }
0x36a6   :  { %v7481_v38 = vmul.f32 %v14227_v46, %v14227_v46 }
0x36a7   :  { %10332 = vmatpush3.bf16.msra.mxu0 %v10961_v41 }
0x36a8   :  { %7490 = vadd.xlane.f32.xlu1 %v7480_v9  ;;  %7468 = vadd.xlane.f32.xlu0 %v14227_v46 }
0x36a9   :  { %10333 = vmatprep.subr.bf16.mxu0 %v11394_v55 }
0x36ab   :  { %10334 = vmatpush3.bf16.msra.mxu0 %v10962_v10 }
0x36ac   :  { %7492 = vadd.xlane.f32.xlu0 %v7481_v38  ;;  %10335 = vmatprep.subr.bf16.mxu0 %v11394_v55  ;;  %v7539_v38 = vrot.slane %v14183_v26, %v12396_v35 }
0x36af   :  { %10336 = vmatpush3.bf16.msra.mxu0 %v10963_v0 }
0x36b0   :  { %10337 = vmatprep.subr.bf16.mxu0 %v11394_v55 }
0x36b3   :  { %10338 = vmatpush3.bf16.msra.mxu0 %v10964_v2 }
0x36b4   :  { %10339 = vmatprep.subr.bf16.mxu0 %v11394_v55 }
0x36b7   :  { %10340 = vmatpush3.bf16.msra.mxu0 %v10965_v23 }
0x36b8   :  { %10341 = vmatprep.subr.bf16.mxu0 %v11394_v55 }
0x36bb   :  { %10342 = vmatpush3.bf16.msra.mxu0 %v10966_v42 }
0x36bc   :  { %10383 = vmatprep.subr.mxu0 %v11394_v55 }
0x3721   :  { %v7459_v11 = vpop.xlane.xlu0 %7458 }
0x3722   :  { %v7470_v49 = vmul.f32 0.0078125, %v7459_v11 }
0x3723   :  { %v7461_v27 = vpop.xlane.xlu1 %7460 }
0x3724   :  { %v7506_v24 = vmul.f32 %v7470_v49, %v7470_v49  ;;  %v7471_v39 = vmul.f32 0.0078125, %v7461_v27  ;;  %v7500_v19 = vsub.f32 %v14191_v4, %v7470_v49 }
0x3725   :  { %v7483_v36 = vpop.xlane.xlu0 %7482 }
0x3726   :  { %v7494_v15 = vmul.f32 0.0078125, %v7483_v36  ;;  %v7507_v16 = vmul.f32 %v7471_v39, %v7471_v39  ;;  %v7501_v0 = vsub.f32 %v14194_v60, %v7471_v39 }
0x3728   :  { %v7512_v29 = vsub.f32 %v7494_v15, %v7506_v24 }
0x3729   :  { %v7485_v56 = vpop.xlane.xlu0 %7484  ;;  %v7463_v20 = vpop.xlane.xlu1 %7462 }
0x372a   :  { %v7518_v62 = vadd.f32 1e-05, %v7512_v29  ;;  %v7495_v13 = vmul.f32 0.0078125, %v7485_v56  ;;  %v7472_v17 = vmul.f32 0.0078125, %v7463_v20 }
0x372c   :  { %11321 = vrsqrt.f32 %v7518_v62  ;;  %v7513_v18 = vsub.f32 %v7495_v13, %v7507_v16  ;;  %v7508_v28 = vmul.f32 %v7472_v17, %v7472_v17  ;;  %v7502_v35 = vsub.f32 %v14205_v31, %v7472_v17 }
0x372d   :  { %v7487_v50 = vpop.xlane.xlu1 %7486  ;;  %v7465_v58 = vpop.xlane.xlu0 %7464 }
0x372e   :  { %v7519_v45 = vadd.f32 1e-05, %v7513_v18  ;;  %v7496_v52 = vmul.f32 0.0078125, %v7487_v50  ;;  %v7473_v44 = vmul.f32 0.0078125, %v7465_v58 }
0x3730   :  { %11323 = vrsqrt.f32 %v7519_v45  ;;  %v7514_v33 = vsub.f32 %v7496_v52, %v7508_v28  ;;  %v7509_v43 = vmul.f32 %v7473_v44, %v7473_v44  ;;  %v7503_v39 = vsub.f32 %v14211_v48, %v7473_v44  ;;  %v10973_v44 = vld [vmem:[%s14358_s10 + $0xb0] sm:$0xff]  }
0x3731   :  { %v7489_v63 = vpop.xlane.xlu0 %7488  ;;  %v7467_v32 = vpop.xlane.xlu1 %7466  ;;  %10368 = vmatpush3.bf16.msra.mxu1 %v10973_v44 }
0x3732   :  { %v7520_v6 = vadd.f32 1e-05, %v7514_v33  ;;  %v7497_v8 = vmul.f32 0.0078125, %v7489_v63  ;;  %v7474_v61 = vmul.f32 0.0078125, %v7467_v32  ;;  %10369 = vmatprep.subr.bf16.mxu1 %v11394_v55  ;;  %v7579_v33 = vrot.slane %v14183_v26, %v12443_v40 }
0x3734   :  { %11325 = vrsqrt.f32 %v7520_v6  ;;  %v7515_v30 = vsub.f32 %v7497_v8, %v7509_v43  ;;  %v7510_v37 = vmul.f32 %v7474_v61, %v7474_v61  ;;  %v7504_v20 = vsub.f32 %v14219_v12, %v7474_v61 }
0x3735   :  { %v7491_v7 = vpop.xlane.xlu1 %7490  ;;  %v7469_v25 = vpop.xlane.xlu0 %7468 }
0x3736   :  { %v11322_v34 = vpop.eup %11321  ;;  %v7521_v57 = vadd.f32 1e-05, %v7515_v30  ;;  %v7498_v9 = vmul.f32 0.0078125, %v7491_v7  ;;  %v7475_v3 = vmul.f32 0.0078125, %v7469_v25 }
0x3737   :  { %v7530_v41 = vmul.f32 %v11322_v34, %v7500_v19 }
0x3738   :  { %11327 = vrsqrt.f32 %v7521_v57  ;;  %v7516_v10 = vsub.f32 %v7498_v9, %v7510_v37  ;;  %v7511_v5 = vmul.f32 %v7475_v3, %v7475_v3  ;;  %v7505_v18 = vsub.f32 %v14227_v46, %v7475_v3  ;;  %v10974_v46 = vld [vmem:[%s14358_s10 + $0xb8] sm:$0xff]  }
0x3739   :  { %v7493_v2 = vpop.xlane.xlu0 %7492  ;;  %v7540_v22 = vmul.f32 %v7539_v38, %v7530_v41  ;;  %10370 = vmatpush3.bf16.msra.mxu1 %v10974_v46 }
0x373a   :  { %v11324_v23 = vpop.eup %11323  ;;  %v7522_v42 = vadd.f32 1e-05, %v7516_v10  ;;  %v7499_v4 = vmul.f32 0.0078125, %v7493_v2 }
0x373b   :  { %v7531_v54 = vmul.f32 %v11324_v23, %v7501_v0  ;;  %v7550_v27 = vadd.f32 %v7549_v53, %v7540_v22 }
0x373c   :  { %11329 = vrsqrt.f32 %v7522_v42  ;;  %v7517_v47 = vsub.f32 %v7499_v4, %v7511_v5 }
0x373d   :  { %v7541_v51 = vmul.f32 %v7539_v38, %v7531_v54 }
0x373e   :  { %v11326_v11 = vpop.eup %11325  ;;  %v7523_v49 = vadd.f32 1e-05, %v7517_v47 }
0x373f   :  { %v7551_v36 = vadd.f32 %v7549_v53, %v7541_v51  ;;  %v7532_v60 = vmul.f32 %v11326_v11, %v7502_v35  ;;  %v7714_v11 = vrot.slane %v14183_v26, %v12456_v1  ;;  %v7856_v1 = vld [vmem:[%s14360_s12] sm:$0xff] }
0x3740   :  { %11331 = vrsqrt.f32 %v7523_v49 }
0x3741   :  { %v7556_v24 = vpack.c.bf16 %v7551_v36, %v7550_v27  ;;  %v7542_v29 = vmul.f32 %v7539_v38, %v7532_v60 }
0x3742   :  { %v11328_v15 = vpop.eup %11327 }
0x3743   :  { %v7533_v56 = vmul.f32 %v11328_v15, %v7503_v39  ;;  %10344 = vmatmul.mubr.bf16.vlgmr.msra.gmra.mrb[8].mxu0 %v7556_v24  ;;  %v14296_v16 = vadd.f32 %v7549_v53, %v7542_v29 }
0x3744   :  { %10347 = vmatprep.mubr.msk.bf16.mxu0 %vm11395_vm0, %v11394_v55  ;;  %10384 = vmatpush3.xpose.msra.mxu0 %v7856_v1 }
0x3745   :  { %v7543_v59 = vmul.f32 %v7539_v38, %v7533_v56  ;;  %10388 = vmatprep.subr.mxu0 %v11394_v55 }
0x3746   :  { %v11330_v31 = vpop.eup %11329 }
0x3747   :  { %v7553_v62 = vadd.f32 %v7549_v53, %v7543_v59  ;;  %v7534_v13 = vmul.f32 %v11330_v31, %v7504_v20 }
0x3749   :  { %v7557_v17 = vpack.c.bf16 %v7553_v62, %v14296_v16  ;;  %v7544_v50 = vmul.f32 %v7539_v38, %v7534_v13 }
0x374a   :  { %v11332_v48 = vpop.eup %11331 }
0x374b   :  { %v7535_v58 = vmul.f32 %v11332_v48, %v7505_v18  ;;  %10348 = vmatmul.mubr.bf16.gmra.mrb[12].mxu0 %v7557_v17  ;;  %v7554_v28 = vadd.f32 %v7549_v53, %v7544_v50 }
0x374c   :  { %10351 = vmatprep.mubr.msk.bf16.mxu0 %vm11395_vm0, %v11394_v55 }
0x374d   :  { %v7545_v45 = vmul.f32 %v7539_v38, %v7535_v58 }
0x374f   :  { %v7555_v52 = vadd.f32 %v7549_v53, %v7545_v45 }
0x3751   :  { %v7558_v12 = vpack.c.bf16 %v7555_v52, %v7554_v28 }
0x3753   :  { %10352 = vmatmul.mubr.bf16.gmra.mrb[16].mxu0 %v7558_v12 }
0x3754   :  { %10385 = vmatprep.mubr.msk.f32.mxu0 %vm11395_vm0, %v11394_v55 }
0x3816   :  { %v7662_v63 = vpop.f32.mrb[8].mxu0 }
0x3817   :  { %v7663_v32 = vadd.f32 %v7662_v63, %v7579_v33  ;;  %v10345_v6 = vpop.f32.mrb[9].mxu0 }
0x3818   :  { %v7665_v43 = vpop.f32.mrb[10].mxu0  ;;  %v7847_v6 = vrot.slane %v14183_v26, %v12525_v14  ;;  %v7927_v14 = vld [vmem:[%s14362_s14] sm:$0xff] }
0x3819   :  { %v7666_v8 = vadd.f32 %v7665_v43, %v7579_v33  ;;  %v10346_v61 = vpop.f32.mrb[11].mxu0  ;;  %v7685_v30 = vmax.f32 %v7663_v32, 0.0 }
0x381b   :  { %v7686_v19 = vmax.f32 %v7666_v8, 0.0  ;;  %v7853_v8 = vrot.slane %v14183_v26, %v12531_v21 }
0x381d   :  { %v7691_v7 = vpack.c.bf16 %v7686_v19, %v7685_v30 }
0x381e   :  { %v7670_v25 = vpop.f32.mrb[12].mxu0 }
0x381f   :  { %v7671_v34 = vadd.f32 %v7670_v25, %v7579_v33  ;;  %v10349_v57 = vpop.f32.mrb[13].mxu0  ;;  %10372 = vmatmul.mubr.bf16.vlgmr.msra.gmra.mrb[32].mxu1 %v7691_v7 }
0x3820   :  { %v7673_v37 = vpop.f32.mrb[14].mxu0  ;;  %10375 = vmatprep.mubr.msk.bf16.mxu1 %vm11395_vm0, %v11394_v55 }
0x3821   :  { %v7674_v9 = vadd.f32 %v7673_v37, %v7579_v33  ;;  %v10350_v3 = vpop.f32.mrb[15].mxu0  ;;  %v7687_v40 = vmax.f32 %v7671_v34, 0.0 }
0x3823   :  { %v7688_v38 = vmax.f32 %v7674_v9, 0.0 }
0x3825   :  { %v7692_v41 = vpack.c.bf16 %v7688_v38, %v7687_v40 }
0x3826   :  { %v7678_v10 = vpop.f32.mrb[16].mxu0 }
0x3827   :  { %v7679_v0 = vadd.f32 %v7678_v10, %v7579_v33  ;;  %v10353_v2 = vpop.f32.mrb[17].mxu0  ;;  %10376 = vmatmul.mubr.bf16.gmra.mrb[36].mxu1 %v7692_v41 }
0x3828   :  { %v7681_v23 = vpop.f32.mrb[18].mxu0  ;;  %10379 = vmatprep.mubr.msk.bf16.mxu1 %vm11395_vm0, %v11394_v55 }
0x3829   :  { %v7682_v42 = vadd.f32 %v7681_v23, %v7579_v33  ;;  %v10354_v5 = vpop.f32.mrb[19].mxu0  ;;  %v7689_v4 = vmax.f32 %v7679_v0, 0.0 }
0x382b   :  { %v7690_v53 = vmax.f32 %v7682_v42, 0.0 }
0x382d   :  { %v7693_v22 = vpack.c.bf16 %v7690_v53, %v7689_v4 }
0x382f   :  { %10380 = vmatmul.mubr.bf16.gmra.mrb[40].mxu1 %v7693_v22 }
0x38f2   :  { %v7797_v54 = vpop.f32.mrb[32].mxu1 }
0x38f3   :  { %v10373_v47 = vpop.f32.mrb[33].mxu1 }
0x38f4   :  { %v7799_v51 = vpop.f32.mrb[34].mxu1 }
0x38f5   :  { %v10374_v35 = vpop.f32.mrb[35].mxu1 }
0x38f6   :  { %v8740_v35 = vld [vmem:[%s14361_s13] ss:$0 sm:$0xff] }
0x38fa   :  { %v7803_v49 = vpop.f32.mrb[36].mxu1 }
0x38fb   :  { %v7804_v27 = vadd.f32 %v7803_v49, %v7714_v11  ;;  %v10377_v36 = vpop.f32.mrb[37].mxu1 }
0x38fc   :  { %v7806_v60 = vpop.f32.mrb[38].mxu1 }
0x38fd   :  { %v7816_v24 = vadd.f32 %v7804_v27, %v14296_v16  ;;  %v10378_v39 = vpop.f32.mrb[39].mxu1 }
0x38ff   :  { %7818 = vadd.xlane.f32.xlu1 %v7816_v24  ;;  %v7824_v15 = vmul.f32 %v7816_v24, %v7816_v24 }
0x3901   :  { %7826 = vadd.xlane.f32.xlu0 %v7824_v15 }
0x3902   :  { %v7810_v29 = vpop.f32.mrb[40].mxu1 }
0x3903   :  { %v10381_v56 = vpop.f32.mrb[41].mxu1 }
0x3904   :  { %v7812_v59 = vpop.f32.mrb[42].mxu1 }
0x3905   :  { %v7813_v20 = vadd.f32 %v7812_v59, %v7714_v11  ;;  %v10382_v31 = vpop.f32.mrb[43].mxu1 }
0x3907   :  { %v7817_v62 = vadd.f32 %v7813_v20, %v7555_v52 }
0x3909   :  { %7820 = vadd.xlane.f32.xlu1 %v7817_v62  ;;  %v7825_v13 = vmul.f32 %v7817_v62, %v7817_v62 }
0x390b   :  { %7828 = vadd.xlane.f32.xlu0 %v7825_v13 }
0x398c   :  { %v7819_v16 = vpop.xlane.xlu1 %7818 }
0x398d   :  { %v7822_v17 = vmul.f32 0.0078125, %v7819_v16 }
0x398e   :  { %v7827_v18 = vpop.xlane.xlu0 %7826 }
0x398f   :  { %v7834_v48 = vmul.f32 %v7822_v17, %v7822_v17  ;;  %v7830_v50 = vmul.f32 0.0078125, %v7827_v18  ;;  %v7832_v32 = vsub.f32 %v7816_v24, %v7822_v17 }
0x3991   :  { %v7836_v58 = vsub.f32 %v7830_v50, %v7834_v48 }
0x3993   :  { %v7838_v45 = vadd.f32 1e-05, %v7836_v58 }
0x3995   :  { %11333 = vrsqrt.f32 %v7838_v45 }
0x3996   :  { %v7821_v28 = vpop.xlane.xlu1 %7820 }
0x3997   :  { %v7823_v52 = vmul.f32 0.0078125, %v7821_v28 }
0x3998   :  { %v7829_v12 = vpop.xlane.xlu0 %7828 }
0x3999   :  { %v7835_v44 = vmul.f32 %v7823_v52, %v7823_v52  ;;  %v7831_v46 = vmul.f32 0.0078125, %v7829_v12  ;;  %v7833_v7 = vsub.f32 %v7817_v62, %v7823_v52 }
0x399b   :  { %v7837_v33 = vsub.f32 %v7831_v46, %v7835_v44 }
0x399d   :  { %v7839_v63 = vadd.f32 1e-05, %v7837_v33 }
0x399f   :  { %v11334_v43 = vpop.eup %11333  ;;  %11335 = vrsqrt.f32 %v7839_v63 }
0x39a0   :  { %v7842_v61 = vmul.f32 %v11334_v43, %v7832_v32 }
0x39a2   :  { %v7848_v30 = vmul.f32 %v7847_v6, %v7842_v61 }
0x39a4   :  { %v7854_v19 = vadd.f32 %v7853_v8, %v7848_v30 }
0x39a6   :  { %10386 = vmatmul.mubr.f32.vlgmr.msra.gmra.mrb[20].mxu0 %v7854_v19 }
0x39a7   :  { %10389 = vmatpush3.xpose.msra.mxu0 %v7856_v1  ;;  %10390 = vmatprep.mubr.msk.f32.mxu0 %vm11395_vm0, %v11394_v55 }
0x39a9   :  { %v11336_v25 = vpop.eup %11335 }
0x39aa   :  { %v7843_v34 = vmul.f32 %v11336_v25, %v7833_v7 }
0x39ac   :  { %v7849_v57 = vmul.f32 %v7847_v6, %v7843_v34 }
0x39ae   :  { %v7855_v37 = vadd.f32 %v7853_v8, %v7849_v57 }
0x39b0   :  { %10391 = vmatmul.mubr.f32.vlgmr.msra.gmra.mrb[22].mxu0 %v7855_v37 }
0x3a79   :  { %v7923_v9 = vpop.f32.mrb[20].mxu0 }
0x3a7a   :  { %v7928_v21 = vmul.f32 %v7927_v14, %v7923_v9  ;;  %v10387_v26 = vpop.f32.mrb[21].mxu0 }
0x3a7c   :  { %v7930_v3 = vsel %vm7929_vm4, %v7928_v21, 0.0 }
0x3a7d   :  { %v7931_v40 = vrot.slane %v7930_v3, 4 }
0x3a7f   :  { %v7932_v38 = vadd.f32 %v7931_v40, %v7930_v3 }
0x3a81   :  { %v7933_v0 = vrot.slane %v7932_v38, 2 }
0x3a83   :  { %v8003_v41 = vpop.f32.mrb[22].mxu0  ;;  %v7934_v42 = vadd.f32 %v7933_v0, %v7932_v38 }
0x3a84   :  { %v8007_v10 = vmul.f32 %v8003_v41, %v7927_v14  ;;  %v10392_v55 = vpop.f32.mrb[23].mxu0 }
0x3a85   :  { %v7935_v53 = vrot.slane %v7934_v42, 1 }
0x3a86   :  { %v8008_v2 = vsel %vm7929_vm4, %v8007_v10, 0.0 }
0x3a87   :  { %v8009_v23 = vrot.slane %v8008_v2, 4  ;;  %v7936_v47 = vadd.f32 %v7935_v53, %v7934_v42 }
0x3a89   :  { %v8010_v5 = vadd.f32 %v8009_v23, %v8008_v2 }
0x3a8b   :  { %v8011_v4 = vrot.slane %v8010_v5, 2 }
0x3a8d   :  { %v8012_v22 = vadd.f32 %v8011_v4, %v8010_v5 }
0x3a8f   :  { %v8013_v54 = vrot.slane %v8012_v22, 1 }
0x3a91   :  { %v8014_v51 = vadd.f32 %v8013_v54, %v8012_v22 }
0x3a93   :  { %v8016_v11 = vsel %vm8015_vm5, %v7936_v47, %v8014_v51 }
0x3a94   :  { %v8024_v49 = vadd.f32 %v8740_v35, %v8016_v11 }
0x3a96   :  { %8026 = vst.msk [vmem:[#allocation2] sm:$0x3] %vm8025_vm6, %v8024_v49 }
0x3a97   :  { %11378 = shalt.err (!%p11375_p4)
}
0x3a98   :  { %s11379_s17 = scalar_lea.hbm %s14363_s15, 32 }
0x3a99   :  { %p11380_p5 = scmp.ne.s32.totalorder %s14363_s15, %s11379_s17  ;;  %p11383_p6 = scmp.lt.u32.totalorder %s11379_s17, %s14363_s15 }
0x3a9b   :  { %p11385_p7 = pnand %p11383_p6, %p11380_p5 }
0x3a9d   :  { %11388 = shalt.err (!%p11385_p7)
}
0x3a9e   :  { %8036 = dma.vmem_to_hbm [thread:$0]  %s8034_s0, 32, %s14363_s15, [#allocation3]  }
0x3a9f   :  { %11389 = dma.done.wait [#allocation3], 32  }
0x3aa0   :  { %11390 = vsyncadd [#allocation3], 4294967264 }
0x3aa1   :  { %8040 = vsyncpa [#allocation3], 1 }

</bundles_post_ra>
